<compile_context>
chip_gen: v6e
topology: v6e:2x2x1
jax: 0.10.0
libtpu: 0.0.40
codegen_flags: <defaults>
</compile_context>

<pallas_src>
import functools

import numpy as np
import jax
import jax.numpy as jnp
from jax.experimental import pallas as pl
from jax.experimental.pallas import tpu as pltpu

_SQRT2 = 2.0 ** 0.5
_LN_EPS = 1e-12              # matches LayerNorm(eps=1e-12) in the PyTorch module
_GELU_C = 0.7978845608028654  # sqrt(2/pi)


# ----------------------------------------------------------------------------
# Small math helpers (trace-time, used inside kernels)
# ----------------------------------------------------------------------------
def _fast_recip(x):
    # EUP approximate reciprocal + one Newton step: ~f32-accurate, off the VALU.
    r = pl.reciprocal(x, approx=True)
    return r * (2.0 - x * r)


def _gelu_tanh(x):
    # tanh-approximate GELU: one EUP tanh + a few FMAs (replaces erf poly).
    return 0.5 * x * (1.0 + jnp.tanh(_GELU_C * (x + 0.044715 * x * x * x)))


def _round_up(x, m):
    return ((x + m - 1) // m) * m


def _choose_tile(dim, max_tile, quantum):
    """Return (tile, padded_dim).  Prefers an exact divisor tile (no padding);
    otherwise falls back to a quantum-aligned tile with zero padding instead of
    a silent full-dim block."""
    if dim <= max_tile:
        return dim, dim
    t = (max_tile // quantum) * quantum
    cand = t
    while cand >= quantum:
        if dim % cand == 0:
            return cand, dim
        cand -= quantum
    return t, _round_up(dim, t)


def _divisor_tile(dim, max_tile, quantum):
    """Largest divisor tile <= max_tile that is a multiple of quantum; falls
    back to the full dim (used for the attention query axis: keys must not be
    padded)."""
    if dim <= max_tile:
        return dim
    t = (max_tile // quantum) * quantum
    while t >= quantum:
        if dim % t == 0:
            return t
        t -= quantum
    return dim


def _mosaic_params(dim_sem, vmem_limit_bytes=None):
    kw = dict(dimension_semantics=dim_sem)
    if vmem_limit_bytes is not None:
        kw["vmem_limit_bytes"] = vmem_limit_bytes
    return pltpu.CompilerParams(**kw)


# ----------------------------------------------------------------------------
# Kernel 1: tiled linear  y = x @ w + b   (used for the fused QKV projection)
# ----------------------------------------------------------------------------
def _linear_kernel(x_ref, w_ref, b_ref, o_ref, acc_ref):
    k = pl.program_id(2)

    @pl.when(k == 0)
    def _():
        acc_ref[...] = jnp.zeros_like(acc_ref)

    acc_ref[...] += jnp.dot(x_ref[...], w_ref[...],
                            preferred_element_type=jnp.float32)

    @pl.when(k == pl.num_programs(2) - 1)
    def _():
        o_ref[...] = (acc_ref[...]
                      + b_ref[...].astype(jnp.float32)).astype(o_ref.dtype)


def linear_pallas(x, w, b, out_dtype=None, tm=512, tn=512, tk=512,
                  vmem_limit_bytes=None):
    """x:(M,K) w:(K,N) b:(N,) -> (M,N), f32 accumulation.
    Pads non-aligned dims with zeros and slices the result back."""
    M, K = x.shape
    N = w.shape[1]
    out_dtype = out_dtype or x.dtype
    tm, Mp = _choose_tile(M, tm, 8)
    tn, Np = _choose_tile(N, tn, 128)
    tk, Kp = _choose_tile(K, tk, 128)
    if Mp != M or Kp != K:
        x = jnp.pad(x, ((0, Mp - M), (0, Kp - K)))
    if Kp != K or Np != N:
        w = jnp.pad(w, ((0, Kp - K), (0, Np - N)))
    b2d = b.reshape(1, N)
    if Np != N:
        b2d = jnp.pad(b2d, ((0, 0), (0, Np - N)))

    grid = (Mp // tm, Np // tn, Kp // tk)
    out = pl.pallas_call(
        _linear_kernel,
        out_shape=jax.ShapeDtypeStruct((Mp, Np), out_dtype),
        grid=grid,
        in_specs=[
            pl.BlockSpec((tm, tk), lambda i, j, k: (i, k)),
            pl.BlockSpec((tk, tn), lambda i, j, k: (k, j)),
            pl.BlockSpec((1, tn), lambda i, j, k: (0, j)),
        ],
        out_specs=pl.BlockSpec((tm, tn), lambda i, j, k: (i, j)),
        scratch_shapes=[pltpu.VMEM((tm, tn), jnp.float32)],
        compiler_params=_mosaic_params(("parallel", "parallel", "arbitrary"),
                                       vmem_limit_bytes),
    )(x, w, b2d)
    if Mp != M or Np != N:
        out = out[:M, :N]
    return out


# ----------------------------------------------------------------------------
# Kernel 2: multi-head self-attention (per batch x query-tile) + residual + LN
#   out = LayerNorm(softmax(QK^T) V  +  residual)
#   (1/sqrt(head_size) is pre-folded into the Q weights.)
# ----------------------------------------------------------------------------
def _attn_addln_kernel(q_ref, k_ref, v_ref, res_ref, g_ref, b_ref, o_ref,
                       att_ref, *, n_heads, eps):
    E = res_ref.shape[-1]
    hs = E // n_heads
    q_all = q_ref[0]          # (tq, E)
    k_all = k_ref[0]          # (N,  E)
    v_all = v_ref[0]          # (N,  E)
    # Static unroll over heads; each head writes its lane slice of the scratch
    # directly (no concatenate copy, bounded live ranges).
    # NOTE(v6e/v7x): QK^T contracts over hs (<=128) => half-depth MXU use; if
    # Mosaic emits a per-head XLU transpose of K, pre-transposing K into
    # scratch once would relieve the 2 XLU units at large N.
    for h in range(n_heads):
        q = q_all[:, h * hs:(h + 1) * hs]
        k = k_all[:, h * hs:(h + 1) * hs]
        v = v_all[:, h * hs:(h + 1) * hs]
        s = jax.lax.dot_general(q, k, (((1,), (1,)), ((), ())),
                                preferred_element_type=jnp.float32)
        s = s - jnp.max(s, axis=-1, keepdims=True)
        e = jnp.exp(s)
        p = e * _fast_recip(jnp.sum(e, axis=-1, keepdims=True))
        att_ref[:, h * hs:(h + 1) * hs] = jnp.dot(
            p.astype(v.dtype), v, preferred_element_type=jnp.float32)

    # fused residual add + norm_img LayerNorm epilogue
    y = att_ref[...] + res_ref[0].astype(jnp.float32)
    u = jnp.mean(y, axis=-1, keepdims=True)
    d = y - u
    var = jnp.mean(d * d, axis=-1, keepdims=True)
    yn = d * jax.lax.rsqrt(var + eps)
    o_ref[0] = (g_ref[...].astype(jnp.float32) * yn
                + b_ref[...].astype(jnp.float32)).astype(o_ref.dtype)


def attention_addln_pallas(qkv, res, gamma, beta, *, n_heads, eps,
                           out_dtype=None, tq=256, vmem_limit_bytes=None):
    """qkv:(B,N,3E) (feature layout [Q|K|V]), res:(B,N,E)
    -> LayerNorm(attention + res): (B,N,E).  Requires E % 128 == 0 and
    E % n_heads == 0 (lane-dense head slices)."""
    B, N, threeE = qkv.shape
    E = threeE // 3
    assert E % n_heads == 0 and (E // n_heads) % 128 == 0, \
        "head_size must be a multiple of 128 for lane-dense head slices"
    out_dtype = out_dtype or res.dtype
    tq = _divisor_tile(N, tq, 8)
    grid = (B, N // tq)
    return pl.pallas_call(
        functools.partial(_attn_addln_kernel, n_heads=n_heads, eps=eps),
        out_shape=jax.ShapeDtypeStruct((B, N, E), out_dtype),
        grid=grid,
        in_specs=[
            pl.BlockSpec((1, tq, E), lambda b, qi: (b, qi, 0)),   # Q rows
            pl.BlockSpec((1, N, E), lambda b, qi: (b, 0, 1)),     # K (all keys)
            pl.BlockSpec((1, N, E), lambda b, qi: (b, 0, 2)),     # V (all keys)
            pl.BlockSpec((1, tq, E), lambda b, qi: (b, qi, 0)),   # residual
            pl.BlockSpec((1, E), lambda b, qi: (0, 0)),           # gamma
            pl.BlockSpec((1, E), lambda b, qi: (0, 0)),           # beta
        ],
        out_specs=pl.BlockSpec((1, tq, E), lambda b, qi: (b, qi, 0)),
        scratch_shapes=[pltpu.VMEM((tq, E), jnp.float32)],
        compiler_params=_mosaic_params(("parallel", "parallel"),
                                       vmem_limit_bytes),
    )(qkv, qkv, qkv, res, gamma.reshape(1, E), beta.reshape(1, E))


# ----------------------------------------------------------------------------
# Kernel 3: fused FCN + AddNorm
#   out = LayerNorm( gelu(x @ w1 + b1) @ w2 + b2 + residual )
#   Grid (M-tile, I-tile): the (M, intermediate) activation never hits HBM.
# ----------------------------------------------------------------------------
def _fcn_addnorm_kernel(x_ref, w1_ref, b1_ref, w2_ref, b2_ref, r_ref,
                        g_ref, be_ref, o_ref, acc_ref, *, eps):
    j = pl.program_id(1)

    @pl.when(j == 0)
    def _():
        acc_ref[...] = jnp.zeros_like(acc_ref)

    h = jnp.dot(x_ref[...], w1_ref[...], preferred_element_type=jnp.float32)
    h = _gelu_tanh(h + b1_ref[...].astype(jnp.float32))
    acc_ref[...] += jnp.dot(h.astype(w2_ref.dtype), w2_ref[...],
                            preferred_element_type=jnp.float32)

    @pl.when(j == pl.num_programs(1) - 1)
    def _():
        y = (acc_ref[...] + b2_ref[...].astype(jnp.float32)
             + r_ref[...].astype(jnp.float32))
        u = jnp.mean(y, axis=-1, keepdims=True)
        d = y - u
        var = jnp.mean(d * d, axis=-1, keepdims=True)
        yn = d * jax.lax.rsqrt(var + eps)
        o_ref[...] = (g_ref[...].astype(jnp.float32) * yn
                      + be_ref[...].astype(jnp.float32)).astype(o_ref.dtype)


def fcn_addnorm_pallas(x, w1, b1, w2, b2, res, gamma, beta, *, eps,
                       out_dtype=None, tm=256, ti=512, vmem_limit_bytes=None):
    """x:(M,E) w1:(E,I) w2:(I,E) res:(M,E) -> LayerNorm(gelu(x@w1+b1)@w2+b2+res).
    The feature dim E stays a full block (LayerNorm needs the whole row)."""
    M, E = x.shape
    I = w1.shape[1]
    out_dtype = out_dtype or res.dtype
    tm, Mp = _choose_tile(M, tm, 8)
    ti, Ip = _choose_tile(I, ti, 128)
    if Mp != M:
        x = jnp.pad(x, ((0, Mp - M), (0, 0)))
        res = jnp.pad(res, ((0, Mp - M), (0, 0)))
    if Ip != I:
        w1 = jnp.pad(w1, ((0, 0), (0, Ip - I)))
        w2 = jnp.pad(w2, ((0, Ip - I), (0, 0)))
        b1 = jnp.pad(b1, (0, Ip - I))

    grid = (Mp // tm, Ip // ti)
    out = pl.pallas_call(
        functools.partial(_fcn_addnorm_kernel, eps=eps),
        out_shape=jax.ShapeDtypeStruct((Mp, E), out_dtype),
        grid=grid,
        in_specs=[
            pl.BlockSpec((tm, E), lambda i, j: (i, 0)),   # x
            pl.BlockSpec((E, ti), lambda i, j: (0, j)),   # w1 tile
            pl.BlockSpec((1, ti), lambda i, j: (0, j)),   # b1 tile
            pl.BlockSpec((ti, E), lambda i, j: (j, 0)),   # w2 tile
            pl.BlockSpec((1, E), lambda i, j: (0, 0)),    # b2
            pl.BlockSpec((tm, E), lambda i, j: (i, 0)),   # residual
            pl.BlockSpec((1, E), lambda i, j: (0, 0)),    # ln gamma
            pl.BlockSpec((1, E), lambda i, j: (0, 0)),    # ln beta
        ],
        out_specs=pl.BlockSpec((tm, E), lambda i, j: (i, 0)),
        scratch_shapes=[pltpu.VMEM((tm, E), jnp.float32)],
        compiler_params=_mosaic_params(("parallel", "arbitrary"),
                                       vmem_limit_bytes),
    )(x, w1, b1.reshape(1, Ip), w2, b2.reshape(1, E), res,
      gamma.reshape(1, E), beta.reshape(1, E))
    if Mp != M:
        out = out[:M]
    return out


# ----------------------------------------------------------------------------
# Parameter init (deterministic, synthetic — replaces BertConfig / checkpoints)
# ----------------------------------------------------------------------------
def init_params(key, embed, inter):
    ks = jax.random.split(key, 5)
    s = 0.02
    p = {}
    p["wq"] = s * jax.random.normal(ks[0], (embed, embed), jnp.float32)
    p["bq"] = jnp.zeros((embed,), jnp.float32)
    p["wk"] = s * jax.random.normal(ks[1], (embed, embed), jnp.float32)
    p["bk"] = jnp.zeros((embed,), jnp.float32)
    p["wv"] = s * jax.random.normal(ks[2], (embed, embed), jnp.float32)
    p["bv"] = jnp.zeros((embed,), jnp.float32)
    p["ln1_g"] = jnp.ones((embed,), jnp.float32)     # norm_img
    p["ln1_b"] = jnp.zeros((embed,), jnp.float32)
    p["w1"] = s * jax.random.normal(ks[3], (embed, inter), jnp.float32)  # FCN
    p["b1"] = jnp.zeros((inter,), jnp.float32)
    p["w2"] = s * jax.random.normal(ks[4], (inter, embed), jnp.float32)  # AddNorm
    p["b2"] = jnp.zeros((embed,), jnp.float32)
    p["ln2_g"] = jnp.ones((embed,), jnp.float32)
    p["ln2_b"] = jnp.zeros((embed,), jnp.float32)
    return p


def prepare_params(p, n_heads, compute_dtype=jnp.float32):
    """One-time kernel-side parameter prep: fuse QKV weights, fold the
    1/sqrt(head_size) softmax scale into wq/bq, and pre-cast the big weight
    tensors to the compute dtype so the forward does zero weight-prep HBM
    traffic per call."""
    E = p["wq"].shape[0]
    hs = E // n_heads
    inv_s = 1.0 / (hs ** 0.5)
    kp = {}
    kp["wqkv"] = jnp.concatenate(
        [p["wq"] * inv_s, p["wk"], p["wv"]], axis=1).astype(compute_dtype)
    kp["bqkv"] = jnp.concatenate(
        [p["bq"] * inv_s, p["bk"], p["bv"]]).astype(jnp.float32)
    kp["w1"] = p["w1"].astype(compute_dtype)
    kp["b1"] = p["b1"].astype(jnp.float32)
    kp["w2"] = p["w2"].astype(compute_dtype)
    kp["b2"] = p["b2"].astype(jnp.float32)
    for k in ("ln1_g", "ln1_b", "ln2_g", "ln2_b"):
        kp[k] = p[k].astype(jnp.float32)
    return kp


# ----------------------------------------------------------------------------
# ImageEncoderLayer forward (Pallas)
# ----------------------------------------------------------------------------
def image_encoder_layer_forward(img, kp, n_heads, sa=True,
                                compute_dtype=jnp.float32, eps=_LN_EPS):
    """img: (B, N, E) float32, kp: prepare_params(...) output.
    Returns (B, N, E) in img.dtype."""
    B, N, E = img.shape
    M = B * N
    cdt = compute_dtype

    img_c = img.astype(cdt)              # single cast; also the attn residual
    x2 = img_c.reshape(M, E)

    if sa:
        # Fused QKV projection: one [M,E] x [E,3E] matmul.
        qkv = linear_pallas(x2, kp["wqkv"], kp["bqkv"], out_dtype=cdt)  # (M,3E)

        # att_out = norm_img(attention(img) + img), fused add+LN epilogue;
        # residual streamed in compute dtype.
        att_out = attention_addln_pallas(
            qkv.reshape(B, N, 3 * E), img_c,
            kp["ln1_g"], kp["ln1_b"], n_heads=n_heads, eps=eps, out_dtype=cdt)
        x2 = att_out.reshape(M, E)

    # Fused FCN (gelu) + AddNorm; the (M, 4E) intermediate never hits HBM.
    # TODO(synk): Dropout(0.01) inside AddNorm / attention is identity (eval).
    out = fcn_addnorm_pallas(x2, kp["w1"], kp["b1"], kp["w2"], kp["b2"], x2,
                             kp["ln2_g"], kp["ln2_b"], eps=eps,
                             out_dtype=img.dtype)
    return out.reshape(B, N, E)


# ----------------------------------------------------------------------------
# Pure-JAX reference (faithful to the PyTorch module) for verification
# ----------------------------------------------------------------------------
def reference_forward(img, p, n_heads, sa=True, eps=_LN_EPS):
    E = img.shape[-1]
    hs = E // n_heads

    def lin(t, w, b):
        return jnp.einsum("...k,kn->...n", t, w, precision="highest") + b

    def ln(t, g, be):
        u = t.mean(-1, keepdims=True)
        s = ((t - u) ** 2).mean(-1, keepdims=True)
        return g * (t - u) / jnp.sqrt(s + eps) + be

    x = img
    if sa:
        B, N, _ = x.shape

        def split(t):
            return t.reshape(B, N, n_heads, hs).transpose(0, 2, 1, 3)

        q = split(lin(x, p["wq"], p["bq"]))
        k = split(lin(x, p["wk"], p["bk"]))
        v = split(lin(x, p["wv"], p["bv"]))
        s = jnp.einsum("bhqd,bhkd->bhqk", q, k, precision="highest") / (hs ** 0.5)
        pr = jax.nn.softmax(s, axis=-1)
        att = jnp.einsum("bhqk,bhkd->bhqd", pr, v, precision="highest")
        att = att.transpose(0, 2, 1, 3).reshape(B, N, E)
        x = ln(att + img, p["ln1_g"], p["ln1_b"])

    h = lin(x, p["w1"], p["b1"])
    h = h * 0.5 * (1.0 + jax.scipy.special.erf(h / _SQRT2))
    h = lin(h, p["w2"], p["b2"])
    return ln(h + x, p["ln2_g"], p["ln2_b"])


# ----------------------------------------------------------------------------
if __name__ == "__main__":
    # Small, module-consistent shapes: (B, N, E) tokens, n_heads heads,
    # intermediate = 4*E (BERT-style).  E / head_size chosen as multiples of
    # 128 so head slices and all kernel outputs are lane-dense.
    B, N, E, HEADS = 2, 128, 256, 2
    INTER = 4 * E

    key = jax.random.PRNGKey(0)
    k_img, k_param = jax.random.split(key)
    img = jax.random.normal(k_img, (B, N, E), dtype=jnp.float32)
    params = init_params(k_param, E, INTER)

    # --- f32 path ---------------------------------------------------------
    kp_f32 = prepare_params(params, HEADS, jnp.float32)
    fwd = jax.jit(functools.partial(image_encoder_layer_forward, n_heads=HEADS))
    out = jax.block_until_ready(fwd(img, kp_f32))
    ref = reference_forward(img, params, HEADS)
    np.testing.assert_allclose(np.asarray(out), np.asarray(ref),
                               atol=5e-3, rtol=5e-3)

    # --- bf16 matmul path (v5e/v6e/v7x MXU), f32 accumulation --------------
    kp_bf16 = prepare_params(params, HEADS, jnp.bfloat16)
    out_bf16 = jax.block_until_ready(
        image_encoder_layer_forward(img, kp_bf16, n_heads=HEADS,
                                    compute_dtype=jnp.bfloat16))
    np.testing.assert_allclose(np.asarray(out_bf16), np.asarray(ref),
                               atol=5e-2, rtol=5e-2)

    # --- sa=False branch of ImageEncoderLayer.forward -----------------------
    out_nosa = jax.block_until_ready(
        image_encoder_layer_forward(img, kp_f32, n_heads=HEADS, sa=False))
    ref_nosa = reference_forward(img, params, HEADS, sa=False)
    np.testing.assert_allclose(np.asarray(out_nosa), np.asarray(ref_nosa),
                               atol=5e-3, rtol=5e-3)

    print("KERNEL_OK")
</pallas_src>

<mosaic_0001>
module attributes {stable_mosaic.version = 11 : i64} {
  func.func @_linear_kernel(%arg0: i32, %arg1: i32, %arg2: i32, %arg3: memref<256x256xf32, #tpu.memory_space<vmem>>, %arg4: memref<256x384xf32, #tpu.memory_space<vmem>>, %arg5: memref<1x384xf32, #tpu.memory_space<vmem>>, %arg6: memref<256x384xf32, #tpu.memory_space<vmem>>, %arg7: memref<256x384xf32, #tpu.memory_space<vmem>>) attributes {dimension_semantics = [#tpu.dimension_semantics<parallel>, #tpu.dimension_semantics<parallel>, #tpu.dimension_semantics<arbitrary>], iteration_bounds = array<i64: 1, 2, 1>, scalar_prefetch = 0 : i64, scratch_operands = 1 : i64, tpu.core_type = #tpu.core_type<tc>, window_params = [{transform_indices = @transform_0, window_bounds = array<i64: 256, 256>}, {transform_indices = @transform_1, window_bounds = array<i64: 256, 384>}, {transform_indices = @transform_2, window_bounds = array<i64: 1, 384>}, {transform_indices = @transform_3, window_bounds = array<i64: 256, 384>}]} {
    %c0_i32 = arith.constant 0 : i32
    %0 = arith.cmpi eq, %arg2, %c0_i32 : i32
    %1 = arith.extui %0 : i1 to i32
    %c0_i32_0 = arith.constant 0 : i32
    %2 = arith.cmpi ne, %1, %c0_i32_0 : i32
    scf.if %2 {
      %cst_10 = arith.constant 0.000000e+00 : f32
      %12 = vector.broadcast %cst_10 : f32 to vector<256x384xf32>
      %c0_11 = arith.constant 0 : index
      %c0_12 = arith.constant 0 : index
      %13 = vector.load %arg7[%c0_11, %c0_12] : memref<256x384xf32, #tpu.memory_space<vmem>>, vector<256x384xf32>
      tpu.vector_store %arg7[%c0_11, %c0_12], %12 {strides = array<i32>} : memref<256x384xf32, #tpu.memory_space<vmem>>, vector<256x384xf32>,
    } else {
    }
    %c0 = arith.constant 0 : index
    %c0_1 = arith.constant 0 : index
    %3 = vector.load %arg7[%c0, %c0_1] : memref<256x384xf32, #tpu.memory_space<vmem>>, vector<256x384xf32>
    %c0_2 = arith.constant 0 : index
    %c0_3 = arith.constant 0 : index
    %4 = vector.load %arg3[%c0_2, %c0_3] : memref<256x256xf32, #tpu.memory_space<vmem>>, vector<256x256xf32>
    %c0_4 = arith.constant 0 : index
    %c0_5 = arith.constant 0 : index
    %5 = vector.load %arg4[%c0_4, %c0_5] : memref<256x384xf32, #tpu.memory_space<vmem>>, vector<256x384xf32>
    %cst = arith.constant dense<0.000000e+00> : vector<256x384xf32>
    %6 = tpu.matmul %4, %5, %cst {dimension_numbers = #tpu.dot_dimension_numbers<[1], [0], [0], [1], [0, 0, 1, 1], [], []>} : vector<256x256xf32>, vector<256x384xf32>, vector<256x384xf32> -> vector<256x384xf32>
    %7 = arith.addf %3, %6 : vector<256x384xf32>
    %c0_6 = arith.constant 0 : index
    %c0_7 = arith.constant 0 : index
    %8 = vector.load %arg7[%c0_6, %c0_7] : memref<256x384xf32, #tpu.memory_space<vmem>>, vector<256x384xf32>
    tpu.vector_store %arg7[%c0_6, %c0_7], %7 {strides = array<i32>} : memref<256x384xf32, #tpu.memory_space<vmem>>, vector<256x384xf32>,
    %c0_i32_8 = arith.constant 0 : i32
    %9 = arith.cmpi eq, %arg2, %c0_i32_8 : i32
    %10 = arith.extui %9 : i1 to i32
    %c0_i32_9 = arith.constant 0 : i32
    %11 = arith.cmpi ne, %10, %c0_i32_9 : i32
    scf.if %11 {
      %c0_10 = arith.constant 0 : index
      %c0_11 = arith.constant 0 : index
      %12 = vector.load %arg7[%c0_10, %c0_11] : memref<256x384xf32, #tpu.memory_space<vmem>>, vector<256x384xf32>
      %c0_12 = arith.constant 0 : index
      %c0_13 = arith.constant 0 : index
      %13 = vector.load %arg5[%c0_12, %c0_13] : memref<1x384xf32, #tpu.memory_space<vmem>>, vector<1x384xf32>
      %14 = vector.broadcast %13 : vector<1x384xf32> to vector<256x384xf32>
      %15 = arith.addf %12, %14 : vector<256x384xf32>
      %c0_14 = arith.constant 0 : index
      %c0_15 = arith.constant 0 : index
      %16 = vector.load %arg6[%c0_14, %c0_15] : memref<256x384xf32, #tpu.memory_space<vmem>>, vector<256x384xf32>
      tpu.vector_store %arg6[%c0_14, %c0_15], %15 {strides = array<i32>} : memref<256x384xf32, #tpu.memory_space<vmem>>, vector<256x384xf32>,
    } else {
    }
    return
  }
  func.func @transform_0(%arg0: i32, %arg1: i32, %arg2: i32) -> (i32, i32) {
    %c0_i32 = arith.constant 0 : i32
    return %arg0, %arg2 : i32, i32
  }
  func.func @transform_1(%arg0: i32, %arg1: i32, %arg2: i32) -> (i32, i32) {
    %c0_i32 = arith.constant 0 : i32
    return %arg2, %arg1 : i32, i32
  }
  func.func @transform_2(%arg0: i32, %arg1: i32, %arg2: i32) -> (i32, i32) {
    %c0_i32 = arith.constant 0 : i32
    %c0_i32_0 = arith.constant 0 : i32
    return %c0_i32, %arg1 : i32, i32
  }
  func.func @transform_3(%arg0: i32, %arg1: i32, %arg2: i32) -> (i32, i32) {
    %c0_i32 = arith.constant 0 : i32
    return %arg0, %arg1 : i32, i32
  }
}

module attributes {stable_mosaic.version = 11 : i64} {
  func.func @_fcn_addnorm_kernel(%arg0: i32, %arg1: i32, %arg2: memref<256x256xf32, #tpu.memory_space<vmem>>, %arg3: memref<256x512xf32, #tpu.memory_space<vmem>>, %arg4: memref<1x512xf32, #tpu.memory_space<vmem>>, %arg5: memref<512x256xf32, #tpu.memory_space<vmem>>, %arg6: memref<1x256xf32, #tpu.memory_space<vmem>>, %arg7: memref<256x256xf32, #tpu.memory_space<vmem>>, %arg8: memref<1x256xf32, #tpu.memory_space<vmem>>, %arg9: memref<1x256xf32, #tpu.memory_space<vmem>>, %arg10: memref<256x256xf32, #tpu.memory_space<vmem>>, %arg11: memref<256x256xf32, #tpu.memory_space<vmem>>) attributes {dimension_semantics = [#tpu.dimension_semantics<parallel>, #tpu.dimension_semantics<arbitrary>], iteration_bounds = array<i64: 1, 2>, scalar_prefetch = 0 : i64, scratch_operands = 1 : i64, tpu.core_type = #tpu.core_type<tc>, window_params = [{transform_indices = @transform_0, window_bounds = array<i64: 256, 256>}, {transform_indices = @transform_1, window_bounds = array<i64: 256, 512>}, {transform_indices = @transform_2, window_bounds = array<i64: 1, 512>}, {transform_indices = @transform_3, window_bounds = array<i64: 512, 256>}, {pipeline_mode = #tpu.pipeline_mode<synchronous>, transform_indices = @transform_4, window_bounds = array<i64: 1, 256>}, {transform_indices = @transform_5, window_bounds = array<i64: 256, 256>}, {pipeline_mode = #tpu.pipeline_mode<synchronous>, transform_indices = @transform_6, window_bounds = array<i64: 1, 256>}, {pipeline_mode = #tpu.pipeline_mode<synchronous>, transform_indices = @transform_7, window_bounds = array<i64: 1, 256>}, {transform_indices = @transform_8, window_bounds = array<i64: 256, 256>}]} {
    %c0_i32 = arith.constant 0 : i32
    %0 = arith.cmpi eq, %arg1, %c0_i32 : i32
    %1 = arith.extui %0 : i1 to i32
    %c0_i32_0 = arith.constant 0 : i32
    %2 = arith.cmpi ne, %1, %c0_i32_0 : i32
    scf.if %2 {
      %cst_18 = arith.constant 0.000000e+00 : f32
      %30 = vector.broadcast %cst_18 : f32 to vector<256x256xf32>
      %c0_19 = arith.constant 0 : index
      %c0_20 = arith.constant 0 : index
      %31 = vector.load %arg11[%c0_19, %c0_20] : memref<256x256xf32, #tpu.memory_space<vmem>>, vector<256x256xf32>
      tpu.vector_store %arg11[%c0_19, %c0_20], %30 {strides = array<i32>} : memref<256x256xf32, #tpu.memory_space<vmem>>, vector<256x256xf32>,
    } else {
    }
    %c0 = arith.constant 0 : index
    %c0_1 = arith.constant 0 : index
    %3 = vector.load %arg2[%c0, %c0_1] : memref<256x256xf32, #tpu.memory_space<vmem>>, vector<256x256xf32>
    %c0_2 = arith.constant 0 : index
    %c0_3 = arith.constant 0 : index
    %4 = vector.load %arg3[%c0_2, %c0_3] : memref<256x512xf32, #tpu.memory_space<vmem>>, vector<256x512xf32>
    %cst = arith.constant dense<0.000000e+00> : vector<256x512xf32>
    %5 = tpu.matmul %3, %4, %cst {dimension_numbers = #tpu.dot_dimension_numbers<[1], [0], [0], [1], [0, 0, 1, 1], [], []>} : vector<256x256xf32>, vector<256x512xf32>, vector<256x512xf32> -> vector<256x512xf32>
    %c0_4 = arith.constant 0 : index
    %c0_5 = arith.constant 0 : index
    %6 = vector.load %arg4[%c0_4, %c0_5] : memref<1x512xf32, #tpu.memory_space<vmem>>, vector<1x512xf32>
    %7 = vector.broadcast %6 : vector<1x512xf32> to vector<256x512xf32>
    %8 = arith.addf %5, %7 : vector<256x512xf32>
    %cst_6 = arith.constant 5.000000e-01 : f32
    %9 = vector.broadcast %cst_6 : f32 to vector<256x512xf32>
    %10 = arith.mulf %9, %8 : vector<256x512xf32>
    %cst_7 = arith.constant 4.471500e-02 : f32
    %11 = vector.broadcast %cst_7 : f32 to vector<256x512xf32>
    %12 = arith.mulf %11, %8 : vector<256x512xf32>
    %13 = arith.mulf %12, %8 : vector<256x512xf32>
    %14 = arith.mulf %13, %8 : vector<256x512xf32>
    %15 = arith.addf %8, %14 : vector<256x512xf32>
    %cst_8 = arith.constant 0.797884583 : f32
    %16 = vector.broadcast %cst_8 : f32 to vector<256x512xf32>
    %17 = arith.mulf %16, %15 : vector<256x512xf32>
    %18 = math.tanh %17 : vector<256x512xf32>
    %cst_9 = arith.constant 1.000000e+00 : f32
    %19 = vector.broadcast %cst_9 : f32 to vector<256x512xf32>
    %20 = arith.addf %19, %18 : vector<256x512xf32>
    %21 = arith.mulf %10, %20 : vector<256x512xf32>
    %c0_10 = arith.constant 0 : index
    %c0_11 = arith.constant 0 : index
    %22 = vector.load %arg11[%c0_10, %c0_11] : memref<256x256xf32, #tpu.memory_space<vmem>>, vector<256x256xf32>
    %c0_12 = arith.constant 0 : index
    %c0_13 = arith.constant 0 : index
    %23 = vector.load %arg5[%c0_12, %c0_13] : memref<512x256xf32, #tpu.memory_space<vmem>>, vector<512x256xf32>
    %cst_14 = arith.constant dense<0.000000e+00> : vector<256x256xf32>
    %24 = tpu.matmul %21, %23, %cst_14 {dimension_numbers = #tpu.dot_dimension_numbers<[1], [0], [0], [1], [0, 0, 1, 1], [], []>} : vector<256x512xf32>, vector<512x256xf32>, vector<256x256xf32> -> vector<256x256xf32>
    %25 = arith.addf %22, %24 : vector<256x256xf32>
    %c0_15 = arith.constant 0 : index
    %c0_16 = arith.constant 0 : index
    %26 = vector.load %arg11[%c0_15, %c0_16] : memref<256x256xf32, #tpu.memory_space<vmem>>, vector<256x256xf32>
    tpu.vector_store %arg11[%c0_15, %c0_16], %25 {strides = array<i32>} : memref<256x256xf32, #tpu.memory_space<vmem>>, vector<256x256xf32>,
    %c1_i32 = arith.constant 1 : i32
    %27 = arith.cmpi eq, %arg1, %c1_i32 : i32
    %28 = arith.extui %27 : i1 to i32
    %c0_i32_17 = arith.constant 0 : i32
    %29 = arith.cmpi ne, %28, %c0_i32_17 : i32
    scf.if %29 {
      %c0_18 = arith.constant 0 : index
      %c0_19 = arith.constant 0 : index
      %30 = vector.load %arg11[%c0_18, %c0_19] : memref<256x256xf32, #tpu.memory_space<vmem>>, vector<256x256xf32>
      %c0_20 = arith.constant 0 : index
      %c0_21 = arith.constant 0 : index
      %31 = vector.load %arg6[%c0_20, %c0_21] : memref<1x256xf32, #tpu.memory_space<vmem>>, vector<1x256xf32>
      %32 = vector.broadcast %31 : vector<1x256xf32> to vector<256x256xf32>
      %33 = arith.addf %30, %32 : vector<256x256xf32>
      %c0_22 = arith.constant 0 : index
      %c0_23 = arith.constant 0 : index
      %34 = vector.load %arg7[%c0_22, %c0_23] : memref<256x256xf32, #tpu.memory_space<vmem>>, vector<256x256xf32>
      %35 = arith.addf %33, %34 : vector<256x256xf32>
      %cst_24 = arith.constant dense<0.000000e+00> : vector<256xf32>
      %36 = vector.multi_reduction <add>, %35, %cst_24 [1] : vector<256x256xf32> to vector<256xf32>
      %37 = vector.shape_cast %36 : vector<256xf32> to vector<256x1xf32>
      %cst_25 = arith.constant 2.560000e+02 : f32
      %38 = vector.broadcast %cst_25 : f32 to vector<256x1xf32>
      %39 = arith.divf %37, %38 : vector<256x1xf32>
      %40 = vector.broadcast %39 : vector<256x1xf32> to vector<256x256xf32>
      %41 = arith.subf %35, %40 : vector<256x256xf32>
      %42 = arith.mulf %41, %41 : vector<256x256xf32>
      %cst_26 = arith.constant dense<0.000000e+00> : vector<256xf32>
      %43 = vector.multi_reduction <add>, %42, %cst_26 [1] : vector<256x256xf32> to vector<256xf32>
      %44 = vector.shape_cast %43 : vector<256xf32> to vector<256x1xf32>
      %cst_27 = arith.constant 2.560000e+02 : f32
      %45 = vector.broadcast %cst_27 : f32 to vector<256x1xf32>
      %46 = arith.divf %44, %45 : vector<256x1xf32>
      %cst_28 = arith.constant 9.99999996E-13 : f32
      %47 = vector.broadcast %cst_28 : f32 to vector<256x1xf32>
      %48 = arith.addf %46, %47 : vector<256x1xf32>
      %49 = math.rsqrt %48 : vector<256x1xf32>
      %50 = vector.broadcast %49 : vector<256x1xf32> to vector<256x256xf32>
      %51 = arith.mulf %41, %50 : vector<256x256xf32>
      %c0_29 = arith.constant 0 : index
      %c0_30 = arith.constant 0 : index
      %52 = vector.load %arg8[%c0_29, %c0_30] : memref<1x256xf32, #tpu.memory_space<vmem>>, vector<1x256xf32>
      %53 = vector.broadcast %52 : vector<1x256xf32> to vector<256x256xf32>
      %54 = arith.mulf %53, %51 : vector<256x256xf32>
      %c0_31 = arith.constant 0 : index
      %c0_32 = arith.constant 0 : index
      %55 = vector.load %arg9[%c0_31, %c0_32] : memref<1x256xf32, #tpu.memory_space<vmem>>, vector<1x256xf32>
      %56 = vector.broadcast %55 : vector<1x256xf32> to vector<256x256xf32>
      %57 = arith.addf %54, %56 : vector<256x256xf32>
      %c0_33 = arith.constant 0 : index
      %c0_34 = arith.constant 0 : index
      %58 = vector.load %arg10[%c0_33, %c0_34] : memref<256x256xf32, #tpu.memory_space<vmem>>, vector<256x256xf32>
      tpu.vector_store %arg10[%c0_33, %c0_34], %57 {strides = array<i32>} : memref<256x256xf32, #tpu.memory_space<vmem>>, vector<256x256xf32>,
    } else {
    }
    return
  }
  func.func @transform_0(%arg0: i32, %arg1: i32) -> (i32, i32) {
    %c0_i32 = arith.constant 0 : i32
    %c0_i32_0 = arith.constant 0 : i32
    return %arg0, %c0_i32 : i32, i32
  }
  func.func @transform_1(%arg0: i32, %arg1: i32) -> (i32, i32) {
    %c0_i32 = arith.constant 0 : i32
    %c0_i32_0 = arith.constant 0 : i32
    return %c0_i32, %arg1 : i32, i32
  }
  func.func @transform_2(%arg0: i32, %arg1: i32) -> (i32, i32) {
    %c0_i32 = arith.constant 0 : i32
    %c0_i32_0 = arith.constant 0 : i32
    return %c0_i32, %arg1 : i32, i32
  }
  func.func @transform_3(%arg0: i32, %arg1: i32) -> (i32, i32) {
    %c0_i32 = arith.constant 0 : i32
    %c0_i32_0 = arith.constant 0 : i32
    return %arg1, %c0_i32 : i32, i32
  }
  func.func @transform_4(%arg0: i32, %arg1: i32) -> (i32, i32) {
    %c0_i32 = arith.constant 0 : i32
    %c0_i32_0 = arith.constant 0 : i32
    %c0_i32_1 = arith.constant 0 : i32
    return %c0_i32, %c0_i32_0 : i32, i32
  }
  func.func @transform_5(%arg0: i32, %arg1: i32) -> (i32, i32) {
    %c0_i32 = arith.constant 0 : i32
    %c0_i32_0 = arith.constant 0 : i32
    return %arg0, %c0_i32 : i32, i32
  }
  func.func @transform_6(%arg0: i32, %arg1: i32) -> (i32, i32) {
    %c0_i32 = arith.constant 0 : i32
    %c0_i32_0 = arith.constant 0 : i32
    %c0_i32_1 = arith.constant 0 : i32
    return %c0_i32, %c0_i32_0 : i32, i32
  }
  func.func @transform_7(%arg0: i32, %arg1: i32) -> (i32, i32) {
    %c0_i32 = arith.constant 0 : i32
    %c0_i32_0 = arith.constant 0 : i32
    %c0_i32_1 = arith.constant 0 : i32
    return %c0_i32, %c0_i32_0 : i32, i32
  }
  func.func @transform_8(%arg0: i32, %arg1: i32) -> (i32, i32) {
    %c0_i32 = arith.constant 0 : i32
    %c0_i32_0 = arith.constant 0 : i32
    return %arg0, %c0_i32 : i32, i32
  }
}

module attributes {stable_mosaic.version = 11 : i64} {
  func.func @_attn_addln_kernel(%arg0: i32, %arg1: i32, %arg2: memref<1x128x256xf32, #tpu.memory_space<vmem>>, %arg3: memref<1x128x256xf32, #tpu.memory_space<vmem>>, %arg4: memref<1x128x256xf32, #tpu.memory_space<vmem>>, %arg5: memref<1x128x256xf32, #tpu.memory_space<vmem>>, %arg6: memref<1x256xf32, #tpu.memory_space<vmem>>, %arg7: memref<1x256xf32, #tpu.memory_space<vmem>>, %arg8: memref<1x128x256xf32, #tpu.memory_space<vmem>>, %arg9: memref<128x256xf32, #tpu.memory_space<vmem>>) attributes {dimension_semantics = [#tpu.dimension_semantics<parallel>, #tpu.dimension_semantics<parallel>], iteration_bounds = array<i64: 2, 1>, scalar_prefetch = 0 : i64, scratch_operands = 1 : i64, tpu.core_type = #tpu.core_type<tc>, window_params = [{transform_indices = @transform_0, window_bounds = array<i64: 1, 128, 256>}, {transform_indices = @transform_1, window_bounds = array<i64: 1, 128, 256>}, {transform_indices = @transform_2, window_bounds = array<i64: 1, 128, 256>}, {transform_indices = @transform_3, window_bounds = array<i64: 1, 128, 256>}, {pipeline_mode = #tpu.pipeline_mode<synchronous>, transform_indices = @transform_4, window_bounds = array<i64: 1, 256>}, {pipeline_mode = #tpu.pipeline_mode<synchronous>, transform_indices = @transform_5, window_bounds = array<i64: 1, 256>}, {transform_indices = @transform_6, window_bounds = array<i64: 1, 128, 256>}]} {
    %c0 = arith.constant 0 : index
    %c0_0 = arith.constant 0 : index
    %c0_1 = arith.constant 0 : index
    %0 = vector.load %arg2[%c0, %c0_0, %c0_1] : memref<1x128x256xf32, #tpu.memory_space<vmem>>, vector<1x128x256xf32>
    %1 = vector.shape_cast %0 : vector<1x128x256xf32> to vector<128x256xf32>
    %c0_2 = arith.constant 0 : index
    %c0_3 = arith.constant 0 : index
    %c0_4 = arith.constant 0 : index
    %2 = vector.load %arg3[%c0_2, %c0_3, %c0_4] : memref<1x128x256xf32, #tpu.memory_space<vmem>>, vector<1x128x256xf32>
    %3 = vector.shape_cast %2 : vector<1x128x256xf32> to vector<128x256xf32>
    %c0_5 = arith.constant 0 : index
    %c0_6 = arith.constant 0 : index
    %c0_7 = arith.constant 0 : index
    %4 = vector.load %arg4[%c0_5, %c0_6, %c0_7] : memref<1x128x256xf32, #tpu.memory_space<vmem>>, vector<1x128x256xf32>
    %5 = vector.shape_cast %4 : vector<1x128x256xf32> to vector<128x256xf32>
    %6 = vector.extract_strided_slice %1 {offsets = [0, 0], sizes = [128, 128], strides = [1, 1]} : vector<128x256xf32> to vector<128x128xf32>
    %7 = vector.extract_strided_slice %3 {offsets = [0, 0], sizes = [128, 128], strides = [1, 1]} : vector<128x256xf32> to vector<128x128xf32>
    %8 = vector.extract_strided_slice %5 {offsets = [0, 0], sizes = [128, 128], strides = [1, 1]} : vector<128x256xf32> to vector<128x128xf32>
    %cst = arith.constant dense<0.000000e+00> : vector<128x128xf32>
    %9 = tpu.matmul %6, %7, %cst {dimension_numbers = #tpu.dot_dimension_numbers<[1], [1], [0], [0], [0, 0, 1, 0], [], []>} : vector<128x128xf32>, vector<128x128xf32>, vector<128x128xf32> -> vector<128x128xf32>
    %cst_8 = arith.constant dense<0xFF800000> : vector<128xf32>
    %10 = vector.multi_reduction <maximumf>, %9, %cst_8 [1] : vector<128x128xf32> to vector<128xf32>
    %11 = vector.shape_cast %10 : vector<128xf32> to vector<128x1xf32>
    %12 = vector.broadcast %11 : vector<128x1xf32> to vector<128x128xf32>
    %13 = arith.subf %9, %12 : vector<128x128xf32>
    %14 = math.exp %13 : vector<128x128xf32>
    %cst_9 = arith.constant dense<0.000000e+00> : vector<128xf32>
    %15 = vector.multi_reduction <add>, %14, %cst_9 [1] : vector<128x128xf32> to vector<128xf32>
    %16 = vector.shape_cast %15 : vector<128xf32> to vector<128x1xf32>
    %17 = tpu.reciprocal %16 {approx = true} : vector<128x1xf32> -> vector<128x1xf32>
    %18 = arith.mulf %16, %17 : vector<128x1xf32>
    %cst_10 = arith.constant 2.000000e+00 : f32
    %19 = vector.broadcast %cst_10 : f32 to vector<128x1xf32>
    %20 = arith.subf %19, %18 : vector<128x1xf32>
    %21 = arith.mulf %17, %20 : vector<128x1xf32>
    %22 = vector.broadcast %21 : vector<128x1xf32> to vector<128x128xf32>
    %23 = arith.mulf %14, %22 : vector<128x128xf32>
    %cst_11 = arith.constant dense<0.000000e+00> : vector<128x128xf32>
    %24 = tpu.matmul %23, %8, %cst_11 {dimension_numbers = #tpu.dot_dimension_numbers<[1], [0], [0], [1], [0, 0, 1, 1], [], []>} : vector<128x128xf32>, vector<128x128xf32>, vector<128x128xf32> -> vector<128x128xf32>
    %c0_12 = arith.constant 0 : index
    %c0_13 = arith.constant 0 : index
    %25 = vector.load %arg9[%c0_12, %c0_13] : memref<128x256xf32, #tpu.memory_space<vmem>>, vector<128x128xf32>
    tpu.vector_store %arg9[%c0_12, %c0_13], %24 {strides = array<i32>} : memref<128x256xf32, #tpu.memory_space<vmem>>, vector<128x128xf32>,
    %26 = vector.extract_strided_slice %1 {offsets = [0, 128], sizes = [128, 128], strides = [1, 1]} : vector<128x256xf32> to vector<128x128xf32>
    %27 = vector.extract_strided_slice %3 {offsets = [0, 128], sizes = [128, 128], strides = [1, 1]} : vector<128x256xf32> to vector<128x128xf32>
    %28 = vector.extract_strided_slice %5 {offsets = [0, 128], sizes = [128, 128], strides = [1, 1]} : vector<128x256xf32> to vector<128x128xf32>
    %cst_14 = arith.constant dense<0.000000e+00> : vector<128x128xf32>
    %29 = tpu.matmul %26, %27, %cst_14 {dimension_numbers = #tpu.dot_dimension_numbers<[1], [1], [0], [0], [0, 0, 1, 0], [], []>} : vector<128x128xf32>, vector<128x128xf32>, vector<128x128xf32> -> vector<128x128xf32>
    %cst_15 = arith.constant dense<0xFF800000> : vector<128xf32>
    %30 = vector.multi_reduction <maximumf>, %29, %cst_15 [1] : vector<128x128xf32> to vector<128xf32>
    %31 = vector.shape_cast %30 : vector<128xf32> to vector<128x1xf32>
    %32 = vector.broadcast %31 : vector<128x1xf32> to vector<128x128xf32>
    %33 = arith.subf %29, %32 : vector<128x128xf32>
    %34 = math.exp %33 : vector<128x128xf32>
    %cst_16 = arith.constant dense<0.000000e+00> : vector<128xf32>
    %35 = vector.multi_reduction <add>, %34, %cst_16 [1] : vector<128x128xf32> to vector<128xf32>
    %36 = vector.shape_cast %35 : vector<128xf32> to vector<128x1xf32>
    %37 = tpu.reciprocal %36 {approx = true} : vector<128x1xf32> -> vector<128x1xf32>
    %38 = arith.mulf %36, %37 : vector<128x1xf32>
    %cst_17 = arith.constant 2.000000e+00 : f32
    %39 = vector.broadcast %cst_17 : f32 to vector<128x1xf32>
    %40 = arith.subf %39, %38 : vector<128x1xf32>
    %41 = arith.mulf %37, %40 : vector<128x1xf32>
    %42 = vector.broadcast %41 : vector<128x1xf32> to vector<128x128xf32>
    %43 = arith.mulf %34, %42 : vector<128x128xf32>
    %cst_18 = arith.constant dense<0.000000e+00> : vector<128x128xf32>
    %44 = tpu.matmul %43, %28, %cst_18 {dimension_numbers = #tpu.dot_dimension_numbers<[1], [0], [0], [1], [0, 0, 1, 1], [], []>} : vector<128x128xf32>, vector<128x128xf32>, vector<128x128xf32> -> vector<128x128xf32>
    %c0_19 = arith.constant 0 : index
    %c128 = arith.constant 128 : index
    %45 = vector.load %arg9[%c0_19, %c128] : memref<128x256xf32, #tpu.memory_space<vmem>>, vector<128x128xf32>
    tpu.vector_store %arg9[%c0_19, %c128], %44 {strides = array<i32>} : memref<128x256xf32, #tpu.memory_space<vmem>>, vector<128x128xf32>,
    %c0_20 = arith.constant 0 : index
    %c0_21 = arith.constant 0 : index
    %46 = vector.load %arg9[%c0_20, %c0_21] : memref<128x256xf32, #tpu.memory_space<vmem>>, vector<128x256xf32>
    %c0_22 = arith.constant 0 : index
    %c0_23 = arith.constant 0 : index
    %c0_24 = arith.constant 0 : index
    %47 = vector.load %arg5[%c0_22, %c0_23, %c0_24] : memref<1x128x256xf32, #tpu.memory_space<vmem>>, vector<1x128x256xf32>
    %48 = vector.shape_cast %47 : vector<1x128x256xf32> to vector<128x256xf32>
    %49 = arith.addf %46, %48 : vector<128x256xf32>
    %cst_25 = arith.constant dense<0.000000e+00> : vector<128xf32>
    %50 = vector.multi_reduction <add>, %49, %cst_25 [1] : vector<128x256xf32> to vector<128xf32>
    %51 = vector.shape_cast %50 : vector<128xf32> to vector<128x1xf32>
    %cst_26 = arith.constant 2.560000e+02 : f32
    %52 = vector.broadcast %cst_26 : f32 to vector<128x1xf32>
    %53 = arith.divf %51, %52 : vector<128x1xf32>
    %54 = vector.broadcast %53 : vector<128x1xf32> to vector<128x256xf32>
    %55 = arith.subf %49, %54 : vector<128x256xf32>
    %56 = arith.mulf %55, %55 : vector<128x256xf32>
    %cst_27 = arith.constant dense<0.000000e+00> : vector<128xf32>
    %57 = vector.multi_reduction <add>, %56, %cst_27 [1] : vector<128x256xf32> to vector<128xf32>
    %58 = vector.shape_cast %57 : vector<128xf32> to vector<128x1xf32>
    %cst_28 = arith.constant 2.560000e+02 : f32
    %59 = vector.broadcast %cst_28 : f32 to vector<128x1xf32>
    %60 = arith.divf %58, %59 : vector<128x1xf32>
    %cst_29 = arith.constant 9.99999996E-13 : f32
    %61 = vector.broadcast %cst_29 : f32 to vector<128x1xf32>
    %62 = arith.addf %60, %61 : vector<128x1xf32>
    %63 = math.rsqrt %62 : vector<128x1xf32>
    %64 = vector.broadcast %63 : vector<128x1xf32> to vector<128x256xf32>
    %65 = arith.mulf %55, %64 : vector<128x256xf32>
    %c0_30 = arith.constant 0 : index
    %c0_31 = arith.constant 0 : index
    %66 = vector.load %arg6[%c0_30, %c0_31] : memref<1x256xf32, #tpu.memory_space<vmem>>, vector<1x256xf32>
    %67 = vector.broadcast %66 : vector<1x256xf32> to vector<128x256xf32>
    %68 = arith.mulf %67, %65 : vector<128x256xf32>
    %c0_32 = arith.constant 0 : index
    %c0_33 = arith.constant 0 : index
    %69 = vector.load %arg7[%c0_32, %c0_33] : memref<1x256xf32, #tpu.memory_space<vmem>>, vector<1x256xf32>
    %70 = vector.broadcast %69 : vector<1x256xf32> to vector<128x256xf32>
    %71 = arith.addf %68, %70 : vector<128x256xf32>
    %c0_34 = arith.constant 0 : index
    %c0_35 = arith.constant 0 : index
    %c0_36 = arith.constant 0 : index
    %72 = vector.load %arg8[%c0_34, %c0_35, %c0_36] : memref<1x128x256xf32, #tpu.memory_space<vmem>>, vector<1x128x256xf32>
    %73 = vector.shape_cast %72 : vector<1x128x256xf32> to vector<128x256xf32>
    %74 = vector.shape_cast %71 : vector<128x256xf32> to vector<1x128x256xf32>
    tpu.vector_store %arg8[%c0_34, %c0_35, %c0_36], %74 {strides = array<i32>} : memref<1x128x256xf32, #tpu.memory_space<vmem>>, vector<1x128x256xf32>,
    return
  }
  func.func @transform_0(%arg0: i32, %arg1: i32) -> (i32, i32, i32) {
    %c0_i32 = arith.constant 0 : i32
    %c0_i32_0 = arith.constant 0 : i32
    return %arg0, %arg1, %c0_i32 : i32, i32, i32
  }
  func.func @transform_1(%arg0: i32, %arg1: i32) -> (i32, i32, i32) {
    %c0_i32 = arith.constant 0 : i32
    %c1_i32 = arith.constant 1 : i32
    %c0_i32_0 = arith.constant 0 : i32
    return %arg0, %c0_i32, %c1_i32 : i32, i32, i32
  }
  func.func @transform_2(%arg0: i32, %arg1: i32) -> (i32, i32, i32) {
    %c0_i32 = arith.constant 0 : i32
    %c2_i32 = arith.constant 2 : i32
    %c0_i32_0 = arith.constant 0 : i32
    return %arg0, %c0_i32, %c2_i32 : i32, i32, i32
  }
  func.func @transform_3(%arg0: i32, %arg1: i32) -> (i32, i32, i32) {
    %c0_i32 = arith.constant 0 : i32
    %c0_i32_0 = arith.constant 0 : i32
    return %arg0, %arg1, %c0_i32 : i32, i32, i32
  }
  func.func @transform_4(%arg0: i32, %arg1: i32) -> (i32, i32) {
    %c0_i32 = arith.constant 0 : i32
    %c0_i32_0 = arith.constant 0 : i32
    %c0_i32_1 = arith.constant 0 : i32
    return %c0_i32, %c0_i32_0 : i32, i32
  }
  func.func @transform_5(%arg0: i32, %arg1: i32) -> (i32, i32) {
    %c0_i32 = arith.constant 0 : i32
    %c0_i32_0 = arith.constant 0 : i32
    %c0_i32_1 = arith.constant 0 : i32
    return %c0_i32, %c0_i32_0 : i32, i32
  }
  func.func @transform_6(%arg0: i32, %arg1: i32) -> (i32, i32, i32) {
    %c0_i32 = arith.constant 0 : i32
    %c0_i32_0 = arith.constant 0 : i32
    return %arg0, %arg1, %c0_i32 : i32, i32, i32
  }
}

</mosaic_0001>

<bundles_post_ra>
// kernel: image_encoder_layer_forward.3
= control target key start
LH: loop header
LB: loop body
LE: loop exit
PB: predicated region body
PF: predicated region fallthrough
CT: control target
= control target key end

     0   :  { %8 = vsyncpa [#allocation4], 0  ;;  %s2818_s0 = inlined_call_operand.hbm [shape: f32[256,256], index: 0, kind: input, shape index: {}]   ;;  %s2819_s1 = inlined_call_operand.hbm [shape: f32[256,768], index: 1, kind: input, shape index: {}]   ;;  %s2820_s2 = inlined_call_operand.vmem [shape: f32[1,768], index: 2, kind: input, shape index: {}]   ;;  %s2821_s3 = inlined_call_operand.vmem [shape: f32[256,768], index: 3, kind: output, shape index: {}]  }
   0x1   :  { %9 = vsyncpa [#allocation6], 0 }
   0x2   :  { %11 = vsyncpa [#allocation6 + $0x1], 0  ;;  %s2152_s12 = smov 0   ;;  %s2154_s13 = smov 0  }
   0x3   :  { %s2156_s14 = smov 0   ;;  %s2158_s15 = smov 0  }
   0x4   :  { %s2160_s16 = smov 0   ;;  %s2162_s17 = smov 0  }
   0x5 LB: > { %s1927_s18 = sadd.s32 4294967295, %s2122_s17   ;;  %s73_s19 = sadd.s32 1, %s2110_s14  ;;  %s2122_s17 = sphi %s2162_s17, %s17_s17   ;;  %s2118_s16 = sphi %s2160_s16, %s2836_s16   ;;  %s2114_s15 = sphi %s2158_s15, %s2835_s15   ;;  %s2110_s14 = sphi %s2156_s14, %s2834_s14   ;;  %s2106_s13 = sphi %s2154_s13, %s2833_s13   ;;  %s2102_s12 = sphi %s2152_s12, %s2832_s12  }
   0x6   : > { %p80_p0 = scmp.ne.s32.totalorder %s2110_s14, %s2106_s13  ;;  %p81_p1 = scmp.eq.s32.totalorder %s2122_s17, 0 }
   0x7   : > { %p86_p2 = scmp.ne.s32.totalorder %s2106_s13, %s2102_s12  ;;  %p2186_p3 = scmp.eq.s32.totalorder %s1927_s18, 0 }
   0x8   : > { %p2190_p4 = por %p81_p1, %p80_p0  ;;  %p138_p5 = scmp.eq.s32.totalorder %s1927_s18, 1 }
   0x9   : > { %p2196_p6 = por %p2186_p3, %p86_p2  ;;  %p1929_p7 = scmp.ge.s32.totalorder %s2122_s17, 1 }
   0xa   : > { %p2201_p8 = por %p138_p5, %p80_p0  ;;  %p151_p9 = scmp.lt.s32.totalorder %s2122_s17, 3 }
   0xb   : > { %s2825_s22 = scalar_select %p2196_p6, 1, 0 }
   0xc   : > { %s2826_s23 = scalar_select %p2201_p8, 1, 0 }
   0xd   : > { %p2206_p10 = pnand %p1929_p7, %p151_p9  ;;  %s2124_s25 = smov [#allocation3]  }
   0xe   : > { %s169_s26 = sshll.u32 %s2124_s25, 4  ;;  %p1957_p12 = scmp.lt.s32.totalorder %s2122_s17, 2  ;;  %s170_s26 = int_to_ptr.vmem [resolvable:$true] %s169_s26 }
   0xf   : > { %p1948_p11 = pneg %p2206_p10  ;;  %s32_s29 = sadd.s32 1, %s2118_s16 }
  0x10   : > { %p2221_p0 = pnand %p1957_p12, %p2190_p4  ;;  %s2025_s30 = scalar_lea.vmem %s170_s26, 8192 }
  0x11   : > { %p2215_p13 = pnand %p1948_p11, %p2186_p3  ;;  %p2026_p2 = scmp.ne.s32.totalorder %s170_s26, %s2025_s30 }
  0x12   : > { %p2033_p9 = scmp.lt.s32.totalorder %s170_s26, %s170_s26  ;;  %p2034_p8 = scmp.lt.s32.totalorder %s2025_s30, %s2025_s30 }
  0x13   : > { %p2016_p1 = pneg %p2215_p13 }
  0x14   : > { %p2035_p6 = por %p2034_p8, %p2033_p9 }
  0x15   : > { %p2028_p5 = pnand %p2026_p2, %p2016_p1 }
  0x17   : > { %p2029_p7 = pneg %p2028_p5 }
  0x19   : > { %p2036_p11 = pnand %p2035_p6, %p2029_p7 }
  0x1b   : > { %2039 = shalt.err (!%p2036_p11)
}
  0x1c   : > { %s2125_s4 = smov 256   ;;  %s2126_s5 = smov 16  }
  0x1d   : > { %1951 = dma.hbm_to_vmem [thread:$0]  (!%p2215_p13), %s2818_s0, 8192, %s170_s26, [#allocation4], %s2125_s4, %s2125_s4, %s2126_s5  }
  0x1e   : > { %p34_p4 = scmp.ge.s32.totalorder %s32_s29, 2  ;;  %s183_s8 = sand.u32 1, %s2110_s14  }
  0x1f   : > { %s1938_s9 = smul.u32 384, %s2118_s16  ;;  %s184_s26 = scalar_lea.sflag [#allocation6], %s183_s8 }
  0x20   : > { %s2838_s29 = smov (%p34_p4, %s32_s29), 0  ;;  %s1940_s10 = smul.u32 768, %s183_s8 }
  0x21   : > { %s69_s11 = ssub.s32 %s2118_s16, %s2838_s29  ;;  %s196_s21 = scalar_lea.hbm %s2819_s1, %s1938_s9 }
  0x22   : > { %p71_p6 = scmp.eq.s32.totalorder %s69_s11, 0  ;;  %s187_s25 = scalar_lea.vmem [#allocation5], %s1940_s10 }
  0x23   : > { %s197_s30 = sshll.u32 %s187_s25, 4  ;;  %p2042_p8 = pneg %p2221_p0  ;;  %s198_s30 = int_to_ptr.vmem [resolvable:$true] %s197_s30 }
  0x24   : > { %s2245_s27 = scalar_select %p71_p6, %s2110_s14, %s73_s19  }
  0x25   : > { %s2053_s4 = scalar_lea.vmem %s198_s30, 12288  ;;  %s2127_s5 = smov [#allocation5]  }
  0x26   : > { %p2054_p12 = scmp.ne.s32.totalorder %s198_s30, %s2053_s4  ;;  %s2058_s6 = sshll.u32 %s2127_s5, 4  ;;  %s2059_s6 = int_to_ptr.vmem [resolvable:$false] %s2058_s6 }
  0x27   : > { %s2060_s7 = scalar_lea.vmem %s2059_s6, 24576  ;;  %p2061_p2 = scmp.lt.s32.totalorder %s198_s30, %s2059_s6 }
  0x28   : > { %p2056_p13 = pnand %p2054_p12, %p2042_p8  ;;  %p2062_p5 = scmp.lt.s32.totalorder %s2060_s7, %s2053_s4 }
  0x2a   : > { %p2057_p1 = pneg %p2056_p13  ;;  %p2063_p7 = por %p2062_p5, %p2061_p2 }
  0x2c   : > { %p2064_p9 = pnand %p2063_p7, %p2057_p1 }
  0x2e   : > { %2067 = shalt.err (!%p2064_p9)
}
  0x2f   : > { %s2128_s9 = smov 768   ;;  %s2129_s19 = smov 384  }
  0x30   : > { %s2130_s10 = smov 24   ;;  %217 = sbr.rel (%p2206_p10) target bundleno = 473 (0x1d9), region = 32 }
  0x31   : > { %1955 = dma.hbm_to_vmem [thread:$0]  (!%p2221_p0), %s196_s21, 12288, %s198_s30, %s184_s26, %s2128_s9, %s2129_s19, %s2130_s10  }
  0x35   : > { %2093 = dma.done.wait (%p2186_p3), [#allocation4], 8192  }
  0x36   : > { %2095 = vsyncadd (%p2186_p3), [#allocation4], 4294959104  ;;  %s223_s8 = sand.u32 1, %s2106_s13   ;;  %p2830_p11 = scmp.ne.s32.totalorder %s2825_s22, 0 }
  0x37   : > { %s2258_s11 = smul.u32 768, %s223_s8  ;;  %s224_s12 = scalar_lea.sflag [#allocation6], %s223_s8 }
  0x39   : > { %s2261_s18 = scalar_lea.vmem [#allocation5], %s2258_s11 }
  0x3a   : > { %2097 = dma.done.wait (%p2830_p11), %s224_s12, 12288  }
  0x3b   : > { %2099 = vsyncadd (%p2830_p11), %s224_s12, 4294955008  ;;  %v2131_v0 = vmov 0.0   ;;  %v570_v1 = vld [vmem:[%s2261_s18 + $0x170] sm:$0xff]  ;;  %v569_v2 = vld [vmem:[%s2261_s18 + $0x168] sm:$0xff]  ;;  %s257_s20 = smul.u32 3, %s2114_s15  ;;  %s2408_s21 = scalar_lea.vmem [#allocation7], %s2258_s11 }
  0x3c   : > { %877 = vmatprep.subr.mxu1 %v2131_v0  ;;  %v571_v3 = vld [vmem:[%s2261_s18 + $0x178] sm:$0xff]  ;;  %620 = vmatprep.subr.mxu0 %v570_v1  ;;  %v566_v5 = vld [vmem:[%s2261_s18 + $0x150] sm:$0xff]  ;;  %v568_v6 = vld [vmem:[%s2261_s18 + $0x160] sm:$0xff]  ;;  %p2831_p10 = scmp.ne.s32.totalorder %s2826_s23, 0 }
  0x3d   : > { %878 = vmatpush1.msra.mxu1 %v571_v3  ;;  %v567_v4 = vld [vmem:[%s2261_s18 + $0x158] sm:$0xff]  ;;  %621 = vmatpush1.msra.mxu0 %v569_v2  ;;  %v564_v7 = vld [vmem:[%s2261_s18 + $0x140] sm:$0xff]  ;;  %v565_v8 = vld [vmem:[%s2261_s18 + $0x148] sm:$0xff]  ;;  %p258_p3 = scmp.lt.s32.totalorder %s257_s20, 5  ;;  %s1939_s25 = smul.u32 (%p2831_p10), 24, %s2114_s15 }
  0x3e   : > { %879 = vmatprep.subr.mxu1 %v2131_v0  ;;  %622 = vmatprep.subr.mxu0 %v567_v4  ;;  %v563_v9 = vld [vmem:[%s2261_s18 + $0x138] sm:$0xff]  ;;  %v561_v10 = vld [vmem:[%s2261_s18 + $0x128] sm:$0xff]  ;;  %v562_v11 = vld [vmem:[%s2261_s18 + $0x130] sm:$0xff] }
  0x3f   : > { %880 = vmatpush1.msra.mxu1 %v568_v6  ;;  %623 = vmatpush1.msra.mxu0 %v566_v5  ;;  %v560_v12 = vld [vmem:[%s2261_s18 + $0x120] sm:$0xff]  ;;  %v558_v13 = vld [vmem:[%s2261_s18 + $0x110] sm:$0xff]  ;;  %v559_v14 = vld [vmem:[%s2261_s18 + $0x118] sm:$0xff]  ;;  %s2840_s20 = smov (!%p258_p3, %s257_s20), 5  ;;  %s2612_s26 = scalar_lea.vmem (%p2831_p10), %s2821_s3, %s1939_s25 }
  0x40   : > { %881 = vmatprep.subr.mxu1 %v2131_v0  ;;  %624 = vmatprep.subr.mxu0 %v564_v7  ;;  %v557_v15 = vld [vmem:[%s2261_s18 + $0x108] sm:$0xff]  ;;  %v555_v16 = vld [vmem:[%s2261_s18 + $0xf8] sm:$0xff]  ;;  %v556_v17 = vld [vmem:[%s2261_s18 + $0x100] sm:$0xff]  ;;  %s260_s28 = scalar_lea.vmem %s2820_s2, %s2840_s20 }
  0x41   : > { %882 = vmatpush1.msra.mxu1 %v565_v8  ;;  %625 = vmatpush1.msra.mxu0 %v563_v9  ;;  %v554_v18 = vld [vmem:[%s2261_s18 + $0xf0] sm:$0xff]  ;;  %v552_v19 = vld [vmem:[%s2261_s18 + $0xe0] sm:$0xff]  ;;  %v553_v20 = vld [vmem:[%s2261_s18 + $0xe8] sm:$0xff] }
  0x42   : > { %883 = vmatprep.subr.mxu1 %v2131_v0  ;;  %626 = vmatprep.subr.mxu0 %v561_v10  ;;  %v551_v21 = vld [vmem:[%s2261_s18 + $0xd8] sm:$0xff]  ;;  %v549_v22 = vld [vmem:[%s2261_s18 + $0xc8] sm:$0xff]  ;;  %v550_v23 = vld [vmem:[%s2261_s18 + $0xd0] sm:$0xff] }
  0x43   : > { %884 = vmatpush1.msra.mxu1 %v562_v11  ;;  %627 = vmatpush1.msra.mxu0 %v560_v12  ;;  %v548_v24 = vld [vmem:[%s2261_s18 + $0xc0] sm:$0xff]  ;;  %v546_v25 = vld [vmem:[%s2261_s18 + $0xb0] sm:$0xff]  ;;  %v547_v26 = vld [vmem:[%s2261_s18 + $0xb8] sm:$0xff] }
  0x44   : > { %885 = vmatprep.subr.mxu1 %v2131_v0  ;;  %628 = vmatprep.subr.mxu0 %v558_v13  ;;  %v545_v27 = vld [vmem:[%s2261_s18 + $0xa8] sm:$0xff]  ;;  %v543_v28 = vld [vmem:[%s2261_s18 + $0x98] sm:$0xff]  ;;  %v544_v29 = vld [vmem:[%s2261_s18 + $0xa0] sm:$0xff] }
  0x45   : > { %886 = vmatpush1.msra.mxu1 %v559_v14  ;;  %629 = vmatpush1.msra.mxu0 %v557_v15  ;;  %v542_v30 = vld [vmem:[%s2261_s18 + $0x90] sm:$0xff]  ;;  %v540_v31 = vld [vmem:[%s2261_s18 + $0x80] sm:$0xff]  ;;  %v541_v32 = vld [vmem:[%s2261_s18 + $0x88] sm:$0xff] }
  0x46   : > { %887 = vmatprep.subr.mxu1 %v2131_v0  ;;  %630 = vmatprep.subr.mxu0 %v555_v16  ;;  %v539_v33 = vld [vmem:[%s2261_s18 + $0x78] sm:$0xff]  ;;  %v537_v34 = vld [vmem:[%s2261_s18 + $0x68] sm:$0xff]  ;;  %v538_v35 = vld [vmem:[%s2261_s18 + $0x70] sm:$0xff] }
  0x47   : > { %888 = vmatpush1.msra.mxu1 %v556_v17  ;;  %631 = vmatpush1.msra.mxu0 %v554_v18  ;;  %v536_v36 = vld [vmem:[%s2261_s18 + $0x60] sm:$0xff]  ;;  %v534_v37 = vld [vmem:[%s2261_s18 + $0x50] sm:$0xff]  ;;  %v535_v38 = vld [vmem:[%s2261_s18 + $0x58] sm:$0xff] }
  0x48   : > { %889 = vmatprep.subr.mxu1 %v2131_v0  ;;  %632 = vmatprep.subr.mxu0 %v552_v19  ;;  %v533_v39 = vld [vmem:[%s2261_s18 + $0x48] sm:$0xff]  ;;  %v531_v40 = vld [vmem:[%s2261_s18 + $0x38] sm:$0xff]  ;;  %v532_v41 = vld [vmem:[%s2261_s18 + $0x40] sm:$0xff] }
  0x49   : > { %890 = vmatpush1.msra.mxu1 %v553_v20  ;;  %633 = vmatpush1.msra.mxu0 %v551_v21  ;;  %v530_v42 = vld [vmem:[%s2261_s18 + $0x30] sm:$0xff]  ;;  %v528_v43 = vld [vmem:[%s2261_s18 + $0x20] sm:$0xff]  ;;  %v529_v44 = vld [vmem:[%s2261_s18 + $0x28] sm:$0xff] }
  0x4a   : > { %891 = vmatprep.subr.mxu1 %v2131_v0  ;;  %634 = vmatprep.subr.mxu0 %v549_v22  ;;  %v527_v45 = vld [vmem:[%s2261_s18 + $0x18] sm:$0xff]  ;;  %v525_v46 = vld [vmem:[%s2261_s18 + $0x8] sm:$0xff]  ;;  %v526_v47 = vld [vmem:[%s2261_s18 + $0x10] sm:$0xff] }
  0x4b   : > { %892 = vmatpush1.msra.mxu1 %v550_v23  ;;  %635 = vmatpush1.msra.mxu0 %v548_v24  ;;  %v524_v48 = vld [vmem:[%s2261_s18] sm:$0xff]  ;;  %v618_v49 = vld [vmem:[%s2261_s18 + $0x2f0] sm:$0xff]  ;;  %v619_v50 = vld [vmem:[%s2261_s18 + $0x2f8] sm:$0xff] }
  0x4c   : > { %893 = vmatprep.subr.mxu1 %v2131_v0  ;;  %636 = vmatprep.subr.mxu0 %v546_v25  ;;  %v617_v51 = vld [vmem:[%s2261_s18 + $0x2e8] sm:$0xff]  ;;  %v615_v52 = vld [vmem:[%s2261_s18 + $0x2d8] sm:$0xff]  ;;  %v616_v53 = vld [vmem:[%s2261_s18 + $0x2e0] sm:$0xff] }
  0x4d   : > { %894 = vmatpush1.msra.mxu1 %v547_v26  ;;  %637 = vmatpush1.msra.mxu0 %v545_v27  ;;  %v614_v54 = vld [vmem:[%s2261_s18 + $0x2d0] sm:$0xff]  ;;  %v612_v55 = vld [vmem:[%s2261_s18 + $0x2c0] sm:$0xff]  ;;  %v613_v56 = vld [vmem:[%s2261_s18 + $0x2c8] sm:$0xff] }
  0x4e   : > { %895 = vmatprep.subr.mxu1 %v2131_v0  ;;  %638 = vmatprep.subr.mxu0 %v543_v28  ;;  %v611_v57 = vld [vmem:[%s2261_s18 + $0x2b8] sm:$0xff]  ;;  %v609_v58 = vld [vmem:[%s2261_s18 + $0x2a8] sm:$0xff]  ;;  %v610_v59 = vld [vmem:[%s2261_s18 + $0x2b0] sm:$0xff] }
  0x4f   : > { %896 = vmatpush1.msra.mxu1 %v544_v29  ;;  %639 = vmatpush1.msra.mxu0 %v542_v30  ;;  %v608_v60 = vld [vmem:[%s2261_s18 + $0x2a0] sm:$0xff]  ;;  %v606_v61 = vld [vmem:[%s2261_s18 + $0x290] sm:$0xff]  ;;  %v607_v62 = vld [vmem:[%s2261_s18 + $0x298] sm:$0xff] }
  0x50   : > { %897 = vmatprep.subr.mxu1 %v2131_v0  ;;  %640 = vmatprep.subr.mxu0 %v540_v31  ;;  %v605_v63 = vld [vmem:[%s2261_s18 + $0x288] sm:$0xff]  ;;  %v603_v1 = vld [vmem:[%s2261_s18 + $0x278] sm:$0xff]  ;;  %v604_v2 = vld [vmem:[%s2261_s18 + $0x280] sm:$0xff] }
  0x51   : > { %898 = vmatpush1.msra.mxu1 %v541_v32  ;;  %641 = vmatpush1.msra.mxu0 %v539_v33  ;;  %v602_v3 = vld [vmem:[%s2261_s18 + $0x270] sm:$0xff]  ;;  %v600_v4 = vld [vmem:[%s2261_s18 + $0x260] sm:$0xff]  ;;  %v601_v5 = vld [vmem:[%s2261_s18 + $0x268] sm:$0xff] }
  0x52   : > { %899 = vmatprep.subr.mxu1 %v2131_v0  ;;  %642 = vmatprep.subr.mxu0 %v537_v34  ;;  %v599_v6 = vld [vmem:[%s2261_s18 + $0x258] sm:$0xff]  ;;  %v597_v7 = vld [vmem:[%s2261_s18 + $0x248] sm:$0xff]  ;;  %v598_v8 = vld [vmem:[%s2261_s18 + $0x250] sm:$0xff] }
  0x53   : > { %900 = vmatpush1.msra.mxu1 %v538_v35  ;;  %643 = vmatpush1.msra.mxu0 %v536_v36  ;;  %v596_v9 = vld [vmem:[%s2261_s18 + $0x240] sm:$0xff]  ;;  %v594_v10 = vld [vmem:[%s2261_s18 + $0x230] sm:$0xff]  ;;  %v595_v11 = vld [vmem:[%s2261_s18 + $0x238] sm:$0xff] }
  0x54   : > { %901 = vmatprep.subr.mxu1 %v2131_v0  ;;  %644 = vmatprep.subr.mxu0 %v534_v37  ;;  %v593_v12 = vld [vmem:[%s2261_s18 + $0x228] sm:$0xff]  ;;  %v591_v13 = vld [vmem:[%s2261_s18 + $0x218] sm:$0xff]  ;;  %v592_v14 = vld [vmem:[%s2261_s18 + $0x220] sm:$0xff] }
  0x55   : > { %902 = vmatpush1.msra.mxu1 %v535_v38  ;;  %645 = vmatpush1.msra.mxu0 %v533_v39  ;;  %v590_v15 = vld [vmem:[%s2261_s18 + $0x210] sm:$0xff]  ;;  %v588_v16 = vld [vmem:[%s2261_s18 + $0x200] sm:$0xff]  ;;  %v589_v17 = vld [vmem:[%s2261_s18 + $0x208] sm:$0xff] }
  0x56   : > { %903 = vmatprep.subr.mxu1 %v2131_v0  ;;  %646 = vmatprep.subr.mxu0 %v531_v40  ;;  %v587_v18 = vld [vmem:[%s2261_s18 + $0x1f8] sm:$0xff]  ;;  %v585_v19 = vld [vmem:[%s2261_s18 + $0x1e8] sm:$0xff]  ;;  %v586_v20 = vld [vmem:[%s2261_s18 + $0x1f0] sm:$0xff] }
  0x57   : > { %904 = vmatpush1.msra.mxu1 %v532_v41  ;;  %647 = vmatpush1.msra.mxu0 %v530_v42  ;;  %v584_v21 = vld [vmem:[%s2261_s18 + $0x1e0] sm:$0xff]  ;;  %v582_v22 = vld [vmem:[%s2261_s18 + $0x1d0] sm:$0xff]  ;;  %v583_v23 = vld [vmem:[%s2261_s18 + $0x1d8] sm:$0xff] }
  0x58   : > { %905 = vmatprep.subr.mxu1 %v2131_v0  ;;  %648 = vmatprep.subr.mxu0 %v528_v43  ;;  %v581_v24 = vld [vmem:[%s2261_s18 + $0x1c8] sm:$0xff]  ;;  %v579_v25 = vld [vmem:[%s2261_s18 + $0x1b8] sm:$0xff]  ;;  %v580_v26 = vld [vmem:[%s2261_s18 + $0x1c0] sm:$0xff] }
  0x59   : > { %906 = vmatpush1.msra.mxu1 %v529_v44  ;;  %649 = vmatpush1.msra.mxu0 %v527_v45  ;;  %v578_v27 = vld [vmem:[%s2261_s18 + $0x1b0] sm:$0xff]  ;;  %v576_v28 = vld [vmem:[%s2261_s18 + $0x1a0] sm:$0xff]  ;;  %v577_v29 = vld [vmem:[%s2261_s18 + $0x1a8] sm:$0xff] }
  0x5a   : > { %907 = vmatprep.subr.mxu1 %v2131_v0  ;;  %650 = vmatprep.subr.mxu0 %v525_v46  ;;  %v575_v30 = vld [vmem:[%s2261_s18 + $0x198] sm:$0xff]  ;;  %v573_v31 = vld [vmem:[%s2261_s18 + $0x188] sm:$0xff]  ;;  %v572_v33 = vld [vmem:[%s2261_s18 + $0x180] sm:$0xff] }
  0x5b   : > { %908 = vmatpush1.msra.mxu1 %v526_v47  ;;  %651 = vmatpush1.msra.mxu0 %v524_v48  ;;  %v461_v32 = vld [vmem:[#allocation3 + $0x8] sm:$0xff]  ;;  %v574_v34 = vld [vmem:[%s2261_s18 + $0x190] sm:$0xff]  ;;  %v460_v35 = vld [vmem:[#allocation3] sm:$0xff] }
  0x5c   : > { %909 = vmatprep.subr.mxu1 %v2131_v0  ;;  %652 = vmatprep.subr.mxu0 %v618_v49  ;;  %v463_v36 = vld [vmem:[#allocation3 + $0x18] sm:$0xff]  ;;  %v462_v37 = vld [vmem:[#allocation3 + $0x10] sm:$0xff]  ;;  %v465_v38 = vld [vmem:[#allocation3 + $0x28] sm:$0xff] }
  0x5d   : > { %910 = vmatpush2.msra.mxu1 %v619_v50  ;;  %653 = vmatpush2.msra.mxu0 %v617_v51  ;;  %v464_v39 = vld [vmem:[#allocation3 + $0x20] sm:$0xff]  ;;  %v467_v40 = vld [vmem:[#allocation3 + $0x38] sm:$0xff]  ;;  %v469_v41 = vld [vmem:[#allocation3 + $0x48] sm:$0xff] }
  0x5e   : > { %911 = vmatprep.subr.mxu1 %v2131_v0  ;;  %654 = vmatprep.subr.mxu0 %v615_v52  ;;  %v468_v42 = vld [vmem:[#allocation3 + $0x40] sm:$0xff]  ;;  %v471_v43 = vld [vmem:[#allocation3 + $0x58] sm:$0xff]  ;;  %v470_v44 = vld [vmem:[#allocation3 + $0x50] sm:$0xff] }
  0x5f   : > { %912 = vmatpush2.msra.mxu1 %v616_v53  ;;  %655 = vmatpush2.msra.mxu0 %v614_v54  ;;  %v473_v45 = vld [vmem:[#allocation3 + $0x68] sm:$0xff]  ;;  %v472_v46 = vld [vmem:[#allocation3 + $0x60] sm:$0xff]  ;;  %v475_v47 = vld [vmem:[#allocation3 + $0x78] sm:$0xff] }
  0x60   : > { %913 = vmatprep.subr.mxu1 %v2131_v0  ;;  %656 = vmatprep.subr.mxu0 %v612_v55  ;;  %v474_v48 = vld [vmem:[#allocation3 + $0x70] sm:$0xff]  ;;  %v477_v49 = vld [vmem:[#allocation3 + $0x88] sm:$0xff]  ;;  %v476_v50 = vld [vmem:[#allocation3 + $0x80] sm:$0xff] }
  0x61   : > { %914 = vmatpush2.msra.mxu1 %v613_v56  ;;  %657 = vmatpush2.msra.mxu0 %v611_v57  ;;  %v479_v51 = vld [vmem:[#allocation3 + $0x98] sm:$0xff]  ;;  %v478_v52 = vld [vmem:[#allocation3 + $0x90] sm:$0xff]  ;;  %v481_v53 = vld [vmem:[#allocation3 + $0xa8] sm:$0xff] }
  0x62   : > { %915 = vmatprep.subr.mxu1 %v2131_v0  ;;  %658 = vmatprep.subr.mxu0 %v609_v58  ;;  %v480_v54 = vld [vmem:[#allocation3 + $0xa0] sm:$0xff]  ;;  %v483_v55 = vld [vmem:[#allocation3 + $0xb8] sm:$0xff]  ;;  %v482_v56 = vld [vmem:[#allocation3 + $0xb0] sm:$0xff] }
  0x63   : > { %916 = vmatpush2.msra.mxu1 %v610_v59  ;;  %659 = vmatpush2.msra.mxu0 %v608_v60  ;;  %v485_v57 = vld [vmem:[#allocation3 + $0xc8] sm:$0xff]  ;;  %v484_v58 = vld [vmem:[#allocation3 + $0xc0] sm:$0xff]  ;;  %v487_v59 = vld [vmem:[#allocation3 + $0xd8] sm:$0xff] }
  0x64   : > { %917 = vmatprep.subr.mxu1 %v2131_v0  ;;  %660 = vmatprep.subr.mxu0 %v606_v61  ;;  %v486_v60 = vld [vmem:[#allocation3 + $0xd0] sm:$0xff]  ;;  %v489_v61 = vld [vmem:[#allocation3 + $0xe8] sm:$0xff] }
  0x65   : > { %918 = vmatpush2.msra.mxu1 %v607_v62  ;;  %661 = vmatpush2.msra.mxu0 %v605_v63  ;;  %v488_v62 = vld [vmem:[#allocation3 + $0xe0] sm:$0xff]  ;;  %v491_v63 = vld [vmem:[#allocation3 + $0xf8] sm:$0xff] }
  0x66   : > { %919 = vmatprep.subr.mxu1 %v2131_v0  ;;  %662 = vmatprep.subr.mxu0 %v603_v1  ;;  %v490_v1 = vld [vmem:[#allocation3 + $0xf0] sm:$0xff] }
  0x67   : > { %920 = vmatpush2.msra.mxu1 %v604_v2  ;;  %663 = vmatpush2.msra.mxu0 %v602_v3  ;;  %v493_v2 = vld [vmem:[#allocation3 + $0x108] sm:$0xff]  ;;  %v492_v3 = vld [vmem:[#allocation3 + $0x100] sm:$0xff] }
  0x68   : > { %921 = vmatprep.subr.mxu1 %v2131_v0  ;;  %664 = vmatprep.subr.mxu0 %v600_v4  ;;  %v495_v4 = vld [vmem:[#allocation3 + $0x118] sm:$0xff] }
  0x69   : > { %922 = vmatpush2.msra.mxu1 %v601_v5  ;;  %665 = vmatpush2.msra.mxu0 %v599_v6  ;;  %v494_v5 = vld [vmem:[#allocation3 + $0x110] sm:$0xff]  ;;  %v497_v6 = vld [vmem:[#allocation3 + $0x128] sm:$0xff] }
  0x6a   : > { %923 = vmatprep.subr.mxu1 %v2131_v0  ;;  %666 = vmatprep.subr.mxu0 %v597_v7  ;;  %v496_v7 = vld [vmem:[#allocation3 + $0x120] sm:$0xff] }
  0x6b   : > { %924 = vmatpush2.msra.mxu1 %v598_v8  ;;  %667 = vmatpush2.msra.mxu0 %v596_v9  ;;  %v499_v8 = vld [vmem:[#allocation3 + $0x138] sm:$0xff]  ;;  %v498_v9 = vld [vmem:[#allocation3 + $0x130] sm:$0xff] }
  0x6c   : > { %925 = vmatprep.subr.mxu1 %v2131_v0  ;;  %668 = vmatprep.subr.mxu0 %v594_v10  ;;  %v501_v10 = vld [vmem:[#allocation3 + $0x148] sm:$0xff] }
  0x6d   : > { %926 = vmatpush2.msra.mxu1 %v595_v11  ;;  %669 = vmatpush2.msra.mxu0 %v593_v12  ;;  %v500_v11 = vld [vmem:[#allocation3 + $0x140] sm:$0xff]  ;;  %v503_v12 = vld [vmem:[#allocation3 + $0x158] sm:$0xff] }
  0x6e   : > { %927 = vmatprep.subr.mxu1 %v2131_v0  ;;  %670 = vmatprep.subr.mxu0 %v591_v13  ;;  %v502_v13 = vld [vmem:[#allocation3 + $0x150] sm:$0xff] }
  0x6f   : > { %928 = vmatpush2.msra.mxu1 %v592_v14  ;;  %671 = vmatpush2.msra.mxu0 %v590_v15  ;;  %v505_v14 = vld [vmem:[#allocation3 + $0x168] sm:$0xff]  ;;  %v504_v15 = vld [vmem:[#allocation3 + $0x160] sm:$0xff] }
  0x70   : > { %929 = vmatprep.subr.mxu1 %v2131_v0  ;;  %672 = vmatprep.subr.mxu0 %v588_v16  ;;  %v507_v16 = vld [vmem:[#allocation3 + $0x178] sm:$0xff] }
  0x71   : > { %930 = vmatpush2.msra.mxu1 %v589_v17  ;;  %673 = vmatpush2.msra.mxu0 %v587_v18  ;;  %v506_v17 = vld [vmem:[#allocation3 + $0x170] sm:$0xff]  ;;  %v509_v18 = vld [vmem:[#allocation3 + $0x188] sm:$0xff] }
  0x72   : > { %931 = vmatprep.subr.mxu1 %v2131_v0  ;;  %674 = vmatprep.subr.mxu0 %v585_v19  ;;  %v508_v19 = vld [vmem:[#allocation3 + $0x180] sm:$0xff] }
  0x73   : > { %932 = vmatpush2.msra.mxu1 %v586_v20  ;;  %675 = vmatpush2.msra.mxu0 %v584_v21  ;;  %v511_v20 = vld [vmem:[#allocation3 + $0x198] sm:$0xff]  ;;  %v510_v21 = vld [vmem:[#allocation3 + $0x190] sm:$0xff] }
  0x74   : > { %933 = vmatprep.subr.mxu1 %v2131_v0  ;;  %676 = vmatprep.subr.mxu0 %v582_v22  ;;  %v513_v22 = vld [vmem:[#allocation3 + $0x1a8] sm:$0xff] }
  0x75   : > { %934 = vmatpush2.msra.mxu1 %v583_v23  ;;  %677 = vmatpush2.msra.mxu0 %v581_v24  ;;  %v512_v23 = vld [vmem:[#allocation3 + $0x1a0] sm:$0xff]  ;;  %v515_v24 = vld [vmem:[#allocation3 + $0x1b8] sm:$0xff] }
  0x76   : > { %935 = vmatprep.subr.mxu1 %v2131_v0  ;;  %678 = vmatprep.subr.mxu0 %v579_v25  ;;  %v514_v25 = vld [vmem:[#allocation3 + $0x1b0] sm:$0xff] }
  0x77   : > { %936 = vmatpush2.msra.mxu1 %v580_v26  ;;  %679 = vmatpush2.msra.mxu0 %v578_v27  ;;  %v517_v26 = vld [vmem:[#allocation3 + $0x1c8] sm:$0xff]  ;;  %v516_v27 = vld [vmem:[#allocation3 + $0x1c0] sm:$0xff] }
  0x78   : > { %937 = vmatprep.subr.mxu1 %v2131_v0  ;;  %680 = vmatprep.subr.mxu0 %v576_v28  ;;  %v519_v28 = vld [vmem:[#allocation3 + $0x1d8] sm:$0xff] }
  0x79   : > { %938 = vmatpush2.msra.mxu1 %v577_v29  ;;  %681 = vmatpush2.msra.mxu0 %v575_v30  ;;  %v518_v29 = vld [vmem:[#allocation3 + $0x1d0] sm:$0xff]  ;;  %v521_v30 = vld [vmem:[#allocation3 + $0x1e8] sm:$0xff] }
  0x7a   : > { %939 = vmatprep.subr.mxu1 %v2131_v0  ;;  %682 = vmatprep.subr.mxu0 %v573_v31  ;;  %v466_v0 = vld [vmem:[#allocation3 + $0x30] sm:$0xff]  ;;  %v520_v31 = vld [vmem:[#allocation3 + $0x1e0] sm:$0xff] }
  0x7b   : > { %684 = vmatprep.mubr.f32.mxu0 %v461_v32  ;;  %683 = vmatpush2.msra.mxu0 %v572_v33  ;;  %v522_v33 = vld [vmem:[#allocation3 + $0x1f0] sm:$0xff] }
  0x7c   : > { %940 = vmatpush2.msra.mxu1 %v574_v34  ;;  %941 = vmatprep.mubr.f32.mxu1 %v461_v32  ;;  %v523_v32 = vld [vmem:[#allocation3 + $0x1f8] sm:$0xff]  ;;  %v1395_v34 = vlaneseq }
  0x7d   : > { %685 = vmatmul.mubr.f32.vlgmr.msra.gmra.mxu0 %v460_v35  ;;  %942 = vmatmul.mubr.f32.vlgmr.msra.gmra.mxu1 %v460_v35 }
  0x7e   : > { %690 = vmatprep.mubr.f32.mxu0 %v463_v36  ;;  %946 = vmatprep.mubr.f32.mxu1 %v463_v36  ;;  %v1396_v35 = vshrl.u32 %v1395_v34, 7 }
  0x80   : > { %v1397_v36 = vsub.s32 0, %v1396_v35 }
  0x81   : > { %691 = vmatmul.mubr.f32.gmra.mxu0 %v462_v37  ;;  %947 = vmatmul.mubr.f32.gmra.mxu1 %v462_v37  ;;  %v1393_v37 = vld [vmem:[%s260_s28] sm:$0x7] }
  0x82   : > { %696 = vmatprep.mubr.f32.mxu0 %v465_v38  ;;  %951 = vmatprep.mubr.f32.mxu1 %v465_v38  ;;  %v1405_v38 = vsub.s32 2, %v1396_v35 }
  0x85   : > { %697 = vmatmul.mubr.f32.gmra.mxu0 %v464_v39  ;;  %952 = vmatmul.mubr.f32.gmra.mxu1 %v464_v39  ;;  %v1401_v39 = vsub.s32 1, %v1396_v35 }
  0x86   : > { %702 = vmatprep.mubr.f32.mxu0 %v467_v40  ;;  %956 = vmatprep.mubr.f32.mxu1 %v467_v40  ;;  %v2399_v40 = vrot.slane %v1393_v37, %v1397_v36 }
  0x89   : > { %703 = vmatmul.mubr.f32.gmra.mxu0 %v466_v0  ;;  %957 = vmatmul.mubr.f32.gmra.mxu1 %v466_v0  ;;  %v2401_v0 = vrot.slane %v1393_v37, %v1405_v38 }
  0x8a   : > { %708 = vmatprep.mubr.f32.mxu0 %v469_v41  ;;  %961 = vmatprep.mubr.f32.mxu1 %v469_v41  ;;  %v2403_v41 = vrot.slane %v1393_v37, %v1401_v39 }
  0x8d   : > { %709 = vmatmul.mubr.f32.gmra.mxu0 %v468_v42  ;;  %962 = vmatmul.mubr.f32.gmra.mxu1 %v468_v42 }
  0x8e   : > { %714 = vmatprep.mubr.f32.mxu0 %v471_v43  ;;  %966 = vmatprep.mubr.f32.mxu1 %v471_v43 }
  0x91   : > { %715 = vmatmul.mubr.f32.gmra.mxu0 %v470_v44  ;;  %967 = vmatmul.mubr.f32.gmra.mxu1 %v470_v44 }
  0x92   : > { %720 = vmatprep.mubr.f32.mxu0 %v473_v45  ;;  %971 = vmatprep.mubr.f32.mxu1 %v473_v45 }
  0x95   : > { %721 = vmatmul.mubr.f32.gmra.mxu0 %v472_v46  ;;  %972 = vmatmul.mubr.f32.gmra.mxu1 %v472_v46 }
  0x96   : > { %726 = vmatprep.mubr.f32.mxu0 %v475_v47  ;;  %976 = vmatprep.mubr.f32.mxu1 %v475_v47 }
  0x99   : > { %727 = vmatmul.mubr.f32.gmra.mxu0 %v474_v48  ;;  %977 = vmatmul.mubr.f32.gmra.mxu1 %v474_v48 }
  0x9a   : > { %732 = vmatprep.mubr.f32.mxu0 %v477_v49  ;;  %981 = vmatprep.mubr.f32.mxu1 %v477_v49 }
  0x9d   : > { %733 = vmatmul.mubr.f32.gmra.mxu0 %v476_v50  ;;  %982 = vmatmul.mubr.f32.gmra.mxu1 %v476_v50 }
  0x9e   : > { %738 = vmatprep.mubr.f32.mxu0 %v479_v51  ;;  %986 = vmatprep.mubr.f32.mxu1 %v479_v51 }
  0xa1   : > { %739 = vmatmul.mubr.f32.gmra.mxu0 %v478_v52  ;;  %987 = vmatmul.mubr.f32.gmra.mxu1 %v478_v52 }
  0xa2   : > { %744 = vmatprep.mubr.f32.mxu0 %v481_v53  ;;  %991 = vmatprep.mubr.f32.mxu1 %v481_v53 }
  0xa5   : > { %745 = vmatmul.mubr.f32.gmra.mxu0 %v480_v54  ;;  %992 = vmatmul.mubr.f32.gmra.mxu1 %v480_v54 }
  0xa6   : > { %750 = vmatprep.mubr.f32.mxu0 %v483_v55  ;;  %996 = vmatprep.mubr.f32.mxu1 %v483_v55 }
  0xa9   : > { %751 = vmatmul.mubr.f32.gmra.mxu0 %v482_v56  ;;  %997 = vmatmul.mubr.f32.gmra.mxu1 %v482_v56 }
  0xaa   : > { %756 = vmatprep.mubr.f32.mxu0 %v485_v57  ;;  %1001 = vmatprep.mubr.f32.mxu1 %v485_v57 }
  0xad   : > { %757 = vmatmul.mubr.f32.gmra.mxu0 %v484_v58  ;;  %1002 = vmatmul.mubr.f32.gmra.mxu1 %v484_v58 }
  0xae   : > { %762 = vmatprep.mubr.f32.mxu0 %v487_v59  ;;  %1006 = vmatprep.mubr.f32.mxu1 %v487_v59 }
  0xb1   : > { %763 = vmatmul.mubr.f32.gmra.mxu0 %v486_v60  ;;  %1007 = vmatmul.mubr.f32.gmra.mxu1 %v486_v60 }
  0xb2   : > { %768 = vmatprep.mubr.f32.mxu0 %v489_v61  ;;  %1011 = vmatprep.mubr.f32.mxu1 %v489_v61 }
  0xb5   : > { %769 = vmatmul.mubr.f32.gmra.mxu0 %v488_v62  ;;  %1012 = vmatmul.mubr.f32.gmra.mxu1 %v488_v62 }
  0xb6   : > { %774 = vmatprep.mubr.f32.mxu0 %v491_v63  ;;  %1016 = vmatprep.mubr.f32.mxu1 %v491_v63 }
  0xb9   : > { %775 = vmatmul.mubr.f32.gmra.mxu0 %v490_v1  ;;  %1017 = vmatmul.mubr.f32.gmra.mxu1 %v490_v1 }
  0xba   : > { %780 = vmatprep.mubr.f32.mxu0 %v493_v2  ;;  %1021 = vmatprep.mubr.f32.mxu1 %v493_v2 }
  0xbd   : > { %781 = vmatmul.mubr.f32.gmra.mxu0 %v492_v3  ;;  %1022 = vmatmul.mubr.f32.gmra.mxu1 %v492_v3 }
  0xbe   : > { %786 = vmatprep.mubr.f32.mxu0 %v495_v4  ;;  %1026 = vmatprep.mubr.f32.mxu1 %v495_v4 }
  0xc1   : > { %787 = vmatmul.mubr.f32.gmra.mxu0 %v494_v5  ;;  %1027 = vmatmul.mubr.f32.gmra.mxu1 %v494_v5 }
  0xc2   : > { %792 = vmatprep.mubr.f32.mxu0 %v497_v6  ;;  %1031 = vmatprep.mubr.f32.mxu1 %v497_v6 }
  0xc5   : > { %793 = vmatmul.mubr.f32.gmra.mxu0 %v496_v7  ;;  %1032 = vmatmul.mubr.f32.gmra.mxu1 %v496_v7 }
  0xc6   : > { %798 = vmatprep.mubr.f32.mxu0 %v499_v8  ;;  %1036 = vmatprep.mubr.f32.mxu1 %v499_v8 }
  0xc9   : > { %799 = vmatmul.mubr.f32.gmra.mxu0 %v498_v9  ;;  %1037 = vmatmul.mubr.f32.gmra.mxu1 %v498_v9 }
  0xca   : > { %804 = vmatprep.mubr.f32.mxu0 %v501_v10  ;;  %1041 = vmatprep.mubr.f32.mxu1 %v501_v10 }
  0xcd   : > { %805 = vmatmul.mubr.f32.gmra.mxu0 %v500_v11  ;;  %1042 = vmatmul.mubr.f32.gmra.mxu1 %v500_v11 }
  0xce   : > { %810 = vmatprep.mubr.f32.mxu0 %v503_v12  ;;  %1046 = vmatprep.mubr.f32.mxu1 %v503_v12 }
  0xd1   : > { %811 = vmatmul.mubr.f32.gmra.mxu0 %v502_v13  ;;  %1047 = vmatmul.mubr.f32.gmra.mxu1 %v502_v13 }
  0xd2   : > { %816 = vmatprep.mubr.f32.mxu0 %v505_v14  ;;  %1051 = vmatprep.mubr.f32.mxu1 %v505_v14 }
  0xd5   : > { %817 = vmatmul.mubr.f32.gmra.mxu0 %v504_v15  ;;  %1052 = vmatmul.mubr.f32.gmra.mxu1 %v504_v15 }
  0xd6   : > { %822 = vmatprep.mubr.f32.mxu0 %v507_v16  ;;  %1056 = vmatprep.mubr.f32.mxu1 %v507_v16 }
  0xd9   : > { %823 = vmatmul.mubr.f32.gmra.mxu0 %v506_v17  ;;  %1057 = vmatmul.mubr.f32.gmra.mxu1 %v506_v17 }
  0xda   : > { %828 = vmatprep.mubr.f32.mxu0 %v509_v18  ;;  %1061 = vmatprep.mubr.f32.mxu1 %v509_v18 }
  0xdd   : > { %829 = vmatmul.mubr.f32.gmra.mxu0 %v508_v19  ;;  %1062 = vmatmul.mubr.f32.gmra.mxu1 %v508_v19 }
  0xde   : > { %834 = vmatprep.mubr.f32.mxu0 %v511_v20  ;;  %1066 = vmatprep.mubr.f32.mxu1 %v511_v20 }
  0xe1   : > { %835 = vmatmul.mubr.f32.gmra.mxu0 %v510_v21  ;;  %1067 = vmatmul.mubr.f32.gmra.mxu1 %v510_v21 }
  0xe2   : > { %840 = vmatprep.mubr.f32.mxu0 %v513_v22  ;;  %1071 = vmatprep.mubr.f32.mxu1 %v513_v22 }
  0xe5   : > { %841 = vmatmul.mubr.f32.gmra.mxu0 %v512_v23  ;;  %1072 = vmatmul.mubr.f32.gmra.mxu1 %v512_v23 }
  0xe6   : > { %846 = vmatprep.mubr.f32.mxu0 %v515_v24  ;;  %1076 = vmatprep.mubr.f32.mxu1 %v515_v24 }
  0xe9   : > { %847 = vmatmul.mubr.f32.gmra.mxu0 %v514_v25  ;;  %1077 = vmatmul.mubr.f32.gmra.mxu1 %v514_v25 }
  0xea   : > { %852 = vmatprep.mubr.f32.mxu0 %v517_v26  ;;  %1081 = vmatprep.mubr.f32.mxu1 %v517_v26 }
  0xed   : > { %853 = vmatmul.mubr.f32.gmra.mxu0 %v516_v27  ;;  %1082 = vmatmul.mubr.f32.gmra.mxu1 %v516_v27 }
  0xee   : > { %858 = vmatprep.mubr.f32.mxu0 %v519_v28  ;;  %1086 = vmatprep.mubr.f32.mxu1 %v519_v28 }
  0xf1   : > { %859 = vmatmul.mubr.f32.gmra.mxu0 %v518_v29  ;;  %1087 = vmatmul.mubr.f32.gmra.mxu1 %v518_v29 }
  0xf2   : > { %864 = vmatprep.mubr.f32.mxu0 %v521_v30  ;;  %1091 = vmatprep.mubr.f32.mxu1 %v521_v30 }
  0xf5   : > { %865 = vmatmul.mubr.f32.gmra.mxu0 %v520_v31  ;;  %1092 = vmatmul.mubr.f32.gmra.mxu1 %v520_v31 }
  0xf6   : > { %870 = vmatprep.mubr.f32.mxu0 %v523_v32  ;;  %1096 = vmatprep.mubr.f32.mxu1 %v523_v32 }
  0xf9   : > { %871 = vmatmul.mubr.f32.gmra.mxu0 %v522_v33  ;;  %1097 = vmatmul.mubr.f32.gmra.mxu1 %v522_v33 }
 0x13d   : > { %v686_v42 = vpop.f32.mrf.mxu0  ;;  %v943_v44 = vpop.f32.mrf.mxu1 }
 0x13e   : > { %v1410_v43 = vadd.f32 %v2399_v40, %v686_v42  ;;  %v1412_v45 = vadd.f32 %v2401_v0, %v943_v44 }
 0x13f   : > { %v688_v46 = vpop.f32.mrf.mxu0  ;;  %v945_v48 = vpop.f32.mrf.mxu1 }
 0x140   : > { %1506 = vst [vmem:[%s2408_s21] sm:$0xff] %v1410_v43  ;;  %v1411_v47 = vadd.f32 %v2403_v41, %v688_v46  ;;  %1508 = vst [vmem:[%s2408_s21 + $0x10] sm:$0xff] %v1412_v45 }
 0x141   : > { %v692_v49 = vpop.f32.mrf.mxu0  ;;  %v948_v51 = vpop.f32.mrf.mxu1 }
 0x142   : > { %1507 = vst [vmem:[%s2408_s21 + $0x8] sm:$0xff] %v1411_v47  ;;  %v1413_v50 = vadd.f32 %v2399_v40, %v692_v49  ;;  %v1415_v52 = vadd.f32 %v2401_v0, %v948_v51 }
 0x143   : > { %v694_v53 = vpop.f32.mrf.mxu0  ;;  %v950_v55 = vpop.f32.mrf.mxu1 }
 0x144   : > { %1509 = vst [vmem:[%s2408_s21 + $0x18] sm:$0xff] %v1413_v50  ;;  %v1414_v54 = vadd.f32 %v2403_v41, %v694_v53  ;;  %1511 = vst [vmem:[%s2408_s21 + $0x28] sm:$0xff] %v1415_v52 }
 0x145   : > { %v698_v56 = vpop.f32.mrf.mxu0  ;;  %v953_v58 = vpop.f32.mrf.mxu1 }
 0x146   : > { %1510 = vst [vmem:[%s2408_s21 + $0x20] sm:$0xff] %v1414_v54  ;;  %v1416_v57 = vadd.f32 %v2399_v40, %v698_v56  ;;  %v1418_v59 = vadd.f32 %v2401_v0, %v953_v58 }
 0x147   : > { %v700_v60 = vpop.f32.mrf.mxu0  ;;  %v955_v62 = vpop.f32.mrf.mxu1 }
 0x148   : > { %1512 = vst [vmem:[%s2408_s21 + $0x30] sm:$0xff] %v1416_v57  ;;  %v1417_v61 = vadd.f32 %v2403_v41, %v700_v60  ;;  %1514 = vst [vmem:[%s2408_s21 + $0x40] sm:$0xff] %v1418_v59 }
 0x149   : > { %v704_v63 = vpop.f32.mrf.mxu0  ;;  %v958_v2 = vpop.f32.mrf.mxu1 }
 0x14a   : > { %1513 = vst [vmem:[%s2408_s21 + $0x38] sm:$0xff] %v1417_v61  ;;  %v1419_v1 = vadd.f32 %v2399_v40, %v704_v63  ;;  %v1421_v3 = vadd.f32 %v2401_v0, %v958_v2 }
 0x14b   : > { %v706_v4 = vpop.f32.mrf.mxu0  ;;  %v960_v6 = vpop.f32.mrf.mxu1 }
 0x14c   : > { %1515 = vst [vmem:[%s2408_s21 + $0x48] sm:$0xff] %v1419_v1  ;;  %v1420_v5 = vadd.f32 %v2403_v41, %v706_v4  ;;  %1517 = vst [vmem:[%s2408_s21 + $0x58] sm:$0xff] %v1421_v3 }
 0x14d   : > { %v710_v7 = vpop.f32.mrf.mxu0  ;;  %v963_v9 = vpop.f32.mrf.mxu1 }
 0x14e   : > { %1516 = vst [vmem:[%s2408_s21 + $0x50] sm:$0xff] %v1420_v5  ;;  %v1422_v8 = vadd.f32 %v2399_v40, %v710_v7  ;;  %v1424_v10 = vadd.f32 %v2401_v0, %v963_v9 }
 0x14f   : > { %v712_v11 = vpop.f32.mrf.mxu0  ;;  %v965_v13 = vpop.f32.mrf.mxu1 }
 0x150   : > { %1518 = vst [vmem:[%s2408_s21 + $0x60] sm:$0xff] %v1422_v8  ;;  %v1423_v12 = vadd.f32 %v2403_v41, %v712_v11  ;;  %1520 = vst [vmem:[%s2408_s21 + $0x70] sm:$0xff] %v1424_v10 }
 0x151   : > { %v716_v14 = vpop.f32.mrf.mxu0  ;;  %v968_v16 = vpop.f32.mrf.mxu1 }
 0x152   : > { %1519 = vst [vmem:[%s2408_s21 + $0x68] sm:$0xff] %v1423_v12  ;;  %v1425_v15 = vadd.f32 %v2399_v40, %v716_v14  ;;  %v1427_v17 = vadd.f32 %v2401_v0, %v968_v16 }
 0x153   : > { %v718_v18 = vpop.f32.mrf.mxu0  ;;  %v970_v20 = vpop.f32.mrf.mxu1 }
 0x154   : > { %1521 = vst [vmem:[%s2408_s21 + $0x78] sm:$0xff] %v1425_v15  ;;  %v1426_v19 = vadd.f32 %v2403_v41, %v718_v18  ;;  %1523 = vst [vmem:[%s2408_s21 + $0x88] sm:$0xff] %v1427_v17 }
 0x155   : > { %v722_v21 = vpop.f32.mrf.mxu0  ;;  %v973_v23 = vpop.f32.mrf.mxu1 }
 0x156   : > { %1522 = vst [vmem:[%s2408_s21 + $0x80] sm:$0xff] %v1426_v19  ;;  %v1428_v22 = vadd.f32 %v2399_v40, %v722_v21  ;;  %v1430_v24 = vadd.f32 %v2401_v0, %v973_v23 }
 0x157   : > { %v724_v25 = vpop.f32.mrf.mxu0  ;;  %v975_v27 = vpop.f32.mrf.mxu1 }
 0x158   : > { %1524 = vst [vmem:[%s2408_s21 + $0x90] sm:$0xff] %v1428_v22  ;;  %v1429_v26 = vadd.f32 %v2403_v41, %v724_v25  ;;  %1526 = vst [vmem:[%s2408_s21 + $0xa0] sm:$0xff] %v1430_v24 }
 0x159   : > { %v728_v28 = vpop.f32.mrf.mxu0  ;;  %v978_v30 = vpop.f32.mrf.mxu1 }
 0x15a   : > { %1525 = vst [vmem:[%s2408_s21 + $0x98] sm:$0xff] %v1429_v26  ;;  %v1431_v29 = vadd.f32 %v2399_v40, %v728_v28  ;;  %v1433_v31 = vadd.f32 %v2401_v0, %v978_v30 }
 0x15b   : > { %v730_v32 = vpop.f32.mrf.mxu0  ;;  %v980_v34 = vpop.f32.mrf.mxu1 }
 0x15c   : > { %1527 = vst [vmem:[%s2408_s21 + $0xa8] sm:$0xff] %v1431_v29  ;;  %v1432_v33 = vadd.f32 %v2403_v41, %v730_v32  ;;  %1529 = vst [vmem:[%s2408_s21 + $0xb8] sm:$0xff] %v1433_v31 }
 0x15d   : > { %v734_v35 = vpop.f32.mrf.mxu0  ;;  %v983_v37 = vpop.f32.mrf.mxu1 }
 0x15e   : > { %1528 = vst [vmem:[%s2408_s21 + $0xb0] sm:$0xff] %v1432_v33  ;;  %v1434_v36 = vadd.f32 %v2399_v40, %v734_v35  ;;  %v1436_v38 = vadd.f32 %v2401_v0, %v983_v37 }
 0x15f   : > { %v736_v39 = vpop.f32.mrf.mxu0  ;;  %v985_v43 = vpop.f32.mrf.mxu1 }
 0x160   : > { %1530 = vst [vmem:[%s2408_s21 + $0xc0] sm:$0xff] %v1434_v36  ;;  %v1435_v42 = vadd.f32 %v2403_v41, %v736_v39  ;;  %1532 = vst [vmem:[%s2408_s21 + $0xd0] sm:$0xff] %v1436_v38 }
 0x161   : > { %v740_v44 = vpop.f32.mrf.mxu0  ;;  %v988_v46 = vpop.f32.mrf.mxu1 }
 0x162   : > { %1531 = vst [vmem:[%s2408_s21 + $0xc8] sm:$0xff] %v1435_v42  ;;  %v1437_v45 = vadd.f32 %v2399_v40, %v740_v44  ;;  %v1439_v47 = vadd.f32 %v2401_v0, %v988_v46 }
 0x163   : > { %v742_v48 = vpop.f32.mrf.mxu0  ;;  %v990_v50 = vpop.f32.mrf.mxu1 }
 0x164   : > { %1533 = vst [vmem:[%s2408_s21 + $0xd8] sm:$0xff] %v1437_v45  ;;  %v1438_v49 = vadd.f32 %v2403_v41, %v742_v48  ;;  %1535 = vst [vmem:[%s2408_s21 + $0xe8] sm:$0xff] %v1439_v47 }
 0x165   : > { %v746_v51 = vpop.f32.mrf.mxu0  ;;  %v993_v53 = vpop.f32.mrf.mxu1 }
 0x166   : > { %1534 = vst [vmem:[%s2408_s21 + $0xe0] sm:$0xff] %v1438_v49  ;;  %v1440_v52 = vadd.f32 %v2399_v40, %v746_v51  ;;  %v1442_v54 = vadd.f32 %v2401_v0, %v993_v53 }
 0x167   : > { %v748_v55 = vpop.f32.mrf.mxu0  ;;  %v995_v57 = vpop.f32.mrf.mxu1 }
 0x168   : > { %1536 = vst [vmem:[%s2408_s21 + $0xf0] sm:$0xff] %v1440_v52  ;;  %v1441_v56 = vadd.f32 %v2403_v41, %v748_v55  ;;  %1538 = vst [vmem:[%s2408_s21 + $0x100] sm:$0xff] %v1442_v54 }
 0x169   : > { %v752_v58 = vpop.f32.mrf.mxu0  ;;  %v998_v60 = vpop.f32.mrf.mxu1 }
 0x16a   : > { %1537 = vst [vmem:[%s2408_s21 + $0xf8] sm:$0xff] %v1441_v56  ;;  %v1443_v59 = vadd.f32 %v2399_v40, %v752_v58  ;;  %v1445_v61 = vadd.f32 %v2401_v0, %v998_v60 }
 0x16b   : > { %v754_v62 = vpop.f32.mrf.mxu0  ;;  %v1000_v1 = vpop.f32.mrf.mxu1 }
 0x16c   : > { %1539 = vst [vmem:[%s2408_s21 + $0x108] sm:$0xff] %v1443_v59  ;;  %v1444_v63 = vadd.f32 %v2403_v41, %v754_v62  ;;  %1541 = vst [vmem:[%s2408_s21 + $0x118] sm:$0xff] %v1445_v61 }
 0x16d   : > { %v758_v2 = vpop.f32.mrf.mxu0  ;;  %v1003_v4 = vpop.f32.mrf.mxu1 }
 0x16e   : > { %1540 = vst [vmem:[%s2408_s21 + $0x110] sm:$0xff] %v1444_v63  ;;  %v1446_v3 = vadd.f32 %v2399_v40, %v758_v2  ;;  %v1448_v5 = vadd.f32 %v2401_v0, %v1003_v4 }
 0x16f   : > { %v760_v6 = vpop.f32.mrf.mxu0  ;;  %v1005_v8 = vpop.f32.mrf.mxu1 }
 0x170   : > { %1542 = vst [vmem:[%s2408_s21 + $0x120] sm:$0xff] %v1446_v3  ;;  %v1447_v7 = vadd.f32 %v2403_v41, %v760_v6  ;;  %1544 = vst [vmem:[%s2408_s21 + $0x130] sm:$0xff] %v1448_v5 }
 0x171   : > { %v764_v9 = vpop.f32.mrf.mxu0  ;;  %v1008_v11 = vpop.f32.mrf.mxu1 }
 0x172   : > { %1543 = vst [vmem:[%s2408_s21 + $0x128] sm:$0xff] %v1447_v7  ;;  %v1449_v10 = vadd.f32 %v2399_v40, %v764_v9  ;;  %v1451_v12 = vadd.f32 %v2401_v0, %v1008_v11 }
 0x173   : > { %v766_v13 = vpop.f32.mrf.mxu0  ;;  %v1010_v15 = vpop.f32.mrf.mxu1 }
 0x174   : > { %1545 = vst [vmem:[%s2408_s21 + $0x138] sm:$0xff] %v1449_v10  ;;  %v1450_v14 = vadd.f32 %v2403_v41, %v766_v13  ;;  %1547 = vst [vmem:[%s2408_s21 + $0x148] sm:$0xff] %v1451_v12 }
 0x175   : > { %v770_v16 = vpop.f32.mrf.mxu0  ;;  %v1013_v18 = vpop.f32.mrf.mxu1 }
 0x176   : > { %1546 = vst [vmem:[%s2408_s21 + $0x140] sm:$0xff] %v1450_v14  ;;  %v1452_v17 = vadd.f32 %v2399_v40, %v770_v16  ;;  %v1454_v19 = vadd.f32 %v2401_v0, %v1013_v18 }
 0x177   : > { %v772_v20 = vpop.f32.mrf.mxu0  ;;  %v1015_v22 = vpop.f32.mrf.mxu1 }
 0x178   : > { %1548 = vst [vmem:[%s2408_s21 + $0x150] sm:$0xff] %v1452_v17  ;;  %v1453_v21 = vadd.f32 %v2403_v41, %v772_v20  ;;  %1550 = vst [vmem:[%s2408_s21 + $0x160] sm:$0xff] %v1454_v19 }
 0x179   : > { %v776_v23 = vpop.f32.mrf.mxu0  ;;  %v1018_v25 = vpop.f32.mrf.mxu1 }
 0x17a   : > { %1549 = vst [vmem:[%s2408_s21 + $0x158] sm:$0xff] %v1453_v21  ;;  %v1455_v24 = vadd.f32 %v2399_v40, %v776_v23  ;;  %v1457_v26 = vadd.f32 %v2401_v0, %v1018_v25 }
 0x17b   : > { %v778_v27 = vpop.f32.mrf.mxu0  ;;  %v1020_v29 = vpop.f32.mrf.mxu1 }
 0x17c   : > { %1551 = vst [vmem:[%s2408_s21 + $0x168] sm:$0xff] %v1455_v24  ;;  %v1456_v28 = vadd.f32 %v2403_v41, %v778_v27  ;;  %1553 = vst [vmem:[%s2408_s21 + $0x178] sm:$0xff] %v1457_v26 }
 0x17d   : > { %v782_v30 = vpop.f32.mrf.mxu0  ;;  %v1023_v32 = vpop.f32.mrf.mxu1 }
 0x17e   : > { %1552 = vst [vmem:[%s2408_s21 + $0x170] sm:$0xff] %v1456_v28  ;;  %v1458_v31 = vadd.f32 %v2399_v40, %v782_v30  ;;  %v1460_v33 = vadd.f32 %v2401_v0, %v1023_v32 }
 0x17f   : > { %v784_v34 = vpop.f32.mrf.mxu0  ;;  %v1025_v36 = vpop.f32.mrf.mxu1 }
 0x180   : > { %1554 = vst [vmem:[%s2408_s21 + $0x180] sm:$0xff] %v1458_v31  ;;  %v1459_v35 = vadd.f32 %v2403_v41, %v784_v34  ;;  %1556 = vst [vmem:[%s2408_s21 + $0x190] sm:$0xff] %v1460_v33 }
 0x181   : > { %v788_v37 = vpop.f32.mrf.mxu0  ;;  %v1028_v39 = vpop.f32.mrf.mxu1 }
 0x182   : > { %1555 = vst [vmem:[%s2408_s21 + $0x188] sm:$0xff] %v1459_v35  ;;  %v1461_v38 = vadd.f32 %v2399_v40, %v788_v37  ;;  %v1463_v42 = vadd.f32 %v2401_v0, %v1028_v39 }
 0x183   : > { %v790_v43 = vpop.f32.mrf.mxu0  ;;  %v1030_v45 = vpop.f32.mrf.mxu1 }
 0x184   : > { %1557 = vst [vmem:[%s2408_s21 + $0x198] sm:$0xff] %v1461_v38  ;;  %v1462_v44 = vadd.f32 %v2403_v41, %v790_v43  ;;  %1559 = vst [vmem:[%s2408_s21 + $0x1a8] sm:$0xff] %v1463_v42 }
 0x185   : > { %v794_v46 = vpop.f32.mrf.mxu0  ;;  %v1033_v48 = vpop.f32.mrf.mxu1 }
 0x186   : > { %1558 = vst [vmem:[%s2408_s21 + $0x1a0] sm:$0xff] %v1462_v44  ;;  %v1464_v47 = vadd.f32 %v2399_v40, %v794_v46  ;;  %v1466_v49 = vadd.f32 %v2401_v0, %v1033_v48 }
 0x187   : > { %v796_v50 = vpop.f32.mrf.mxu0  ;;  %v1035_v52 = vpop.f32.mrf.mxu1 }
 0x188   : > { %1560 = vst [vmem:[%s2408_s21 + $0x1b0] sm:$0xff] %v1464_v47  ;;  %v1465_v51 = vadd.f32 %v2403_v41, %v796_v50  ;;  %1562 = vst [vmem:[%s2408_s21 + $0x1c0] sm:$0xff] %v1466_v49 }
 0x189   : > { %v800_v53 = vpop.f32.mrf.mxu0  ;;  %v1038_v55 = vpop.f32.mrf.mxu1 }
 0x18a   : > { %1561 = vst [vmem:[%s2408_s21 + $0x1b8] sm:$0xff] %v1465_v51  ;;  %v1467_v54 = vadd.f32 %v2399_v40, %v800_v53  ;;  %v1469_v56 = vadd.f32 %v2401_v0, %v1038_v55 }
 0x18b   : > { %v802_v57 = vpop.f32.mrf.mxu0  ;;  %v1040_v59 = vpop.f32.mrf.mxu1 }
 0x18c   : > { %1563 = vst [vmem:[%s2408_s21 + $0x1c8] sm:$0xff] %v1467_v54  ;;  %v1468_v58 = vadd.f32 %v2403_v41, %v802_v57  ;;  %1565 = vst [vmem:[%s2408_s21 + $0x1d8] sm:$0xff] %v1469_v56 }
 0x18d   : > { %v806_v60 = vpop.f32.mrf.mxu0  ;;  %v1043_v62 = vpop.f32.mrf.mxu1 }
 0x18e   : > { %1564 = vst [vmem:[%s2408_s21 + $0x1d0] sm:$0xff] %v1468_v58  ;;  %v1470_v61 = vadd.f32 %v2399_v40, %v806_v60  ;;  %v1472_v63 = vadd.f32 %v2401_v0, %v1043_v62 }
 0x18f   : > { %v808_v1 = vpop.f32.mrf.mxu0  ;;  %v1045_v3 = vpop.f32.mrf.mxu1 }
 0x190   : > { %1566 = vst [vmem:[%s2408_s21 + $0x1e0] sm:$0xff] %v1470_v61  ;;  %v1471_v2 = vadd.f32 %v2403_v41, %v808_v1  ;;  %1568 = vst [vmem:[%s2408_s21 + $0x1f0] sm:$0xff] %v1472_v63 }
 0x191   : > { %v812_v4 = vpop.f32.mrf.mxu0  ;;  %v1048_v6 = vpop.f32.mrf.mxu1 }
 0x192   : > { %1567 = vst [vmem:[%s2408_s21 + $0x1e8] sm:$0xff] %v1471_v2  ;;  %v1473_v5 = vadd.f32 %v2399_v40, %v812_v4  ;;  %v1475_v7 = vadd.f32 %v2401_v0, %v1048_v6 }
 0x193   : > { %v814_v8 = vpop.f32.mrf.mxu0  ;;  %v1050_v10 = vpop.f32.mrf.mxu1 }
 0x194   : > { %1569 = vst [vmem:[%s2408_s21 + $0x1f8] sm:$0xff] %v1473_v5  ;;  %v1474_v9 = vadd.f32 %v2403_v41, %v814_v8  ;;  %1571 = vst [vmem:[%s2408_s21 + $0x208] sm:$0xff] %v1475_v7 }
 0x195   : > { %v818_v11 = vpop.f32.mrf.mxu0  ;;  %v1053_v13 = vpop.f32.mrf.mxu1 }
 0x196   : > { %1570 = vst [vmem:[%s2408_s21 + $0x200] sm:$0xff] %v1474_v9  ;;  %v1476_v12 = vadd.f32 %v2399_v40, %v818_v11  ;;  %v1478_v14 = vadd.f32 %v2401_v0, %v1053_v13 }
 0x197   : > { %v820_v15 = vpop.f32.mrf.mxu0  ;;  %v1055_v17 = vpop.f32.mrf.mxu1 }
 0x198   : > { %1572 = vst [vmem:[%s2408_s21 + $0x210] sm:$0xff] %v1476_v12  ;;  %v1477_v16 = vadd.f32 %v2403_v41, %v820_v15  ;;  %1574 = vst [vmem:[%s2408_s21 + $0x220] sm:$0xff] %v1478_v14 }
 0x199   : > { %v824_v18 = vpop.f32.mrf.mxu0  ;;  %v1058_v20 = vpop.f32.mrf.mxu1 }
 0x19a   : > { %1573 = vst [vmem:[%s2408_s21 + $0x218] sm:$0xff] %v1477_v16  ;;  %v1479_v19 = vadd.f32 %v2399_v40, %v824_v18  ;;  %v1481_v21 = vadd.f32 %v2401_v0, %v1058_v20  ;;  %v1633_v20 = vld [vmem:[%s2408_s21 + $0x18] sm:$0xff] (%p2831_p10) }
 0x19b   : > { %v826_v22 = vpop.f32.mrf.mxu0  ;;  %v1060_v24 = vpop.f32.mrf.mxu1  ;;  %1634 = vst [vmem:[%s2612_s26 + $0x30] sm:$0xff] (%p2831_p10), %v1633_v20 }
 0x19c   : > { %1575 = vst [vmem:[%s2408_s21 + $0x228] sm:$0xff] %v1479_v19  ;;  %v1480_v23 = vadd.f32 %v2403_v41, %v826_v22  ;;  %1577 = vst [vmem:[%s2408_s21 + $0x238] sm:$0xff] %v1481_v21  ;;  %v1635_v21 = vld [vmem:[%s2408_s21 + $0x20] sm:$0xff] (%p2831_p10)  ;;  %v1637_v22 = vld [vmem:[%s2408_s21 + $0x28] sm:$0xff] (%p2831_p10) }
 0x19d   : > { %v830_v25 = vpop.f32.mrf.mxu0  ;;  %v1063_v27 = vpop.f32.mrf.mxu1  ;;  %v1641_v24 = vld [vmem:[%s2408_s21 + $0x38] sm:$0xff] (%p2831_p10)  ;;  %1636 = vst [vmem:[%s2612_s26 + $0x38] sm:$0xff] (%p2831_p10), %v1635_v21  ;;  %1638 = vst [vmem:[%s2612_s26 + $0x40] sm:$0xff] (%p2831_p10), %v1637_v22 }
 0x19e   : > { %1576 = vst [vmem:[%s2408_s21 + $0x230] sm:$0xff] %v1480_v23  ;;  %v1482_v26 = vadd.f32 %v2399_v40, %v830_v25  ;;  %v1484_v28 = vadd.f32 %v2401_v0, %v1063_v27  ;;  %v1639_v23 = vld [vmem:[%s2408_s21 + $0x30] sm:$0xff] (%p2831_p10)  ;;  %v1643_v25 = vld [vmem:[%s2408_s21 + $0x40] sm:$0xff] (%p2831_p10)  ;;  %1642 = vst [vmem:[%s2612_s26 + $0x68] sm:$0xff] (%p2831_p10), %v1641_v24 }
 0x19f   : > { %v832_v29 = vpop.f32.mrf.mxu0  ;;  %v1065_v31 = vpop.f32.mrf.mxu1  ;;  %1640 = vst [vmem:[%s2612_s26 + $0x60] sm:$0xff] (%p2831_p10), %v1639_v23  ;;  %1644 = vst [vmem:[%s2612_s26 + $0x70] sm:$0xff] (%p2831_p10), %v1643_v25  ;;  %v1647_v27 = vld [vmem:[%s2408_s21 + $0x50] sm:$0xff] (%p2831_p10)  ;;  %v1763_v21 = vld [vmem:[%s2408_s21 + $0x220] sm:$0xff] (%p2831_p10) }
 0x1a0   : > { %1578 = vst [vmem:[%s2408_s21 + $0x240] sm:$0xff] %v1482_v26  ;;  %v1483_v30 = vadd.f32 %v2403_v41, %v832_v29  ;;  %1580 = vst [vmem:[%s2408_s21 + $0x250] sm:$0xff] %v1484_v28  ;;  %v1645_v26 = vld [vmem:[%s2408_s21 + $0x48] sm:$0xff] (%p2831_p10)  ;;  %v1649_v28 = vld [vmem:[%s2408_s21 + $0x58] sm:$0xff] (%p2831_p10) }
 0x1a1   : > { %v836_v32 = vpop.f32.mrf.mxu0  ;;  %v1068_v34 = vpop.f32.mrf.mxu1  ;;  %1646 = vst [vmem:[%s2612_s26 + $0x90] sm:$0xff] (%p2831_p10), %v1645_v26  ;;  %1648 = vst [vmem:[%s2612_s26 + $0x98] sm:$0xff] (%p2831_p10), %v1647_v27  ;;  %v1651_v29 = vld [vmem:[%s2408_s21 + $0x60] sm:$0xff] (%p2831_p10)  ;;  %v1655_v31 = vld [vmem:[%s2408_s21 + $0x70] sm:$0xff] (%p2831_p10) }
 0x1a2   : > { %1579 = vst [vmem:[%s2408_s21 + $0x248] sm:$0xff] %v1483_v30  ;;  %v1485_v33 = vadd.f32 %v2399_v40, %v836_v32  ;;  %v1487_v35 = vadd.f32 %v2401_v0, %v1068_v34  ;;  %1650 = vst [vmem:[%s2612_s26 + $0xa0] sm:$0xff] (%p2831_p10), %v1649_v28  ;;  %v1653_v30 = vld [vmem:[%s2408_s21 + $0x68] sm:$0xff] (%p2831_p10)  ;;  %v1657_v32 = vld [vmem:[%s2408_s21 + $0x78] sm:$0xff] (%p2831_p10) }
 0x1a3   : > { %v838_v36 = vpop.f32.mrf.mxu0  ;;  %v1070_v38 = vpop.f32.mrf.mxu1  ;;  %1652 = vst [vmem:[%s2612_s26 + $0xc0] sm:$0xff] (%p2831_p10), %v1651_v29  ;;  %1654 = vst [vmem:[%s2612_s26 + $0xc8] sm:$0xff] (%p2831_p10), %v1653_v30  ;;  %v1661_v34 = vld [vmem:[%s2408_s21 + $0x88] sm:$0xff] (%p2831_p10)  ;;  %v1761_v20 = vld [vmem:[%s2408_s21 + $0x218] sm:$0xff] (%p2831_p10) }
 0x1a4   : > { %1581 = vst [vmem:[%s2408_s21 + $0x258] sm:$0xff] %v1485_v33  ;;  %v1486_v37 = vadd.f32 %v2403_v41, %v838_v36  ;;  %1583 = vst [vmem:[%s2408_s21 + $0x268] sm:$0xff] %v1487_v35  ;;  %v1659_v33 = vld [vmem:[%s2408_s21 + $0x80] sm:$0xff] (%p2831_p10)  ;;  %v1663_v35 = vld [vmem:[%s2408_s21 + $0x90] sm:$0xff] (%p2831_p10) }
 0x1a5   : > { %v842_v39 = vpop.f32.mrf.mxu0  ;;  %v1073_v43 = vpop.f32.mrf.mxu1  ;;  %1656 = vst [vmem:[%s2612_s26 + $0xd0] sm:$0xff] (%p2831_p10), %v1655_v31  ;;  %1658 = vst [vmem:[%s2612_s26 + $0xf0] sm:$0xff] (%p2831_p10), %v1657_v32  ;;  %v1665_v36 = vld [vmem:[%s2408_s21 + $0x98] sm:$0xff] (%p2831_p10)  ;;  %v1669_v38 = vld [vmem:[%s2408_s21 + $0xa8] sm:$0xff] (%p2831_p10) }
 0x1a6   : > { %1582 = vst [vmem:[%s2408_s21 + $0x260] sm:$0xff] %v1486_v37  ;;  %v1488_v42 = vadd.f32 %v2399_v40, %v842_v39  ;;  %v1490_v44 = vadd.f32 %v2401_v0, %v1073_v43  ;;  %1660 = vst [vmem:[%s2612_s26 + $0xf8] sm:$0xff] (%p2831_p10), %v1659_v33  ;;  %v1667_v37 = vld [vmem:[%s2408_s21 + $0xa0] sm:$0xff] (%p2831_p10)  ;;  %v1671_v39 = vld [vmem:[%s2408_s21 + $0xb0] sm:$0xff] (%p2831_p10) }
 0x1a7   : > { %v844_v45 = vpop.f32.mrf.mxu0  ;;  %v1075_v47 = vpop.f32.mrf.mxu1  ;;  %1662 = vst [vmem:[%s2612_s26 + $0x100] sm:$0xff] (%p2831_p10), %v1661_v34  ;;  %1664 = vst [vmem:[%s2612_s26 + $0x120] sm:$0xff] (%p2831_p10), %v1663_v35  ;;  %v1675_v43 = vld [vmem:[%s2408_s21 + $0xc0] sm:$0xff] (%p2831_p10)  ;;  %v1765_v22 = vld [vmem:[%s2408_s21 + $0x228] sm:$0xff] (%p2831_p10) }
 0x1a8   : > { %1584 = vst [vmem:[%s2408_s21 + $0x270] sm:$0xff] %v1488_v42  ;;  %v1489_v46 = vadd.f32 %v2403_v41, %v844_v45  ;;  %1586 = vst [vmem:[%s2408_s21 + $0x280] sm:$0xff] %v1490_v44  ;;  %v1673_v42 = vld [vmem:[%s2408_s21 + $0xb8] sm:$0xff] (%p2831_p10)  ;;  %v1677_v44 = vld [vmem:[%s2408_s21 + $0xc8] sm:$0xff] (%p2831_p10) }
 0x1a9   : > { %v848_v48 = vpop.f32.mrf.mxu0  ;;  %v1078_v50 = vpop.f32.mrf.mxu1  ;;  %1666 = vst [vmem:[%s2612_s26 + $0x128] sm:$0xff] (%p2831_p10), %v1665_v36  ;;  %1668 = vst [vmem:[%s2612_s26 + $0x130] sm:$0xff] (%p2831_p10), %v1667_v37  ;;  %v1679_v45 = vld [vmem:[%s2408_s21 + $0xd0] sm:$0xff] (%p2831_p10)  ;;  %v1683_v47 = vld [vmem:[%s2408_s21 + $0xe0] sm:$0xff] (%p2831_p10) }
 0x1aa   : > { %1585 = vst [vmem:[%s2408_s21 + $0x278] sm:$0xff] %v1489_v46  ;;  %v1491_v49 = vadd.f32 %v2399_v40, %v848_v48  ;;  %v1493_v51 = vadd.f32 %v2401_v0, %v1078_v50  ;;  %1670 = vst [vmem:[%s2612_s26 + $0x150] sm:$0xff] (%p2831_p10), %v1669_v38  ;;  %v1681_v46 = vld [vmem:[%s2408_s21 + $0xd8] sm:$0xff] (%p2831_p10)  ;;  %v1685_v48 = vld [vmem:[%s2408_s21 + $0xe8] sm:$0xff] (%p2831_p10) }
 0x1ab   : > { %v850_v52 = vpop.f32.mrf.mxu0  ;;  %v1080_v54 = vpop.f32.mrf.mxu1  ;;  %1672 = vst [vmem:[%s2612_s26 + $0x158] sm:$0xff] (%p2831_p10), %v1671_v39  ;;  %1674 = vst [vmem:[%s2612_s26 + $0x160] sm:$0xff] (%p2831_p10), %v1673_v42  ;;  %v1689_v50 = vld [vmem:[%s2408_s21 + $0xf8] sm:$0xff] (%p2831_p10)  ;;  %v1767_v23 = vld [vmem:[%s2408_s21 + $0x230] sm:$0xff] (%p2831_p10) }
 0x1ac   : > { %1587 = vst [vmem:[%s2408_s21 + $0x288] sm:$0xff] %v1491_v49  ;;  %v1492_v53 = vadd.f32 %v2403_v41, %v850_v52  ;;  %1589 = vst [vmem:[%s2408_s21 + $0x298] sm:$0xff] %v1493_v51  ;;  %v1687_v49 = vld [vmem:[%s2408_s21 + $0xf0] sm:$0xff] (%p2831_p10)  ;;  %v1691_v51 = vld [vmem:[%s2408_s21 + $0x100] sm:$0xff] (%p2831_p10) }
 0x1ad   : > { %v854_v55 = vpop.f32.mrf.mxu0  ;;  %v1083_v57 = vpop.f32.mrf.mxu1  ;;  %1676 = vst [vmem:[%s2612_s26 + $0x180] sm:$0xff] (%p2831_p10), %v1675_v43  ;;  %1678 = vst [vmem:[%s2612_s26 + $0x188] sm:$0xff] (%p2831_p10), %v1677_v44  ;;  %v1693_v52 = vld [vmem:[%s2408_s21 + $0x108] sm:$0xff] (%p2831_p10)  ;;  %v1697_v54 = vld [vmem:[%s2408_s21 + $0x118] sm:$0xff] (%p2831_p10) }
 0x1ae   : > { %1588 = vst [vmem:[%s2408_s21 + $0x290] sm:$0xff] %v1492_v53  ;;  %v1494_v56 = vadd.f32 %v2399_v40, %v854_v55  ;;  %v1496_v58 = vadd.f32 %v2401_v0, %v1083_v57  ;;  %1680 = vst [vmem:[%s2612_s26 + $0x190] sm:$0xff] (%p2831_p10), %v1679_v45  ;;  %v1695_v53 = vld [vmem:[%s2408_s21 + $0x110] sm:$0xff] (%p2831_p10)  ;;  %v1699_v55 = vld [vmem:[%s2408_s21 + $0x120] sm:$0xff] (%p2831_p10) }
 0x1af   : > { %v856_v59 = vpop.f32.mrf.mxu0  ;;  %v1085_v61 = vpop.f32.mrf.mxu1  ;;  %1682 = vst [vmem:[%s2612_s26 + $0x1b0] sm:$0xff] (%p2831_p10), %v1681_v46  ;;  %1684 = vst [vmem:[%s2612_s26 + $0x1b8] sm:$0xff] (%p2831_p10), %v1683_v47  ;;  %v1703_v57 = vld [vmem:[%s2408_s21 + $0x130] sm:$0xff] (%p2831_p10)  ;;  %v1769_v24 = vld [vmem:[%s2408_s21 + $0x238] sm:$0xff] (%p2831_p10) }
 0x1b0   : > { %1590 = vst [vmem:[%s2408_s21 + $0x2a0] sm:$0xff] %v1494_v56  ;;  %v1495_v60 = vadd.f32 %v2403_v41, %v856_v59  ;;  %1592 = vst [vmem:[%s2408_s21 + $0x2b0] sm:$0xff] %v1496_v58  ;;  %v1701_v56 = vld [vmem:[%s2408_s21 + $0x128] sm:$0xff] (%p2831_p10)  ;;  %v1705_v58 = vld [vmem:[%s2408_s21 + $0x138] sm:$0xff] (%p2831_p10) }
 0x1b1   : > { %v860_v62 = vpop.f32.mrf.mxu0  ;;  %v1088_v1 = vpop.f32.mrf.mxu1  ;;  %1686 = vst [vmem:[%s2612_s26 + $0x1c0] sm:$0xff] (%p2831_p10), %v1685_v48  ;;  %1688 = vst [vmem:[%s2612_s26 + $0x1e0] sm:$0xff] (%p2831_p10), %v1687_v49  ;;  %v1707_v59 = vld [vmem:[%s2408_s21 + $0x140] sm:$0xff] (%p2831_p10)  ;;  %v1711_v61 = vld [vmem:[%s2408_s21 + $0x150] sm:$0xff] (%p2831_p10) }
 0x1b2   : > { %1591 = vst [vmem:[%s2408_s21 + $0x2a8] sm:$0xff] %v1495_v60  ;;  %v1497_v63 = vadd.f32 %v2399_v40, %v860_v62  ;;  %v1499_v2 = vadd.f32 %v2401_v0, %v1088_v1  ;;  %1690 = vst [vmem:[%s2612_s26 + $0x1e8] sm:$0xff] (%p2831_p10), %v1689_v50  ;;  %v1709_v60 = vld [vmem:[%s2408_s21 + $0x148] sm:$0xff] (%p2831_p10)  ;;  %v1713_v62 = vld [vmem:[%s2408_s21 + $0x158] sm:$0xff] (%p2831_p10) }
 0x1b3   : > { %v862_v3 = vpop.f32.mrf.mxu0  ;;  %v1090_v5 = vpop.f32.mrf.mxu1  ;;  %1692 = vst [vmem:[%s2612_s26 + $0x1f0] sm:$0xff] (%p2831_p10), %v1691_v51  ;;  %1694 = vst [vmem:[%s2612_s26 + $0x210] sm:$0xff] (%p2831_p10), %v1693_v52  ;;  %v1717_v1 = vld [vmem:[%s2408_s21 + $0x168] sm:$0xff] (%p2831_p10)  ;;  %v1771_v25 = vld [vmem:[%s2408_s21 + $0x240] sm:$0xff] (%p2831_p10) }
 0x1b4   : > { %1593 = vst [vmem:[%s2408_s21 + $0x2b8] sm:$0xff] %v1497_v63  ;;  %v1498_v4 = vadd.f32 %v2403_v41, %v862_v3  ;;  %1595 = vst [vmem:[%s2408_s21 + $0x2c8] sm:$0xff] %v1499_v2  ;;  %v1715_v63 = vld [vmem:[%s2408_s21 + $0x160] sm:$0xff] (%p2831_p10)  ;;  %v1719_v2 = vld [vmem:[%s2408_s21 + $0x170] sm:$0xff] (%p2831_p10) }
 0x1b5   : > { %v866_v6 = vpop.f32.mrf.mxu0  ;;  %v1093_v8 = vpop.f32.mrf.mxu1  ;;  %1696 = vst [vmem:[%s2612_s26 + $0x218] sm:$0xff] (%p2831_p10), %v1695_v53  ;;  %1698 = vst [vmem:[%s2612_s26 + $0x220] sm:$0xff] (%p2831_p10), %v1697_v54  ;;  %v1721_v3 = vld [vmem:[%s2408_s21 + $0x178] sm:$0xff] (%p2831_p10)  ;;  %v1725_v5 = vld [vmem:[%s2408_s21 + $0x188] sm:$0xff] (%p2831_p10) }
 0x1b6   : > { %1594 = vst [vmem:[%s2408_s21 + $0x2c0] sm:$0xff] %v1498_v4  ;;  %v1500_v7 = vadd.f32 %v2399_v40, %v866_v6  ;;  %v1502_v9 = vadd.f32 %v2401_v0, %v1093_v8  ;;  %1700 = vst [vmem:[%s2612_s26 + $0x240] sm:$0xff] (%p2831_p10), %v1699_v55  ;;  %v1723_v4 = vld [vmem:[%s2408_s21 + $0x180] sm:$0xff] (%p2831_p10)  ;;  %v1727_v6 = vld [vmem:[%s2408_s21 + $0x190] sm:$0xff] (%p2831_p10) }
 0x1b7   : > { %v868_v10 = vpop.f32.mrf.mxu0  ;;  %v1095_v12 = vpop.f32.mrf.mxu1  ;;  %1702 = vst [vmem:[%s2612_s26 + $0x248] sm:$0xff] (%p2831_p10), %v1701_v56  ;;  %1704 = vst [vmem:[%s2612_s26 + $0x250] sm:$0xff] (%p2831_p10), %v1703_v57  ;;  %v1731_v8 = vld [vmem:[%s2408_s21 + $0x1a0] sm:$0xff] (%p2831_p10)  ;;  %v1773_v26 = vld [vmem:[%s2408_s21 + $0x248] sm:$0xff] (%p2831_p10) }
 0x1b8   : > { %1596 = vst [vmem:[%s2408_s21 + $0x2d0] sm:$0xff] %v1500_v7  ;;  %v1501_v11 = vadd.f32 %v2403_v41, %v868_v10  ;;  %1598 = vst [vmem:[%s2408_s21 + $0x2e0] sm:$0xff] %v1502_v9  ;;  %v1729_v7 = vld [vmem:[%s2408_s21 + $0x198] sm:$0xff] (%p2831_p10)  ;;  %v1733_v9 = vld [vmem:[%s2408_s21 + $0x1a8] sm:$0xff] (%p2831_p10) }
 0x1b9   : > { %v872_v13 = vpop.f32.mrf.mxu0  ;;  %v1098_v15 = vpop.f32.mrf.mxu1  ;;  %1706 = vst [vmem:[%s2612_s26 + $0x270] sm:$0xff] (%p2831_p10), %v1705_v58  ;;  %1708 = vst [vmem:[%s2612_s26 + $0x278] sm:$0xff] (%p2831_p10), %v1707_v59  ;;  %v1735_v10 = vld [vmem:[%s2408_s21 + $0x1b0] sm:$0xff] (%p2831_p10)  ;;  %v1739_v12 = vld [vmem:[%s2408_s21 + $0x1c0] sm:$0xff] (%p2831_p10) }
 0x1ba   : > { %1597 = vst [vmem:[%s2408_s21 + $0x2d8] sm:$0xff] %v1501_v11  ;;  %v1503_v14 = vadd.f32 %v2399_v40, %v872_v13  ;;  %v1505_v16 = vadd.f32 %v2401_v0, %v1098_v15  ;;  %1608 = sbr.rel (!%p2831_p10) target bundleno = 473 (0x1d9), region = 52  ;;  %v1627_v40 = vld [vmem:[%s2408_s21] sm:$0xff] (%p2831_p10)  ;;  %v1629_v0 = vld [vmem:[%s2408_s21 + $0x8] sm:$0xff] (%p2831_p10)  ;;  %1710 = vst [vmem:[%s2612_s26 + $0x280] sm:$0xff] (%p2831_p10), %v1709_v60 }
 0x1bb   : > { %v874_v17 = vpop.f32.mrf.mxu0  ;;  %v1100_v19 = vpop.f32.mrf.mxu1  ;;  %1628 = vst [vmem:[%s2612_s26] sm:$0xff] (%p2831_p10), %v1627_v40  ;;  %1630 = vst [vmem:[%s2612_s26 + $0x8] sm:$0xff] (%p2831_p10), %v1629_v0  ;;  %v1737_v11 = vld [vmem:[%s2408_s21 + $0x1b8] sm:$0xff] (%p2831_p10)  ;;  %v1741_v13 = vld [vmem:[%s2408_s21 + $0x1c8] sm:$0xff] (%p2831_p10) }
 0x1bc   : > { %1599 = vst [vmem:[%s2408_s21 + $0x2e8] sm:$0xff] %v1503_v14  ;;  %v1504_v18 = vadd.f32 %v2403_v41, %v874_v17  ;;  %1601 = vst [vmem:[%s2408_s21 + $0x2f8] sm:$0xff] %v1505_v16  ;;  %v1631_v41 = vld [vmem:[%s2408_s21 + $0x10] sm:$0xff] (%p2831_p10)  ;;  %v1745_v15 = vld [vmem:[%s2408_s21 + $0x1d8] sm:$0xff] (%p2831_p10) }
 0x1bd   : > { %1632 = vst [vmem:[%s2612_s26 + $0x10] sm:$0xff] (%p2831_p10), %v1631_v41  ;;  %1712 = vst [vmem:[%s2612_s26 + $0x2a0] sm:$0xff] (%p2831_p10), %v1711_v61  ;;  %v1743_v14 = vld [vmem:[%s2408_s21 + $0x1d0] sm:$0xff] (%p2831_p10)  ;;  %v1747_v16 = vld [vmem:[%s2408_s21 + $0x1e0] sm:$0xff] (%p2831_p10) }
 0x1be   : > { %1600 = vst [vmem:[%s2408_s21 + $0x2f0] sm:$0xff] %v1504_v18  ;;  %1714 = vst [vmem:[%s2612_s26 + $0x2a8] sm:$0xff] (%p2831_p10), %v1713_v62  ;;  %v1749_v17 = vld [vmem:[%s2408_s21 + $0x1e8] sm:$0xff] (%p2831_p10)  ;;  %v1751_v18 = vld [vmem:[%s2408_s21 + $0x1f0] sm:$0xff] (%p2831_p10) }
 0x1bf   : > { %1716 = vst [vmem:[%s2612_s26 + $0x2b0] sm:$0xff] %v1715_v63  ;;  %1718 = vst [vmem:[%s2612_s26 + $0x2d0] sm:$0xff] %v1717_v1  ;;  %v1753_v19 = vld [vmem:[%s2408_s21 + $0x1f8] sm:$0xff]  ;;  %v1755_v40 = vld [vmem:[%s2408_s21 + $0x200] sm:$0xff] }
 0x1c0   : > { %1720 = vst [vmem:[%s2612_s26 + $0x2d8] sm:$0xff] %v1719_v2  ;;  %1722 = vst [vmem:[%s2612_s26 + $0x2e0] sm:$0xff] %v1721_v3  ;;  %v1757_v0 = vld [vmem:[%s2408_s21 + $0x208] sm:$0xff]  ;;  %v1759_v41 = vld [vmem:[%s2408_s21 + $0x210] sm:$0xff] }
 0x1c1   : > { %1724 = vst [vmem:[%s2612_s26 + $0x300] sm:$0xff] %v1723_v4  ;;  %1726 = vst [vmem:[%s2612_s26 + $0x308] sm:$0xff] %v1725_v5  ;;  %v1775_v27 = vld [vmem:[%s2408_s21 + $0x250] sm:$0xff]  ;;  %v1777_v28 = vld [vmem:[%s2408_s21 + $0x258] sm:$0xff] }
 0x1c2   : > { %1728 = vst [vmem:[%s2612_s26 + $0x310] sm:$0xff] %v1727_v6  ;;  %1730 = vst [vmem:[%s2612_s26 + $0x330] sm:$0xff] %v1729_v7  ;;  %v1779_v29 = vld [vmem:[%s2408_s21 + $0x260] sm:$0xff]  ;;  %v1781_v30 = vld [vmem:[%s2408_s21 + $0x268] sm:$0xff] }
 0x1c3   : > { %1732 = vst [vmem:[%s2612_s26 + $0x338] sm:$0xff] %v1731_v8  ;;  %1734 = vst [vmem:[%s2612_s26 + $0x340] sm:$0xff] %v1733_v9  ;;  %v1783_v31 = vld [vmem:[%s2408_s21 + $0x270] sm:$0xff]  ;;  %v1785_v32 = vld [vmem:[%s2408_s21 + $0x278] sm:$0xff] }
 0x1c4   : > { %1736 = vst [vmem:[%s2612_s26 + $0x360] sm:$0xff] %v1735_v10  ;;  %1738 = vst [vmem:[%s2612_s26 + $0x368] sm:$0xff] %v1737_v11  ;;  %v1787_v33 = vld [vmem:[%s2408_s21 + $0x280] sm:$0xff]  ;;  %v1789_v34 = vld [vmem:[%s2408_s21 + $0x288] sm:$0xff] }
 0x1c5   : > { %1740 = vst [vmem:[%s2612_s26 + $0x370] sm:$0xff] %v1739_v12  ;;  %1742 = vst [vmem:[%s2612_s26 + $0x390] sm:$0xff] %v1741_v13  ;;  %v1791_v35 = vld [vmem:[%s2408_s21 + $0x290] sm:$0xff]  ;;  %v1793_v36 = vld [vmem:[%s2408_s21 + $0x298] sm:$0xff] }
 0x1c6   : > { %1744 = vst [vmem:[%s2612_s26 + $0x398] sm:$0xff] %v1743_v14  ;;  %1746 = vst [vmem:[%s2612_s26 + $0x3a0] sm:$0xff] %v1745_v15  ;;  %v1795_v37 = vld [vmem:[%s2408_s21 + $0x2a0] sm:$0xff]  ;;  %v1797_v38 = vld [vmem:[%s2408_s21 + $0x2a8] sm:$0xff] }
 0x1c7   : > { %1748 = vst [vmem:[%s2612_s26 + $0x3c0] sm:$0xff] %v1747_v16  ;;  %1750 = vst [vmem:[%s2612_s26 + $0x3c8] sm:$0xff] %v1749_v17  ;;  %v1799_v39 = vld [vmem:[%s2408_s21 + $0x2b0] sm:$0xff]  ;;  %v1801_v42 = vld [vmem:[%s2408_s21 + $0x2b8] sm:$0xff] }
 0x1c8   : > { %1752 = vst [vmem:[%s2612_s26 + $0x3d0] sm:$0xff] %v1751_v18  ;;  %1754 = vst [vmem:[%s2612_s26 + $0x3f0] sm:$0xff] %v1753_v19  ;;  %v1803_v43 = vld [vmem:[%s2408_s21 + $0x2c0] sm:$0xff]  ;;  %v1805_v44 = vld [vmem:[%s2408_s21 + $0x2c8] sm:$0xff] }
 0x1c9   : > { %1756 = vst [vmem:[%s2612_s26 + $0x3f8] sm:$0xff] %v1755_v40  ;;  %1758 = vst [vmem:[%s2612_s26 + $0x400] sm:$0xff] %v1757_v0  ;;  %v1807_v45 = vld [vmem:[%s2408_s21 + $0x2d0] sm:$0xff]  ;;  %v1809_v46 = vld [vmem:[%s2408_s21 + $0x2d8] sm:$0xff] }
 0x1ca   : > { %1760 = vst [vmem:[%s2612_s26 + $0x420] sm:$0xff] %v1759_v41  ;;  %1762 = vst [vmem:[%s2612_s26 + $0x428] sm:$0xff] %v1761_v20  ;;  %v1811_v47 = vld [vmem:[%s2408_s21 + $0x2e0] sm:$0xff]  ;;  %v1813_v48 = vld [vmem:[%s2408_s21 + $0x2e8] sm:$0xff] }
 0x1cb   : > { %1764 = vst [vmem:[%s2612_s26 + $0x430] sm:$0xff] %v1763_v21  ;;  %1766 = vst [vmem:[%s2612_s26 + $0x450] sm:$0xff] %v1765_v22  ;;  %v1815_v49 = vld [vmem:[%s2408_s21 + $0x2f0] sm:$0xff]  ;;  %v1817_v50 = vld [vmem:[%s2408_s21 + $0x2f8] sm:$0xff] }
 0x1cc   : > { %1768 = vst [vmem:[%s2612_s26 + $0x458] sm:$0xff] %v1767_v23  ;;  %1770 = vst [vmem:[%s2612_s26 + $0x460] sm:$0xff] %v1769_v24 }
 0x1cd   : > { %1772 = vst [vmem:[%s2612_s26 + $0x480] sm:$0xff] %v1771_v25  ;;  %1774 = vst [vmem:[%s2612_s26 + $0x488] sm:$0xff] %v1773_v26 }
 0x1ce   : > { %1776 = vst [vmem:[%s2612_s26 + $0x490] sm:$0xff] %v1775_v27  ;;  %1778 = vst [vmem:[%s2612_s26 + $0x4b0] sm:$0xff] %v1777_v28 }
 0x1cf   : > { %1780 = vst [vmem:[%s2612_s26 + $0x4b8] sm:$0xff] %v1779_v29  ;;  %1782 = vst [vmem:[%s2612_s26 + $0x4c0] sm:$0xff] %v1781_v30 }
 0x1d0   : > { %1784 = vst [vmem:[%s2612_s26 + $0x4e0] sm:$0xff] %v1783_v31  ;;  %1786 = vst [vmem:[%s2612_s26 + $0x4e8] sm:$0xff] %v1785_v32 }
 0x1d1   : > { %1788 = vst [vmem:[%s2612_s26 + $0x4f0] sm:$0xff] %v1787_v33  ;;  %1790 = vst [vmem:[%s2612_s26 + $0x510] sm:$0xff] %v1789_v34 }
 0x1d2   : > { %1792 = vst [vmem:[%s2612_s26 + $0x518] sm:$0xff] %v1791_v35  ;;  %1794 = vst [vmem:[%s2612_s26 + $0x520] sm:$0xff] %v1793_v36 }
 0x1d3   : > { %1796 = vst [vmem:[%s2612_s26 + $0x540] sm:$0xff] %v1795_v37  ;;  %1798 = vst [vmem:[%s2612_s26 + $0x548] sm:$0xff] %v1797_v38 }
 0x1d4   : > { %1800 = vst [vmem:[%s2612_s26 + $0x550] sm:$0xff] %v1799_v39  ;;  %1802 = vst [vmem:[%s2612_s26 + $0x570] sm:$0xff] %v1801_v42 }
 0x1d5   : > { %1804 = vst [vmem:[%s2612_s26 + $0x578] sm:$0xff] %v1803_v43  ;;  %1806 = vst [vmem:[%s2612_s26 + $0x580] sm:$0xff] %v1805_v44 }
 0x1d6   : > { %1808 = vst [vmem:[%s2612_s26 + $0x5a0] sm:$0xff] %v1807_v45  ;;  %1810 = vst [vmem:[%s2612_s26 + $0x5a8] sm:$0xff] %v1809_v46 }
 0x1d7   : > { %1812 = vst [vmem:[%s2612_s26 + $0x5b0] sm:$0xff] %v1811_v47  ;;  %1814 = vst [vmem:[%s2612_s26 + $0x5d0] sm:$0xff] %v1813_v48 }
 0x1d8   : > { %1816 = vst [vmem:[%s2612_s26 + $0x5d8] sm:$0xff] %v1815_v49  ;;  %1818 = vst [vmem:[%s2612_s26 + $0x5e0] sm:$0xff] %v1817_v50 }
 0x1d9 PF: > { %s17_s17 = sadd.s32 1, %s2122_s17   ;;  %s2832_s12 = smov %s2106_s13 }
 0x1da   : > { %p14_p0 = scmp.ge.s32.totalorder %s17_s17, 4   ;;  %s2833_s13 = smov %s2110_s14 }
 0x1db   : > { %s2834_s14 = smov %s2245_s27  ;;  %s2835_s15 = smov %s2118_s16 }
 0x1dc   : > { %s2836_s16 = smov %s2838_s29  ;;  %16 = sbr.rel (!%p14_p0) target bundleno = 5 (0x5), region = 112 }
 0x1e1   :  { %1834 = vsyncpa [#allocation4], 1 }
 0x1e2   :  { %1836 = vsyncpa [#allocation4 + $0x1], 1 }
 0x1e3   :  { %1837 = vsyncpa [#allocation6], 1 }
 0x1e4   :  { %1839 = vsyncpa [#allocation6 + $0x1], 1 }

// kernel: image_encoder_layer_forward.4
= control target key start
LH: loop header
LB: loop body
LE: loop exit
PB: predicated region body
PF: predicated region fallthrough
CT: control target
= control target key end

     0   :  { %s3046_s21 = smov 0   ;;  %s3048_s22 = smov 0   ;;  %s4139_s0 = inlined_call_operand.vmem [shape: f32[2,128,768], index: 0, kind: input, shape index: {}, may-alias: {0,1,2}]   ;;  %s4140_s1 = inlined_call_operand.vmem [shape: f32[2,128,768], index: 1, kind: input, shape index: {}, may-alias: {0,1,2}]   ;;  %s4141_s2 = inlined_call_operand.vmem [shape: f32[2,128,768], index: 2, kind: input, shape index: {}, may-alias: {0,1,2}]   ;;  %s4142_s3 = inlined_call_operand.vmem [shape: f32[2,128,256], index: 3, kind: input, shape index: {}]   ;;  %s4143_s4 = inlined_call_operand.vmem [shape: f32[1,256], index: 4, kind: input, shape index: {}]   ;;  %s4144_s5 = inlined_call_operand.vmem [shape: f32[1,256], index: 5, kind: input, shape index: {}]   ;;  %s4145_s6 = inlined_call_operand.vmem [shape: f32[2,128,256], index: 6, kind: output, shape index: {}]  }
   0x1   :  { %s3050_s23 = smov 0   ;;  %s3052_s24 = smov 0  }
   0x2   :  { %s3054_s25 = smov 0  }
   0x3 LB: > { %s28_s26 = sadd.s32 1, %s3005_s24  ;;  %p44_p1 = scmp.ne.s32.totalorder %s2997_s22, %s2993_s21  ;;  %s3009_s25 = sphi %s3054_s25, %s16_s25   ;;  %s3005_s24 = sphi %s3052_s24, %s4150_s24   ;;  %s3001_s23 = sphi %s3050_s23, %s4149_s23   ;;  %s2997_s22 = sphi %s3048_s22, %s4148_s22   ;;  %s2993_s21 = sphi %s3046_s21, %s4147_s21  }
   0x4   : > { %p30_p0 = scmp.ge.s32.totalorder %s28_s26, 2  ;;  %p45_p2 = scmp.eq.s32.totalorder %s3009_s25, 0 }
   0x5   : > { %s37_s29 = sadd.s32 1, %s2997_s22  ;;  %p2335_p5 = scmp.ge.s32.totalorder %s3009_s25, 2 }
   0x6   : > { %s4152_s26 = smov (%p30_p0, %s28_s26), 0  ;;  %p3077_p3 = por %p45_p2, %p44_p1 }
   0x7   : > { %s32_s28 = ssub.s32 %s3005_s24, %s4152_s26  ;;  %226 = sbr.rel (%p2335_p5) target bundleno = 75 (0x4b), region = 24 }
   0x8   : > { %p35_p4 = scmp.eq.s32.totalorder %s32_s28, 0 }
   0xa   : > { %s3085_s30 = scalar_select %p35_p4, %s2997_s22, %s37_s29  }
   0xc   : > { %229 = sbr.rel (!%p3077_p3) target bundleno = 33 (0x21), region = 28  ;;  %s231_s7 = sand.u32 (%p3077_p3), 1, %s2997_s22  }
   0xd   : > { %s2770_s8 = smul.u32 (%p3077_p3), 768, %s3005_s24  ;;  %s2336_s9 = sshll.u32 (%p3077_p3), %s231_s7, 8 }
   0xe   : > { %s3100_s13 = scalar_lea.vmem (%p3077_p3), [#allocation3], %s2336_s9 }
   0xf   : > { %s3095_s12 = scalar_lea.vmem (%p3077_p3), %s4139_s0, %s2770_s8 }
  0x10   : > { %v252_v0 = vld [vmem:[%s3095_s12] sm:$0xff] (%p3077_p3)  ;;  %v254_v1 = vld [vmem:[%s3095_s12 + $0x8] sm:$0xff] (%p3077_p3)  ;;  %v256_v2 = vld [vmem:[%s3095_s12 + $0x30] sm:$0xff] (%p3077_p3) }
  0x11   : > { %253 = vst [vmem:[%s3100_s13] sm:$0xff] %v252_v0  ;;  %255 = vst [vmem:[%s3100_s13 + $0x8] sm:$0xff] %v254_v1  ;;  %v258_v3 = vld [vmem:[%s3095_s12 + $0x38] sm:$0xff]  ;;  %v260_v4 = vld [vmem:[%s3095_s12 + $0x60] sm:$0xff] }
  0x12   : > { %257 = vst [vmem:[%s3100_s13 + $0x10] sm:$0xff] %v256_v2  ;;  %v262_v5 = vld [vmem:[%s3095_s12 + $0x68] sm:$0xff]  ;;  %259 = vst [vmem:[%s3100_s13 + $0x18] sm:$0xff] %v258_v3  ;;  %v264_v6 = vld [vmem:[%s3095_s12 + $0x90] sm:$0xff] }
  0x13   : > { %261 = vst [vmem:[%s3100_s13 + $0x20] sm:$0xff] %v260_v4  ;;  %263 = vst [vmem:[%s3100_s13 + $0x28] sm:$0xff] %v262_v5  ;;  %v266_v7 = vld [vmem:[%s3095_s12 + $0x98] sm:$0xff]  ;;  %v268_v8 = vld [vmem:[%s3095_s12 + $0xc0] sm:$0xff] }
  0x14   : > { %265 = vst [vmem:[%s3100_s13 + $0x30] sm:$0xff] %v264_v6  ;;  %267 = vst [vmem:[%s3100_s13 + $0x38] sm:$0xff] %v266_v7  ;;  %v270_v9 = vld [vmem:[%s3095_s12 + $0xc8] sm:$0xff]  ;;  %v272_v10 = vld [vmem:[%s3095_s12 + $0xf0] sm:$0xff] }
  0x15   : > { %269 = vst [vmem:[%s3100_s13 + $0x40] sm:$0xff] %v268_v8  ;;  %v274_v11 = vld [vmem:[%s3095_s12 + $0xf8] sm:$0xff]  ;;  %271 = vst [vmem:[%s3100_s13 + $0x48] sm:$0xff] %v270_v9  ;;  %v276_v12 = vld [vmem:[%s3095_s12 + $0x120] sm:$0xff] }
  0x16   : > { %273 = vst [vmem:[%s3100_s13 + $0x50] sm:$0xff] %v272_v10  ;;  %275 = vst [vmem:[%s3100_s13 + $0x58] sm:$0xff] %v274_v11  ;;  %v278_v13 = vld [vmem:[%s3095_s12 + $0x128] sm:$0xff]  ;;  %v280_v14 = vld [vmem:[%s3095_s12 + $0x150] sm:$0xff] }
  0x17   : > { %277 = vst [vmem:[%s3100_s13 + $0x60] sm:$0xff] %v276_v12  ;;  %279 = vst [vmem:[%s3100_s13 + $0x68] sm:$0xff] %v278_v13  ;;  %v282_v15 = vld [vmem:[%s3095_s12 + $0x158] sm:$0xff]  ;;  %v284_v16 = vld [vmem:[%s3095_s12 + $0x180] sm:$0xff] }
  0x18   : > { %281 = vst [vmem:[%s3100_s13 + $0x70] sm:$0xff] %v280_v14  ;;  %v286_v17 = vld [vmem:[%s3095_s12 + $0x188] sm:$0xff]  ;;  %283 = vst [vmem:[%s3100_s13 + $0x78] sm:$0xff] %v282_v15  ;;  %v288_v18 = vld [vmem:[%s3095_s12 + $0x1b0] sm:$0xff] }
  0x19   : > { %285 = vst [vmem:[%s3100_s13 + $0x80] sm:$0xff] %v284_v16  ;;  %287 = vst [vmem:[%s3100_s13 + $0x88] sm:$0xff] %v286_v17  ;;  %v290_v19 = vld [vmem:[%s3095_s12 + $0x1b8] sm:$0xff]  ;;  %v292_v20 = vld [vmem:[%s3095_s12 + $0x1e0] sm:$0xff] }
  0x1a   : > { %289 = vst [vmem:[%s3100_s13 + $0x90] sm:$0xff] %v288_v18  ;;  %291 = vst [vmem:[%s3100_s13 + $0x98] sm:$0xff] %v290_v19  ;;  %v294_v21 = vld [vmem:[%s3095_s12 + $0x1e8] sm:$0xff]  ;;  %v296_v22 = vld [vmem:[%s3095_s12 + $0x210] sm:$0xff] }
  0x1b   : > { %293 = vst [vmem:[%s3100_s13 + $0xa0] sm:$0xff] %v292_v20  ;;  %v298_v23 = vld [vmem:[%s3095_s12 + $0x218] sm:$0xff]  ;;  %295 = vst [vmem:[%s3100_s13 + $0xa8] sm:$0xff] %v294_v21  ;;  %v300_v24 = vld [vmem:[%s3095_s12 + $0x240] sm:$0xff] }
  0x1c   : > { %297 = vst [vmem:[%s3100_s13 + $0xb0] sm:$0xff] %v296_v22  ;;  %299 = vst [vmem:[%s3100_s13 + $0xb8] sm:$0xff] %v298_v23  ;;  %v302_v25 = vld [vmem:[%s3095_s12 + $0x248] sm:$0xff]  ;;  %v304_v26 = vld [vmem:[%s3095_s12 + $0x270] sm:$0xff] }
  0x1d   : > { %301 = vst [vmem:[%s3100_s13 + $0xc0] sm:$0xff] %v300_v24  ;;  %303 = vst [vmem:[%s3100_s13 + $0xc8] sm:$0xff] %v302_v25  ;;  %v306_v27 = vld [vmem:[%s3095_s12 + $0x278] sm:$0xff]  ;;  %v308_v28 = vld [vmem:[%s3095_s12 + $0x2a0] sm:$0xff] }
  0x1e   : > { %305 = vst [vmem:[%s3100_s13 + $0xd0] sm:$0xff] %v304_v26  ;;  %v310_v29 = vld [vmem:[%s3095_s12 + $0x2a8] sm:$0xff]  ;;  %307 = vst [vmem:[%s3100_s13 + $0xd8] sm:$0xff] %v306_v27  ;;  %v312_v30 = vld [vmem:[%s3095_s12 + $0x2d0] sm:$0xff] }
  0x1f   : > { %309 = vst [vmem:[%s3100_s13 + $0xe0] sm:$0xff] %v308_v28  ;;  %311 = vst [vmem:[%s3100_s13 + $0xe8] sm:$0xff] %v310_v29  ;;  %v314_v31 = vld [vmem:[%s3095_s12 + $0x2d8] sm:$0xff] }
  0x20   : > { %313 = vst [vmem:[%s3100_s13 + $0xf0] sm:$0xff] %v312_v30  ;;  %315 = vst [vmem:[%s3100_s13 + $0xf8] sm:$0xff] %v314_v31 }
  0x21 PF: > { %321 = sbr.rel (!%p3077_p3) target bundleno = 54 (0x36), region = 51  ;;  %s323_s14 = sand.u32 (%p3077_p3), 1, %s2997_s22  }
  0x22   : > { %s2339_s15 = smul.u32 (%p3077_p3), 768, %s3005_s24  ;;  %s2338_s16 = sshll.u32 (%p3077_p3), %s323_s14, 8 }
  0x23   : > { %s3175_s20 = scalar_lea.vmem (%p3077_p3), [#allocation4], %s2338_s16 }
  0x24   : > { %s3170_s19 = scalar_lea.vmem (%p3077_p3), %s4140_s1, %s2339_s15 }
  0x25   : > { %v2340_v32 = vld [vmem:[%s3170_s19 + $0x10] sm:$0xff] (%p3077_p3)  ;;  %v2341_v33 = vld [vmem:[%s3170_s19 + $0x18] sm:$0xff] (%p3077_p3)  ;;  %v2342_v34 = vld [vmem:[%s3170_s19 + $0x40] sm:$0xff] (%p3077_p3) }
  0x26   : > { %343 = vst [vmem:[%s3175_s20] sm:$0xff] %v2340_v32  ;;  %345 = vst [vmem:[%s3175_s20 + $0x8] sm:$0xff] %v2341_v33  ;;  %v2343_v35 = vld [vmem:[%s3170_s19 + $0x48] sm:$0xff]  ;;  %v2344_v36 = vld [vmem:[%s3170_s19 + $0x70] sm:$0xff] }
  0x27   : > { %347 = vst [vmem:[%s3175_s20 + $0x10] sm:$0xff] %v2342_v34  ;;  %v2345_v37 = vld [vmem:[%s3170_s19 + $0x78] sm:$0xff]  ;;  %349 = vst [vmem:[%s3175_s20 + $0x18] sm:$0xff] %v2343_v35  ;;  %v2346_v38 = vld [vmem:[%s3170_s19 + $0xa0] sm:$0xff] }
  0x28   : > { %351 = vst [vmem:[%s3175_s20 + $0x20] sm:$0xff] %v2344_v36  ;;  %353 = vst [vmem:[%s3175_s20 + $0x28] sm:$0xff] %v2345_v37  ;;  %v2347_v39 = vld [vmem:[%s3170_s19 + $0xa8] sm:$0xff]  ;;  %v2348_v40 = vld [vmem:[%s3170_s19 + $0xd0] sm:$0xff] }
  0x29   : > { %355 = vst [vmem:[%s3175_s20 + $0x30] sm:$0xff] %v2346_v38  ;;  %357 = vst [vmem:[%s3175_s20 + $0x38] sm:$0xff] %v2347_v39  ;;  %v2349_v41 = vld [vmem:[%s3170_s19 + $0xd8] sm:$0xff]  ;;  %v2350_v42 = vld [vmem:[%s3170_s19 + $0x100] sm:$0xff] }
  0x2a   : > { %359 = vst [vmem:[%s3175_s20 + $0x40] sm:$0xff] %v2348_v40  ;;  %v2351_v43 = vld [vmem:[%s3170_s19 + $0x108] sm:$0xff]  ;;  %361 = vst [vmem:[%s3175_s20 + $0x48] sm:$0xff] %v2349_v41  ;;  %v2352_v44 = vld [vmem:[%s3170_s19 + $0x130] sm:$0xff] }
  0x2b   : > { %363 = vst [vmem:[%s3175_s20 + $0x50] sm:$0xff] %v2350_v42  ;;  %365 = vst [vmem:[%s3175_s20 + $0x58] sm:$0xff] %v2351_v43  ;;  %v2353_v45 = vld [vmem:[%s3170_s19 + $0x138] sm:$0xff]  ;;  %v2354_v46 = vld [vmem:[%s3170_s19 + $0x160] sm:$0xff] }
  0x2c   : > { %367 = vst [vmem:[%s3175_s20 + $0x60] sm:$0xff] %v2352_v44  ;;  %369 = vst [vmem:[%s3175_s20 + $0x68] sm:$0xff] %v2353_v45  ;;  %v2355_v47 = vld [vmem:[%s3170_s19 + $0x168] sm:$0xff]  ;;  %v2356_v48 = vld [vmem:[%s3170_s19 + $0x190] sm:$0xff] }
  0x2d   : > { %371 = vst [vmem:[%s3175_s20 + $0x70] sm:$0xff] %v2354_v46  ;;  %v2357_v49 = vld [vmem:[%s3170_s19 + $0x198] sm:$0xff]  ;;  %373 = vst [vmem:[%s3175_s20 + $0x78] sm:$0xff] %v2355_v47  ;;  %v2358_v50 = vld [vmem:[%s3170_s19 + $0x1c0] sm:$0xff] }
  0x2e   : > { %375 = vst [vmem:[%s3175_s20 + $0x80] sm:$0xff] %v2356_v48  ;;  %377 = vst [vmem:[%s3175_s20 + $0x88] sm:$0xff] %v2357_v49  ;;  %v2359_v51 = vld [vmem:[%s3170_s19 + $0x1c8] sm:$0xff]  ;;  %v2360_v52 = vld [vmem:[%s3170_s19 + $0x1f0] sm:$0xff] }
  0x2f   : > { %379 = vst [vmem:[%s3175_s20 + $0x90] sm:$0xff] %v2358_v50  ;;  %381 = vst [vmem:[%s3175_s20 + $0x98] sm:$0xff] %v2359_v51  ;;  %v2361_v53 = vld [vmem:[%s3170_s19 + $0x1f8] sm:$0xff]  ;;  %v2362_v54 = vld [vmem:[%s3170_s19 + $0x220] sm:$0xff] }
  0x30   : > { %383 = vst [vmem:[%s3175_s20 + $0xa0] sm:$0xff] %v2360_v52  ;;  %v2363_v55 = vld [vmem:[%s3170_s19 + $0x228] sm:$0xff]  ;;  %385 = vst [vmem:[%s3175_s20 + $0xa8] sm:$0xff] %v2361_v53  ;;  %v2364_v56 = vld [vmem:[%s3170_s19 + $0x250] sm:$0xff] }
  0x31   : > { %387 = vst [vmem:[%s3175_s20 + $0xb0] sm:$0xff] %v2362_v54  ;;  %389 = vst [vmem:[%s3175_s20 + $0xb8] sm:$0xff] %v2363_v55  ;;  %v2365_v57 = vld [vmem:[%s3170_s19 + $0x258] sm:$0xff]  ;;  %v2366_v58 = vld [vmem:[%s3170_s19 + $0x280] sm:$0xff] }
  0x32   : > { %391 = vst [vmem:[%s3175_s20 + $0xc0] sm:$0xff] %v2364_v56  ;;  %393 = vst [vmem:[%s3175_s20 + $0xc8] sm:$0xff] %v2365_v57  ;;  %v2367_v59 = vld [vmem:[%s3170_s19 + $0x288] sm:$0xff]  ;;  %v2368_v60 = vld [vmem:[%s3170_s19 + $0x2b0] sm:$0xff] }
  0x33   : > { %395 = vst [vmem:[%s3175_s20 + $0xd0] sm:$0xff] %v2366_v58  ;;  %v2369_v61 = vld [vmem:[%s3170_s19 + $0x2b8] sm:$0xff]  ;;  %397 = vst [vmem:[%s3175_s20 + $0xd8] sm:$0xff] %v2367_v59  ;;  %v2370_v62 = vld [vmem:[%s3170_s19 + $0x2e0] sm:$0xff] }
  0x34   : > { %399 = vst [vmem:[%s3175_s20 + $0xe0] sm:$0xff] %v2368_v60  ;;  %401 = vst [vmem:[%s3175_s20 + $0xe8] sm:$0xff] %v2369_v61  ;;  %v2371_v63 = vld [vmem:[%s3170_s19 + $0x2e8] sm:$0xff] }
  0x35   : > { %403 = vst [vmem:[%s3175_s20 + $0xf0] sm:$0xff] %v2370_v62  ;;  %405 = vst [vmem:[%s3175_s20 + $0xf8] sm:$0xff] %v2371_v63 }
  0x36 PF: > { %411 = sbr.rel (!%p3077_p3) target bundleno = 75 (0x4b), region = 74  ;;  %s413_s28 = sand.u32 (%p3077_p3), 1, %s2997_s22  }
  0x37   : > { %s2373_s29 = smul.u32 (%p3077_p3), 768, %s3005_s24  ;;  %s2372_s7 = sshll.u32 (%p3077_p3), %s413_s28, 8 }
  0x38   : > { %s3250_s27 = scalar_lea.vmem (%p3077_p3), [#allocation5], %s2372_s7 }
  0x39   : > { %s3245_s10 = scalar_lea.vmem (%p3077_p3), %s4141_s2, %s2373_s29 }
  0x3a   : > { %v2374_v0 = vld [vmem:[%s3245_s10 + $0x20] sm:$0xff] (%p3077_p3)  ;;  %v2375_v1 = vld [vmem:[%s3245_s10 + $0x28] sm:$0xff] (%p3077_p3)  ;;  %v2376_v2 = vld [vmem:[%s3245_s10 + $0x50] sm:$0xff] (%p3077_p3) }
  0x3b   : > { %433 = vst [vmem:[%s3250_s27] sm:$0xff] %v2374_v0  ;;  %435 = vst [vmem:[%s3250_s27 + $0x8] sm:$0xff] %v2375_v1  ;;  %v2377_v3 = vld [vmem:[%s3245_s10 + $0x58] sm:$0xff]  ;;  %v2378_v4 = vld [vmem:[%s3245_s10 + $0x80] sm:$0xff] }
  0x3c   : > { %437 = vst [vmem:[%s3250_s27 + $0x10] sm:$0xff] %v2376_v2  ;;  %v2379_v5 = vld [vmem:[%s3245_s10 + $0x88] sm:$0xff]  ;;  %439 = vst [vmem:[%s3250_s27 + $0x18] sm:$0xff] %v2377_v3  ;;  %v2380_v6 = vld [vmem:[%s3245_s10 + $0xb0] sm:$0xff] }
  0x3d   : > { %441 = vst [vmem:[%s3250_s27 + $0x20] sm:$0xff] %v2378_v4  ;;  %443 = vst [vmem:[%s3250_s27 + $0x28] sm:$0xff] %v2379_v5  ;;  %v2381_v7 = vld [vmem:[%s3245_s10 + $0xb8] sm:$0xff]  ;;  %v2382_v8 = vld [vmem:[%s3245_s10 + $0xe0] sm:$0xff] }
  0x3e   : > { %445 = vst [vmem:[%s3250_s27 + $0x30] sm:$0xff] %v2380_v6  ;;  %447 = vst [vmem:[%s3250_s27 + $0x38] sm:$0xff] %v2381_v7  ;;  %v2383_v9 = vld [vmem:[%s3245_s10 + $0xe8] sm:$0xff]  ;;  %v2384_v10 = vld [vmem:[%s3245_s10 + $0x110] sm:$0xff] }
  0x3f   : > { %449 = vst [vmem:[%s3250_s27 + $0x40] sm:$0xff] %v2382_v8  ;;  %v2385_v11 = vld [vmem:[%s3245_s10 + $0x118] sm:$0xff]  ;;  %451 = vst [vmem:[%s3250_s27 + $0x48] sm:$0xff] %v2383_v9  ;;  %v2386_v12 = vld [vmem:[%s3245_s10 + $0x140] sm:$0xff] }
  0x40   : > { %453 = vst [vmem:[%s3250_s27 + $0x50] sm:$0xff] %v2384_v10  ;;  %455 = vst [vmem:[%s3250_s27 + $0x58] sm:$0xff] %v2385_v11  ;;  %v2387_v13 = vld [vmem:[%s3245_s10 + $0x148] sm:$0xff]  ;;  %v2388_v14 = vld [vmem:[%s3245_s10 + $0x170] sm:$0xff] }
  0x41   : > { %457 = vst [vmem:[%s3250_s27 + $0x60] sm:$0xff] %v2386_v12  ;;  %459 = vst [vmem:[%s3250_s27 + $0x68] sm:$0xff] %v2387_v13  ;;  %v2389_v15 = vld [vmem:[%s3245_s10 + $0x178] sm:$0xff]  ;;  %v2390_v16 = vld [vmem:[%s3245_s10 + $0x1a0] sm:$0xff] }
  0x42   : > { %461 = vst [vmem:[%s3250_s27 + $0x70] sm:$0xff] %v2388_v14  ;;  %v2391_v17 = vld [vmem:[%s3245_s10 + $0x1a8] sm:$0xff]  ;;  %463 = vst [vmem:[%s3250_s27 + $0x78] sm:$0xff] %v2389_v15  ;;  %v2392_v18 = vld [vmem:[%s3245_s10 + $0x1d0] sm:$0xff] }
  0x43   : > { %465 = vst [vmem:[%s3250_s27 + $0x80] sm:$0xff] %v2390_v16  ;;  %467 = vst [vmem:[%s3250_s27 + $0x88] sm:$0xff] %v2391_v17  ;;  %v2393_v19 = vld [vmem:[%s3245_s10 + $0x1d8] sm:$0xff]  ;;  %v2394_v20 = vld [vmem:[%s3245_s10 + $0x200] sm:$0xff] }
  0x44   : > { %469 = vst [vmem:[%s3250_s27 + $0x90] sm:$0xff] %v2392_v18  ;;  %471 = vst [vmem:[%s3250_s27 + $0x98] sm:$0xff] %v2393_v19  ;;  %v2395_v21 = vld [vmem:[%s3245_s10 + $0x208] sm:$0xff]  ;;  %v2396_v22 = vld [vmem:[%s3245_s10 + $0x230] sm:$0xff] }
  0x45   : > { %473 = vst [vmem:[%s3250_s27 + $0xa0] sm:$0xff] %v2394_v20  ;;  %v2397_v23 = vld [vmem:[%s3245_s10 + $0x238] sm:$0xff]  ;;  %475 = vst [vmem:[%s3250_s27 + $0xa8] sm:$0xff] %v2395_v21  ;;  %v2398_v24 = vld [vmem:[%s3245_s10 + $0x260] sm:$0xff] }
  0x46   : > { %477 = vst [vmem:[%s3250_s27 + $0xb0] sm:$0xff] %v2396_v22  ;;  %479 = vst [vmem:[%s3250_s27 + $0xb8] sm:$0xff] %v2397_v23  ;;  %v2399_v25 = vld [vmem:[%s3245_s10 + $0x268] sm:$0xff]  ;;  %v2400_v26 = vld [vmem:[%s3245_s10 + $0x290] sm:$0xff] }
  0x47   : > { %481 = vst [vmem:[%s3250_s27 + $0xc0] sm:$0xff] %v2398_v24  ;;  %483 = vst [vmem:[%s3250_s27 + $0xc8] sm:$0xff] %v2399_v25  ;;  %v2401_v27 = vld [vmem:[%s3245_s10 + $0x298] sm:$0xff]  ;;  %v2402_v28 = vld [vmem:[%s3245_s10 + $0x2c0] sm:$0xff] }
  0x48   : > { %485 = vst [vmem:[%s3250_s27 + $0xd0] sm:$0xff] %v2400_v26  ;;  %v2403_v29 = vld [vmem:[%s3245_s10 + $0x2c8] sm:$0xff]  ;;  %487 = vst [vmem:[%s3250_s27 + $0xd8] sm:$0xff] %v2401_v27  ;;  %v2404_v30 = vld [vmem:[%s3245_s10 + $0x2f0] sm:$0xff] }
  0x49   : > { %489 = vst [vmem:[%s3250_s27 + $0xe0] sm:$0xff] %v2402_v28  ;;  %491 = vst [vmem:[%s3250_s27 + $0xe8] sm:$0xff] %v2403_v29  ;;  %v2405_v31 = vld [vmem:[%s3245_s10 + $0x2f8] sm:$0xff] }
  0x4a   : > { %493 = vst [vmem:[%s3250_s27 + $0xf0] sm:$0xff] %v2404_v30  ;;  %495 = vst [vmem:[%s3250_s27 + $0xf8] sm:$0xff] %v2405_v31 }
  0x4b PF: > { %p2406_p6 = scmp.ge.s32.totalorder %s3009_s25, 1  ;;  %p514_p7 = scmp.lt.s32.totalorder %s3009_s25, 3 }
  0x4d   : > { %p515_p8 = pnand %p2406_p6, %p514_p7 }
  0x4e   : > { %s521_s11 = sand.u32 (!%p515_p8), 1, %s2993_s21   ;;  %p589_p9 = scmp.lt.s32.totalorder (!%p515_p8), %s3001_s23, 1 }
  0x4f   : > { %518 = sbr.rel (%p515_p8) target bundleno = 1784 (0x6f8), region = 101  ;;  %s3316_s12 = sshll.u32 (!%p515_p8), %s521_s11, 8 }
  0x50   : > { %s3319_s13 = scalar_lea.vmem (!%p515_p8), [#allocation4], %s3316_s12  ;;  %s3325_s21 = scalar_lea.vmem (!%p515_p8), [#allocation3], %s3316_s12 }
  0x51   : > { %s3384_s14 = scalar_lea.vmem (!%p515_p8), [#allocation5], %s3316_s12 }
  0x54   : > { %v672_v32 = vld [vmem:[%s3319_s13 + $0xf0] sm:$0xff]  ;;  %v670_v33 = vld [vmem:[%s3319_s13 + $0xe0] sm:$0xff]  ;;  %s4154_s23 = smov (!%p589_p9, %s3001_s23), 1 }
  0x55   : > { %2546 = vmatprep.subr.mxu0 %v672_v32  ;;  %v668_v34 = vld [vmem:[%s3319_s13 + $0xd0] sm:$0xff]  ;;  %v610_v35 = vld [vmem:[%s3325_s21] sm:$0xff]  ;;  %s2416_s15 = sshll.u32 %s4154_s23, 8 }
  0x56   : > { %2547 = vmatpush3.xpose.msra.mxu0 %v672_v32  ;;  %2578 = vmatprep.mubr.f32.mxu0 %v610_v35  ;;  %v666_v36 = vld [vmem:[%s3319_s13 + $0xc0] sm:$0xff]  ;;  %v664_v37 = vld [vmem:[%s3319_s13 + $0xb0] sm:$0xff]  ;;  %s3669_s18 = scalar_lea.vmem %s4142_s3, %s2416_s15  ;;  %s4000_s9 = scalar_lea.vmem %s4145_s6, %s2416_s15 }
  0x57   : > { %2548 = vmatprep.subr.mxu0 %v670_v33  ;;  %v662_v38 = vld [vmem:[%s3319_s13 + $0xa0] sm:$0xff]  ;;  %v660_v39 = vld [vmem:[%s3319_s13 + $0x90] sm:$0xff] }
  0x58   : > { %v658_v40 = vld [vmem:[%s3319_s13 + $0x80] sm:$0xff]  ;;  %v656_v41 = vld [vmem:[%s3319_s13 + $0x70] sm:$0xff] }
  0x59   : > { %v654_v42 = vld [vmem:[%s3319_s13 + $0x60] sm:$0xff]  ;;  %v652_v43 = vld [vmem:[%s3319_s13 + $0x50] sm:$0xff] }
  0x5a   : > { %2549 = vmatpush3.xpose.msra.mxu0 %v670_v33  ;;  %v650_v44 = vld [vmem:[%s3319_s13 + $0x40] sm:$0xff]  ;;  %v648_v45 = vld [vmem:[%s3319_s13 + $0x30] sm:$0xff] }
  0x5b   : > { %2550 = vmatprep.subr.mxu0 %v668_v34  ;;  %v646_v46 = vld [vmem:[%s3319_s13 + $0x20] sm:$0xff]  ;;  %v644_v47 = vld [vmem:[%s3319_s13 + $0x10] sm:$0xff] }
  0x5c   : > { %v642_v48 = vld [vmem:[%s3319_s13] sm:$0xff]  ;;  %v612_v49 = vld [vmem:[%s3325_s21 + $0x10] sm:$0xff] }
  0x5d   : > { %v614_v50 = vld [vmem:[%s3325_s21 + $0x20] sm:$0xff]  ;;  %v616_v51 = vld [vmem:[%s3325_s21 + $0x30] sm:$0xff] }
  0x5e   : > { %2551 = vmatpush3.xpose.msra.mxu0 %v668_v34  ;;  %v618_v52 = vld [vmem:[%s3325_s21 + $0x40] sm:$0xff]  ;;  %v620_v53 = vld [vmem:[%s3325_s21 + $0x50] sm:$0xff] }
  0x5f   : > { %2552 = vmatprep.subr.mxu0 %v666_v36  ;;  %v622_v54 = vld [vmem:[%s3325_s21 + $0x60] sm:$0xff]  ;;  %v624_v55 = vld [vmem:[%s3325_s21 + $0x70] sm:$0xff] }
  0x60   : > { %v626_v56 = vld [vmem:[%s3325_s21 + $0x80] sm:$0xff]  ;;  %v628_v57 = vld [vmem:[%s3325_s21 + $0x90] sm:$0xff] }
  0x61   : > { %v630_v58 = vld [vmem:[%s3325_s21 + $0xa0] sm:$0xff]  ;;  %v632_v59 = vld [vmem:[%s3325_s21 + $0xb0] sm:$0xff] }
  0x62   : > { %2553 = vmatpush3.xpose.msra.mxu0 %v666_v36  ;;  %v634_v60 = vld [vmem:[%s3325_s21 + $0xc0] sm:$0xff]  ;;  %v636_v61 = vld [vmem:[%s3325_s21 + $0xd0] sm:$0xff] }
  0x63   : > { %2554 = vmatprep.subr.mxu0 %v664_v37  ;;  %v638_v62 = vld [vmem:[%s3325_s21 + $0xe0] sm:$0xff]  ;;  %v640_v63 = vld [vmem:[%s3325_s21 + $0xf0] sm:$0xff] }
  0x64   : > { %v704_v16 = vld [vmem:[%s3384_s14 + $0xf0] sm:$0xff]  ;;  %v702_v17 = vld [vmem:[%s3384_s14 + $0xe0] sm:$0xff] }
  0x65   : > { %2602 = vmatprep.subr.mxu1 %v704_v16  ;;  %v700_v18 = vld [vmem:[%s3384_s14 + $0xd0] sm:$0xff]  ;;  %v698_v19 = vld [vmem:[%s3384_s14 + $0xc0] sm:$0xff] }
  0x66   : > { %2555 = vmatpush3.xpose.msra.mxu0 %v664_v37  ;;  %2603 = vmatpush3.msra.mxu1 %v704_v16 }
  0x67   : > { %2556 = vmatprep.subr.mxu0 %v662_v38  ;;  %2604 = vmatprep.subr.mxu1 %v702_v17 }
  0x68   : > { %2605 = vmatpush3.msra.mxu1 %v702_v17  ;;  %v690_v17 = vld [vmem:[%s3384_s14 + $0x80] sm:$0xff] }
  0x69   : > { %2606 = vmatprep.subr.mxu1 %v700_v18 }
  0x6a   : > { %2557 = vmatpush3.xpose.msra.mxu0 %v662_v38  ;;  %2607 = vmatpush3.msra.mxu1 %v700_v18  ;;  %v688_v18 = vld [vmem:[%s3384_s14 + $0x70] sm:$0xff] }
  0x6b   : > { %2558 = vmatprep.subr.mxu0 %v660_v39  ;;  %2608 = vmatprep.subr.mxu1 %v698_v19 }
  0x6c   : > { %2609 = vmatpush3.msra.mxu1 %v698_v19 }
  0x6e   : > { %2559 = vmatpush3.xpose.msra.mxu0 %v660_v39 }
  0x6f   : > { %2560 = vmatprep.subr.mxu0 %v658_v40 }
  0x72   : > { %2561 = vmatpush3.xpose.msra.mxu0 %v658_v40 }
  0x73   : > { %2562 = vmatprep.subr.mxu0 %v656_v41 }
  0x76   : > { %2563 = vmatpush3.xpose.msra.mxu0 %v656_v41 }
  0x77   : > { %2564 = vmatprep.subr.mxu0 %v654_v42 }
  0x7a   : > { %2565 = vmatpush3.xpose.msra.mxu0 %v654_v42 }
  0x7b   : > { %2566 = vmatprep.subr.mxu0 %v652_v43 }
  0x7e   : > { %2567 = vmatpush3.xpose.msra.mxu0 %v652_v43 }
  0x7f   : > { %2568 = vmatprep.subr.mxu0 %v650_v44 }
  0x82   : > { %2569 = vmatpush3.xpose.msra.mxu0 %v650_v44 }
  0x83   : > { %2570 = vmatprep.subr.mxu0 %v648_v45 }
  0x86   : > { %2571 = vmatpush3.xpose.msra.mxu0 %v648_v45 }
  0x87   : > { %2572 = vmatprep.subr.mxu0 %v646_v46 }
  0x8a   : > { %2573 = vmatpush3.xpose.msra.mxu0 %v646_v46 }
  0x8b   : > { %2574 = vmatprep.subr.mxu0 %v644_v47 }
  0x8e   : > { %2575 = vmatpush3.xpose.msra.mxu0 %v644_v47 }
  0x8f   : > { %2576 = vmatprep.subr.mxu0 %v642_v48 }
  0x92   : > { %2577 = vmatpush3.xpose.msra.mxu0 %v642_v48 }
  0x95   : > { %2579 = vmatmul.mubr.f32.vlgmr.msra.gmra.mxu0 %v612_v49 }
  0x96   : > { %2581 = vmatprep.mubr.f32.mxu0 %v614_v50 }
  0x99   : > { %2582 = vmatmul.mubr.f32.gmra.mxu0 %v616_v51 }
  0x9a   : > { %2584 = vmatprep.mubr.f32.mxu0 %v618_v52 }
  0x9d   : > { %2585 = vmatmul.mubr.f32.gmra.mxu0 %v620_v53 }
  0x9e   : > { %2587 = vmatprep.mubr.f32.mxu0 %v622_v54 }
  0xa1   : > { %2588 = vmatmul.mubr.f32.gmra.mxu0 %v624_v55 }
  0xa2   : > { %2590 = vmatprep.mubr.f32.mxu0 %v626_v56 }
  0xa5   : > { %2591 = vmatmul.mubr.f32.gmra.mxu0 %v628_v57 }
  0xa6   : > { %2593 = vmatprep.mubr.f32.mxu0 %v630_v58 }
  0xa9   : > { %2594 = vmatmul.mubr.f32.gmra.mxu0 %v632_v59 }
  0xaa   : > { %2596 = vmatprep.mubr.f32.mxu0 %v634_v60 }
  0xad   : > { %2597 = vmatmul.mubr.f32.gmra.mxu0 %v636_v61 }
  0xae   : > { %2599 = vmatprep.mubr.f32.mxu0 %v638_v62 }
  0xb1   : > { %2600 = vmatmul.mubr.f32.gmra.mxu0 %v640_v63 }
 0x155   : > { %v2580_v0 = vpop.f32.mrf.mxu0 }
 0x157   : > { %v772_v1 = vpop.f32.mrf.mxu0 }
 0x158   : > { %851 = vmax.xlane.f32.xlu0 %v772_v1 }
 0x159   : > { %v2583_v2 = vpop.f32.mrf.mxu0 }
 0x15b   : > { %v782_v3 = vpop.f32.mrf.mxu0 }
 0x15c   : > { %853 = vmax.xlane.f32.xlu0 %v2580_v0  ;;  %855 = vmax.xlane.f32.xlu1 %v782_v3 }
 0x15d   : > { %v2586_v4 = vpop.f32.mrf.mxu0 }
 0x15f   : > { %v792_v5 = vpop.f32.mrf.mxu0 }
 0x160   : > { %857 = vmax.xlane.f32.xlu1 %v2583_v2  ;;  %859 = vmax.xlane.f32.xlu0 %v792_v5 }
 0x161   : > { %v3356_v6 = vpop.f32.mrf.mxu0 }
 0x163   : > { %v802_v7 = vpop.f32.mrf.mxu0 }
 0x164   : > { %861 = vmax.xlane.f32.xlu1 %v2586_v4  ;;  %863 = vmax.xlane.f32.xlu0 %v802_v7 }
 0x165   : > { %v3358_v8 = vpop.f32.mrf.mxu0 }
 0x167   : > { %v3360_v9 = vpop.f32.mrf.mxu0 }
 0x168   : > { %865 = vmax.xlane.f32.xlu1 %v3356_v6  ;;  %867 = vmax.xlane.f32.xlu0 %v3360_v9 }
 0x169   : > { %v3364_v10 = vpop.f32.mrf.mxu0 }
 0x16b   : > { %v3366_v11 = vpop.f32.mrf.mxu0 }
 0x16c   : > { %869 = vmax.xlane.f32.xlu1 %v3358_v8  ;;  %871 = vmax.xlane.f32.xlu0 %v3366_v11 }
 0x16d   : > { %v3370_v12 = vpop.f32.mrf.mxu0 }
 0x16f   : > { %v3372_v13 = vpop.f32.mrf.mxu0 }
 0x170   : > { %873 = vmax.xlane.f32.xlu1 %v3364_v10  ;;  %875 = vmax.xlane.f32.xlu0 %v3372_v13 }
 0x171   : > { %v3376_v14 = vpop.f32.mrf.mxu0 }
 0x173   : > { %v3378_v15 = vpop.f32.mrf.mxu0 }
 0x174   : > { %877 = vmax.xlane.f32.xlu1 %v3370_v12  ;;  %879 = vmax.xlane.f32.xlu0 %v3378_v15 }
 0x178   : > { %881 = vmax.xlane.f32.xlu1 %v3376_v14 }
 0x1e1   : > { %v852_v20 = vpop.xlane.xlu0 %851 }
 0x1e2   : > { %v883_v21 = vsub.f32 %v772_v1, %v852_v20  ;;  %v686_v20 = vld [vmem:[%s3384_s14 + $0x60] sm:$0xff] }
 0x1e4   : > { %v899_v22 = vmul.f32 1.442695, %v883_v21 }
 0x1e5   : > { %v854_v23 = vpop.xlane.xlu0 %853  ;;  %v856_v24 = vpop.xlane.xlu1 %855 }
 0x1e6   : > { %2811 = vpow2.f32 %v899_v22  ;;  %v884_v25 = vsub.f32 %v2580_v0, %v854_v23  ;;  %v885_v26 = vsub.f32 %v782_v3, %v856_v24  ;;  %v684_v22 = vld [vmem:[%s3384_s14 + $0x50] sm:$0xff]  ;;  %v682_v24 = vld [vmem:[%s3384_s14 + $0x40] sm:$0xff] }
 0x1e8   : > { %v901_v27 = vmul.f32 1.442695, %v884_v25  ;;  %v903_v28 = vmul.f32 1.442695, %v885_v26  ;;  %v680_v26 = vld [vmem:[%s3384_s14 + $0x30] sm:$0xff] }
 0x1e9   : > { %v858_v29 = vpop.xlane.xlu1 %857  ;;  %v860_v30 = vpop.xlane.xlu0 %859 }
 0x1ea   : > { %2813 = vpow2.f32 %v901_v27  ;;  %v886_v31 = vsub.f32 %v2583_v2, %v858_v29  ;;  %v887_v32 = vsub.f32 %v792_v5, %v860_v30  ;;  %v696_v5 = vld [vmem:[%s3384_s14 + $0xb0] sm:$0xff] }
 0x1eb   : > { %2815 = vpow2.f32 %v903_v28  ;;  %2610 = vmatprep.subr.mxu1 %v696_v5  ;;  %v678_v28 = vld [vmem:[%s3384_s14 + $0x20] sm:$0xff]  ;;  %v676_v30 = vld [vmem:[%s3384_s14 + $0x10] sm:$0xff] }
 0x1ec   : > { %v905_v33 = vmul.f32 1.442695, %v886_v31  ;;  %v907_v34 = vmul.f32 1.442695, %v887_v32  ;;  %2611 = vmatpush3.msra.mxu1 %v696_v5  ;;  %v674_v31 = vld [vmem:[%s3384_s14] sm:$0xff]  ;;  %v673_v32 = vld [vmem:[%s3319_s13 + $0xf8] sm:$0xff] }
 0x1ed   : > { %v862_v35 = vpop.xlane.xlu1 %861  ;;  %v864_v36 = vpop.xlane.xlu0 %863 }
 0x1ee   : > { %2817 = vpow2.f32 %v905_v33  ;;  %v888_v37 = vsub.f32 %v2586_v4, %v862_v35  ;;  %v889_v38 = vsub.f32 %v802_v7, %v864_v36 }
 0x1ef   : > { %2819 = vpow2.f32 %v907_v34 }
 0x1f0   : > { %v909_v39 = vmul.f32 1.442695, %v888_v37  ;;  %v911_v40 = vmul.f32 1.442695, %v889_v38 }
 0x1f1   : > { %v866_v41 = vpop.xlane.xlu1 %865  ;;  %v868_v42 = vpop.xlane.xlu0 %867 }
 0x1f2   : > { %2821 = vpow2.f32 %v909_v39  ;;  %v890_v43 = vsub.f32 %v3356_v6, %v866_v41  ;;  %v891_v44 = vsub.f32 %v3360_v9, %v868_v42 }
 0x1f3   : > { %v3392_v45 = vpop.eup %2811  ;;  %2823 = vpow2.f32 %v911_v40 }
 0x1f4   : > { %v913_v46 = vmul.f32 1.442695, %v890_v43  ;;  %v915_v47 = vmul.f32 1.442695, %v891_v44  ;;  %931 = vadd.xlane.f32.xlu0 %v3392_v45 }
 0x1f5   : > { %v870_v48 = vpop.xlane.xlu1 %869  ;;  %v872_v49 = vpop.xlane.xlu0 %871 }
 0x1f6   : > { %2825 = vpow2.f32 %v913_v46  ;;  %v892_v50 = vsub.f32 %v3358_v8, %v870_v48  ;;  %v893_v51 = vsub.f32 %v3366_v11, %v872_v49 }
 0x1f7   : > { %v3397_v52 = vpop.eup %2813  ;;  %2827 = vpow2.f32 %v915_v47 }
 0x1f8   : > { %v3399_v53 = vpop.eup %2815  ;;  %v917_v54 = vmul.f32 1.442695, %v892_v50  ;;  %v919_v55 = vmul.f32 1.442695, %v893_v51  ;;  %933 = vadd.xlane.f32.xlu1 %v3397_v52 }
 0x1f9   : > { %935 = vadd.xlane.f32.xlu0 %v3399_v53  ;;  %v874_v56 = vpop.xlane.xlu1 %873  ;;  %v876_v57 = vpop.xlane.xlu0 %875 }
 0x1fa   : > { %2829 = vpow2.f32 %v917_v54  ;;  %v894_v58 = vsub.f32 %v3364_v10, %v874_v56  ;;  %v895_v59 = vsub.f32 %v3372_v13, %v876_v57  ;;  %v694_v10 = vld [vmem:[%s3384_s14 + $0xa0] sm:$0xff]  ;;  %v692_v13 = vld [vmem:[%s3384_s14 + $0x90] sm:$0xff] }
 0x1fb   : > { %v3405_v60 = vpop.eup %2817  ;;  %2831 = vpow2.f32 %v919_v55  ;;  %2612 = vmatprep.subr.mxu1 %v694_v10 }
 0x1fc   : > { %v3407_v61 = vpop.eup %2819  ;;  %v921_v62 = vmul.f32 1.442695, %v894_v58  ;;  %v923_v63 = vmul.f32 1.442695, %v895_v59  ;;  %937 = vadd.xlane.f32.xlu1 %v3405_v60  ;;  %2613 = vmatpush3.msra.mxu1 %v694_v10  ;;  %v671_v10 = vld [vmem:[%s3319_s13 + $0xe8] sm:$0xff] }
 0x1fd   : > { %939 = vadd.xlane.f32.xlu0 %v3407_v61  ;;  %v878_v0 = vpop.xlane.xlu1 %877  ;;  %v880_v1 = vpop.xlane.xlu0 %879  ;;  %2614 = vmatprep.subr.mxu1 %v692_v13 }
 0x1fe   : > { %2833 = vpow2.f32 %v921_v62  ;;  %v896_v2 = vsub.f32 %v3370_v12, %v878_v0  ;;  %v897_v3 = vsub.f32 %v3378_v15, %v880_v1  ;;  %2615 = vmatpush3.msra.mxu1 %v692_v13 }
 0x1ff   : > { %v3413_v4 = vpop.eup %2821  ;;  %2835 = vpow2.f32 %v923_v63  ;;  %2616 = vmatprep.subr.mxu1 %v690_v17 }
 0x200   : > { %v3416_v6 = vpop.eup %2823  ;;  %v925_v7 = vmul.f32 1.442695, %v896_v2  ;;  %v927_v8 = vmul.f32 1.442695, %v897_v3  ;;  %941 = vadd.xlane.f32.xlu1 %v3413_v4  ;;  %2617 = vmatpush3.msra.mxu1 %v690_v17 }
 0x201   : > { %943 = vadd.xlane.f32.xlu0 %v3416_v6  ;;  %v882_v9 = vpop.xlane.xlu1 %881  ;;  %2618 = vmatprep.subr.mxu1 %v688_v18 }
 0x202   : > { %2837 = vpow2.f32 %v925_v7  ;;  %v898_v11 = vsub.f32 %v3376_v14, %v882_v9  ;;  %2619 = vmatpush3.msra.mxu1 %v688_v18 }
 0x203   : > { %v3422_v12 = vpop.eup %2825  ;;  %2839 = vpow2.f32 %v927_v8  ;;  %2620 = vmatprep.subr.mxu1 %v686_v20 }
 0x204   : > { %v3425_v15 = vpop.eup %2827  ;;  %v929_v16 = vmul.f32 1.442695, %v898_v11  ;;  %945 = vadd.xlane.f32.xlu1 %v3422_v12  ;;  %2621 = vmatpush3.msra.mxu1 %v686_v20 }
 0x205   : > { %947 = vadd.xlane.f32.xlu0 %v3425_v15  ;;  %2622 = vmatprep.subr.mxu1 %v684_v22 }
 0x206   : > { %2841 = vpow2.f32 %v929_v16  ;;  %2623 = vmatpush3.msra.mxu1 %v684_v22 }
 0x207   : > { %v3430_v14 = vpop.eup %2829  ;;  %2624 = vmatprep.subr.mxu1 %v682_v24 }
 0x208   : > { %v3433_v19 = vpop.eup %2831  ;;  %949 = vadd.xlane.f32.xlu1 %v3430_v14  ;;  %2625 = vmatpush3.msra.mxu1 %v682_v24 }
 0x209   : > { %951 = vadd.xlane.f32.xlu0 %v3433_v19  ;;  %2626 = vmatprep.subr.mxu1 %v680_v26 }
 0x20a   : > { %2627 = vmatpush3.msra.mxu1 %v680_v26 }
 0x20b   : > { %v3438_v21 = vpop.eup %2833  ;;  %2628 = vmatprep.subr.mxu1 %v678_v28 }
 0x20c   : > { %v3441_v23 = vpop.eup %2835  ;;  %953 = vadd.xlane.f32.xlu1 %v3438_v21  ;;  %2629 = vmatpush3.msra.mxu1 %v678_v28 }
 0x20d   : > { %955 = vadd.xlane.f32.xlu0 %v3441_v23  ;;  %2630 = vmatprep.subr.mxu1 %v676_v30 }
 0x20e   : > { %2631 = vmatpush3.msra.mxu1 %v676_v30  ;;  %v669_v30 = vld [vmem:[%s3319_s13 + $0xd8] sm:$0xff] }
 0x20f   : > { %v3446_v25 = vpop.eup %2837  ;;  %2632 = vmatprep.subr.mxu1 %v674_v31 }
 0x210   : > { %v3449_v27 = vpop.eup %2839  ;;  %957 = vadd.xlane.f32.xlu1 %v3446_v25  ;;  %2633 = vmatpush3.msra.mxu1 %v674_v31 }
 0x211   : > { %959 = vadd.xlane.f32.xlu0 %v3449_v27  ;;  %2658 = vmatprep.subr.mxu1 %v673_v32 }
 0x213   : > { %v3454_v29 = vpop.eup %2841 }
 0x214   : > { %961 = vadd.xlane.f32.xlu1 %v3454_v29 }
 0x27d   : > { %v932_v33 = vpop.xlane.xlu0 %931 }
 0x27e   : > { %2843 = vrcp.f32 %v932_v33 }
 0x281   : > { %v934_v34 = vpop.xlane.xlu1 %933 }
 0x282   : > { %2845 = vrcp.f32 %v934_v34  ;;  %v936_v35 = vpop.xlane.xlu0 %935 }
 0x283   : > { %2847 = vrcp.f32 %v936_v35 }
 0x285   : > { %v938_v36 = vpop.xlane.xlu1 %937 }
 0x286   : > { %2849 = vrcp.f32 %v938_v36  ;;  %v940_v37 = vpop.xlane.xlu0 %939 }
 0x287   : > { %2851 = vrcp.f32 %v940_v37 }
 0x289   : > { %v942_v38 = vpop.xlane.xlu1 %941 }
 0x28a   : > { %2853 = vrcp.f32 %v942_v38  ;;  %v944_v39 = vpop.xlane.xlu0 %943 }
 0x28b   : > { %v2844_v40 = vpop.eup %2843  ;;  %2855 = vrcp.f32 %v944_v39 }
 0x28c   : > { %v979_v41 = vmul.f32 %v2844_v40, %v932_v33 }
 0x28d   : > { %v946_v42 = vpop.xlane.xlu1 %945 }
 0x28e   : > { %v995_v43 = vsub.f32 2.0, %v979_v41  ;;  %2857 = vrcp.f32 %v946_v42  ;;  %v948_v44 = vpop.xlane.xlu0 %947 }
 0x28f   : > { %v2846_v46 = vpop.eup %2845  ;;  %2859 = vrcp.f32 %v948_v44 }
 0x290   : > { %v2848_v47 = vpop.eup %2847  ;;  %v980_v48 = vmul.f32 %v2846_v46, %v934_v34  ;;  %v1011_v49 = vmul.f32 %v2844_v40, %v995_v43  ;;  %v667_v40 = vld [vmem:[%s3319_s13 + $0xc8] sm:$0xff] }
 0x291   : > { %v981_v50 = vmul.f32 %v2848_v47, %v936_v35  ;;  %v950_v51 = vpop.xlane.xlu1 %949 }
 0x292   : > { %v996_v54 = vsub.f32 2.0, %v980_v48  ;;  %2861 = vrcp.f32 %v950_v51  ;;  %v952_v55 = vpop.xlane.xlu0 %951  ;;  %v1027_v56 = vmul.f32 %v3392_v45, %v1011_v49 }
 0x293   : > { %v2850_v57 = vpop.eup %2849  ;;  %v997_v58 = vsub.f32 2.0, %v981_v50  ;;  %2863 = vrcp.f32 %v952_v55 }
 0x294   : > { %v2852_v59 = vpop.eup %2851  ;;  %v1012_v62 = vmul.f32 %v2846_v46, %v996_v54  ;;  %v982_v63 = vmul.f32 %v2850_v57, %v938_v36  ;;  %2634 = vmatprep.mubr.f32.mxu1 %v1027_v56 }
 0x295   : > { %v1013_v0 = vmul.f32 %v2848_v47, %v997_v58  ;;  %v983_v1 = vmul.f32 %v2852_v59, %v940_v37  ;;  %v3461_v2 = vpop.xlane.xlu1 %953 }
 0x296   : > { %v998_v3 = vsub.f32 2.0, %v982_v63  ;;  %2865 = vrcp.f32 %v3461_v2  ;;  %v3464_v5 = vpop.xlane.xlu0 %955  ;;  %v1028_v7 = vmul.f32 %v3397_v52, %v1012_v62  ;;  %v663_v63 = vld [vmem:[%s3319_s13 + $0xa8] sm:$0xff] }
 0x297   : > { %v2854_v45 = vpop.eup %2853  ;;  %v999_v8 = vsub.f32 2.0, %v983_v1  ;;  %2867 = vrcp.f32 %v3464_v5  ;;  %v1029_v9 = vmul.f32 %v3399_v53, %v1013_v0 }
 0x298   : > { %v2856_v11 = vpop.eup %2855  ;;  %v1014_v13 = vmul.f32 %v2850_v57, %v998_v3  ;;  %v984_v16 = vmul.f32 %v2854_v45, %v942_v38  ;;  %2635 = vmatmul.mubr.f32.vlgmr.msra.gmra.mxu1 %v1028_v7 }
 0x299   : > { %v1015_v17 = vmul.f32 %v2852_v59, %v999_v8  ;;  %v985_v18 = vmul.f32 %v2856_v11, %v944_v39  ;;  %2659 = vmatpush3.xpose.msra.mxu1 %v673_v32  ;;  %v958_v20 = vpop.xlane.xlu1 %957  ;;  %2637 = vmatprep.mubr.f32.mxu1 %v1029_v9 }
 0x29a   : > { %v1000_v22 = vsub.f32 2.0, %v984_v16  ;;  %2869 = vrcp.f32 %v958_v20  ;;  %v960_v52 = vpop.xlane.xlu0 %959  ;;  %2660 = vmatprep.subr.mxu1 %v671_v10  ;;  %v1030_v24 = vmul.f32 %v3405_v60, %v1014_v13 }
 0x29b   : > { %v2858_v26 = vpop.eup %2857  ;;  %v1001_v28 = vsub.f32 2.0, %v985_v18  ;;  %2871 = vrcp.f32 %v960_v52  ;;  %v1031_v53 = vmul.f32 %v3407_v61, %v1015_v17  ;;  %v659_v18 = vld [vmem:[%s3319_s13 + $0x88] sm:$0xff] }
 0x29c   : > { %v2860_v31 = vpop.eup %2859  ;;  %v1016_v33 = vmul.f32 %v2854_v45, %v1000_v22  ;;  %v986_v34 = vmul.f32 %v2858_v26, %v946_v42  ;;  %2638 = vmatmul.mubr.f32.gmra.mxu1 %v1030_v24  ;;  %v611_v22 = vld [vmem:[%s3325_s21 + $0x8] sm:$0xff] }
 0x29d   : > { %v1017_v32 = vmul.f32 %v2856_v11, %v1001_v28  ;;  %v987_v35 = vmul.f32 %v2860_v31, %v948_v44  ;;  %2661 = vmatpush3.xpose.msra.mxu1 %v671_v10  ;;  %v962_v36 = vpop.xlane.xlu1 %961  ;;  %2640 = vmatprep.mubr.f32.mxu1 %v1031_v53  ;;  %v651_v24 = vld [vmem:[%s3319_s13 + $0x48] sm:$0xff]  ;;  %v645_v28 = vld [vmem:[%s3319_s13 + $0x18] sm:$0xff] }
 0x29e   : > { %v1002_v37 = vsub.f32 2.0, %v986_v34  ;;  %2873 = vrcp.f32 %v962_v36  ;;  %2662 = vmatprep.subr.mxu1 %v669_v30  ;;  %v1032_v60 = vmul.f32 %v3413_v4, %v1016_v33  ;;  %v643_v53 = vld [vmem:[%s3319_s13 + $0x8] sm:$0xff]  ;;  %v617_v33 = vld [vmem:[%s3325_s21 + $0x38] sm:$0xff] }
 0x29f   : > { %v2862_v38 = vpop.eup %2861  ;;  %v1003_v39 = vsub.f32 2.0, %v987_v35  ;;  %v1033_v61 = vmul.f32 %v3416_v6, %v1017_v32  ;;  %v665_v6 = vld [vmem:[%s3319_s13 + $0xb8] sm:$0xff]  ;;  %v619_v34 = vld [vmem:[%s3325_s21 + $0x48] sm:$0xff] }
 0x2a0   : > { %v2864_v41 = vpop.eup %2863  ;;  %v1018_v43 = vmul.f32 %v2858_v26, %v1002_v37  ;;  %v988_v42 = vmul.f32 %v2862_v38, %v950_v51  ;;  %2641 = vmatmul.mubr.f32.gmra.mxu1 %v1032_v60  ;;  %v647_v26 = vld [vmem:[%s3319_s13 + $0x28] sm:$0xff]  ;;  %v621_v32 = vld [vmem:[%s3325_s21 + $0x58] sm:$0xff] }
 0x2a1   : > { %v1019_v46 = vmul.f32 %v2860_v31, %v1003_v39  ;;  %v989_v44 = vmul.f32 %v2864_v41, %v952_v55  ;;  %2663 = vmatpush3.xpose.msra.mxu1 %v669_v30  ;;  %2643 = vmatprep.mubr.f32.mxu1 %v1033_v61  ;;  %v613_v30 = vld [vmem:[%s3325_s21 + $0x18] sm:$0xff]  ;;  %v615_v31 = vld [vmem:[%s3325_s21 + $0x28] sm:$0xff] }
 0x2a2   : > { %v1004_v47 = vsub.f32 2.0, %v988_v42  ;;  %2664 = vmatprep.subr.mxu1 %v667_v40  ;;  %v1034_v48 = vmul.f32 %v3422_v12, %v1018_v43  ;;  %v623_v35 = vld [vmem:[%s3325_s21 + $0x68] sm:$0xff]  ;;  %v629_v60 = vld [vmem:[%s3325_s21 + $0x98] sm:$0xff] }
 0x2a3   : > { %v2866_v49 = vpop.eup %2865  ;;  %v1005_v4 = vsub.f32 2.0, %v989_v44  ;;  %v1035_v50 = vmul.f32 %v3425_v15, %v1019_v46  ;;  %v627_v37 = vld [vmem:[%s3325_s21 + $0x88] sm:$0xff]  ;;  %v633_v39 = vld [vmem:[%s3325_s21 + $0xb8] sm:$0xff] }
 0x2a4   : > { %v2868_v54 = vpop.eup %2867  ;;  %v1020_v56 = vmul.f32 %v2862_v38, %v1004_v47  ;;  %v990_v57 = vmul.f32 %v2866_v49, %v3461_v2  ;;  %2644 = vmatmul.mubr.f32.gmra.mxu1 %v1034_v48  ;;  %v631_v38 = vld [vmem:[%s3325_s21 + $0xa8] sm:$0xff]  ;;  %v641_v43 = vld [vmem:[%s3325_s21 + $0xf8] sm:$0xff] }
 0x2a5   : > { %v1021_v51 = vmul.f32 %v2864_v41, %v1005_v4  ;;  %v991_v55 = vmul.f32 %v2868_v54, %v3464_v5  ;;  %2665 = vmatpush3.xpose.msra.mxu1 %v667_v40  ;;  %2646 = vmatprep.mubr.f32.mxu1 %v1035_v50  ;;  %v635_v61 = vld [vmem:[%s3325_s21 + $0xc8] sm:$0xff]  ;;  %v637_v40 = vld [vmem:[%s3325_s21 + $0xd8] sm:$0xff] }
 0x2a6   : > { %v1006_v58 = vsub.f32 2.0, %v990_v57  ;;  %2666 = vmatprep.subr.mxu1 %v665_v6  ;;  %v1036_v12 = vmul.f32 %v3430_v14, %v1020_v56  ;;  %v639_v41 = vld [vmem:[%s3325_s21 + $0xe8] sm:$0xff] }
 0x2a7   : > { %v2870_v59 = vpop.eup %2869  ;;  %v1007_v62 = vsub.f32 2.0, %v991_v55  ;;  %v1037_v15 = vmul.f32 %v3433_v19, %v1021_v51  ;;  %v661_v19 = vld [vmem:[%s3319_s13 + $0x98] sm:$0xff] }
 0x2a8   : > { %v2872_v0 = vpop.eup %2871  ;;  %v1022_v1 = vmul.f32 %v2866_v49, %v1006_v58  ;;  %v992_v3 = vmul.f32 %v2870_v59, %v958_v20  ;;  %2647 = vmatmul.mubr.f32.gmra.mxu1 %v1036_v12 }
 0x2a9   : > { %v1023_v2 = vmul.f32 %v2868_v54, %v1007_v62  ;;  %v993_v7 = vmul.f32 %v2872_v0, %v960_v52  ;;  %2667 = vmatpush3.xpose.msra.mxu1 %v665_v6  ;;  %2649 = vmatprep.mubr.f32.mxu1 %v1037_v15  ;;  %v657_v52 = vld [vmem:[%s3319_s13 + $0x78] sm:$0xff] }
 0x2aa   : > { %v1008_v5 = vsub.f32 2.0, %v992_v3  ;;  %2668 = vmatprep.subr.mxu1 %v663_v63  ;;  %v1038_v45 = vmul.f32 %v3438_v21, %v1022_v1 }
 0x2ab   : > { %v2874_v14 = vpop.eup %2873  ;;  %v1009_v8 = vsub.f32 2.0, %v993_v7  ;;  %v1039_v9 = vmul.f32 %v3441_v23, %v1023_v2 }
 0x2ac   : > { %v1024_v10 = vmul.f32 %v2870_v59, %v1008_v5  ;;  %v994_v11 = vmul.f32 %v2874_v14, %v962_v36  ;;  %2650 = vmatmul.mubr.f32.gmra.mxu1 %v1038_v45  ;;  %v625_v36 = vld [vmem:[%s3325_s21 + $0x78] sm:$0xff] }
 0x2ad   : > { %v1025_v13 = vmul.f32 %v2872_v0, %v1009_v8  ;;  %2669 = vmatpush3.xpose.msra.mxu1 %v663_v63  ;;  %2652 = vmatprep.mubr.f32.mxu1 %v1039_v9 }
 0x2ae   : > { %v1010_v16 = vsub.f32 2.0, %v994_v11  ;;  %2670 = vmatprep.subr.mxu1 %v661_v19  ;;  %v1040_v17 = vmul.f32 %v3446_v25, %v1024_v10  ;;  %v655_v25 = vld [vmem:[%s3319_s13 + $0x68] sm:$0xff]  ;;  %v705_v11 = vld [vmem:[%s3384_s14 + $0xf8] sm:$0xff] }
 0x2af   : > { %v1041_v21 = vmul.f32 %v3449_v27, %v1025_v13  ;;  %v653_v27 = vld [vmem:[%s3319_s13 + $0x58] sm:$0xff]  ;;  %v703_v13 = vld [vmem:[%s3384_s14 + $0xe8] sm:$0xff]  ;;  %2714 = vmatprep.subr.mxu0 %v705_v11 }
 0x2b0   : > { %v1026_v20 = vmul.f32 %v2874_v14, %v1010_v16  ;;  %2653 = vmatmul.mubr.f32.gmra.mxu1 %v1040_v17  ;;  %2715 = vmatpush3.msra.mxu0 %v705_v11  ;;  %v701_v16 = vld [vmem:[%s3384_s14 + $0xd8] sm:$0xff]  ;;  %v699_v17 = vld [vmem:[%s3384_s14 + $0xc8] sm:$0xff] }
 0x2b1   : > { %2671 = vmatpush3.xpose.msra.mxu1 %v661_v19  ;;  %2655 = vmatprep.mubr.f32.mxu1 %v1041_v21 }
 0x2b2   : > { %2672 = vmatprep.subr.mxu1 %v659_v18  ;;  %v1042_v23 = vmul.f32 %v3454_v29, %v1026_v20  ;;  %v649_v29 = vld [vmem:[%s3319_s13 + $0x38] sm:$0xff]  ;;  %2716 = vmatprep.subr.mxu0 %v703_v13 }
 0x2b3   : > { %2717 = vmatpush3.msra.mxu0 %v703_v13 }
 0x2b4   : > { %2656 = vmatmul.mubr.f32.gmra.mxu1 %v1042_v23  ;;  %2718 = vmatprep.subr.mxu0 %v701_v16 }
 0x2b5   : > { %2673 = vmatpush3.xpose.msra.mxu1 %v659_v18  ;;  %2690 = vmatprep.mubr.f32.mxu1 %v611_v22 }
 0x2b6   : > { %2674 = vmatprep.subr.mxu1 %v657_v52  ;;  %2719 = vmatpush3.msra.mxu0 %v701_v16 }
 0x2b7   : > { %2720 = vmatprep.subr.mxu0 %v699_v17 }
 0x2b8   : > { %2721 = vmatpush3.msra.mxu0 %v699_v17 }
 0x2b9   : > { %2675 = vmatpush3.xpose.msra.mxu1 %v657_v52 }
 0x2ba   : > { %2676 = vmatprep.subr.mxu1 %v655_v25 }
 0x2bd   : > { %2677 = vmatpush3.xpose.msra.mxu1 %v655_v25 }
 0x2be   : > { %2678 = vmatprep.subr.mxu1 %v653_v27 }
 0x2c1   : > { %2679 = vmatpush3.xpose.msra.mxu1 %v653_v27 }
 0x2c2   : > { %2680 = vmatprep.subr.mxu1 %v651_v24 }
 0x2c5   : > { %2681 = vmatpush3.xpose.msra.mxu1 %v651_v24 }
 0x2c6   : > { %2682 = vmatprep.subr.mxu1 %v649_v29 }
 0x2c9   : > { %2683 = vmatpush3.xpose.msra.mxu1 %v649_v29 }
 0x2ca   : > { %2684 = vmatprep.subr.mxu1 %v647_v26 }
 0x2cd   : > { %2685 = vmatpush3.xpose.msra.mxu1 %v647_v26 }
 0x2ce   : > { %2686 = vmatprep.subr.mxu1 %v645_v28 }
 0x2d1   : > { %2687 = vmatpush3.xpose.msra.mxu1 %v645_v28 }
 0x2d2   : > { %2688 = vmatprep.subr.mxu1 %v643_v53 }
 0x2d5   : > { %2689 = vmatpush3.xpose.msra.mxu1 %v643_v53 }
 0x2d8   : > { %2691 = vmatmul.mubr.f32.vlgmr.msra.gmra.mxu1 %v613_v30 }
 0x2d9   : > { %2693 = vmatprep.mubr.f32.mxu1 %v615_v31 }
 0x2dc   : > { %2694 = vmatmul.mubr.f32.gmra.mxu1 %v617_v33 }
 0x2dd   : > { %2696 = vmatprep.mubr.f32.mxu1 %v619_v34 }
 0x2e0   : > { %2697 = vmatmul.mubr.f32.gmra.mxu1 %v621_v32 }
 0x2e1   : > { %2699 = vmatprep.mubr.f32.mxu1 %v623_v35 }
 0x2e4   : > { %2700 = vmatmul.mubr.f32.gmra.mxu1 %v625_v36 }
 0x2e5   : > { %2702 = vmatprep.mubr.f32.mxu1 %v627_v37 }
 0x2e8   : > { %2703 = vmatmul.mubr.f32.gmra.mxu1 %v629_v60 }
 0x2e9   : > { %2705 = vmatprep.mubr.f32.mxu1 %v631_v38 }
 0x2ec   : > { %2706 = vmatmul.mubr.f32.gmra.mxu1 %v633_v39 }
 0x2ed   : > { %2708 = vmatprep.mubr.f32.mxu1 %v635_v61 }
 0x2f0   : > { %2709 = vmatmul.mubr.f32.gmra.mxu1 %v637_v40 }
 0x2f1   : > { %2711 = vmatprep.mubr.f32.mxu1 %v639_v41 }
 0x2f4   : > { %2712 = vmatmul.mubr.f32.gmra.mxu1 %v641_v43 }
 0x358   : > { %v3515_v42 = vpop.f32.mrf.mxu1 }
 0x35a   : > { %v3517_v46 = vpop.f32.mrf.mxu1 }
 0x35c   : > { %v3519_v44 = vpop.f32.mrf.mxu1 }
 0x35e   : > { %v3521_v47 = vpop.f32.mrf.mxu1 }
 0x360   : > { %v3523_v48 = vpop.f32.mrf.mxu1 }
 0x362   : > { %v3525_v49 = vpop.f32.mrf.mxu1 }
 0x364   : > { %v3527_v4 = vpop.f32.mrf.mxu1 }
 0x366   : > { %v3529_v50 = vpop.f32.mrf.mxu1 }
 0x368   : > { %v3531_v6 = vpop.f32.mrf.mxu1 }
 0x36a   : > { %v3533_v54 = vpop.f32.mrf.mxu1 }
 0x36c   : > { %v3535_v56 = vpop.f32.mrf.mxu1 }
 0x36e   : > { %v3537_v57 = vpop.f32.mrf.mxu1 }
 0x370   : > { %v3539_v51 = vpop.f32.mrf.mxu1 }
 0x372   : > { %v3541_v55 = vpop.f32.mrf.mxu1 }
 0x374   : > { %v3543_v58 = vpop.f32.mrf.mxu1 }
 0x376   : > { %v3545_v12 = vpop.f32.mrf.mxu1 }
 0x398   : > { %v2692_v59 = vpop.f32.mrf.mxu1 }
 0x399   : > { %1351 = vmax.xlane.f32.xlu1 %v2692_v59 }
 0x39a   : > { %v1270_v62 = vpop.f32.mrf.mxu1 }
 0x39b   : > { %1349 = vmax.xlane.f32.xlu0 %v1270_v62 }
 0x39c   : > { %v2695_v15 = vpop.f32.mrf.mxu1 }
 0x39d   : > { %1355 = vmax.xlane.f32.xlu1 %v2695_v15 }
 0x39e   : > { %v1280_v63 = vpop.f32.mrf.mxu1 }
 0x39f   : > { %1353 = vmax.xlane.f32.xlu0 %v1280_v63 }
 0x3a0   : > { %v2698_v0 = vpop.f32.mrf.mxu1 }
 0x3a1   : > { %1359 = vmax.xlane.f32.xlu1 %v2698_v0 }
 0x3a2   : > { %v1290_v1 = vpop.f32.mrf.mxu1 }
 0x3a3   : > { %1357 = vmax.xlane.f32.xlu0 %v1290_v1 }
 0x3a4   : > { %v2701_v3 = vpop.f32.mrf.mxu1 }
 0x3a5   : > { %1363 = vmax.xlane.f32.xlu1 %v2701_v3 }
 0x3a6   : > { %v1300_v2 = vpop.f32.mrf.mxu1 }
 0x3a7   : > { %1361 = vmax.xlane.f32.xlu0 %v1300_v2 }
 0x3a8   : > { %v3547_v7 = vpop.f32.mrf.mxu1 }
 0x3a9   : > { %1367 = vmax.xlane.f32.xlu1 %v3547_v7 }
 0x3aa   : > { %v3550_v5 = vpop.f32.mrf.mxu1 }
 0x3ab   : > { %1365 = vmax.xlane.f32.xlu0 %v3550_v5 }
 0x3ac   : > { %v3553_v45 = vpop.f32.mrf.mxu1 }
 0x3ad   : > { %1371 = vmax.xlane.f32.xlu1 %v3553_v45 }
 0x3ae   : > { %v3556_v14 = vpop.f32.mrf.mxu1 }
 0x3af   : > { %1369 = vmax.xlane.f32.xlu0 %v3556_v14 }
 0x3b0   : > { %v3559_v8 = vpop.f32.mrf.mxu1 }
 0x3b1   : > { %1375 = vmax.xlane.f32.xlu1 %v3559_v8 }
 0x3b2   : > { %v3562_v9 = vpop.f32.mrf.mxu1 }
 0x3b3   : > { %1373 = vmax.xlane.f32.xlu0 %v3562_v9 }
 0x3b4   : > { %v3565_v19 = vpop.f32.mrf.mxu1 }
 0x3b5   : > { %1379 = vmax.xlane.f32.xlu1 %v3565_v19 }
 0x3b6   : > { %v3568_v10 = vpop.f32.mrf.mxu1 }
 0x3b7   : > { %1377 = vmax.xlane.f32.xlu0 %v3568_v10 }
 0x422   : > { %v1352_v21 = vpop.xlane.xlu1 %1351 }
 0x423   : > { %v1382_v18 = vsub.f32 %v2692_v59, %v1352_v21 }
 0x424   : > { %v1350_v20 = vpop.xlane.xlu0 %1349 }
 0x425   : > { %v1399_v23 = vmul.f32 1.442695, %v1382_v18  ;;  %v1381_v22 = vsub.f32 %v1270_v62, %v1350_v20 }
 0x426   : > { %v1356_v52 = vpop.xlane.xlu1 %1355 }
 0x427   : > { %2875 = vpow2.f32 %v1399_v23  ;;  %v1397_v25 = vmul.f32 1.442695, %v1381_v22  ;;  %v1384_v27 = vsub.f32 %v2695_v15, %v1356_v52 }
 0x428   : > { %v1354_v24 = vpop.xlane.xlu0 %1353 }
 0x429   : > { %2877 = vpow2.f32 %v1397_v25  ;;  %v1403_v29 = vmul.f32 1.442695, %v1384_v27  ;;  %v1383_v26 = vsub.f32 %v1280_v63, %v1354_v24 }
 0x42a   : > { %v1360_v28 = vpop.xlane.xlu1 %1359 }
 0x42b   : > { %2879 = vpow2.f32 %v1403_v29  ;;  %v1401_v53 = vmul.f32 1.442695, %v1383_v26  ;;  %v1386_v30 = vsub.f32 %v2698_v0, %v1360_v28  ;;  %v695_v29 = vld [vmem:[%s3384_s14 + $0xa8] sm:$0xff]  ;;  %v693_v28 = vld [vmem:[%s3384_s14 + $0x98] sm:$0xff] }
 0x42c   : > { %v1358_v31 = vpop.xlane.xlu0 %1357 }
 0x42d   : > { %2881 = vpow2.f32 %v1401_v53  ;;  %v1407_v33 = vmul.f32 1.442695, %v1386_v30  ;;  %v1385_v34 = vsub.f32 %v1290_v1, %v1358_v31  ;;  %v689_v31 = vld [vmem:[%s3384_s14 + $0x78] sm:$0xff] }
 0x42e   : > { %v1364_v32 = vpop.xlane.xlu1 %1363 }
 0x42f   : > { %2883 = vpow2.f32 %v1407_v33  ;;  %v1405_v35 = vmul.f32 1.442695, %v1385_v34  ;;  %v1388_v36 = vsub.f32 %v2701_v3, %v1364_v32  ;;  %v687_v34 = vld [vmem:[%s3384_s14 + $0x68] sm:$0xff] }
 0x430   : > { %v1362_v37 = vpop.xlane.xlu0 %1361 }
 0x431   : > { %2885 = vpow2.f32 %v1405_v35  ;;  %v1411_v60 = vmul.f32 1.442695, %v1388_v36  ;;  %v1387_v38 = vsub.f32 %v1300_v2, %v1362_v37  ;;  %v685_v35 = vld [vmem:[%s3384_s14 + $0x58] sm:$0xff]  ;;  %v683_v37 = vld [vmem:[%s3384_s14 + $0x48] sm:$0xff] }
 0x432   : > { %v1368_v39 = vpop.xlane.xlu1 %1367 }
 0x433   : > { %2887 = vpow2.f32 %v1411_v60  ;;  %v1409_v61 = vmul.f32 1.442695, %v1387_v38  ;;  %v1390_v40 = vsub.f32 %v3547_v7, %v1368_v39  ;;  %v681_v38 = vld [vmem:[%s3384_s14 + $0x38] sm:$0xff] }
 0x434   : > { %v3576_v41 = vpop.eup %2875  ;;  %v1366_v43 = vpop.xlane.xlu0 %1365 }
 0x435   : > { %2889 = vpow2.f32 %v1409_v61  ;;  %v1415_v59 = vmul.f32 1.442695, %v1390_v40  ;;  %v1389_v62 = vsub.f32 %v3550_v5, %v1366_v43  ;;  %1431 = vadd.xlane.f32.xlu1 %v3576_v41  ;;  %v679_v61 = vld [vmem:[%s3384_s14 + $0x28] sm:$0xff]  ;;  %v677_v43 = vld [vmem:[%s3384_s14 + $0x18] sm:$0xff] }
 0x436   : > { %v3580_v15 = vpop.eup %2877  ;;  %v1372_v63 = vpop.xlane.xlu1 %1371 }
 0x437   : > { %2891 = vpow2.f32 %v1415_v59  ;;  %v1413_v0 = vmul.f32 1.442695, %v1389_v62  ;;  %v1392_v1 = vsub.f32 %v3553_v45, %v1372_v63  ;;  %1429 = vadd.xlane.f32.xlu0 %v3580_v15  ;;  %v675_v59 = vld [vmem:[%s3384_s14 + $0x8] sm:$0xff] }
 0x438   : > { %v3584_v3 = vpop.eup %2879  ;;  %v1370_v2 = vpop.xlane.xlu0 %1369 }
 0x439   : > { %2893 = vpow2.f32 %v1413_v0  ;;  %v1419_v7 = vmul.f32 1.442695, %v1392_v1  ;;  %v1391_v11 = vsub.f32 %v3556_v14, %v1370_v2  ;;  %1435 = vadd.xlane.f32.xlu1 %v3584_v3 }
 0x43a   : > { %v3588_v5 = vpop.eup %2881  ;;  %v1376_v13 = vpop.xlane.xlu1 %1375 }
 0x43b   : > { %2895 = vpow2.f32 %v1419_v7  ;;  %v1417_v16 = vmul.f32 1.442695, %v1391_v11  ;;  %v1394_v17 = vsub.f32 %v3559_v8, %v1376_v13  ;;  %1433 = vadd.xlane.f32.xlu0 %v3588_v5  ;;  %v697_v8 = vld [vmem:[%s3384_s14 + $0xb8] sm:$0xff] }
 0x43c   : > { %v3592_v45 = vpop.eup %2883  ;;  %v1374_v21 = vpop.xlane.xlu0 %1373  ;;  %2722 = vmatprep.subr.mxu0 %v697_v8 }
 0x43d   : > { %2897 = vpow2.f32 %v1417_v16  ;;  %v1423_v18 = vmul.f32 1.442695, %v1394_v17  ;;  %v1393_v20 = vsub.f32 %v3562_v9, %v1374_v21  ;;  %1439 = vadd.xlane.f32.xlu1 %v3592_v45  ;;  %2723 = vmatpush3.msra.mxu0 %v697_v8 }
 0x43e   : > { %v3596_v14 = vpop.eup %2885  ;;  %v1380_v23 = vpop.xlane.xlu1 %1379  ;;  %2724 = vmatprep.subr.mxu0 %v695_v29 }
 0x43f   : > { %2899 = vpow2.f32 %v1423_v18  ;;  %v1421_v22 = vmul.f32 1.442695, %v1393_v20  ;;  %v1396_v52 = vsub.f32 %v3565_v19, %v1380_v23  ;;  %1437 = vadd.xlane.f32.xlu0 %v3596_v14  ;;  %2725 = vmatpush3.msra.mxu0 %v695_v29 }
 0x440   : > { %v3601_v25 = vpop.eup %2887  ;;  %v1378_v27 = vpop.xlane.xlu0 %1377  ;;  %2726 = vmatprep.subr.mxu0 %v693_v28 }
 0x441   : > { %2901 = vpow2.f32 %v1421_v22  ;;  %v1427_v9 = vmul.f32 1.442695, %v1396_v52  ;;  %v1395_v24 = vsub.f32 %v3568_v10, %v1378_v27  ;;  %1443 = vadd.xlane.f32.xlu1 %v3601_v25  ;;  %2727 = vmatpush3.msra.mxu0 %v693_v28  ;;  %v691_v10 = vld [vmem:[%s3384_s14 + $0x88] sm:$0xff] }
 0x442   : > { %v3606_v26 = vpop.eup %2889  ;;  %2728 = vmatprep.subr.mxu0 %v691_v10 }
 0x443   : > { %2903 = vpow2.f32 %v1427_v9  ;;  %v1425_v19 = vmul.f32 1.442695, %v1395_v24  ;;  %1441 = vadd.xlane.f32.xlu0 %v3606_v26  ;;  %2729 = vmatpush3.msra.mxu0 %v691_v10 }
 0x444   : > { %v3610_v53 = vpop.eup %2891  ;;  %2730 = vmatprep.subr.mxu0 %v689_v31 }
 0x445   : > { %2905 = vpow2.f32 %v1425_v19  ;;  %1447 = vadd.xlane.f32.xlu1 %v3610_v53  ;;  %2731 = vmatpush3.msra.mxu0 %v689_v31 }
 0x446   : > { %v3614_v30 = vpop.eup %2893  ;;  %2732 = vmatprep.subr.mxu0 %v687_v34 }
 0x447   : > { %1445 = vadd.xlane.f32.xlu0 %v3614_v30  ;;  %2733 = vmatpush3.msra.mxu0 %v687_v34 }
 0x448   : > { %v3618_v33 = vpop.eup %2895  ;;  %2734 = vmatprep.subr.mxu0 %v685_v35 }
 0x449   : > { %1451 = vadd.xlane.f32.xlu1 %v3618_v33  ;;  %2735 = vmatpush3.msra.mxu0 %v685_v35 }
 0x44a   : > { %v3622_v32 = vpop.eup %2897  ;;  %2736 = vmatprep.subr.mxu0 %v683_v37 }
 0x44b   : > { %1449 = vadd.xlane.f32.xlu0 %v3622_v32  ;;  %2737 = vmatpush3.msra.mxu0 %v683_v37 }
 0x44c   : > { %v3626_v36 = vpop.eup %2899  ;;  %2738 = vmatprep.subr.mxu0 %v681_v38 }
 0x44d   : > { %1455 = vadd.xlane.f32.xlu1 %v3626_v36  ;;  %2739 = vmatpush3.msra.mxu0 %v681_v38 }
 0x44e   : > { %v3630_v60 = vpop.eup %2901  ;;  %2740 = vmatprep.subr.mxu0 %v679_v61 }
 0x44f   : > { %1453 = vadd.xlane.f32.xlu0 %v3630_v60  ;;  %2741 = vmatpush3.msra.mxu0 %v679_v61 }
 0x450   : > { %v3634_v39 = vpop.eup %2903  ;;  %2742 = vmatprep.subr.mxu0 %v677_v43 }
 0x451   : > { %1459 = vadd.xlane.f32.xlu1 %v3634_v39  ;;  %2743 = vmatpush3.msra.mxu0 %v677_v43 }
 0x452   : > { %v3638_v40 = vpop.eup %2905  ;;  %2744 = vmatprep.subr.mxu0 %v675_v59 }
 0x453   : > { %1457 = vadd.xlane.f32.xlu0 %v3638_v40  ;;  %2745 = vmatpush3.msra.mxu0 %v675_v59 }
 0x4be   : > { %v1432_v62 = vpop.xlane.xlu1 %1431 }
 0x4bf   : > { %2907 = vrcp.f32 %v1432_v62 }
 0x4c0   : > { %v1430_v63 = vpop.xlane.xlu0 %1429 }
 0x4c1   : > { %2909 = vrcp.f32 %v1430_v63 }
 0x4c2   : > { %v1436_v0 = vpop.xlane.xlu1 %1435 }
 0x4c3   : > { %2911 = vrcp.f32 %v1436_v0 }
 0x4c4   : > { %v1434_v1 = vpop.xlane.xlu0 %1433 }
 0x4c5   : > { %2913 = vrcp.f32 %v1434_v1 }
 0x4c6   : > { %v1440_v2 = vpop.xlane.xlu1 %1439 }
 0x4c7   : > { %2915 = vrcp.f32 %v1440_v2 }
 0x4c8   : > { %v1438_v7 = vpop.xlane.xlu0 %1437 }
 0x4c9   : > { %2917 = vrcp.f32 %v1438_v7 }
 0x4ca   : > { %v1444_v11 = vpop.xlane.xlu1 %1443 }
 0x4cb   : > { %2919 = vrcp.f32 %v1444_v11 }
 0x4cc   : > { %v2908_v13 = vpop.eup %2907  ;;  %v1442_v16 = vpop.xlane.xlu0 %1441 }
 0x4cd   : > { %v1478_v17 = vmul.f32 %v2908_v13, %v1432_v62  ;;  %2921 = vrcp.f32 %v1442_v16 }
 0x4ce   : > { %v2910_v21 = vpop.eup %2909  ;;  %v1448_v18 = vpop.xlane.xlu1 %1447 }
 0x4cf   : > { %v1494_v20 = vsub.f32 2.0, %v1478_v17  ;;  %v1477_v23 = vmul.f32 %v2910_v21, %v1430_v63  ;;  %2923 = vrcp.f32 %v1448_v18 }
 0x4d0   : > { %v2912_v22 = vpop.eup %2911  ;;  %v1446_v52 = vpop.xlane.xlu0 %1445 }
 0x4d1   : > { %v1493_v8 = vsub.f32 2.0, %v1477_v23  ;;  %v1480_v27 = vmul.f32 %v2912_v22, %v1436_v0  ;;  %2925 = vrcp.f32 %v1446_v52  ;;  %v1510_v24 = vmul.f32 %v2908_v13, %v1494_v20 }
 0x4d2   : > { %v2914_v9 = vpop.eup %2913  ;;  %v1452_v29 = vpop.xlane.xlu1 %1451 }
 0x4d3   : > { %v1509_v19 = vmul.f32 %v2910_v21, %v1493_v8  ;;  %v1496_v28 = vsub.f32 2.0, %v1480_v27  ;;  %v1479_v10 = vmul.f32 %v2914_v9, %v1434_v1  ;;  %2927 = vrcp.f32 %v1452_v29 }
 0x4d4   : > { %v2916_v31 = vpop.eup %2915  ;;  %v1450_v34 = vpop.xlane.xlu0 %1449  ;;  %v1526_v61 = vmul.f32 %v3576_v41, %v1510_v24 }
 0x4d5   : > { %v1495_v35 = vsub.f32 2.0, %v1479_v10  ;;  %v1482_v37 = vmul.f32 %v2916_v31, %v1440_v2  ;;  %2929 = vrcp.f32 %v1450_v34  ;;  %v1512_v43 = vmul.f32 %v2912_v22, %v1496_v28 }
 0x4d6   : > { %v2918_v38 = vpop.eup %2917  ;;  %v1456_v59 = vpop.xlane.xlu1 %1455  ;;  %v1525_v62 = vmul.f32 %v3580_v15, %v1509_v19 }
 0x4d7   : > { %v1511_v63 = vmul.f32 %v2914_v9, %v1495_v35  ;;  %v1498_v0 = vsub.f32 2.0, %v1482_v37  ;;  %v1481_v13 = vmul.f32 %v2918_v38, %v1438_v7  ;;  %2931 = vrcp.f32 %v1456_v59 }
 0x4d8   : > { %v2920_v17 = vpop.eup %2919  ;;  %2746 = vmatprep.mubr.f32.mxu0 %v1525_v62  ;;  %v1454_v1 = vpop.xlane.xlu0 %1453  ;;  %v1528_v22 = vmul.f32 %v3584_v3, %v1512_v43 }
 0x4d9   : > { %v1497_v21 = vsub.f32 2.0, %v1481_v13  ;;  %v1484_v20 = vmul.f32 %v2920_v17, %v1444_v11  ;;  %2747 = vmatmul.mubr.f32.vlgmr.msra.gmra.mxu0 %v1526_v61  ;;  %2933 = vrcp.f32 %v1454_v1  ;;  %v1514_v23 = vmul.f32 %v2916_v31, %v1498_v0 }
 0x4da   : > { %v2922_v2 = vpop.eup %2921  ;;  %v1460_v8 = vpop.xlane.xlu1 %1459  ;;  %v1527_v41 = vmul.f32 %v3588_v5, %v1511_v63 }
 0x4db   : > { %v1513_v27 = vmul.f32 %v2918_v38, %v1497_v21  ;;  %v1500_v15 = vsub.f32 2.0, %v1484_v20  ;;  %v1483_v9 = vmul.f32 %v2922_v2, %v1442_v16  ;;  %2935 = vrcp.f32 %v1460_v8 }
 0x4dc   : > { %v2924_v7 = vpop.eup %2923  ;;  %2749 = vmatprep.mubr.f32.mxu0 %v1527_v41  ;;  %v1458_v24 = vpop.xlane.xlu0 %1457  ;;  %v1530_v31 = vmul.f32 %v3592_v45, %v1514_v23 }
 0x4dd   : > { %v1499_v19 = vsub.f32 2.0, %v1483_v9  ;;  %v1486_v28 = vmul.f32 %v2924_v7, %v1448_v18  ;;  %2750 = vmatmul.mubr.f32.gmra.mxu0 %v1528_v22  ;;  %2937 = vrcp.f32 %v1458_v24  ;;  %v1529_v10 = vmul.f32 %v3596_v14, %v1513_v27 }
 0x4de   : > { %v2926_v11 = vpop.eup %2925  ;;  %v1516_v35 = vmul.f32 %v2920_v17, %v1500_v15 }
 0x4df   : > { %v1515_v5 = vmul.f32 %v2922_v2, %v1499_v19  ;;  %v1502_v37 = vsub.f32 2.0, %v1486_v28  ;;  %v1485_v3 = vmul.f32 %v2926_v11, %v1446_v52  ;;  %2752 = vmatprep.mubr.f32.mxu0 %v1529_v10 }
 0x4e0   : > { %v2928_v38 = vpop.eup %2927  ;;  %v1532_v14 = vmul.f32 %v3601_v25, %v1516_v35  ;;  %v1740_v35 = vld [vmem:[%s3669_s18 + $0x30] sm:$0xff] }
 0x4e1   : > { %v1501_v16 = vsub.f32 2.0, %v1485_v3  ;;  %2753 = vmatmul.mubr.f32.gmra.mxu0 %v1530_v31  ;;  %v1531_v61 = vmul.f32 %v3606_v26, %v1515_v5  ;;  %v1488_v62 = vmul.f32 %v2928_v38, %v1452_v29  ;;  %v1518_v18 = vmul.f32 %v2924_v7, %v1502_v37  ;;  %v1741_v37 = vld [vmem:[%s3669_s18 + $0x38] sm:$0xff] }
 0x4e2   : > { %v2930_v43 = vpop.eup %2929 }
 0x4e3   : > { %v1517_v63 = vmul.f32 %v2926_v11, %v1501_v16  ;;  %v1487_v0 = vmul.f32 %v2930_v43, %v1450_v34  ;;  %2755 = vmatprep.mubr.f32.mxu0 %v1531_v61  ;;  %v1504_v45 = vsub.f32 2.0, %v1488_v62  ;;  %v1534_v29 = vmul.f32 %v3610_v53, %v1518_v18  ;;  %v1738_v61 = vld [vmem:[%s3669_s18 + $0x20] sm:$0xff] }
 0x4e4   : > { %v2932_v13 = vpop.eup %2931  ;;  %v3692_v62 = vadd.f32 %v3519_v44, %v1740_v35 }
 0x4e5   : > { %v1503_v17 = vsub.f32 2.0, %v1487_v0  ;;  %v1490_v21 = vmul.f32 %v2932_v13, %v1456_v59  ;;  %2756 = vmatmul.mubr.f32.gmra.mxu0 %v1532_v14  ;;  %v1533_v52 = vmul.f32 %v3614_v30, %v1517_v63  ;;  %v1520_v2 = vmul.f32 %v2928_v38, %v1504_v45  ;;  %v1744_v63 = vld [vmem:[%s3669_s18 + $0x50] sm:$0xff]  ;;  %v1745_v14 = vld [vmem:[%s3669_s18 + $0x58] sm:$0xff] }
 0x4e6   : > { %v2934_v20 = vpop.eup %2933 }
 0x4e7   : > { %v1519_v23 = vmul.f32 %v2930_v43, %v1503_v17  ;;  %v1506_v41 = vsub.f32 2.0, %v1490_v21  ;;  %v1489_v26 = vmul.f32 %v2934_v20, %v1454_v1  ;;  %2758 = vmatprep.mubr.f32.mxu0 %v1533_v52  ;;  %v1536_v59 = vmul.f32 %v3618_v33, %v1520_v2  ;;  %v1742_v17 = vld [vmem:[%s3669_s18 + $0x40] sm:$0xff]  ;;  %v1743_v52 = vld [vmem:[%s3669_s18 + $0x48] sm:$0xff] }
 0x4e8   : > { %v2936_v22 = vpop.eup %2935 }
 0x4e9   : > { %v1505_v34 = vsub.f32 2.0, %v1489_v26  ;;  %v1492_v27 = vmul.f32 %v2936_v22, %v1460_v8  ;;  %2759 = vmatmul.mubr.f32.gmra.mxu0 %v1534_v29  ;;  %v1535_v25 = vmul.f32 %v3622_v32, %v1519_v23  ;;  %v1522_v9 = vmul.f32 %v2932_v13, %v1506_v41  ;;  %v1748_v23 = vld [vmem:[%s3669_s18 + $0x70] sm:$0xff]  ;;  %v1749_v26 = vld [vmem:[%s3669_s18 + $0x78] sm:$0xff] }
 0x4ea   : > { %v2938_v15 = vpop.eup %2937  ;;  %v3701_v13 = vadd.f32 %v1738_v61, %v3521_v47  ;;  %v3719_v29 = vadd.f32 %v1742_v17, %v3525_v49  ;;  %v1760_v61 = vld [vmem:[%s3669_s18 + $0xd0] sm:$0xff] }
 0x4eb   : > { %v1521_v7 = vmul.f32 %v2934_v20, %v1505_v34  ;;  %v1508_v30 = vsub.f32 2.0, %v1492_v27  ;;  %v1491_v19 = vmul.f32 %v2938_v15, %v1458_v24  ;;  %2761 = vmatprep.mubr.f32.mxu0 %v1535_v25  ;;  %v1538_v8 = vmul.f32 %v3626_v36, %v1522_v9  ;;  %v1736_v36 = vld [vmem:[%s3669_s18 + $0x10] sm:$0xff]  ;;  %v1735_v24 = vld [vmem:[%s3669_s18 + $0x8] sm:$0xff]  ;;  %v1746_v34 = vld [vmem:[%s3669_s18 + $0x60] sm:$0xff] }
 0x4ec   : > { %v3676_v10 = vadd.f32 %v3515_v42, %v1736_v36  ;;  %v1739_v42 = vld [vmem:[%s3669_s18 + $0x28] sm:$0xff]  ;;  %v3710_v20 = vadd.f32 %v3523_v48, %v1744_v63  ;;  %v1752_v9 = vld [vmem:[%s3669_s18 + $0x90] sm:$0xff]  ;;  %v3782_v17 = vadd.f32 %v3539_v51, %v1760_v61  ;;  %v1762_v51 = vld [vmem:[%s3669_s18 + $0xe0] sm:$0xff] }
 0x4ed   : > { %v1507_v1 = vsub.f32 2.0, %v1491_v19  ;;  %2762 = vmatmul.mubr.f32.gmra.mxu0 %v1536_v59  ;;  %v1537_v53 = vmul.f32 %v3630_v60, %v1521_v7  ;;  %v1524_v28 = vmul.f32 %v2936_v22, %v1508_v30  ;;  %v1737_v60 = vld [vmem:[%s3669_s18 + $0x18] sm:$0xff]  ;;  %v1747_v25 = vld [vmem:[%s3669_s18 + $0x68] sm:$0xff]  ;;  %v3737_v19 = vadd.f32 %v1746_v34, %v3529_v50 }
 0x4ee   : > { %v1753_v30 = vld [vmem:[%s3669_s18 + $0x98] sm:$0xff] }
 0x4ef   : > { %v1523_v11 = vmul.f32 %v2938_v15, %v1507_v1  ;;  %2764 = vmatprep.mubr.f32.mxu0 %v1537_v53  ;;  %v1540_v33 = vmul.f32 %v3634_v39, %v1524_v28  ;;  %v1734_v39 = vld [vmem:[%s3669_s18] sm:$0xff]  ;;  %v3728_v15 = vadd.f32 %v3527_v4, %v1748_v23  ;;  %v1765_v23 = vld [vmem:[%s3669_s18 + $0xf8] sm:$0xff] }
 0x4f0   : > { %v3683_v3 = vadd.f32 %v1734_v39, %v3517_v46  ;;  %v1750_v53 = vld [vmem:[%s3669_s18 + $0x80] sm:$0xff] }
 0x4f1   : > { %2765 = vmatmul.mubr.f32.gmra.mxu0 %v1538_v8  ;;  %v1539_v32 = vmul.f32 %v3638_v40, %v1523_v11  ;;  %v1751_v11 = vld [vmem:[%s3669_s18 + $0x88] sm:$0xff]  ;;  %v3746_v8 = vadd.f32 %v3531_v6, %v1752_v9  ;;  %v3755_v39 = vadd.f32 %v1750_v53, %v3533_v54 }
 0x4f3   : > { %2767 = vmatprep.mubr.f32.mxu0 %v1539_v32 }
 0x4f5   : > { %2768 = vmatmul.mubr.f32.gmra.mxu0 %v1540_v33  ;;  %v1756_v33 = vld [vmem:[%s3669_s18 + $0xb0] sm:$0xff] }
 0x599   : > { %v2748_v40 = vpop.f32.mrf.mxu0 }
 0x59a   : > { %v3678_v31 = vadd.f32 %v2748_v40, %v1737_v60  ;;  %v1757_v60 = vld [vmem:[%s3669_s18 + $0xb8] sm:$0xff] }
 0x59b   : > { %v1607_v5 = vpop.f32.mrf.mxu0 }
 0x59c   : > { %v3685_v38 = vadd.f32 %v1735_v24, %v1607_v5  ;;  %v1801_v16 = vadd.f32 %v3678_v31, %v3676_v10  ;;  %v1754_v24 = vld [vmem:[%s3669_s18 + $0xa0] sm:$0xff]  ;;  %v1755_v5 = vld [vmem:[%s3669_s18 + $0xa8] sm:$0xff] }
 0x59d   : > { %v2751_v43 = vpop.f32.mrf.mxu0 }
 0x59e   : > { %v3694_v18 = vadd.f32 %v2751_v43, %v1741_v37  ;;  %1802 = vadd.xlane.f32.xlu1 %v1801_v16  ;;  %v1798_v46 = vadd.f32 %v3685_v38, %v3683_v3  ;;  %v3764_v37 = vadd.f32 %v3535_v56, %v1756_v33 }
 0x59f   : > { %v1617_v0 = vpop.f32.mrf.mxu0 }
 0x5a0   : > { %v3703_v45 = vadd.f32 %v1739_v42, %v1617_v0  ;;  %1799 = vadd.xlane.f32.xlu0 %v1798_v46  ;;  %v1807_v44 = vadd.f32 %v3694_v18, %v3692_v62  ;;  %v1761_v42 = vld [vmem:[%s3669_s18 + $0xd8] sm:$0xff]  ;;  %v3773_v46 = vadd.f32 %v1754_v24, %v3537_v57  ;;  %v1758_v0 = vld [vmem:[%s3669_s18 + $0xc0] sm:$0xff] }
 0x5a1   : > { %v2754_v21 = vpop.f32.mrf.mxu0 }
 0x5a2   : > { %v3712_v2 = vadd.f32 %v2754_v21, %v1745_v14  ;;  %1808 = vadd.xlane.f32.xlu1 %v1807_v44  ;;  %v1804_v47 = vadd.f32 %v3703_v45, %v3701_v13  ;;  %v1759_v44 = vld [vmem:[%s3669_s18 + $0xc8] sm:$0xff] }
 0x5a3   : > { %v1627_v41 = vpop.f32.mrf.mxu0 }
 0x5a4   : > { %v3721_v22 = vadd.f32 %v1743_v52, %v1627_v41  ;;  %1805 = vadd.xlane.f32.xlu0 %v1804_v47  ;;  %v1813_v48 = vadd.f32 %v3712_v2, %v3710_v20  ;;  %v1764_v52 = vld [vmem:[%s3669_s18 + $0xf0] sm:$0xff]  ;;  %v3791_v41 = vadd.f32 %v1758_v0, %v3541_v55 }
 0x5a5   : > { %v2757_v27 = vpop.f32.mrf.mxu0 }
 0x5a6   : > { %v3730_v59 = vadd.f32 %v2757_v27, %v1749_v26  ;;  %1814 = vadd.xlane.f32.xlu1 %v1813_v48  ;;  %v1810_v49 = vadd.f32 %v3721_v22, %v3719_v29  ;;  %v1763_v27 = vld [vmem:[%s3669_s18 + $0xe8] sm:$0xff] }
 0x5a7   : > { %v1637_v7 = vpop.f32.mrf.mxu0 }
 0x5a8   : > { %v3739_v1 = vadd.f32 %v1747_v25, %v1637_v7  ;;  %1811 = vadd.xlane.f32.xlu0 %v1810_v49  ;;  %v1819_v4 = vadd.f32 %v3730_v59, %v3728_v15  ;;  %v3800_v25 = vadd.f32 %v3543_v58, %v1764_v52  ;;  %v3807_v7 = vadd.f32 %v1762_v51, %v3545_v12 }
 0x5a9   : > { %v2760_v28 = vpop.f32.mrf.mxu0 }
 0x5aa   : > { %v3748_v32 = vadd.f32 %v2760_v28, %v1753_v30  ;;  %1820 = vadd.xlane.f32.xlu1 %v1819_v4  ;;  %v1816_v50 = vadd.f32 %v3739_v1, %v3737_v19 }
 0x5ab   : > { %v1647_v36 = vpop.f32.mrf.mxu0 }
 0x5ac   : > { %v3757_v40 = vadd.f32 %v1751_v11, %v1647_v36  ;;  %1817 = vadd.xlane.f32.xlu0 %v1816_v50  ;;  %v1825_v6 = vadd.f32 %v3748_v32, %v3746_v8 }
 0x5ad   : > { %v2763_v35 = vpop.f32.mrf.mxu0 }
 0x5ae   : > { %v3766_v16 = vadd.f32 %v2763_v35, %v1757_v60  ;;  %1826 = vadd.xlane.f32.xlu1 %v1825_v6  ;;  %v1822_v54 = vadd.f32 %v3757_v40, %v3755_v39 }
 0x5af   : > { %v1657_v43 = vpop.f32.mrf.mxu0 }
 0x5b0   : > { %v3775_v63 = vadd.f32 %v1755_v5, %v1657_v43  ;;  %1823 = vadd.xlane.f32.xlu0 %v1822_v54  ;;  %v1831_v56 = vadd.f32 %v3766_v16, %v3764_v37 }
 0x5b1   : > { %v2766_v14 = vpop.f32.mrf.mxu0 }
 0x5b2   : > { %v3784_v21 = vadd.f32 %v2766_v14, %v1761_v42  ;;  %1832 = vadd.xlane.f32.xlu1 %v1831_v56  ;;  %v1828_v57 = vadd.f32 %v3775_v63, %v3773_v46 }
 0x5b3   : > { %v1667_v47 = vpop.f32.mrf.mxu0 }
 0x5b4   : > { %v3793_v26 = vadd.f32 %v1759_v44, %v1667_v47  ;;  %1829 = vadd.xlane.f32.xlu0 %v1828_v57  ;;  %v1837_v48 = vadd.f32 %v3784_v21, %v3782_v17 }
 0x5b5   : > { %v2769_v34 = vpop.f32.mrf.mxu0 }
 0x5b6   : > { %v3802_v49 = vadd.f32 %v2769_v34, %v1765_v23  ;;  %1838 = vadd.xlane.f32.xlu1 %v1837_v48  ;;  %v1834_v9 = vadd.f32 %v3793_v26, %v3791_v41 }
 0x5b7   : > { %v1677_v55 = vpop.f32.mrf.mxu0 }
 0x5b8   : > { %v3809_v30 = vadd.f32 %v1763_v27, %v1677_v55  ;;  %1835 = vadd.xlane.f32.xlu0 %v1834_v9  ;;  %v1843_v4 = vadd.f32 %v3802_v49, %v3800_v25 }
 0x5ba   : > { %1844 = vadd.xlane.f32.xlu1 %v1843_v4  ;;  %v1840_v58 = vadd.f32 %v3809_v30, %v3807_v7 }
 0x5bc   : > { %1841 = vadd.xlane.f32.xlu0 %v1840_v58 }
 0x627   : > { %v1803_v53 = vpop.xlane.xlu1 %1802 }
 0x628   : > { %v1848_v28 = vmul.f32 0.00390625, %v1803_v53 }
 0x629   : > { %v1800_v11 = vpop.xlane.xlu0 %1799 }
 0x62a   : > { %v3816_v50 = vsub.f32 %v3676_v10, %v1848_v28  ;;  %v3819_v12 = vsub.f32 %v3678_v31, %v1848_v28  ;;  %v1847_v33 = vmul.f32 0.00390625, %v1800_v11 }
 0x62b   : > { %v1809_v36 = vpop.xlane.xlu1 %1808 }
 0x62c   : > { %v3822_v60 = vsub.f32 %v3683_v3, %v1847_v33  ;;  %v3825_v6 = vsub.f32 %v3685_v38, %v1847_v33  ;;  %v1850_v24 = vmul.f32 0.00390625, %v1809_v36  ;;  %v1897_v35 = vmul.f32 %v3816_v50, %v3816_v50 }
 0x62d   : > { %v1806_v5 = vpop.xlane.xlu0 %1805  ;;  %v1898_v10 = vmul.f32 %v3819_v12, %v3819_v12 }
 0x62e   : > { %v3832_v54 = vsub.f32 %v3692_v62, %v1850_v24  ;;  %v3835_v31 = vsub.f32 %v3694_v18, %v1850_v24  ;;  %v1849_v61 = vmul.f32 0.00390625, %v1806_v5  ;;  %v1895_v3 = vmul.f32 %v3822_v60, %v3822_v60 }
 0x62f   : > { %v1815_v38 = vpop.xlane.xlu1 %1814  ;;  %v1930_v43 = vadd.f32 %v1898_v10, %v1897_v35  ;;  %v1896_v42 = vmul.f32 %v3825_v6, %v3825_v6 }
 0x630   : > { %v3842_v56 = vsub.f32 %v3701_v13, %v1849_v61  ;;  %v3845_v0 = vsub.f32 %v3703_v45, %v1849_v61  ;;  %v1852_v62 = vmul.f32 0.00390625, %v1815_v38  ;;  %v1901_v18 = vmul.f32 %v3832_v54, %v3832_v54 }
 0x631   : > { %1931 = vadd.xlane.f32.xlu1 %v1930_v43  ;;  %v1812_v14 = vpop.xlane.xlu0 %1811  ;;  %v1927_v44 = vadd.f32 %v1896_v42, %v1895_v3  ;;  %v1902_v57 = vmul.f32 %v3835_v31, %v3835_v31 }
 0x632   : > { %v3852_v52 = vsub.f32 %v3710_v20, %v1852_v62  ;;  %v3855_v47 = vsub.f32 %v3712_v2, %v1852_v62  ;;  %v1851_v13 = vmul.f32 0.00390625, %v1812_v14  ;;  %v1899_v45 = vmul.f32 %v3842_v56, %v3842_v56 }
 0x633   : > { %1928 = vadd.xlane.f32.xlu0 %v1927_v44  ;;  %v1821_v23 = vpop.xlane.xlu1 %1820  ;;  %v1936_v48 = vadd.f32 %v1902_v57, %v1901_v18  ;;  %v1900_v51 = vmul.f32 %v3845_v0, %v3845_v0 }
 0x634   : > { %v3862_v34 = vsub.f32 %v3719_v29, %v1851_v13  ;;  %v3865_v27 = vsub.f32 %v3721_v22, %v1851_v13  ;;  %v1854_v20 = vmul.f32 0.00390625, %v1821_v23  ;;  %v1905_v2 = vmul.f32 %v3852_v52, %v3852_v52 }
 0x635   : > { %1937 = vadd.xlane.f32.xlu1 %v1936_v48  ;;  %v1818_v9 = vpop.xlane.xlu0 %1817  ;;  %v1933_v55 = vadd.f32 %v1900_v51, %v1899_v45  ;;  %v1906_v4 = vmul.f32 %v3855_v47, %v3855_v47 }
 0x636   : > { %v3872_v58 = vsub.f32 %v3728_v15, %v1854_v20  ;;  %v3875_v53 = vsub.f32 %v3730_v59, %v1854_v20  ;;  %v1853_v29 = vmul.f32 0.00390625, %v1818_v9  ;;  %v1903_v22 = vmul.f32 %v3862_v34, %v3862_v34 }
 0x637   : > { %1934 = vadd.xlane.f32.xlu0 %v1933_v55  ;;  %v1827_v28 = vpop.xlane.xlu1 %1826  ;;  %v1942_v11 = vadd.f32 %v1906_v4, %v1905_v2  ;;  %v1904_v33 = vmul.f32 %v3865_v27, %v3865_v27 }
 0x638   : > { %v3882_v36 = vsub.f32 %v3737_v19, %v1853_v29  ;;  %v3885_v24 = vsub.f32 %v3739_v1, %v1853_v29  ;;  %v1856_v15 = vmul.f32 0.00390625, %v1827_v28  ;;  %v1909_v59 = vmul.f32 %v3872_v58, %v3872_v58 }
 0x639   : > { %1943 = vadd.xlane.f32.xlu1 %v1942_v11  ;;  %v1824_v35 = vpop.xlane.xlu0 %1823  ;;  %v1939_v5 = vadd.f32 %v1904_v33, %v1903_v22  ;;  %v1910_v10 = vmul.f32 %v3875_v53, %v3875_v53 }
 0x63a   : > { %v3892_v61 = vsub.f32 %v3746_v8, %v1856_v15  ;;  %v3895_v3 = vsub.f32 %v3748_v32, %v1856_v15  ;;  %v1855_v19 = vmul.f32 0.00390625, %v1824_v35  ;;  %v1907_v1 = vmul.f32 %v3882_v36, %v3882_v36 }
 0x63b   : > { %1940 = vadd.xlane.f32.xlu0 %v1939_v5  ;;  %v1833_v38 = vpop.xlane.xlu1 %1832  ;;  %v1948_v43 = vadd.f32 %v1910_v10, %v1909_v59  ;;  %v1908_v42 = vmul.f32 %v3885_v24, %v3885_v24 }
 0x63c   : > { %v3902_v62 = vsub.f32 %v3755_v39, %v1855_v19  ;;  %v3905_v18 = vsub.f32 %v3757_v40, %v1855_v19  ;;  %v1858_v8 = vmul.f32 0.00390625, %v1833_v38  ;;  %v1913_v32 = vmul.f32 %v3892_v61, %v3892_v61 }
 0x63d   : > { %1949 = vadd.xlane.f32.xlu1 %v1948_v43  ;;  %v1830_v14 = vpop.xlane.xlu0 %1829  ;;  %v1945_v44 = vadd.f32 %v1908_v42, %v1907_v1  ;;  %v1914_v57 = vmul.f32 %v3895_v3, %v3895_v3 }
 0x63e   : > { %v3912_v13 = vsub.f32 %v3764_v37, %v1858_v8  ;;  %v3915_v45 = vsub.f32 %v3766_v16, %v1858_v8  ;;  %v1857_v39 = vmul.f32 0.00390625, %v1830_v14  ;;  %v1911_v40 = vmul.f32 %v3902_v62, %v3902_v62 }
 0x63f   : > { %1946 = vadd.xlane.f32.xlu0 %v1945_v44  ;;  %v1839_v23 = vpop.xlane.xlu1 %1838  ;;  %v1954_v48 = vadd.f32 %v1914_v57, %v1913_v32  ;;  %v1912_v51 = vmul.f32 %v3905_v18, %v3905_v18 }
 0x640   : > { %v3922_v20 = vsub.f32 %v3773_v46, %v1857_v39  ;;  %v3925_v2 = vsub.f32 %v3775_v63, %v1857_v39  ;;  %v1860_v37 = vmul.f32 0.00390625, %v1839_v23  ;;  %v1917_v16 = vmul.f32 %v3912_v13, %v3912_v13 }
 0x641   : > { %1955 = vadd.xlane.f32.xlu1 %v1954_v48  ;;  %v1836_v9 = vpop.xlane.xlu0 %1835  ;;  %v1951_v55 = vadd.f32 %v1912_v51, %v1911_v40  ;;  %v1918_v4 = vmul.f32 %v3915_v45, %v3915_v45  ;;  %v2057_v51 = vlaneseq }
 0x642   : > { %v3932_v29 = vsub.f32 %v3782_v17, %v1860_v37  ;;  %v3935_v22 = vsub.f32 %v3784_v21, %v1860_v37  ;;  %v1859_v46 = vmul.f32 0.00390625, %v1836_v9  ;;  %v1915_v63 = vmul.f32 %v3922_v20, %v3922_v20 }
 0x643   : > { %1952 = vadd.xlane.f32.xlu0 %v1951_v55  ;;  %v1845_v28 = vpop.xlane.xlu1 %1844  ;;  %v1960_v11 = vadd.f32 %v1918_v4, %v1917_v16  ;;  %v1916_v33 = vmul.f32 %v3925_v2, %v3925_v2 }
 0x644   : > { %v3942_v15 = vsub.f32 %v3791_v41, %v1859_v46  ;;  %v3945_v59 = vsub.f32 %v3793_v26, %v1859_v46  ;;  %v1862_v17 = vmul.f32 0.00390625, %v1845_v28  ;;  %v1921_v21 = vmul.f32 %v3932_v29, %v3932_v29 }
 0x645   : > { %1961 = vadd.xlane.f32.xlu1 %v1960_v11  ;;  %v1842_v35 = vpop.xlane.xlu0 %1841  ;;  %v1957_v5 = vadd.f32 %v1916_v33, %v1915_v63  ;;  %v1922_v10 = vmul.f32 %v3935_v22, %v3935_v22  ;;  %v2058_v63 = vshrl.u32 %v2057_v51, 7 }
 0x646   : > { %v3952_v19 = vsub.f32 %v3800_v25, %v1862_v17  ;;  %v3955_v1 = vsub.f32 %v3802_v49, %v1862_v17  ;;  %v1861_v41 = vmul.f32 0.00390625, %v1842_v35  ;;  %v1919_v26 = vmul.f32 %v3942_v15, %v3942_v15 }
 0x647   : > { %1958 = vadd.xlane.f32.xlu0 %v1957_v5  ;;  %v1966_v38 = vadd.f32 %v1922_v10, %v1921_v21  ;;  %v1920_v43 = vmul.f32 %v3945_v59, %v3945_v59  ;;  %v2059_v5 = vsub.s32 0, %v2058_v63 }
 0x648   : > { %v3962_v42 = vsub.f32 %v3807_v7, %v1861_v41  ;;  %v3965_v8 = vsub.f32 %v3809_v30, %v1861_v41  ;;  %v1925_v25 = vmul.f32 %v3952_v19, %v3952_v19  ;;  %v1926_v49 = vmul.f32 %v3955_v1, %v3955_v1  ;;  %v2055_v41 = vld [vmem:[%s4143_s4] sm:$0x3] }
 0x649   : > { %1967 = vadd.xlane.f32.xlu1 %v1966_v38  ;;  %v1963_v32 = vadd.f32 %v1920_v43, %v1919_v26  ;;  %v2063_v26 = vsub.s32 1, %v2058_v63 }
 0x64a   : > { %v1972_v14 = vadd.f32 %v1926_v49, %v1925_v25  ;;  %v1923_v44 = vmul.f32 %v3962_v42, %v3962_v42  ;;  %v1924_v57 = vmul.f32 %v3965_v8, %v3965_v8  ;;  %v2099_v49 = vld [vmem:[%s4144_s5] sm:$0x3] }
 0x64b   : > { %1964 = vadd.xlane.f32.xlu0 %v1963_v32 }
 0x64c   : > { %v1969_v7 = vadd.f32 %v1924_v57, %v1923_v44  ;;  %v3981_v44 = vrot.slane %v2055_v41, %v2059_v5 }
 0x64d   : > { %1973 = vadd.xlane.f32.xlu1 %v1972_v14 }
 0x64f   : > { %1970 = vadd.xlane.f32.xlu0 %v1969_v7  ;;  %v3983_v7 = vrot.slane %v2055_v41, %v2063_v26 }
 0x6ba   : > { %v1932_v30 = vpop.xlane.xlu1 %1931 }
 0x6bb   : > { %v1976_v39 = vmul.f32 0.00390625, %v1932_v30 }
 0x6bc   : > { %v1929_v40 = vpop.xlane.xlu0 %1928 }
 0x6bd   : > { %v1992_v23 = vadd.f32 1e-12, %v1976_v39  ;;  %v1975_v48 = vmul.f32 0.00390625, %v1929_v40 }
 0x6be   : > { %v1938_v37 = vpop.xlane.xlu1 %1937 }
 0x6bf   : > { %2939 = vrsqrt.f32 %v1992_v23  ;;  %v1991_v16 = vadd.f32 1e-12, %v1975_v48  ;;  %v1978_v9 = vmul.f32 0.00390625, %v1938_v37  ;;  %v3985_v23 = vrot.slane %v2099_v49, %v2059_v5 }
 0x6c0   : > { %v1935_v55 = vpop.xlane.xlu0 %1934  ;;  %v3987_v48 = vrot.slane %v2099_v49, %v2063_v26 }
 0x6c1   : > { %2941 = vrsqrt.f32 %v1991_v16  ;;  %v1994_v4 = vadd.f32 1e-12, %v1978_v9  ;;  %v1977_v46 = vmul.f32 0.00390625, %v1935_v55 }
 0x6c2   : > { %v1944_v28 = vpop.xlane.xlu1 %1943 }
 0x6c3   : > { %2943 = vrsqrt.f32 %v1994_v4  ;;  %v1993_v11 = vadd.f32 1e-12, %v1977_v46  ;;  %v1980_v33 = vmul.f32 0.00390625, %v1944_v28 }
 0x6c4   : > { %v1941_v17 = vpop.xlane.xlu0 %1940 }
 0x6c5   : > { %2945 = vrsqrt.f32 %v1993_v11  ;;  %v1996_v21 = vadd.f32 1e-12, %v1980_v33  ;;  %v1979_v35 = vmul.f32 0.00390625, %v1941_v17 }
 0x6c6   : > { %v1950_v10 = vpop.xlane.xlu1 %1949 }
 0x6c7   : > { %2947 = vrsqrt.f32 %v1996_v21  ;;  %v1995_v38 = vadd.f32 1e-12, %v1979_v35  ;;  %v1982_v43 = vmul.f32 0.00390625, %v1950_v10 }
 0x6c8   : > { %v1947_v25 = vpop.xlane.xlu0 %1946 }
 0x6c9   : > { %2949 = vrsqrt.f32 %v1995_v38  ;;  %v1998_v32 = vadd.f32 1e-12, %v1982_v43  ;;  %v1981_v14 = vmul.f32 0.00390625, %v1947_v25 }
 0x6ca   : > { %v1956_v57 = vpop.xlane.xlu1 %1955 }
 0x6cb   : > { %2951 = vrsqrt.f32 %v1998_v32  ;;  %v1997_v30 = vadd.f32 1e-12, %v1981_v14  ;;  %v1984_v39 = vmul.f32 0.00390625, %v1956_v57 }
 0x6cc   : > { %v2940_v40 = vpop.eup %2939  ;;  %v1953_v51 = vpop.xlane.xlu0 %1952 }
 0x6cd   : > { %v2025_v37 = vmul.f32 %v2940_v40, %v3816_v50  ;;  %v2026_v16 = vmul.f32 %v2940_v40, %v3819_v12  ;;  %2953 = vrsqrt.f32 %v1997_v30  ;;  %v2000_v9 = vadd.f32 1e-12, %v1984_v39 }
 0x6ce   : > { %v2942_v55 = vpop.eup %2941  ;;  %v1983_v4 = vmul.f32 0.00390625, %v1953_v51  ;;  %v1962_v46 = vpop.xlane.xlu1 %1961 }
 0x6cf   : > { %v2069_v63 = vmul.f32 %v3981_v44, %v2025_v37  ;;  %v2070_v28 = vmul.f32 %v3983_v7, %v2026_v16  ;;  %v2023_v11 = vmul.f32 %v2942_v55, %v3822_v60  ;;  %v2024_v33 = vmul.f32 %v2942_v55, %v3825_v6 }
 0x6d0   : > { %v2944_v17 = vpop.eup %2943  ;;  %2955 = vrsqrt.f32 %v2000_v9  ;;  %v1999_v50 = vadd.f32 1e-12, %v1983_v4  ;;  %v1986_v12 = vmul.f32 0.00390625, %v1962_v46  ;;  %v1959_v21 = vpop.xlane.xlu0 %1958 }
 0x6d1   : > { %v2113_v35 = vadd.f32 %v3985_v23, %v2069_v63  ;;  %v2114_v5 = vadd.f32 %v3987_v48, %v2070_v28  ;;  %v2067_v60 = vmul.f32 %v3981_v44, %v2023_v11  ;;  %v2068_v6 = vmul.f32 %v3983_v7, %v2024_v33 }
 0x6d2   : > { %v2946_v10 = vpop.eup %2945  ;;  %v2029_v41 = vmul.f32 %v2944_v17, %v3832_v54  ;;  %v2030_v26 = vmul.f32 %v2944_v17, %v3835_v31  ;;  %2957 = vrsqrt.f32 %v1999_v50  ;;  %v2002_v38 = vadd.f32 1e-12, %v1986_v12  ;;  %v1968_v14 = vpop.xlane.xlu1 %1967 }
 0x6d3   : > { %2145 = vst [vmem:[%s4000_s9 + $0x10] sm:$0xff] %v2113_v35  ;;  %2146 = vst [vmem:[%s4000_s9 + $0x18] sm:$0xff] %v2114_v5  ;;  %v2111_v43 = vadd.f32 %v3985_v23, %v2067_v60  ;;  %v2112_v25 = vadd.f32 %v3987_v48, %v2068_v6  ;;  %v2027_v49 = vmul.f32 %v2946_v10, %v3842_v56  ;;  %v1985_v31 = vmul.f32 0.00390625, %v1959_v21 }
 0x6d4   : > { %v2028_v32 = vmul.f32 %v2946_v10, %v3845_v0  ;;  %v2948_v57 = vpop.eup %2947  ;;  %v2073_v54 = vmul.f32 %v3981_v44, %v2029_v41  ;;  %v2074_v30 = vmul.f32 %v3983_v7, %v2030_v26  ;;  %2959 = vrsqrt.f32 %v2002_v38  ;;  %v1965_v4 = vpop.xlane.xlu0 %1964 }
 0x6d5   : > { %2143 = vst [vmem:[%s4000_s9] sm:$0xff] %v2111_v43  ;;  %2144 = vst [vmem:[%s4000_s9 + $0x8] sm:$0xff] %v2112_v25  ;;  %v2071_v39 = vmul.f32 %v3981_v44, %v2027_v49  ;;  %v2033_v56 = vmul.f32 %v2948_v57, %v3852_v52  ;;  %v2034_v0 = vmul.f32 %v2948_v57, %v3855_v47  ;;  %v2001_v9 = vadd.f32 1e-12, %v1985_v31 }
 0x6d6   : > { %v2072_v40 = vmul.f32 %v3983_v7, %v2028_v32  ;;  %v2950_v51 = vpop.eup %2949  ;;  %v2117_v37 = vadd.f32 %v3985_v23, %v2073_v54  ;;  %v2118_v16 = vadd.f32 %v3987_v48, %v2074_v30  ;;  %v1988_v55 = vmul.f32 0.00390625, %v1968_v14  ;;  %v1974_v5 = vpop.xlane.xlu1 %1973 }
 0x6d7   : > { %v2115_v46 = vadd.f32 %v3985_v23, %v2071_v39  ;;  %v2077_v28 = vmul.f32 %v3981_v44, %v2033_v56  ;;  %v2078_v52 = vmul.f32 %v3983_v7, %v2034_v0  ;;  %v2031_v47 = vmul.f32 %v2950_v51, %v3862_v34 }
 0x6d8   : > { %v2116_v63 = vadd.f32 %v3987_v48, %v2072_v40  ;;  %v2952_v11 = vpop.eup %2951  ;;  %2149 = vst [vmem:[%s4000_s9 + $0x30] sm:$0xff] %v2117_v37  ;;  %2150 = vst [vmem:[%s4000_s9 + $0x38] sm:$0xff] %v2118_v16  ;;  %v2032_v33 = vmul.f32 %v2950_v51, %v3865_v27  ;;  %2961 = vrsqrt.f32 %v2001_v9  ;;  %v2004_v17 = vadd.f32 1e-12, %v1988_v55  ;;  %v1971_v49 = vpop.xlane.xlu0 %1970 }
 0x6d9   : > { %2147 = vst [vmem:[%s4000_s9 + $0x20] sm:$0xff] %v2115_v46  ;;  %v2121_v50 = vadd.f32 %v3985_v23, %v2077_v28  ;;  %v2122_v12 = vadd.f32 %v3987_v48, %v2078_v52  ;;  %v2037_v21 = vmul.f32 %v2952_v11, %v3872_v58  ;;  %v2038_v35 = vmul.f32 %v2952_v11, %v3875_v53 }
 0x6da   : > { %2148 = vst [vmem:[%s4000_s9 + $0x28] sm:$0xff] %v2116_v63  ;;  %v2954_v60 = vpop.eup %2953  ;;  %v2075_v34 = vmul.f32 %v3981_v44, %v2031_v47  ;;  %v2076_v6 = vmul.f32 %v3983_v7, %v2032_v33  ;;  %2963 = vrsqrt.f32 %v2004_v17  ;;  %v1987_v27 = vmul.f32 0.00390625, %v1965_v4 }
 0x6db   : > { %2153 = vst [vmem:[%s4000_s9 + $0x50] sm:$0xff] %v2121_v50  ;;  %2154 = vst [vmem:[%s4000_s9 + $0x58] sm:$0xff] %v2122_v12  ;;  %v2081_v10 = vmul.f32 %v3981_v44, %v2037_v21  ;;  %v2082_v41 = vmul.f32 %v3983_v7, %v2038_v35  ;;  %v2035_v58 = vmul.f32 %v2954_v60, %v3882_v36  ;;  %v1990_v25 = vmul.f32 0.00390625, %v1974_v5 }
 0x6dc   : > { %v2036_v53 = vmul.f32 %v2954_v60, %v3885_v24  ;;  %v2119_v26 = vadd.f32 %v3985_v23, %v2075_v34  ;;  %v2120_v38 = vadd.f32 %v3987_v48, %v2076_v6  ;;  %v2003_v43 = vadd.f32 1e-12, %v1987_v27 }
 0x6dd   : > { %v2956_v32 = vpop.eup %2955  ;;  %v2125_v14 = vadd.f32 %v3985_v23, %v2081_v10  ;;  %v2126_v57 = vadd.f32 %v3987_v48, %v2082_v41  ;;  %v2079_v54 = vmul.f32 %v3981_v44, %v2035_v58  ;;  %v2006_v31 = vadd.f32 1e-12, %v1990_v25 }
 0x6de   : > { %v2080_v36 = vmul.f32 %v3983_v7, %v2036_v53  ;;  %2151 = vst [vmem:[%s4000_s9 + $0x40] sm:$0xff] %v2119_v26  ;;  %2152 = vst [vmem:[%s4000_s9 + $0x48] sm:$0xff] %v2120_v38  ;;  %v2041_v24 = vmul.f32 %v2956_v32, %v3892_v61  ;;  %v2042_v30 = vmul.f32 %v2956_v32, %v3895_v3  ;;  %2965 = vrsqrt.f32 %v2003_v43 }
 0x6df   : > { %v2958_v39 = vpop.eup %2957  ;;  %2157 = vst [vmem:[%s4000_s9 + $0x70] sm:$0xff] %v2125_v14  ;;  %2158 = vst [vmem:[%s4000_s9 + $0x78] sm:$0xff] %v2126_v57  ;;  %v2123_v40 = vadd.f32 %v3985_v23, %v2079_v54  ;;  %v1989_v0 = vmul.f32 0.00390625, %v1971_v49  ;;  %2967 = vrsqrt.f32 %v2006_v31 }
 0x6e0   : > { %v2124_v56 = vadd.f32 %v3987_v48, %v2080_v36  ;;  %v2085_v51 = vmul.f32 %v3981_v44, %v2041_v24  ;;  %v2086_v37 = vmul.f32 %v3983_v7, %v2042_v30  ;;  %v2039_v61 = vmul.f32 %v2958_v39, %v3902_v62 }
 0x6e1   : > { %v2040_v3 = vmul.f32 %v2958_v39, %v3905_v18  ;;  %v2960_v16 = vpop.eup %2959  ;;  %2155 = vst [vmem:[%s4000_s9 + $0x60] sm:$0xff] %v2123_v40  ;;  %v2005_v9 = vadd.f32 1e-12, %v1989_v0 }
 0x6e2   : > { %2156 = vst [vmem:[%s4000_s9 + $0x68] sm:$0xff] %v2124_v56  ;;  %v2129_v55 = vadd.f32 %v3985_v23, %v2085_v51  ;;  %v2130_v4 = vadd.f32 %v3987_v48, %v2086_v37  ;;  %v2083_v46 = vmul.f32 %v3981_v44, %v2039_v61  ;;  %v2045_v28 = vmul.f32 %v2960_v16, %v3912_v13 }
 0x6e3   : > { %v2084_v63 = vmul.f32 %v3983_v7, %v2040_v3  ;;  %v2046_v62 = vmul.f32 %v2960_v16, %v3915_v45  ;;  %2969 = vrsqrt.f32 %v2005_v9 }
 0x6e4   : > { %2161 = vst [vmem:[%s4000_s9 + $0x90] sm:$0xff] %v2129_v55  ;;  %2162 = vst [vmem:[%s4000_s9 + $0x98] sm:$0xff] %v2130_v4  ;;  %v2127_v18 = vadd.f32 %v3985_v23, %v2083_v46  ;;  %v2089_v47 = vmul.f32 %v3981_v44, %v2045_v28 }
 0x6e5   : > { %v2128_v52 = vadd.f32 %v3987_v48, %v2084_v63  ;;  %v2962_v11 = vpop.eup %2961  ;;  %v2090_v33 = vmul.f32 %v3983_v7, %v2046_v62 }
 0x6e6   : > { %2159 = vst [vmem:[%s4000_s9 + $0x80] sm:$0xff] %v2127_v18  ;;  %v2043_v13 = vmul.f32 %v2962_v11, %v3922_v20  ;;  %v2044_v45 = vmul.f32 %v2962_v11, %v3925_v2  ;;  %v2133_v50 = vadd.f32 %v3985_v23, %v2089_v47 }
 0x6e7   : > { %2160 = vst [vmem:[%s4000_s9 + $0x88] sm:$0xff] %v2128_v52  ;;  %v2964_v17 = vpop.eup %2963  ;;  %v2134_v12 = vadd.f32 %v3987_v48, %v2090_v33 }
 0x6e8   : > { %v2087_v21 = vmul.f32 %v3981_v44, %v2043_v13  ;;  %v2088_v35 = vmul.f32 %v3983_v7, %v2044_v45  ;;  %v2049_v5 = vmul.f32 %v2964_v17, %v3932_v29  ;;  %v2050_v60 = vmul.f32 %v2964_v17, %v3935_v22  ;;  %2165 = vst [vmem:[%s4000_s9 + $0xb0] sm:$0xff] %v2133_v50 }
 0x6e9   : > { %2166 = vst [vmem:[%s4000_s9 + $0xb8] sm:$0xff] %v2134_v12 }
 0x6ea   : > { %v2131_v20 = vadd.f32 %v3985_v23, %v2087_v21  ;;  %v2132_v2 = vadd.f32 %v3987_v48, %v2088_v35  ;;  %v2093_v34 = vmul.f32 %v3981_v44, %v2049_v5  ;;  %v2094_v6 = vmul.f32 %v3983_v7, %v2050_v60 }
 0x6eb   : > { %v2966_v27 = vpop.eup %2965 }
 0x6ec   : > { %2163 = vst [vmem:[%s4000_s9 + $0xa0] sm:$0xff] %v2131_v20  ;;  %2164 = vst [vmem:[%s4000_s9 + $0xa8] sm:$0xff] %v2132_v2  ;;  %v2137_v10 = vadd.f32 %v3985_v23, %v2093_v34  ;;  %v2138_v29 = vadd.f32 %v3987_v48, %v2094_v6  ;;  %v2047_v22 = vmul.f32 %v2966_v27, %v3942_v15  ;;  %v2968_v58 = vpop.eup %2967 }
 0x6ed   : > { %v2048_v41 = vmul.f32 %v2966_v27, %v3945_v59  ;;  %v2053_v38 = vmul.f32 %v2968_v58, %v3952_v19  ;;  %v2054_v43 = vmul.f32 %v2968_v58, %v3955_v1 }
 0x6ee   : > { %2169 = vst [vmem:[%s4000_s9 + $0xd0] sm:$0xff] %v2137_v10  ;;  %2170 = vst [vmem:[%s4000_s9 + $0xd8] sm:$0xff] %v2138_v29  ;;  %v2091_v53 = vmul.f32 %v3981_v44, %v2047_v22 }
 0x6ef   : > { %v2092_v26 = vmul.f32 %v3983_v7, %v2048_v41  ;;  %v2097_v49 = vmul.f32 %v3981_v44, %v2053_v38  ;;  %v2098_v32 = vmul.f32 %v3983_v7, %v2054_v43 }
 0x6f0   : > { %v2970_v25 = vpop.eup %2969  ;;  %v2135_v15 = vadd.f32 %v3985_v23, %v2091_v53 }
 0x6f1   : > { %v2136_v59 = vadd.f32 %v3987_v48, %v2092_v26  ;;  %v2051_v14 = vmul.f32 %v2970_v25, %v3962_v42  ;;  %v2052_v57 = vmul.f32 %v2970_v25, %v3965_v8  ;;  %v2141_v19 = vadd.f32 %v3985_v23, %v2097_v49 }
 0x6f2   : > { %2167 = vst [vmem:[%s4000_s9 + $0xc0] sm:$0xff] %v2135_v15  ;;  %v2142_v1 = vadd.f32 %v3987_v48, %v2098_v32 }
 0x6f3   : > { %2168 = vst [vmem:[%s4000_s9 + $0xc8] sm:$0xff] %v2136_v59  ;;  %v2095_v54 = vmul.f32 %v3981_v44, %v2051_v14  ;;  %v2096_v36 = vmul.f32 %v3983_v7, %v2052_v57  ;;  %2173 = vst [vmem:[%s4000_s9 + $0xf0] sm:$0xff] %v2141_v19 }
 0x6f4   : > { %2174 = vst [vmem:[%s4000_s9 + $0xf8] sm:$0xff] %v2142_v1 }
 0x6f5   : > { %v2139_v24 = vadd.f32 %v3985_v23, %v2095_v54  ;;  %v2140_v30 = vadd.f32 %v3987_v48, %v2096_v36 }
 0x6f7   : > { %2171 = vst [vmem:[%s4000_s9 + $0xe0] sm:$0xff] %v2139_v24  ;;  %2172 = vst [vmem:[%s4000_s9 + $0xe8] sm:$0xff] %v2140_v30 }
 0x6f8 PF: > { %s16_s25 = sadd.s32 1, %s3009_s25   ;;  %s4147_s21 = smov %s2997_s22 }
 0x6f9   : > { %p13_p10 = scmp.ge.s32.totalorder %s16_s25, 4   ;;  %s4148_s22 = smov %s3085_s30 }
 0x6fa   : > { %s4149_s23 = smov %s3005_s24  ;;  %s4150_s24 = smov %s4152_s26 }
 0x6fb   :  { %15 = sbr.rel (!%p13_p10) target bundleno = 3 (0x3), region = 167 }

// kernel: image_encoder_layer_forward.5
= control target key start
LH: loop header
LB: loop body
LE: loop exit
PB: predicated region body
PF: predicated region fallthrough
CT: control target
= control target key end

     0   :  { %13 = vsyncpa [#allocation5], 0  ;;  %s5091_s27 = smov 0   ;;  %s5093_s28 = smov 0   ;;  %s8815_s0 = inlined_call_operand.vmem [shape: f32[256,256], index: 0, kind: input, shape index: {}, may-alias: {0,5}]   ;;  %s8816_s1 = inlined_call_operand.vmem [shape: f32[256,1024], index: 1, kind: input, shape index: {}]   ;;  %s8817_s2 = inlined_call_operand.vmem [shape: f32[1,1024], index: 2, kind: input, shape index: {}]   ;;  %s8818_s3 = inlined_call_operand.vmem [shape: f32[1024,256], index: 3, kind: input, shape index: {}]   ;;  %s8819_s4 = inlined_call_operand.vmem [shape: f32[1,256], index: 4, kind: input, shape index: {}]   ;;  %s8820_s5 = inlined_call_operand.vmem [shape: f32[256,256], index: 5, kind: input, shape index: {}, may-alias: {0,5}]   ;;  %s8821_s6 = inlined_call_operand.vmem [shape: f32[1,256], index: 6, kind: input, shape index: {}]   ;;  %s8822_s7 = inlined_call_operand.vmem [shape: f32[1,256], index: 7, kind: input, shape index: {}]   ;;  %s8823_s8 = inlined_call_operand.hbm [shape: f32[256,256], index: 8, kind: output, shape index: {}]  }
   0x1   :  { %s5095_s29 = smov 0   ;;  %s5097_s30 = smov 0  }
   0x2   :  { %s5099_s9 = smov 0  }
   0x3 LB: > { %s4582_s10 = sadd.s32 4294967295, %s5040_s9   ;;  %s28_s11 = sadd.s32 1, %s5036_s30  ;;  %s5040_s9 = sphi %s5099_s9, %s19_s9   ;;  %s5036_s30 = sphi %s5097_s30, %s9292_s30   ;;  %s5032_s29 = sphi %s5095_s29, %s9291_s29   ;;  %s5028_s28 = sphi %s5093_s28, %s9290_s28   ;;  %s5024_s27 = sphi %s5091_s27, %s9289_s27  }
   0x4   : > { %p29_p0 = scmp.ge.s32.totalorder %s28_s11, 2  ;;  %p71_p1 = scmp.ne.s32.totalorder %s5028_s28, %s5024_s27 }
   0x5   : > { %p72_p2 = scmp.eq.s32.totalorder %s5040_s9, 0  ;;  %s64_s13 = sadd.s32 1, %s5028_s28 }
   0x6   : > { %s9294_s11 = smov (%p29_p0, %s28_s11), 0  ;;  %p4586_p5 = scmp.ge.s32.totalorder %s5040_s9, 2 }
   0x7   : > { %p73_p3 = por %p72_p2, %p71_p1  ;;  %s61_s12 = ssub.s32 %s5036_s30, %s9294_s11 }
   0x8   : > { %p62_p4 = scmp.eq.s32.totalorder %s61_s12, 0  ;;  %293 = sbr.rel (%p4586_p5) target bundleno = 81 (0x51), region = 36 }
   0xa   : > { %s5127_s14 = scalar_select %p62_p4, %s5028_s28, %s64_s13  }
   0xd   : > { %296 = sbr.rel (!%p73_p3) target bundleno = 81 (0x51), region = 40  ;;  %s298_s15 = sand.u32 (%p73_p3), 1, %s5028_s28  }
   0xe   : > { %s4602_s16 = sshll.u32 (%p73_p3), %s5036_s30, 5  ;;  %s4587_s17 = sshll.u32 (%p73_p3), %s298_s15, 10 }
   0xf   : > { %s5135_s20 = scalar_lea.vmem (%p73_p3), %s8816_s1, %s4602_s16  ;;  %s5140_s21 = scalar_lea.vmem (%p73_p3), [#allocation3], %s4587_s17 }
  0x10   : > { %v316_v0 = vld [vmem:[%s5135_s20] sm:$0xff] (%p73_p3)  ;;  %v318_v1 = vld [vmem:[%s5135_s20 + $0x8] sm:$0xff] (%p73_p3)  ;;  %v320_v2 = vld [vmem:[%s5135_s20 + $0x10] sm:$0xff] (%p73_p3) }
  0x11   : > { %317 = vst [vmem:[%s5140_s21] sm:$0xff] (%p73_p3), %v316_v0  ;;  %319 = vst [vmem:[%s5140_s21 + $0x8] sm:$0xff] (%p73_p3), %v318_v1  ;;  %v322_v3 = vld [vmem:[%s5135_s20 + $0x18] sm:$0xff] (%p73_p3)  ;;  %v324_v4 = vld [vmem:[%s5135_s20 + $0x40] sm:$0xff] (%p73_p3) }
  0x12   : > { %321 = vst [vmem:[%s5140_s21 + $0x10] sm:$0xff] %v320_v2  ;;  %v326_v5 = vld [vmem:[%s5135_s20 + $0x48] sm:$0xff]  ;;  %323 = vst [vmem:[%s5140_s21 + $0x18] sm:$0xff] %v322_v3  ;;  %v328_v6 = vld [vmem:[%s5135_s20 + $0x50] sm:$0xff] }
  0x13   : > { %325 = vst [vmem:[%s5140_s21 + $0x20] sm:$0xff] %v324_v4  ;;  %327 = vst [vmem:[%s5140_s21 + $0x28] sm:$0xff] %v326_v5  ;;  %v330_v7 = vld [vmem:[%s5135_s20 + $0x58] sm:$0xff]  ;;  %v332_v8 = vld [vmem:[%s5135_s20 + $0x80] sm:$0xff] }
  0x14   : > { %329 = vst [vmem:[%s5140_s21 + $0x30] sm:$0xff] %v328_v6  ;;  %331 = vst [vmem:[%s5140_s21 + $0x38] sm:$0xff] %v330_v7  ;;  %v334_v9 = vld [vmem:[%s5135_s20 + $0x88] sm:$0xff]  ;;  %v336_v10 = vld [vmem:[%s5135_s20 + $0x90] sm:$0xff] }
  0x15   : > { %333 = vst [vmem:[%s5140_s21 + $0x40] sm:$0xff] %v332_v8  ;;  %v338_v11 = vld [vmem:[%s5135_s20 + $0x98] sm:$0xff]  ;;  %335 = vst [vmem:[%s5140_s21 + $0x48] sm:$0xff] %v334_v9  ;;  %v340_v12 = vld [vmem:[%s5135_s20 + $0xc0] sm:$0xff] }
  0x16   : > { %337 = vst [vmem:[%s5140_s21 + $0x50] sm:$0xff] %v336_v10  ;;  %339 = vst [vmem:[%s5140_s21 + $0x58] sm:$0xff] %v338_v11  ;;  %v342_v13 = vld [vmem:[%s5135_s20 + $0xc8] sm:$0xff]  ;;  %v344_v14 = vld [vmem:[%s5135_s20 + $0xd0] sm:$0xff] }
  0x17   : > { %341 = vst [vmem:[%s5140_s21 + $0x60] sm:$0xff] %v340_v12  ;;  %343 = vst [vmem:[%s5140_s21 + $0x68] sm:$0xff] %v342_v13  ;;  %v346_v15 = vld [vmem:[%s5135_s20 + $0xd8] sm:$0xff]  ;;  %v348_v16 = vld [vmem:[%s5135_s20 + $0x100] sm:$0xff] }
  0x18   : > { %345 = vst [vmem:[%s5140_s21 + $0x70] sm:$0xff] %v344_v14  ;;  %v350_v17 = vld [vmem:[%s5135_s20 + $0x108] sm:$0xff]  ;;  %347 = vst [vmem:[%s5140_s21 + $0x78] sm:$0xff] %v346_v15  ;;  %v352_v18 = vld [vmem:[%s5135_s20 + $0x110] sm:$0xff] }
  0x19   : > { %349 = vst [vmem:[%s5140_s21 + $0x80] sm:$0xff] %v348_v16  ;;  %351 = vst [vmem:[%s5140_s21 + $0x88] sm:$0xff] %v350_v17  ;;  %v354_v19 = vld [vmem:[%s5135_s20 + $0x118] sm:$0xff]  ;;  %v356_v20 = vld [vmem:[%s5135_s20 + $0x140] sm:$0xff] }
  0x1a   : > { %353 = vst [vmem:[%s5140_s21 + $0x90] sm:$0xff] %v352_v18  ;;  %355 = vst [vmem:[%s5140_s21 + $0x98] sm:$0xff] %v354_v19  ;;  %v358_v21 = vld [vmem:[%s5135_s20 + $0x148] sm:$0xff]  ;;  %v360_v22 = vld [vmem:[%s5135_s20 + $0x150] sm:$0xff] }
  0x1b   : > { %357 = vst [vmem:[%s5140_s21 + $0xa0] sm:$0xff] %v356_v20  ;;  %v362_v23 = vld [vmem:[%s5135_s20 + $0x158] sm:$0xff]  ;;  %359 = vst [vmem:[%s5140_s21 + $0xa8] sm:$0xff] %v358_v21  ;;  %v364_v24 = vld [vmem:[%s5135_s20 + $0x180] sm:$0xff] }
  0x1c   : > { %361 = vst [vmem:[%s5140_s21 + $0xb0] sm:$0xff] %v360_v22  ;;  %363 = vst [vmem:[%s5140_s21 + $0xb8] sm:$0xff] %v362_v23  ;;  %v366_v25 = vld [vmem:[%s5135_s20 + $0x188] sm:$0xff]  ;;  %v368_v26 = vld [vmem:[%s5135_s20 + $0x190] sm:$0xff] }
  0x1d   : > { %365 = vst [vmem:[%s5140_s21 + $0xc0] sm:$0xff] %v364_v24  ;;  %367 = vst [vmem:[%s5140_s21 + $0xc8] sm:$0xff] %v366_v25  ;;  %v370_v27 = vld [vmem:[%s5135_s20 + $0x198] sm:$0xff]  ;;  %v372_v28 = vld [vmem:[%s5135_s20 + $0x1c0] sm:$0xff] }
  0x1e   : > { %369 = vst [vmem:[%s5140_s21 + $0xd0] sm:$0xff] %v368_v26  ;;  %v374_v29 = vld [vmem:[%s5135_s20 + $0x1c8] sm:$0xff]  ;;  %371 = vst [vmem:[%s5140_s21 + $0xd8] sm:$0xff] %v370_v27  ;;  %v376_v30 = vld [vmem:[%s5135_s20 + $0x1d0] sm:$0xff] }
  0x1f   : > { %373 = vst [vmem:[%s5140_s21 + $0xe0] sm:$0xff] %v372_v28  ;;  %375 = vst [vmem:[%s5140_s21 + $0xe8] sm:$0xff] %v374_v29  ;;  %v378_v31 = vld [vmem:[%s5135_s20 + $0x1d8] sm:$0xff]  ;;  %v380_v32 = vld [vmem:[%s5135_s20 + $0x200] sm:$0xff] }
  0x20   : > { %377 = vst [vmem:[%s5140_s21 + $0xf0] sm:$0xff] %v376_v30  ;;  %379 = vst [vmem:[%s5140_s21 + $0xf8] sm:$0xff] %v378_v31  ;;  %v382_v33 = vld [vmem:[%s5135_s20 + $0x208] sm:$0xff]  ;;  %v384_v34 = vld [vmem:[%s5135_s20 + $0x210] sm:$0xff] }
  0x21   : > { %381 = vst [vmem:[%s5140_s21 + $0x100] sm:$0xff] %v380_v32  ;;  %v386_v35 = vld [vmem:[%s5135_s20 + $0x218] sm:$0xff]  ;;  %383 = vst [vmem:[%s5140_s21 + $0x108] sm:$0xff] %v382_v33  ;;  %v388_v36 = vld [vmem:[%s5135_s20 + $0x240] sm:$0xff] }
  0x22   : > { %385 = vst [vmem:[%s5140_s21 + $0x110] sm:$0xff] %v384_v34  ;;  %387 = vst [vmem:[%s5140_s21 + $0x118] sm:$0xff] %v386_v35  ;;  %v390_v37 = vld [vmem:[%s5135_s20 + $0x248] sm:$0xff]  ;;  %v392_v38 = vld [vmem:[%s5135_s20 + $0x250] sm:$0xff] }
  0x23   : > { %389 = vst [vmem:[%s5140_s21 + $0x120] sm:$0xff] %v388_v36  ;;  %391 = vst [vmem:[%s5140_s21 + $0x128] sm:$0xff] %v390_v37  ;;  %v394_v39 = vld [vmem:[%s5135_s20 + $0x258] sm:$0xff]  ;;  %v396_v40 = vld [vmem:[%s5135_s20 + $0x280] sm:$0xff] }
  0x24   : > { %393 = vst [vmem:[%s5140_s21 + $0x130] sm:$0xff] %v392_v38  ;;  %v398_v41 = vld [vmem:[%s5135_s20 + $0x288] sm:$0xff]  ;;  %395 = vst [vmem:[%s5140_s21 + $0x138] sm:$0xff] %v394_v39  ;;  %v400_v42 = vld [vmem:[%s5135_s20 + $0x290] sm:$0xff] }
  0x25   : > { %397 = vst [vmem:[%s5140_s21 + $0x140] sm:$0xff] %v396_v40  ;;  %399 = vst [vmem:[%s5140_s21 + $0x148] sm:$0xff] %v398_v41  ;;  %v402_v43 = vld [vmem:[%s5135_s20 + $0x298] sm:$0xff]  ;;  %v404_v44 = vld [vmem:[%s5135_s20 + $0x2c0] sm:$0xff] }
  0x26   : > { %401 = vst [vmem:[%s5140_s21 + $0x150] sm:$0xff] %v400_v42  ;;  %403 = vst [vmem:[%s5140_s21 + $0x158] sm:$0xff] %v402_v43  ;;  %v406_v45 = vld [vmem:[%s5135_s20 + $0x2c8] sm:$0xff]  ;;  %v408_v46 = vld [vmem:[%s5135_s20 + $0x2d0] sm:$0xff] }
  0x27   : > { %405 = vst [vmem:[%s5140_s21 + $0x160] sm:$0xff] %v404_v44  ;;  %v410_v47 = vld [vmem:[%s5135_s20 + $0x2d8] sm:$0xff]  ;;  %407 = vst [vmem:[%s5140_s21 + $0x168] sm:$0xff] %v406_v45  ;;  %v412_v48 = vld [vmem:[%s5135_s20 + $0x300] sm:$0xff] }
  0x28   : > { %409 = vst [vmem:[%s5140_s21 + $0x170] sm:$0xff] %v408_v46  ;;  %411 = vst [vmem:[%s5140_s21 + $0x178] sm:$0xff] %v410_v47  ;;  %v414_v49 = vld [vmem:[%s5135_s20 + $0x308] sm:$0xff]  ;;  %v416_v50 = vld [vmem:[%s5135_s20 + $0x310] sm:$0xff] }
  0x29   : > { %413 = vst [vmem:[%s5140_s21 + $0x180] sm:$0xff] %v412_v48  ;;  %415 = vst [vmem:[%s5140_s21 + $0x188] sm:$0xff] %v414_v49  ;;  %v418_v51 = vld [vmem:[%s5135_s20 + $0x318] sm:$0xff]  ;;  %v420_v52 = vld [vmem:[%s5135_s20 + $0x340] sm:$0xff] }
  0x2a   : > { %417 = vst [vmem:[%s5140_s21 + $0x190] sm:$0xff] %v416_v50  ;;  %v422_v53 = vld [vmem:[%s5135_s20 + $0x348] sm:$0xff]  ;;  %419 = vst [vmem:[%s5140_s21 + $0x198] sm:$0xff] %v418_v51  ;;  %v424_v54 = vld [vmem:[%s5135_s20 + $0x350] sm:$0xff] }
  0x2b   : > { %421 = vst [vmem:[%s5140_s21 + $0x1a0] sm:$0xff] %v420_v52  ;;  %423 = vst [vmem:[%s5140_s21 + $0x1a8] sm:$0xff] %v422_v53  ;;  %v426_v55 = vld [vmem:[%s5135_s20 + $0x358] sm:$0xff]  ;;  %v428_v56 = vld [vmem:[%s5135_s20 + $0x380] sm:$0xff] }
  0x2c   : > { %425 = vst [vmem:[%s5140_s21 + $0x1b0] sm:$0xff] %v424_v54  ;;  %427 = vst [vmem:[%s5140_s21 + $0x1b8] sm:$0xff] %v426_v55  ;;  %v430_v57 = vld [vmem:[%s5135_s20 + $0x388] sm:$0xff]  ;;  %v432_v58 = vld [vmem:[%s5135_s20 + $0x390] sm:$0xff] }
  0x2d   : > { %429 = vst [vmem:[%s5140_s21 + $0x1c0] sm:$0xff] %v428_v56  ;;  %v434_v59 = vld [vmem:[%s5135_s20 + $0x398] sm:$0xff]  ;;  %431 = vst [vmem:[%s5140_s21 + $0x1c8] sm:$0xff] %v430_v57  ;;  %v436_v60 = vld [vmem:[%s5135_s20 + $0x3c0] sm:$0xff] }
  0x2e   : > { %433 = vst [vmem:[%s5140_s21 + $0x1d0] sm:$0xff] %v432_v58  ;;  %435 = vst [vmem:[%s5140_s21 + $0x1d8] sm:$0xff] %v434_v59  ;;  %v438_v61 = vld [vmem:[%s5135_s20 + $0x3c8] sm:$0xff]  ;;  %v440_v62 = vld [vmem:[%s5135_s20 + $0x3d0] sm:$0xff] }
  0x2f   : > { %437 = vst [vmem:[%s5140_s21 + $0x1e0] sm:$0xff] %v436_v60  ;;  %439 = vst [vmem:[%s5140_s21 + $0x1e8] sm:$0xff] %v438_v61  ;;  %v442_v63 = vld [vmem:[%s5135_s20 + $0x3d8] sm:$0xff]  ;;  %v444_v0 = vld [vmem:[%s5135_s20 + $0x400] sm:$0xff] }
  0x30   : > { %441 = vst [vmem:[%s5140_s21 + $0x1f0] sm:$0xff] %v440_v62  ;;  %v446_v1 = vld [vmem:[%s5135_s20 + $0x408] sm:$0xff]  ;;  %443 = vst [vmem:[%s5140_s21 + $0x1f8] sm:$0xff] %v442_v63  ;;  %v448_v2 = vld [vmem:[%s5135_s20 + $0x410] sm:$0xff] }
  0x31   : > { %445 = vst [vmem:[%s5140_s21 + $0x200] sm:$0xff] %v444_v0  ;;  %447 = vst [vmem:[%s5140_s21 + $0x208] sm:$0xff] %v446_v1  ;;  %v450_v3 = vld [vmem:[%s5135_s20 + $0x418] sm:$0xff]  ;;  %v452_v4 = vld [vmem:[%s5135_s20 + $0x440] sm:$0xff] }
  0x32   : > { %449 = vst [vmem:[%s5140_s21 + $0x210] sm:$0xff] %v448_v2  ;;  %451 = vst [vmem:[%s5140_s21 + $0x218] sm:$0xff] %v450_v3  ;;  %v454_v5 = vld [vmem:[%s5135_s20 + $0x448] sm:$0xff]  ;;  %v456_v6 = vld [vmem:[%s5135_s20 + $0x450] sm:$0xff] }
  0x33   : > { %453 = vst [vmem:[%s5140_s21 + $0x220] sm:$0xff] %v452_v4  ;;  %v458_v7 = vld [vmem:[%s5135_s20 + $0x458] sm:$0xff]  ;;  %455 = vst [vmem:[%s5140_s21 + $0x228] sm:$0xff] %v454_v5  ;;  %v460_v8 = vld [vmem:[%s5135_s20 + $0x480] sm:$0xff] }
  0x34   : > { %457 = vst [vmem:[%s5140_s21 + $0x230] sm:$0xff] %v456_v6  ;;  %459 = vst [vmem:[%s5140_s21 + $0x238] sm:$0xff] %v458_v7  ;;  %v462_v9 = vld [vmem:[%s5135_s20 + $0x488] sm:$0xff]  ;;  %v464_v10 = vld [vmem:[%s5135_s20 + $0x490] sm:$0xff] }
  0x35   : > { %461 = vst [vmem:[%s5140_s21 + $0x240] sm:$0xff] %v460_v8  ;;  %463 = vst [vmem:[%s5140_s21 + $0x248] sm:$0xff] %v462_v9  ;;  %v466_v11 = vld [vmem:[%s5135_s20 + $0x498] sm:$0xff]  ;;  %v468_v12 = vld [vmem:[%s5135_s20 + $0x4c0] sm:$0xff] }
  0x36   : > { %465 = vst [vmem:[%s5140_s21 + $0x250] sm:$0xff] %v464_v10  ;;  %v470_v13 = vld [vmem:[%s5135_s20 + $0x4c8] sm:$0xff]  ;;  %467 = vst [vmem:[%s5140_s21 + $0x258] sm:$0xff] %v466_v11  ;;  %v472_v14 = vld [vmem:[%s5135_s20 + $0x4d0] sm:$0xff] }
  0x37   : > { %469 = vst [vmem:[%s5140_s21 + $0x260] sm:$0xff] %v468_v12  ;;  %471 = vst [vmem:[%s5140_s21 + $0x268] sm:$0xff] %v470_v13  ;;  %v474_v15 = vld [vmem:[%s5135_s20 + $0x4d8] sm:$0xff]  ;;  %v476_v16 = vld [vmem:[%s5135_s20 + $0x500] sm:$0xff] }
  0x38   : > { %473 = vst [vmem:[%s5140_s21 + $0x270] sm:$0xff] %v472_v14  ;;  %475 = vst [vmem:[%s5140_s21 + $0x278] sm:$0xff] %v474_v15  ;;  %v478_v17 = vld [vmem:[%s5135_s20 + $0x508] sm:$0xff]  ;;  %v480_v18 = vld [vmem:[%s5135_s20 + $0x510] sm:$0xff] }
  0x39   : > { %477 = vst [vmem:[%s5140_s21 + $0x280] sm:$0xff] %v476_v16  ;;  %v482_v19 = vld [vmem:[%s5135_s20 + $0x518] sm:$0xff]  ;;  %479 = vst [vmem:[%s5140_s21 + $0x288] sm:$0xff] %v478_v17  ;;  %v484_v20 = vld [vmem:[%s5135_s20 + $0x540] sm:$0xff] }
  0x3a   : > { %481 = vst [vmem:[%s5140_s21 + $0x290] sm:$0xff] %v480_v18  ;;  %483 = vst [vmem:[%s5140_s21 + $0x298] sm:$0xff] %v482_v19  ;;  %v486_v21 = vld [vmem:[%s5135_s20 + $0x548] sm:$0xff]  ;;  %v488_v22 = vld [vmem:[%s5135_s20 + $0x550] sm:$0xff] }
  0x3b   : > { %485 = vst [vmem:[%s5140_s21 + $0x2a0] sm:$0xff] %v484_v20  ;;  %487 = vst [vmem:[%s5140_s21 + $0x2a8] sm:$0xff] %v486_v21  ;;  %v490_v23 = vld [vmem:[%s5135_s20 + $0x558] sm:$0xff]  ;;  %v492_v24 = vld [vmem:[%s5135_s20 + $0x580] sm:$0xff] }
  0x3c   : > { %489 = vst [vmem:[%s5140_s21 + $0x2b0] sm:$0xff] %v488_v22  ;;  %v494_v25 = vld [vmem:[%s5135_s20 + $0x588] sm:$0xff]  ;;  %491 = vst [vmem:[%s5140_s21 + $0x2b8] sm:$0xff] %v490_v23  ;;  %v496_v26 = vld [vmem:[%s5135_s20 + $0x590] sm:$0xff] }
  0x3d   : > { %493 = vst [vmem:[%s5140_s21 + $0x2c0] sm:$0xff] %v492_v24  ;;  %495 = vst [vmem:[%s5140_s21 + $0x2c8] sm:$0xff] %v494_v25  ;;  %v498_v27 = vld [vmem:[%s5135_s20 + $0x598] sm:$0xff]  ;;  %v500_v28 = vld [vmem:[%s5135_s20 + $0x5c0] sm:$0xff] }
  0x3e   : > { %497 = vst [vmem:[%s5140_s21 + $0x2d0] sm:$0xff] %v496_v26  ;;  %499 = vst [vmem:[%s5140_s21 + $0x2d8] sm:$0xff] %v498_v27  ;;  %v502_v29 = vld [vmem:[%s5135_s20 + $0x5c8] sm:$0xff]  ;;  %v504_v30 = vld [vmem:[%s5135_s20 + $0x5d0] sm:$0xff] }
  0x3f   : > { %501 = vst [vmem:[%s5140_s21 + $0x2e0] sm:$0xff] %v500_v28  ;;  %v506_v31 = vld [vmem:[%s5135_s20 + $0x5d8] sm:$0xff]  ;;  %503 = vst [vmem:[%s5140_s21 + $0x2e8] sm:$0xff] %v502_v29  ;;  %v508_v32 = vld [vmem:[%s5135_s20 + $0x600] sm:$0xff] }
  0x40   : > { %505 = vst [vmem:[%s5140_s21 + $0x2f0] sm:$0xff] %v504_v30  ;;  %507 = vst [vmem:[%s5140_s21 + $0x2f8] sm:$0xff] %v506_v31  ;;  %v510_v33 = vld [vmem:[%s5135_s20 + $0x608] sm:$0xff]  ;;  %v512_v34 = vld [vmem:[%s5135_s20 + $0x610] sm:$0xff] }
  0x41   : > { %509 = vst [vmem:[%s5140_s21 + $0x300] sm:$0xff] %v508_v32  ;;  %511 = vst [vmem:[%s5140_s21 + $0x308] sm:$0xff] %v510_v33  ;;  %v514_v35 = vld [vmem:[%s5135_s20 + $0x618] sm:$0xff]  ;;  %v516_v36 = vld [vmem:[%s5135_s20 + $0x640] sm:$0xff] }
  0x42   : > { %513 = vst [vmem:[%s5140_s21 + $0x310] sm:$0xff] %v512_v34  ;;  %v518_v37 = vld [vmem:[%s5135_s20 + $0x648] sm:$0xff]  ;;  %515 = vst [vmem:[%s5140_s21 + $0x318] sm:$0xff] %v514_v35  ;;  %v520_v38 = vld [vmem:[%s5135_s20 + $0x650] sm:$0xff] }
  0x43   : > { %517 = vst [vmem:[%s5140_s21 + $0x320] sm:$0xff] %v516_v36  ;;  %519 = vst [vmem:[%s5140_s21 + $0x328] sm:$0xff] %v518_v37  ;;  %v522_v39 = vld [vmem:[%s5135_s20 + $0x658] sm:$0xff]  ;;  %v524_v40 = vld [vmem:[%s5135_s20 + $0x680] sm:$0xff] }
  0x44   : > { %521 = vst [vmem:[%s5140_s21 + $0x330] sm:$0xff] %v520_v38  ;;  %523 = vst [vmem:[%s5140_s21 + $0x338] sm:$0xff] %v522_v39  ;;  %v526_v41 = vld [vmem:[%s5135_s20 + $0x688] sm:$0xff]  ;;  %v528_v42 = vld [vmem:[%s5135_s20 + $0x690] sm:$0xff] }
  0x45   : > { %525 = vst [vmem:[%s5140_s21 + $0x340] sm:$0xff] %v524_v40  ;;  %v530_v43 = vld [vmem:[%s5135_s20 + $0x698] sm:$0xff]  ;;  %527 = vst [vmem:[%s5140_s21 + $0x348] sm:$0xff] %v526_v41  ;;  %v532_v44 = vld [vmem:[%s5135_s20 + $0x6c0] sm:$0xff] }
  0x46   : > { %529 = vst [vmem:[%s5140_s21 + $0x350] sm:$0xff] %v528_v42  ;;  %531 = vst [vmem:[%s5140_s21 + $0x358] sm:$0xff] %v530_v43  ;;  %v534_v45 = vld [vmem:[%s5135_s20 + $0x6c8] sm:$0xff]  ;;  %v536_v46 = vld [vmem:[%s5135_s20 + $0x6d0] sm:$0xff] }
  0x47   : > { %533 = vst [vmem:[%s5140_s21 + $0x360] sm:$0xff] %v532_v44  ;;  %535 = vst [vmem:[%s5140_s21 + $0x368] sm:$0xff] %v534_v45  ;;  %v538_v47 = vld [vmem:[%s5135_s20 + $0x6d8] sm:$0xff]  ;;  %v540_v48 = vld [vmem:[%s5135_s20 + $0x700] sm:$0xff] }
  0x48   : > { %537 = vst [vmem:[%s5140_s21 + $0x370] sm:$0xff] %v536_v46  ;;  %v542_v49 = vld [vmem:[%s5135_s20 + $0x708] sm:$0xff]  ;;  %539 = vst [vmem:[%s5140_s21 + $0x378] sm:$0xff] %v538_v47  ;;  %v544_v50 = vld [vmem:[%s5135_s20 + $0x710] sm:$0xff] }
  0x49   : > { %541 = vst [vmem:[%s5140_s21 + $0x380] sm:$0xff] %v540_v48  ;;  %543 = vst [vmem:[%s5140_s21 + $0x388] sm:$0xff] %v542_v49  ;;  %v546_v51 = vld [vmem:[%s5135_s20 + $0x718] sm:$0xff]  ;;  %v548_v52 = vld [vmem:[%s5135_s20 + $0x740] sm:$0xff] }
  0x4a   : > { %545 = vst [vmem:[%s5140_s21 + $0x390] sm:$0xff] %v544_v50  ;;  %547 = vst [vmem:[%s5140_s21 + $0x398] sm:$0xff] %v546_v51  ;;  %v550_v53 = vld [vmem:[%s5135_s20 + $0x748] sm:$0xff]  ;;  %v552_v54 = vld [vmem:[%s5135_s20 + $0x750] sm:$0xff] }
  0x4b   : > { %549 = vst [vmem:[%s5140_s21 + $0x3a0] sm:$0xff] %v548_v52  ;;  %v554_v55 = vld [vmem:[%s5135_s20 + $0x758] sm:$0xff]  ;;  %551 = vst [vmem:[%s5140_s21 + $0x3a8] sm:$0xff] %v550_v53  ;;  %v556_v56 = vld [vmem:[%s5135_s20 + $0x780] sm:$0xff] }
  0x4c   : > { %553 = vst [vmem:[%s5140_s21 + $0x3b0] sm:$0xff] %v552_v54  ;;  %555 = vst [vmem:[%s5140_s21 + $0x3b8] sm:$0xff] %v554_v55  ;;  %v558_v57 = vld [vmem:[%s5135_s20 + $0x788] sm:$0xff]  ;;  %v560_v58 = vld [vmem:[%s5135_s20 + $0x790] sm:$0xff] }
  0x4d   : > { %557 = vst [vmem:[%s5140_s21 + $0x3c0] sm:$0xff] %v556_v56  ;;  %559 = vst [vmem:[%s5140_s21 + $0x3c8] sm:$0xff] %v558_v57  ;;  %v562_v59 = vld [vmem:[%s5135_s20 + $0x798] sm:$0xff]  ;;  %v564_v60 = vld [vmem:[%s5135_s20 + $0x7c0] sm:$0xff] }
  0x4e   : > { %561 = vst [vmem:[%s5140_s21 + $0x3d0] sm:$0xff] %v560_v58  ;;  %v566_v61 = vld [vmem:[%s5135_s20 + $0x7c8] sm:$0xff]  ;;  %563 = vst [vmem:[%s5140_s21 + $0x3d8] sm:$0xff] %v562_v59  ;;  %v568_v62 = vld [vmem:[%s5135_s20 + $0x7d0] sm:$0xff] }
  0x4f   : > { %565 = vst [vmem:[%s5140_s21 + $0x3e0] sm:$0xff] %v564_v60  ;;  %567 = vst [vmem:[%s5140_s21 + $0x3e8] sm:$0xff] %v566_v61  ;;  %v570_v63 = vld [vmem:[%s5135_s20 + $0x7d8] sm:$0xff] }
  0x50   : > { %569 = vst [vmem:[%s5140_s21 + $0x3f0] sm:$0xff] %v568_v62  ;;  %571 = vst [vmem:[%s5140_s21 + $0x3f8] sm:$0xff] %v570_v63 }
  0x51 PF: > { %p4590_p6 = scmp.ge.s32.totalorder %s5040_s9, 1  ;;  %p594_p7 = scmp.lt.s32.totalorder %s5040_s9, 3 }
  0x53   : > { %p595_p8 = pnand %p4590_p6, %p594_p7 }
  0x55   : > { %598 = sbr.rel (%p595_p8) target bundleno = 1337 (0x539), region = 71 }
  0x5a   : > { %s601_s22 = sand.u32 1, %s5024_s27   ;;  %s4592_s23 = sshll.u32 %s5032_s29, 2 }
  0x5b   : > { %s4591_s24 = sshll.u32 %s601_s22, 10  ;;  %p660_p9 = scmp.lt.s32.totalorder %s4592_s23, 7 }
  0x5c   : > { %s4593_s25 = sshll.u32 %s5032_s29, 6  ;;  %s5411_s27 = scalar_lea.vmem [#allocation3], %s4591_s24 }
  0x5d   : > { %s9296_s23 = smov (!%p660_p9, %s4592_s23), 7  ;;  %p665_p10 = scmp.lt.s32.totalorder %s4593_s25, 127 }
  0x5e   : > { %s662_s13 = scalar_lea.vmem %s8817_s2, %s9296_s23  ;;  %p4596_p11 = scmp.ne.s32.totalorder %s5032_s29, 0 }
  0x5f   : > { %s9298_s25 = smov (!%p665_p10, %s4593_s25), 127 }
  0x60   : > { %s4603_s15 = sshll.u32 %s9298_s25, 4  ;;  %682 = sbr.rel (%p4596_p11) target bundleno = 134 (0x86), region = 79 }
  0x61   : > { %s5409_s18 = scalar_lea.vmem %s8818_s3, %s4603_s15 }
  0x65   : > { %v5042_v0 = vmov 0.0  }
  0x66   : > { %683 = vst [vmem:[#allocation2 + $0xb0] sm:$0xff] %v5042_v0  ;;  %684 = vst [vmem:[#allocation2 + $0x1b0] sm:$0xff] %v5042_v0 }
  0x67   : > { %685 = vst [vmem:[#allocation2 + $0xd8] sm:$0xff] %v5042_v0  ;;  %686 = vst [vmem:[#allocation2 + $0x18] sm:$0xff] %v5042_v0 }
  0x68   : > { %687 = vst [vmem:[#allocation2 + $0x50] sm:$0xff] %v5042_v0  ;;  %688 = vst [vmem:[#allocation2 + $0x168] sm:$0xff] %v5042_v0 }
  0x69   : > { %689 = vst [vmem:[#allocation2 + $0x130] sm:$0xff] %v5042_v0  ;;  %690 = vst [vmem:[#allocation2 + $0x48] sm:$0xff] %v5042_v0 }
  0x6a   : > { %691 = vst [vmem:[#allocation2 + $0x180] sm:$0xff] %v5042_v0  ;;  %692 = vst [vmem:[#allocation2 + $0x110] sm:$0xff] %v5042_v0 }
  0x6b   : > { %693 = vst [vmem:[#allocation2 + $0x118] sm:$0xff] %v5042_v0  ;;  %694 = vst [vmem:[#allocation2 + $0x98] sm:$0xff] %v5042_v0 }
  0x6c   : > { %695 = vst [vmem:[#allocation2 + $0x120] sm:$0xff] %v5042_v0  ;;  %696 = vst [vmem:[#allocation2 + $0x150] sm:$0xff] %v5042_v0 }
  0x6d   : > { %697 = vst [vmem:[#allocation2 + $0x108] sm:$0xff] %v5042_v0  ;;  %698 = vst [vmem:[#allocation2 + $0x60] sm:$0xff] %v5042_v0 }
  0x6e   : > { %699 = vst [vmem:[#allocation2 + $0xe0] sm:$0xff] %v5042_v0  ;;  %700 = vst [vmem:[#allocation2 + $0x188] sm:$0xff] %v5042_v0 }
  0x6f   : > { %701 = vst [vmem:[#allocation2 + $0x138] sm:$0xff] %v5042_v0  ;;  %702 = vst [vmem:[#allocation2 + $0x140] sm:$0xff] %v5042_v0 }
  0x70   : > { %703 = vst [vmem:[#allocation2 + $0x80] sm:$0xff] %v5042_v0  ;;  %704 = vst [vmem:[#allocation2 + $0x1a8] sm:$0xff] %v5042_v0 }
  0x71   : > { %705 = vst [vmem:[#allocation2 + $0x1b8] sm:$0xff] %v5042_v0  ;;  %706 = vst [vmem:[#allocation2 + $0x28] sm:$0xff] %v5042_v0 }
  0x72   : > { %707 = vst [vmem:[#allocation2 + $0x1e8] sm:$0xff] %v5042_v0  ;;  %708 = vst [vmem:[#allocation2 + $0xf8] sm:$0xff] %v5042_v0 }
  0x73   : > { %709 = vst [vmem:[#allocation2 + $0x160] sm:$0xff] %v5042_v0  ;;  %710 = vst [vmem:[#allocation2 + $0x30] sm:$0xff] %v5042_v0 }
  0x74   : > { %711 = vst [vmem:[#allocation2 + $0x1e0] sm:$0xff] %v5042_v0  ;;  %712 = vst [vmem:[#allocation2] sm:$0xff] %v5042_v0 }
  0x75   : > { %713 = vst [vmem:[#allocation2 + $0xf0] sm:$0xff] %v5042_v0  ;;  %714 = vst [vmem:[#allocation2 + $0x8] sm:$0xff] %v5042_v0 }
  0x76   : > { %715 = vst [vmem:[#allocation2 + $0x148] sm:$0xff] %v5042_v0  ;;  %716 = vst [vmem:[#allocation2 + $0x1d0] sm:$0xff] %v5042_v0 }
  0x77   : > { %717 = vst [vmem:[#allocation2 + $0x100] sm:$0xff] %v5042_v0  ;;  %718 = vst [vmem:[#allocation2 + $0xc8] sm:$0xff] %v5042_v0 }
  0x78   : > { %719 = vst [vmem:[#allocation2 + $0x40] sm:$0xff] %v5042_v0  ;;  %720 = vst [vmem:[#allocation2 + $0x1f8] sm:$0xff] %v5042_v0 }
  0x79   : > { %721 = vst [vmem:[#allocation2 + $0x20] sm:$0xff] %v5042_v0  ;;  %722 = vst [vmem:[#allocation2 + $0x128] sm:$0xff] %v5042_v0 }
  0x7a   : > { %723 = vst [vmem:[#allocation2 + $0x1a0] sm:$0xff] %v5042_v0  ;;  %724 = vst [vmem:[#allocation2 + $0x1f0] sm:$0xff] %v5042_v0 }
  0x7b   : > { %725 = vst [vmem:[#allocation2 + $0xe8] sm:$0xff] %v5042_v0  ;;  %726 = vst [vmem:[#allocation2 + $0x78] sm:$0xff] %v5042_v0 }
  0x7c   : > { %727 = vst [vmem:[#allocation2 + $0x70] sm:$0xff] %v5042_v0  ;;  %728 = vst [vmem:[#allocation2 + $0x90] sm:$0xff] %v5042_v0 }
  0x7d   : > { %729 = vst [vmem:[#allocation2 + $0x1d8] sm:$0xff] %v5042_v0  ;;  %730 = vst [vmem:[#allocation2 + $0xd0] sm:$0xff] %v5042_v0 }
  0x7e   : > { %731 = vst [vmem:[#allocation2 + $0xb8] sm:$0xff] %v5042_v0  ;;  %732 = vst [vmem:[#allocation2 + $0x88] sm:$0xff] %v5042_v0 }
  0x7f   : > { %733 = vst [vmem:[#allocation2 + $0xa8] sm:$0xff] %v5042_v0  ;;  %734 = vst [vmem:[#allocation2 + $0x1c8] sm:$0xff] %v5042_v0 }
  0x80   : > { %735 = vst [vmem:[#allocation2 + $0x170] sm:$0xff] %v5042_v0  ;;  %736 = vst [vmem:[#allocation2 + $0x178] sm:$0xff] %v5042_v0 }
  0x81   : > { %737 = vst [vmem:[#allocation2 + $0x68] sm:$0xff] %v5042_v0  ;;  %738 = vst [vmem:[#allocation2 + $0x190] sm:$0xff] %v5042_v0 }
  0x82   : > { %739 = vst [vmem:[#allocation2 + $0x198] sm:$0xff] %v5042_v0  ;;  %740 = vst [vmem:[#allocation2 + $0x38] sm:$0xff] %v5042_v0 }
  0x83   : > { %741 = vst [vmem:[#allocation2 + $0xc0] sm:$0xff] %v5042_v0  ;;  %742 = vst [vmem:[#allocation2 + $0x1c0] sm:$0xff] %v5042_v0 }
  0x84   : > { %743 = vst [vmem:[#allocation2 + $0x158] sm:$0xff] %v5042_v0  ;;  %744 = vst [vmem:[#allocation2 + $0x10] sm:$0xff] %v5042_v0 }
  0x85   : > { %745 = vst [vmem:[#allocation2 + $0x58] sm:$0xff] %v5042_v0  ;;  %746 = vst [vmem:[#allocation2 + $0xa0] sm:$0xff] %v5042_v0 }
  0x86 PF: > { %v872_v1 = vld [vmem:[%s5411_s27 + $0x1e8] sm:$0xff]  ;;  %v874_v2 = vld [vmem:[%s5411_s27 + $0x1f8] sm:$0xff]  ;;  %v871_v3 = vld [vmem:[%s5411_s27 + $0x1e0] sm:$0xff]  ;;  %p4597_p12 = scmp.ne.s32.totalorder %s5032_s29, 1 }
  0x87   : > { %961 = vmatprep.subr.mxu0 %v872_v1  ;;  %1218 = vmatprep.subr.mxu1 %v874_v2  ;;  %v873_v4 = vld [vmem:[%s5411_s27 + $0x1f0] sm:$0xff]  ;;  %v868_v5 = vld [vmem:[%s5411_s27 + $0x1c8] sm:$0xff]  ;;  %v870_v6 = vld [vmem:[%s5411_s27 + $0x1d8] sm:$0xff] }
  0x88   : > { %962 = vmatpush1.msra.mxu0 %v871_v3  ;;  %1219 = vmatpush1.msra.mxu1 %v873_v4  ;;  %v867_v7 = vld [vmem:[%s5411_s27 + $0x1c0] sm:$0xff]  ;;  %v869_v8 = vld [vmem:[%s5411_s27 + $0x1d0] sm:$0xff]  ;;  %v864_v9 = vld [vmem:[%s5411_s27 + $0x1a8] sm:$0xff] }
  0x89   : > { %963 = vmatprep.subr.mxu0 %v868_v5  ;;  %1220 = vmatprep.subr.mxu1 %v870_v6  ;;  %v866_v10 = vld [vmem:[%s5411_s27 + $0x1b8] sm:$0xff]  ;;  %v863_v11 = vld [vmem:[%s5411_s27 + $0x1a0] sm:$0xff]  ;;  %v865_v12 = vld [vmem:[%s5411_s27 + $0x1b0] sm:$0xff] }
  0x8a   : > { %964 = vmatpush1.msra.mxu0 %v867_v7  ;;  %1221 = vmatpush1.msra.mxu1 %v869_v8  ;;  %v860_v13 = vld [vmem:[%s5411_s27 + $0x188] sm:$0xff]  ;;  %v862_v14 = vld [vmem:[%s5411_s27 + $0x198] sm:$0xff]  ;;  %v859_v15 = vld [vmem:[%s5411_s27 + $0x180] sm:$0xff] }
  0x8b   : > { %965 = vmatprep.subr.mxu0 %v864_v9  ;;  %1222 = vmatprep.subr.mxu1 %v866_v10  ;;  %v861_v16 = vld [vmem:[%s5411_s27 + $0x190] sm:$0xff]  ;;  %v856_v17 = vld [vmem:[%s5411_s27 + $0x168] sm:$0xff]  ;;  %v858_v18 = vld [vmem:[%s5411_s27 + $0x178] sm:$0xff] }
  0x8c   : > { %966 = vmatpush1.msra.mxu0 %v863_v11  ;;  %1223 = vmatpush1.msra.mxu1 %v865_v12  ;;  %v855_v19 = vld [vmem:[%s5411_s27 + $0x160] sm:$0xff]  ;;  %v857_v20 = vld [vmem:[%s5411_s27 + $0x170] sm:$0xff]  ;;  %v852_v21 = vld [vmem:[%s5411_s27 + $0x148] sm:$0xff] }
  0x8d   : > { %967 = vmatprep.subr.mxu0 %v860_v13  ;;  %1224 = vmatprep.subr.mxu1 %v862_v14  ;;  %v854_v22 = vld [vmem:[%s5411_s27 + $0x158] sm:$0xff]  ;;  %v851_v23 = vld [vmem:[%s5411_s27 + $0x140] sm:$0xff]  ;;  %v853_v24 = vld [vmem:[%s5411_s27 + $0x150] sm:$0xff] }
  0x8e   : > { %968 = vmatpush1.msra.mxu0 %v859_v15  ;;  %1225 = vmatpush1.msra.mxu1 %v861_v16  ;;  %v848_v25 = vld [vmem:[%s5411_s27 + $0x128] sm:$0xff]  ;;  %v850_v26 = vld [vmem:[%s5411_s27 + $0x138] sm:$0xff]  ;;  %v847_v27 = vld [vmem:[%s5411_s27 + $0x120] sm:$0xff] }
  0x8f   : > { %969 = vmatprep.subr.mxu0 %v856_v17  ;;  %1226 = vmatprep.subr.mxu1 %v858_v18  ;;  %v849_v28 = vld [vmem:[%s5411_s27 + $0x130] sm:$0xff]  ;;  %v844_v29 = vld [vmem:[%s5411_s27 + $0x108] sm:$0xff]  ;;  %v846_v30 = vld [vmem:[%s5411_s27 + $0x118] sm:$0xff] }
  0x90   : > { %970 = vmatpush1.msra.mxu0 %v855_v19  ;;  %1227 = vmatpush1.msra.mxu1 %v857_v20  ;;  %v843_v31 = vld [vmem:[%s5411_s27 + $0x100] sm:$0xff]  ;;  %v845_v32 = vld [vmem:[%s5411_s27 + $0x110] sm:$0xff]  ;;  %v840_v33 = vld [vmem:[%s5411_s27 + $0xe8] sm:$0xff] }
  0x91   : > { %971 = vmatprep.subr.mxu0 %v852_v21  ;;  %1228 = vmatprep.subr.mxu1 %v854_v22  ;;  %v842_v34 = vld [vmem:[%s5411_s27 + $0xf8] sm:$0xff]  ;;  %v839_v35 = vld [vmem:[%s5411_s27 + $0xe0] sm:$0xff]  ;;  %v841_v36 = vld [vmem:[%s5411_s27 + $0xf0] sm:$0xff] }
  0x92   : > { %972 = vmatpush1.msra.mxu0 %v851_v23  ;;  %1229 = vmatpush1.msra.mxu1 %v853_v24  ;;  %v836_v37 = vld [vmem:[%s5411_s27 + $0xc8] sm:$0xff]  ;;  %v838_v38 = vld [vmem:[%s5411_s27 + $0xd8] sm:$0xff]  ;;  %v835_v39 = vld [vmem:[%s5411_s27 + $0xc0] sm:$0xff] }
  0x93   : > { %973 = vmatprep.subr.mxu0 %v848_v25  ;;  %1230 = vmatprep.subr.mxu1 %v850_v26  ;;  %v837_v40 = vld [vmem:[%s5411_s27 + $0xd0] sm:$0xff]  ;;  %v832_v41 = vld [vmem:[%s5411_s27 + $0xa8] sm:$0xff]  ;;  %v834_v42 = vld [vmem:[%s5411_s27 + $0xb8] sm:$0xff] }
  0x94   : > { %974 = vmatpush1.msra.mxu0 %v847_v27  ;;  %1231 = vmatpush1.msra.mxu1 %v849_v28  ;;  %v831_v43 = vld [vmem:[%s5411_s27 + $0xa0] sm:$0xff]  ;;  %v833_v44 = vld [vmem:[%s5411_s27 + $0xb0] sm:$0xff]  ;;  %v828_v45 = vld [vmem:[%s5411_s27 + $0x88] sm:$0xff] }
  0x95   : > { %975 = vmatprep.subr.mxu0 %v844_v29  ;;  %1232 = vmatprep.subr.mxu1 %v846_v30  ;;  %v830_v46 = vld [vmem:[%s5411_s27 + $0x98] sm:$0xff]  ;;  %v827_v47 = vld [vmem:[%s5411_s27 + $0x80] sm:$0xff]  ;;  %v829_v48 = vld [vmem:[%s5411_s27 + $0x90] sm:$0xff] }
  0x96   : > { %976 = vmatpush1.msra.mxu0 %v843_v31  ;;  %1233 = vmatpush1.msra.mxu1 %v845_v32  ;;  %v824_v49 = vld [vmem:[%s5411_s27 + $0x68] sm:$0xff]  ;;  %v826_v50 = vld [vmem:[%s5411_s27 + $0x78] sm:$0xff]  ;;  %v823_v51 = vld [vmem:[%s5411_s27 + $0x60] sm:$0xff] }
  0x97   : > { %977 = vmatprep.subr.mxu0 %v840_v33  ;;  %1234 = vmatprep.subr.mxu1 %v842_v34  ;;  %v825_v52 = vld [vmem:[%s5411_s27 + $0x70] sm:$0xff]  ;;  %v820_v53 = vld [vmem:[%s5411_s27 + $0x48] sm:$0xff]  ;;  %v822_v54 = vld [vmem:[%s5411_s27 + $0x58] sm:$0xff] }
  0x98   : > { %978 = vmatpush1.msra.mxu0 %v839_v35  ;;  %1235 = vmatpush1.msra.mxu1 %v841_v36  ;;  %v819_v55 = vld [vmem:[%s5411_s27 + $0x40] sm:$0xff]  ;;  %v821_v56 = vld [vmem:[%s5411_s27 + $0x50] sm:$0xff]  ;;  %v816_v57 = vld [vmem:[%s5411_s27 + $0x28] sm:$0xff] }
  0x99   : > { %979 = vmatprep.subr.mxu0 %v836_v37  ;;  %1236 = vmatprep.subr.mxu1 %v838_v38  ;;  %v818_v58 = vld [vmem:[%s5411_s27 + $0x38] sm:$0xff]  ;;  %v815_v59 = vld [vmem:[%s5411_s27 + $0x20] sm:$0xff]  ;;  %v817_v60 = vld [vmem:[%s5411_s27 + $0x30] sm:$0xff] }
  0x9a   : > { %980 = vmatpush1.msra.mxu0 %v835_v39  ;;  %1237 = vmatpush1.msra.mxu1 %v837_v40  ;;  %v812_v61 = vld [vmem:[%s5411_s27 + $0x8] sm:$0xff]  ;;  %v814_v62 = vld [vmem:[%s5411_s27 + $0x18] sm:$0xff]  ;;  %v811_v63 = vld [vmem:[%s5411_s27] sm:$0xff] }
  0x9b   : > { %981 = vmatprep.subr.mxu0 %v832_v41  ;;  %1238 = vmatprep.subr.mxu1 %v834_v42  ;;  %v813_v0 = vld [vmem:[%s5411_s27 + $0x10] sm:$0xff]  ;;  %v936_v1 = vld [vmem:[%s5411_s27 + $0x3e8] sm:$0xff]  ;;  %v938_v2 = vld [vmem:[%s5411_s27 + $0x3f8] sm:$0xff] }
  0x9c   : > { %982 = vmatpush1.msra.mxu0 %v831_v43  ;;  %1239 = vmatpush1.msra.mxu1 %v833_v44  ;;  %v935_v3 = vld [vmem:[%s5411_s27 + $0x3e0] sm:$0xff]  ;;  %v937_v4 = vld [vmem:[%s5411_s27 + $0x3f0] sm:$0xff]  ;;  %v932_v5 = vld [vmem:[%s5411_s27 + $0x3c8] sm:$0xff] }
  0x9d   : > { %983 = vmatprep.subr.mxu0 %v828_v45  ;;  %1240 = vmatprep.subr.mxu1 %v830_v46  ;;  %v934_v6 = vld [vmem:[%s5411_s27 + $0x3d8] sm:$0xff]  ;;  %v931_v7 = vld [vmem:[%s5411_s27 + $0x3c0] sm:$0xff]  ;;  %v933_v8 = vld [vmem:[%s5411_s27 + $0x3d0] sm:$0xff] }
  0x9e   : > { %984 = vmatpush1.msra.mxu0 %v827_v47  ;;  %1241 = vmatpush1.msra.mxu1 %v829_v48  ;;  %v928_v9 = vld [vmem:[%s5411_s27 + $0x3a8] sm:$0xff]  ;;  %v930_v10 = vld [vmem:[%s5411_s27 + $0x3b8] sm:$0xff]  ;;  %v927_v11 = vld [vmem:[%s5411_s27 + $0x3a0] sm:$0xff] }
  0x9f   : > { %985 = vmatprep.subr.mxu0 %v824_v49  ;;  %1242 = vmatprep.subr.mxu1 %v826_v50  ;;  %v929_v12 = vld [vmem:[%s5411_s27 + $0x3b0] sm:$0xff]  ;;  %v924_v13 = vld [vmem:[%s5411_s27 + $0x388] sm:$0xff]  ;;  %v926_v14 = vld [vmem:[%s5411_s27 + $0x398] sm:$0xff] }
  0xa0   : > { %986 = vmatpush1.msra.mxu0 %v823_v51  ;;  %1243 = vmatpush1.msra.mxu1 %v825_v52  ;;  %v923_v15 = vld [vmem:[%s5411_s27 + $0x380] sm:$0xff]  ;;  %v925_v16 = vld [vmem:[%s5411_s27 + $0x390] sm:$0xff]  ;;  %v920_v17 = vld [vmem:[%s5411_s27 + $0x368] sm:$0xff] }
  0xa1   : > { %987 = vmatprep.subr.mxu0 %v820_v53  ;;  %1244 = vmatprep.subr.mxu1 %v822_v54  ;;  %v922_v18 = vld [vmem:[%s5411_s27 + $0x378] sm:$0xff]  ;;  %v919_v19 = vld [vmem:[%s5411_s27 + $0x360] sm:$0xff]  ;;  %v921_v20 = vld [vmem:[%s5411_s27 + $0x370] sm:$0xff] }
  0xa2   : > { %988 = vmatpush1.msra.mxu0 %v819_v55  ;;  %1245 = vmatpush1.msra.mxu1 %v821_v56  ;;  %v916_v21 = vld [vmem:[%s5411_s27 + $0x348] sm:$0xff]  ;;  %v918_v22 = vld [vmem:[%s5411_s27 + $0x358] sm:$0xff]  ;;  %v915_v23 = vld [vmem:[%s5411_s27 + $0x340] sm:$0xff] }
  0xa3   : > { %989 = vmatprep.subr.mxu0 %v816_v57  ;;  %1246 = vmatprep.subr.mxu1 %v818_v58  ;;  %v917_v24 = vld [vmem:[%s5411_s27 + $0x350] sm:$0xff]  ;;  %v912_v25 = vld [vmem:[%s5411_s27 + $0x328] sm:$0xff]  ;;  %v914_v26 = vld [vmem:[%s5411_s27 + $0x338] sm:$0xff] }
  0xa4   : > { %990 = vmatpush1.msra.mxu0 %v815_v59  ;;  %1247 = vmatpush1.msra.mxu1 %v817_v60  ;;  %v911_v27 = vld [vmem:[%s5411_s27 + $0x320] sm:$0xff]  ;;  %v913_v28 = vld [vmem:[%s5411_s27 + $0x330] sm:$0xff]  ;;  %v908_v29 = vld [vmem:[%s5411_s27 + $0x308] sm:$0xff] }
  0xa5   : > { %991 = vmatprep.subr.mxu0 %v812_v61  ;;  %1248 = vmatprep.subr.mxu1 %v814_v62  ;;  %v910_v30 = vld [vmem:[%s5411_s27 + $0x318] sm:$0xff]  ;;  %v907_v31 = vld [vmem:[%s5411_s27 + $0x300] sm:$0xff]  ;;  %v909_v32 = vld [vmem:[%s5411_s27 + $0x310] sm:$0xff] }
  0xa6   : > { %992 = vmatpush1.msra.mxu0 %v811_v63  ;;  %1249 = vmatpush1.msra.mxu1 %v813_v0  ;;  %v904_v33 = vld [vmem:[%s5411_s27 + $0x2e8] sm:$0xff]  ;;  %v906_v34 = vld [vmem:[%s5411_s27 + $0x2f8] sm:$0xff]  ;;  %v903_v35 = vld [vmem:[%s5411_s27 + $0x2e0] sm:$0xff] }
  0xa7   : > { %993 = vmatprep.subr.mxu0 %v936_v1  ;;  %1250 = vmatprep.subr.mxu1 %v938_v2  ;;  %v905_v36 = vld [vmem:[%s5411_s27 + $0x2f0] sm:$0xff]  ;;  %v900_v37 = vld [vmem:[%s5411_s27 + $0x2c8] sm:$0xff]  ;;  %v902_v38 = vld [vmem:[%s5411_s27 + $0x2d8] sm:$0xff] }
  0xa8   : > { %994 = vmatpush2.msra.mxu0 %v935_v3  ;;  %1251 = vmatpush2.msra.mxu1 %v937_v4  ;;  %v899_v39 = vld [vmem:[%s5411_s27 + $0x2c0] sm:$0xff]  ;;  %v901_v40 = vld [vmem:[%s5411_s27 + $0x2d0] sm:$0xff]  ;;  %v896_v41 = vld [vmem:[%s5411_s27 + $0x2a8] sm:$0xff] }
  0xa9   : > { %995 = vmatprep.subr.mxu0 %v932_v5  ;;  %1252 = vmatprep.subr.mxu1 %v934_v6  ;;  %v898_v42 = vld [vmem:[%s5411_s27 + $0x2b8] sm:$0xff]  ;;  %v895_v43 = vld [vmem:[%s5411_s27 + $0x2a0] sm:$0xff]  ;;  %v897_v44 = vld [vmem:[%s5411_s27 + $0x2b0] sm:$0xff] }
  0xaa   : > { %996 = vmatpush2.msra.mxu0 %v931_v7  ;;  %1253 = vmatpush2.msra.mxu1 %v933_v8  ;;  %v892_v45 = vld [vmem:[%s5411_s27 + $0x288] sm:$0xff]  ;;  %v894_v46 = vld [vmem:[%s5411_s27 + $0x298] sm:$0xff]  ;;  %v891_v47 = vld [vmem:[%s5411_s27 + $0x280] sm:$0xff] }
  0xab   : > { %997 = vmatprep.subr.mxu0 %v928_v9  ;;  %1254 = vmatprep.subr.mxu1 %v930_v10  ;;  %v893_v48 = vld [vmem:[%s5411_s27 + $0x290] sm:$0xff]  ;;  %v888_v49 = vld [vmem:[%s5411_s27 + $0x268] sm:$0xff]  ;;  %v890_v50 = vld [vmem:[%s5411_s27 + $0x278] sm:$0xff] }
  0xac   : > { %998 = vmatpush2.msra.mxu0 %v927_v11  ;;  %1255 = vmatpush2.msra.mxu1 %v929_v12  ;;  %v887_v51 = vld [vmem:[%s5411_s27 + $0x260] sm:$0xff]  ;;  %v889_v52 = vld [vmem:[%s5411_s27 + $0x270] sm:$0xff]  ;;  %v884_v53 = vld [vmem:[%s5411_s27 + $0x248] sm:$0xff] }
  0xad   : > { %999 = vmatprep.subr.mxu0 %v924_v13  ;;  %1256 = vmatprep.subr.mxu1 %v926_v14  ;;  %v886_v54 = vld [vmem:[%s5411_s27 + $0x258] sm:$0xff]  ;;  %v883_v55 = vld [vmem:[%s5411_s27 + $0x240] sm:$0xff]  ;;  %v885_v56 = vld [vmem:[%s5411_s27 + $0x250] sm:$0xff] }
  0xae   : > { %1000 = vmatpush2.msra.mxu0 %v923_v15  ;;  %1257 = vmatpush2.msra.mxu1 %v925_v16  ;;  %v880_v57 = vld [vmem:[%s5411_s27 + $0x228] sm:$0xff]  ;;  %v882_v58 = vld [vmem:[%s5411_s27 + $0x238] sm:$0xff]  ;;  %v879_v59 = vld [vmem:[%s5411_s27 + $0x220] sm:$0xff] }
  0xaf   : > { %1001 = vmatprep.subr.mxu0 %v920_v17  ;;  %1258 = vmatprep.subr.mxu1 %v922_v18  ;;  %v881_v60 = vld [vmem:[%s5411_s27 + $0x230] sm:$0xff]  ;;  %v876_v61 = vld [vmem:[%s5411_s27 + $0x208] sm:$0xff]  ;;  %v878_v62 = vld [vmem:[%s5411_s27 + $0x218] sm:$0xff] }
  0xb0   : > { %1002 = vmatpush2.msra.mxu0 %v919_v19  ;;  %1259 = vmatpush2.msra.mxu1 %v921_v20  ;;  %v875_v63 = vld [vmem:[%s5411_s27 + $0x200] sm:$0xff]  ;;  %v748_v0 = vld [vmem:[%s8815_s0 + $0x8] sm:$0xff]  ;;  %v877_v1 = vld [vmem:[%s5411_s27 + $0x210] sm:$0xff] }
  0xb1   : > { %1003 = vmatprep.subr.mxu0 %v916_v21  ;;  %1260 = vmatprep.subr.mxu1 %v918_v22  ;;  %v747_v2 = vld [vmem:[%s8815_s0] sm:$0xff]  ;;  %v750_v3 = vld [vmem:[%s8815_s0 + $0x18] sm:$0xff]  ;;  %v2721_v6 = vld [vmem:[%s5409_s18 + $0xf0] sm:$0xff] }
  0xb2   : > { %1004 = vmatpush2.msra.mxu0 %v915_v23  ;;  %1261 = vmatpush2.msra.mxu1 %v917_v24  ;;  %v2722_v4 = vld [vmem:[%s5409_s18 + $0xf8] sm:$0xff]  ;;  %v2785_v7 = vld [vmem:[%s5409_s18 + $0x2f0] sm:$0xff]  ;;  %v752_v9 = vld [vmem:[%s8815_s0 + $0x28] sm:$0xff] }
  0xb3   : > { %1005 = vmatprep.subr.mxu0 %v912_v25  ;;  %1262 = vmatprep.subr.mxu1 %v914_v26  ;;  %v2786_v5 = vld [vmem:[%s5409_s18 + $0x2f8] sm:$0xff]  ;;  %v749_v8 = vld [vmem:[%s8815_s0 + $0x10] sm:$0xff]  ;;  %v2720_v10 = vld [vmem:[%s5409_s18 + $0xe8] sm:$0xff] }
  0xb4   : > { %1006 = vmatpush2.msra.mxu0 %v911_v27  ;;  %1263 = vmatpush2.msra.mxu1 %v913_v28  ;;  %v2784_v11 = vld [vmem:[%s5409_s18 + $0x2e8] sm:$0xff]  ;;  %v2719_v12 = vld [vmem:[%s5409_s18 + $0xe0] sm:$0xff]  ;;  %v754_v15 = vld [vmem:[%s8815_s0 + $0x38] sm:$0xff] }
  0xb5   : > { %1007 = vmatprep.subr.mxu0 %v908_v29  ;;  %1264 = vmatprep.subr.mxu1 %v910_v30  ;;  %v2783_v13 = vld [vmem:[%s5409_s18 + $0x2e0] sm:$0xff]  ;;  %v2718_v16 = vld [vmem:[%s5409_s18 + $0xd8] sm:$0xff]  ;;  %v2717_v18 = vld [vmem:[%s5409_s18 + $0xd0] sm:$0xff] }
  0xb6   : > { %1008 = vmatpush2.msra.mxu0 %v907_v31  ;;  %1265 = vmatpush2.msra.mxu1 %v909_v32  ;;  %v751_v14 = vld [vmem:[%s8815_s0 + $0x20] sm:$0xff]  ;;  %v2782_v17 = vld [vmem:[%s5409_s18 + $0x2d8] sm:$0xff]  ;;  %v2781_v19 = vld [vmem:[%s5409_s18 + $0x2d0] sm:$0xff] }
  0xb7   : > { %1009 = vmatprep.subr.mxu0 %v904_v33  ;;  %1266 = vmatprep.subr.mxu1 %v906_v34  ;;  %v753_v20 = vld [vmem:[%s8815_s0 + $0x30] sm:$0xff]  ;;  %v756_v21 = vld [vmem:[%s8815_s0 + $0x48] sm:$0xff]  ;;  %v2715_v24 = vld [vmem:[%s5409_s18 + $0xc0] sm:$0xff] }
  0xb8   : > { %1010 = vmatpush2.msra.mxu0 %v903_v35  ;;  %1267 = vmatpush2.msra.mxu1 %v905_v36  ;;  %v2716_v22 = vld [vmem:[%s5409_s18 + $0xc8] sm:$0xff]  ;;  %v2779_v25 = vld [vmem:[%s5409_s18 + $0x2c0] sm:$0xff]  ;;  %v758_v27 = vld [vmem:[%s8815_s0 + $0x58] sm:$0xff] }
  0xb9   : > { %1011 = vmatprep.subr.mxu0 %v900_v37  ;;  %1268 = vmatprep.subr.mxu1 %v902_v38  ;;  %v2780_v23 = vld [vmem:[%s5409_s18 + $0x2c8] sm:$0xff]  ;;  %v755_v26 = vld [vmem:[%s8815_s0 + $0x40] sm:$0xff]  ;;  %v2714_v28 = vld [vmem:[%s5409_s18 + $0xb8] sm:$0xff] }
  0xba   : > { %1012 = vmatpush2.msra.mxu0 %v899_v39  ;;  %1269 = vmatpush2.msra.mxu1 %v901_v40  ;;  %v2778_v29 = vld [vmem:[%s5409_s18 + $0x2b8] sm:$0xff]  ;;  %v2713_v30 = vld [vmem:[%s5409_s18 + $0xb0] sm:$0xff]  ;;  %v760_v33 = vld [vmem:[%s8815_s0 + $0x68] sm:$0xff] }
  0xbb   : > { %1013 = vmatprep.subr.mxu0 %v896_v41  ;;  %1270 = vmatprep.subr.mxu1 %v898_v42  ;;  %v2777_v31 = vld [vmem:[%s5409_s18 + $0x2b0] sm:$0xff]  ;;  %v2712_v34 = vld [vmem:[%s5409_s18 + $0xa8] sm:$0xff]  ;;  %v2711_v36 = vld [vmem:[%s5409_s18 + $0xa0] sm:$0xff] }
  0xbc   : > { %1014 = vmatpush2.msra.mxu0 %v895_v43  ;;  %1271 = vmatpush2.msra.mxu1 %v897_v44  ;;  %v757_v32 = vld [vmem:[%s8815_s0 + $0x50] sm:$0xff]  ;;  %v2776_v35 = vld [vmem:[%s5409_s18 + $0x2a8] sm:$0xff]  ;;  %v2775_v37 = vld [vmem:[%s5409_s18 + $0x2a0] sm:$0xff] }
  0xbd   : > { %1015 = vmatprep.subr.mxu0 %v892_v45  ;;  %1272 = vmatprep.subr.mxu1 %v894_v46  ;;  %v759_v38 = vld [vmem:[%s8815_s0 + $0x60] sm:$0xff]  ;;  %v762_v39 = vld [vmem:[%s8815_s0 + $0x78] sm:$0xff]  ;;  %v2709_v42 = vld [vmem:[%s5409_s18 + $0x90] sm:$0xff] }
  0xbe   : > { %1016 = vmatpush2.msra.mxu0 %v891_v47  ;;  %1273 = vmatpush2.msra.mxu1 %v893_v48  ;;  %v2710_v40 = vld [vmem:[%s5409_s18 + $0x98] sm:$0xff]  ;;  %v2773_v43 = vld [vmem:[%s5409_s18 + $0x290] sm:$0xff]  ;;  %v764_v45 = vld [vmem:[%s8815_s0 + $0x88] sm:$0xff] }
  0xbf   : > { %1017 = vmatprep.subr.mxu0 %v888_v49  ;;  %1274 = vmatprep.subr.mxu1 %v890_v50  ;;  %v2774_v41 = vld [vmem:[%s5409_s18 + $0x298] sm:$0xff]  ;;  %v761_v44 = vld [vmem:[%s8815_s0 + $0x70] sm:$0xff]  ;;  %v2708_v46 = vld [vmem:[%s5409_s18 + $0x88] sm:$0xff] }
  0xc0   : > { %1018 = vmatpush2.msra.mxu0 %v887_v51  ;;  %1275 = vmatpush2.msra.mxu1 %v889_v52  ;;  %v2772_v47 = vld [vmem:[%s5409_s18 + $0x288] sm:$0xff]  ;;  %v2707_v48 = vld [vmem:[%s5409_s18 + $0x80] sm:$0xff]  ;;  %v766_v51 = vld [vmem:[%s8815_s0 + $0x98] sm:$0xff] }
  0xc1   : > { %1019 = vmatprep.subr.mxu0 %v884_v53  ;;  %1276 = vmatprep.subr.mxu1 %v886_v54  ;;  %v2771_v49 = vld [vmem:[%s5409_s18 + $0x280] sm:$0xff]  ;;  %v2706_v52 = vld [vmem:[%s5409_s18 + $0x78] sm:$0xff]  ;;  %v2705_v54 = vld [vmem:[%s5409_s18 + $0x70] sm:$0xff] }
  0xc2   : > { %1020 = vmatpush2.msra.mxu0 %v883_v55  ;;  %1277 = vmatpush2.msra.mxu1 %v885_v56  ;;  %v763_v50 = vld [vmem:[%s8815_s0 + $0x80] sm:$0xff]  ;;  %v2770_v53 = vld [vmem:[%s5409_s18 + $0x278] sm:$0xff]  ;;  %v2769_v55 = vld [vmem:[%s5409_s18 + $0x270] sm:$0xff] }
  0xc3   : > { %1021 = vmatprep.subr.mxu0 %v880_v57  ;;  %1278 = vmatprep.subr.mxu1 %v882_v58  ;;  %v765_v56 = vld [vmem:[%s8815_s0 + $0x90] sm:$0xff]  ;;  %v768_v57 = vld [vmem:[%s8815_s0 + $0xa8] sm:$0xff] }
  0xc4   : > { %1022 = vmatpush2.msra.mxu0 %v879_v59  ;;  %1279 = vmatpush2.msra.mxu1 %v881_v60  ;;  %v2704_v58 = vld [vmem:[%s5409_s18 + $0x68] sm:$0xff]  ;;  %v2703_v60 = vld [vmem:[%s5409_s18 + $0x60] sm:$0xff] }
  0xc5   : > { %1023 = vmatprep.subr.mxu0 %v876_v61  ;;  %1280 = vmatprep.subr.mxu1 %v878_v62  ;;  %v2768_v59 = vld [vmem:[%s5409_s18 + $0x268] sm:$0xff]  ;;  %v2767_v61 = vld [vmem:[%s5409_s18 + $0x260] sm:$0xff] }
  0xc6   : > { %1024 = vmatpush2.msra.mxu0 %v875_v63  ;;  %1025 = vmatprep.mubr.f32.mxu0 %v748_v0  ;;  %v767_v62 = vld [vmem:[%s8815_s0 + $0xa0] sm:$0xff]  ;;  %v770_v63 = vld [vmem:[%s8815_s0 + $0xb8] sm:$0xff] }
  0xc7   : > { %1281 = vmatpush2.msra.mxu1 %v877_v1  ;;  %1282 = vmatprep.mubr.f32.mxu1 %v748_v0  ;;  %v2702_v0 = vld [vmem:[%s5409_s18 + $0x58] sm:$0xff] }
  0xc8   : > { %1026 = vmatmul.mubr.f32.vlgmr.msra.gmra.mxu0 %v747_v2  ;;  %1283 = vmatmul.mubr.f32.vlgmr.msra.gmra.mxu1 %v747_v2  ;;  %v2766_v1 = vld [vmem:[%s5409_s18 + $0x258] sm:$0xff]  ;;  %v2701_v2 = vld [vmem:[%s5409_s18 + $0x50] sm:$0xff] }
  0xc9   : > { %1031 = vmatprep.mubr.f32.mxu0 %v750_v3  ;;  %1288 = vmatprep.mubr.f32.mxu1 %v750_v3  ;;  %v2765_v3 = vld [vmem:[%s5409_s18 + $0x250] sm:$0xff] }
  0xca   : > { %2819 = vmatprep.subr.mxu0 %v2722_v4  ;;  %3076 = vmatprep.subr.mxu1 %v2786_v5  ;;  %v769_v4 = vld [vmem:[%s8815_s0 + $0xb0] sm:$0xff]  ;;  %v772_v5 = vld [vmem:[%s8815_s0 + $0xc8] sm:$0xff] }
  0xcb   : > { %2820 = vmatpush1.msra.mxu0 %v2721_v6  ;;  %3077 = vmatpush1.msra.mxu1 %v2785_v7  ;;  %v2700_v6 = vld [vmem:[%s5409_s18 + $0x48] sm:$0xff] }
  0xcc   : > { %1032 = vmatmul.mubr.f32.gmra.mxu0 %v749_v8  ;;  %1289 = vmatmul.mubr.f32.gmra.mxu1 %v749_v8  ;;  %v2764_v7 = vld [vmem:[%s5409_s18 + $0x248] sm:$0xff]  ;;  %v2699_v8 = vld [vmem:[%s5409_s18 + $0x40] sm:$0xff] }
  0xcd   : > { %1037 = vmatprep.mubr.f32.mxu0 %v752_v9  ;;  %1294 = vmatprep.mubr.f32.mxu1 %v752_v9  ;;  %v2763_v9 = vld [vmem:[%s5409_s18 + $0x240] sm:$0xff] }
  0xce   : > { %2821 = vmatprep.subr.mxu0 %v2720_v10  ;;  %3078 = vmatprep.subr.mxu1 %v2784_v11  ;;  %v771_v10 = vld [vmem:[%s8815_s0 + $0xc0] sm:$0xff]  ;;  %v774_v11 = vld [vmem:[%s8815_s0 + $0xd8] sm:$0xff] }
  0xcf   : > { %2822 = vmatpush1.msra.mxu0 %v2719_v12  ;;  %3079 = vmatpush1.msra.mxu1 %v2783_v13  ;;  %v2698_v12 = vld [vmem:[%s5409_s18 + $0x38] sm:$0xff] }
  0xd0   : > { %1038 = vmatmul.mubr.f32.gmra.mxu0 %v751_v14  ;;  %1295 = vmatmul.mubr.f32.gmra.mxu1 %v751_v14  ;;  %v2762_v13 = vld [vmem:[%s5409_s18 + $0x238] sm:$0xff]  ;;  %v2697_v14 = vld [vmem:[%s5409_s18 + $0x30] sm:$0xff] }
  0xd1   : > { %1043 = vmatprep.mubr.f32.mxu0 %v754_v15  ;;  %1300 = vmatprep.mubr.f32.mxu1 %v754_v15  ;;  %v2761_v15 = vld [vmem:[%s5409_s18 + $0x230] sm:$0xff] }
  0xd2   : > { %2823 = vmatprep.subr.mxu0 %v2718_v16  ;;  %3080 = vmatprep.subr.mxu1 %v2782_v17  ;;  %v773_v16 = vld [vmem:[%s8815_s0 + $0xd0] sm:$0xff]  ;;  %v776_v17 = vld [vmem:[%s8815_s0 + $0xe8] sm:$0xff] }
  0xd3   : > { %2824 = vmatpush1.msra.mxu0 %v2717_v18  ;;  %3081 = vmatpush1.msra.mxu1 %v2781_v19  ;;  %v2696_v18 = vld [vmem:[%s5409_s18 + $0x28] sm:$0xff] }
  0xd4   : > { %1044 = vmatmul.mubr.f32.gmra.mxu0 %v753_v20  ;;  %1301 = vmatmul.mubr.f32.gmra.mxu1 %v753_v20  ;;  %v2760_v19 = vld [vmem:[%s5409_s18 + $0x228] sm:$0xff]  ;;  %v2695_v20 = vld [vmem:[%s5409_s18 + $0x20] sm:$0xff] }
  0xd5   : > { %1049 = vmatprep.mubr.f32.mxu0 %v756_v21  ;;  %1306 = vmatprep.mubr.f32.mxu1 %v756_v21  ;;  %v2759_v21 = vld [vmem:[%s5409_s18 + $0x220] sm:$0xff] }
  0xd6   : > { %2825 = vmatprep.subr.mxu0 %v2716_v22  ;;  %3082 = vmatprep.subr.mxu1 %v2780_v23  ;;  %v775_v22 = vld [vmem:[%s8815_s0 + $0xe0] sm:$0xff]  ;;  %v778_v23 = vld [vmem:[%s8815_s0 + $0xf8] sm:$0xff] }
  0xd7   : > { %2826 = vmatpush1.msra.mxu0 %v2715_v24  ;;  %3083 = vmatpush1.msra.mxu1 %v2779_v25  ;;  %v2694_v24 = vld [vmem:[%s5409_s18 + $0x18] sm:$0xff] }
  0xd8   : > { %1050 = vmatmul.mubr.f32.gmra.mxu0 %v755_v26  ;;  %1307 = vmatmul.mubr.f32.gmra.mxu1 %v755_v26  ;;  %v2758_v25 = vld [vmem:[%s5409_s18 + $0x218] sm:$0xff]  ;;  %v2693_v26 = vld [vmem:[%s5409_s18 + $0x10] sm:$0xff] }
  0xd9   : > { %1055 = vmatprep.mubr.f32.mxu0 %v758_v27  ;;  %1312 = vmatprep.mubr.f32.mxu1 %v758_v27  ;;  %v2757_v27 = vld [vmem:[%s5409_s18 + $0x210] sm:$0xff] }
  0xda   : > { %2827 = vmatprep.subr.mxu0 %v2714_v28  ;;  %3084 = vmatprep.subr.mxu1 %v2778_v29  ;;  %v777_v28 = vld [vmem:[%s8815_s0 + $0xf0] sm:$0xff]  ;;  %v780_v29 = vld [vmem:[%s8815_s0 + $0x108] sm:$0xff] }
  0xdb   : > { %2828 = vmatpush1.msra.mxu0 %v2713_v30  ;;  %3085 = vmatpush1.msra.mxu1 %v2777_v31  ;;  %v2692_v30 = vld [vmem:[%s5409_s18 + $0x8] sm:$0xff] }
  0xdc   : > { %1056 = vmatmul.mubr.f32.gmra.mxu0 %v757_v32  ;;  %1313 = vmatmul.mubr.f32.gmra.mxu1 %v757_v32  ;;  %v2756_v31 = vld [vmem:[%s5409_s18 + $0x208] sm:$0xff]  ;;  %v2691_v32 = vld [vmem:[%s5409_s18] sm:$0xff] }
  0xdd   : > { %1061 = vmatprep.mubr.f32.mxu0 %v760_v33  ;;  %1318 = vmatprep.mubr.f32.mxu1 %v760_v33  ;;  %v2755_v33 = vld [vmem:[%s5409_s18 + $0x200] sm:$0xff] }
  0xde   : > { %2829 = vmatprep.subr.mxu0 %v2712_v34  ;;  %3086 = vmatprep.subr.mxu1 %v2776_v35  ;;  %v779_v34 = vld [vmem:[%s8815_s0 + $0x100] sm:$0xff]  ;;  %v782_v35 = vld [vmem:[%s8815_s0 + $0x118] sm:$0xff] }
  0xdf   : > { %2830 = vmatpush1.msra.mxu0 %v2711_v36  ;;  %3087 = vmatpush1.msra.mxu1 %v2775_v37  ;;  %v2754_v36 = vld [vmem:[%s5409_s18 + $0x1f8] sm:$0xff] }
  0xe0   : > { %1062 = vmatmul.mubr.f32.gmra.mxu0 %v759_v38  ;;  %1319 = vmatmul.mubr.f32.gmra.mxu1 %v759_v38  ;;  %v2818_v37 = vld [vmem:[%s5409_s18 + $0x3f8] sm:$0xff]  ;;  %v2753_v38 = vld [vmem:[%s5409_s18 + $0x1f0] sm:$0xff] }
  0xe1   : > { %1067 = vmatprep.mubr.f32.mxu0 %v762_v39  ;;  %1324 = vmatprep.mubr.f32.mxu1 %v762_v39  ;;  %v2817_v39 = vld [vmem:[%s5409_s18 + $0x3f0] sm:$0xff] }
  0xe2   : > { %2831 = vmatprep.subr.mxu0 %v2710_v40  ;;  %3088 = vmatprep.subr.mxu1 %v2774_v41  ;;  %v781_v40 = vld [vmem:[%s8815_s0 + $0x110] sm:$0xff]  ;;  %v784_v41 = vld [vmem:[%s8815_s0 + $0x128] sm:$0xff] }
  0xe3   : > { %2832 = vmatpush1.msra.mxu0 %v2709_v42  ;;  %3089 = vmatpush1.msra.mxu1 %v2773_v43  ;;  %v2752_v42 = vld [vmem:[%s5409_s18 + $0x1e8] sm:$0xff] }
  0xe4   : > { %1068 = vmatmul.mubr.f32.gmra.mxu0 %v761_v44  ;;  %1325 = vmatmul.mubr.f32.gmra.mxu1 %v761_v44  ;;  %v2816_v43 = vld [vmem:[%s5409_s18 + $0x3e8] sm:$0xff]  ;;  %v2751_v44 = vld [vmem:[%s5409_s18 + $0x1e0] sm:$0xff] }
  0xe5   : > { %1073 = vmatprep.mubr.f32.mxu0 %v764_v45  ;;  %1330 = vmatprep.mubr.f32.mxu1 %v764_v45  ;;  %v2815_v45 = vld [vmem:[%s5409_s18 + $0x3e0] sm:$0xff] }
  0xe6   : > { %2833 = vmatprep.subr.mxu0 %v2708_v46  ;;  %3090 = vmatprep.subr.mxu1 %v2772_v47  ;;  %v783_v46 = vld [vmem:[%s8815_s0 + $0x120] sm:$0xff]  ;;  %v786_v47 = vld [vmem:[%s8815_s0 + $0x138] sm:$0xff] }
  0xe7   : > { %2834 = vmatpush1.msra.mxu0 %v2707_v48  ;;  %3091 = vmatpush1.msra.mxu1 %v2771_v49  ;;  %v2750_v48 = vld [vmem:[%s5409_s18 + $0x1d8] sm:$0xff] }
  0xe8   : > { %1074 = vmatmul.mubr.f32.gmra.mxu0 %v763_v50  ;;  %1331 = vmatmul.mubr.f32.gmra.mxu1 %v763_v50  ;;  %v2814_v49 = vld [vmem:[%s5409_s18 + $0x3d8] sm:$0xff]  ;;  %v2749_v50 = vld [vmem:[%s5409_s18 + $0x1d0] sm:$0xff] }
  0xe9   : > { %1079 = vmatprep.mubr.f32.mxu0 %v766_v51  ;;  %1336 = vmatprep.mubr.f32.mxu1 %v766_v51  ;;  %v2813_v51 = vld [vmem:[%s5409_s18 + $0x3d0] sm:$0xff] }
  0xea   : > { %2835 = vmatprep.subr.mxu0 %v2706_v52  ;;  %3092 = vmatprep.subr.mxu1 %v2770_v53  ;;  %v785_v52 = vld [vmem:[%s8815_s0 + $0x130] sm:$0xff]  ;;  %v788_v53 = vld [vmem:[%s8815_s0 + $0x148] sm:$0xff] }
  0xeb   : > { %2836 = vmatpush1.msra.mxu0 %v2705_v54  ;;  %3093 = vmatpush1.msra.mxu1 %v2769_v55  ;;  %v2748_v54 = vld [vmem:[%s5409_s18 + $0x1c8] sm:$0xff] }
  0xec   : > { %1080 = vmatmul.mubr.f32.gmra.mxu0 %v765_v56  ;;  %1337 = vmatmul.mubr.f32.gmra.mxu1 %v765_v56  ;;  %v2812_v55 = vld [vmem:[%s5409_s18 + $0x3c8] sm:$0xff]  ;;  %v2747_v56 = vld [vmem:[%s5409_s18 + $0x1c0] sm:$0xff] }
  0xed   : > { %1085 = vmatprep.mubr.f32.mxu0 %v768_v57  ;;  %1342 = vmatprep.mubr.f32.mxu1 %v768_v57  ;;  %v2811_v57 = vld [vmem:[%s5409_s18 + $0x3c0] sm:$0xff] }
  0xee   : > { %2837 = vmatprep.subr.mxu0 %v2704_v58  ;;  %3094 = vmatprep.subr.mxu1 %v2768_v59  ;;  %v787_v58 = vld [vmem:[%s8815_s0 + $0x140] sm:$0xff]  ;;  %v790_v59 = vld [vmem:[%s8815_s0 + $0x158] sm:$0xff] }
  0xef   : > { %2838 = vmatpush1.msra.mxu0 %v2703_v60  ;;  %3095 = vmatpush1.msra.mxu1 %v2767_v61  ;;  %v2746_v60 = vld [vmem:[%s5409_s18 + $0x1b8] sm:$0xff] }
  0xf0   : > { %1086 = vmatmul.mubr.f32.gmra.mxu0 %v767_v62  ;;  %1343 = vmatmul.mubr.f32.gmra.mxu1 %v767_v62  ;;  %v2810_v61 = vld [vmem:[%s5409_s18 + $0x3b8] sm:$0xff]  ;;  %v2745_v62 = vld [vmem:[%s5409_s18 + $0x1b0] sm:$0xff] }
  0xf1   : > { %1091 = vmatprep.mubr.f32.mxu0 %v770_v63  ;;  %1348 = vmatprep.mubr.f32.mxu1 %v770_v63  ;;  %v2809_v63 = vld [vmem:[%s5409_s18 + $0x3b0] sm:$0xff] }
  0xf2   : > { %2839 = vmatprep.subr.mxu0 %v2702_v0  ;;  %3096 = vmatprep.subr.mxu1 %v2766_v1  ;;  %v789_v0 = vld [vmem:[%s8815_s0 + $0x150] sm:$0xff]  ;;  %v792_v1 = vld [vmem:[%s8815_s0 + $0x168] sm:$0xff] }
  0xf3   : > { %2840 = vmatpush1.msra.mxu0 %v2701_v2  ;;  %3097 = vmatpush1.msra.mxu1 %v2765_v3  ;;  %v2744_v2 = vld [vmem:[%s5409_s18 + $0x1a8] sm:$0xff] }
  0xf4   : > { %1092 = vmatmul.mubr.f32.gmra.mxu0 %v769_v4  ;;  %1349 = vmatmul.mubr.f32.gmra.mxu1 %v769_v4  ;;  %v2808_v3 = vld [vmem:[%s5409_s18 + $0x3a8] sm:$0xff]  ;;  %v2743_v4 = vld [vmem:[%s5409_s18 + $0x1a0] sm:$0xff] }
  0xf5   : > { %1097 = vmatprep.mubr.f32.mxu0 %v772_v5  ;;  %1354 = vmatprep.mubr.f32.mxu1 %v772_v5  ;;  %v2807_v5 = vld [vmem:[%s5409_s18 + $0x3a0] sm:$0xff] }
  0xf6   : > { %2841 = vmatprep.subr.mxu0 %v2700_v6  ;;  %3098 = vmatprep.subr.mxu1 %v2764_v7  ;;  %v791_v6 = vld [vmem:[%s8815_s0 + $0x160] sm:$0xff]  ;;  %v794_v7 = vld [vmem:[%s8815_s0 + $0x178] sm:$0xff] }
  0xf7   : > { %2842 = vmatpush1.msra.mxu0 %v2699_v8  ;;  %3099 = vmatpush1.msra.mxu1 %v2763_v9  ;;  %v2742_v8 = vld [vmem:[%s5409_s18 + $0x198] sm:$0xff] }
  0xf8   : > { %1098 = vmatmul.mubr.f32.gmra.mxu0 %v771_v10  ;;  %1355 = vmatmul.mubr.f32.gmra.mxu1 %v771_v10  ;;  %v2806_v9 = vld [vmem:[%s5409_s18 + $0x398] sm:$0xff]  ;;  %v2741_v10 = vld [vmem:[%s5409_s18 + $0x190] sm:$0xff] }
  0xf9   : > { %1103 = vmatprep.mubr.f32.mxu0 %v774_v11  ;;  %1360 = vmatprep.mubr.f32.mxu1 %v774_v11  ;;  %v2805_v11 = vld [vmem:[%s5409_s18 + $0x390] sm:$0xff] }
  0xfa   : > { %2843 = vmatprep.subr.mxu0 %v2698_v12  ;;  %3100 = vmatprep.subr.mxu1 %v2762_v13  ;;  %v793_v12 = vld [vmem:[%s8815_s0 + $0x170] sm:$0xff]  ;;  %v796_v13 = vld [vmem:[%s8815_s0 + $0x188] sm:$0xff] }
  0xfb   : > { %2844 = vmatpush1.msra.mxu0 %v2697_v14  ;;  %3101 = vmatpush1.msra.mxu1 %v2761_v15  ;;  %v2740_v14 = vld [vmem:[%s5409_s18 + $0x188] sm:$0xff] }
  0xfc   : > { %1104 = vmatmul.mubr.f32.gmra.mxu0 %v773_v16  ;;  %1361 = vmatmul.mubr.f32.gmra.mxu1 %v773_v16  ;;  %v2804_v15 = vld [vmem:[%s5409_s18 + $0x388] sm:$0xff]  ;;  %v2739_v16 = vld [vmem:[%s5409_s18 + $0x180] sm:$0xff] }
  0xfd   : > { %1109 = vmatprep.mubr.f32.mxu0 %v776_v17  ;;  %1366 = vmatprep.mubr.f32.mxu1 %v776_v17  ;;  %v2803_v17 = vld [vmem:[%s5409_s18 + $0x380] sm:$0xff] }
  0xfe   : > { %2845 = vmatprep.subr.mxu0 %v2696_v18  ;;  %3102 = vmatprep.subr.mxu1 %v2760_v19  ;;  %v795_v18 = vld [vmem:[%s8815_s0 + $0x180] sm:$0xff]  ;;  %v798_v19 = vld [vmem:[%s8815_s0 + $0x198] sm:$0xff] }
  0xff   : > { %2846 = vmatpush1.msra.mxu0 %v2695_v20  ;;  %3103 = vmatpush1.msra.mxu1 %v2759_v21  ;;  %v2738_v20 = vld [vmem:[%s5409_s18 + $0x178] sm:$0xff] }
 0x100   : > { %1110 = vmatmul.mubr.f32.gmra.mxu0 %v775_v22  ;;  %1367 = vmatmul.mubr.f32.gmra.mxu1 %v775_v22  ;;  %v2802_v21 = vld [vmem:[%s5409_s18 + $0x378] sm:$0xff]  ;;  %v2737_v22 = vld [vmem:[%s5409_s18 + $0x170] sm:$0xff] }
 0x101   : > { %1115 = vmatprep.mubr.f32.mxu0 %v778_v23  ;;  %1372 = vmatprep.mubr.f32.mxu1 %v778_v23  ;;  %v2801_v23 = vld [vmem:[%s5409_s18 + $0x370] sm:$0xff] }
 0x102   : > { %2847 = vmatprep.subr.mxu0 %v2694_v24  ;;  %3104 = vmatprep.subr.mxu1 %v2758_v25  ;;  %v797_v24 = vld [vmem:[%s8815_s0 + $0x190] sm:$0xff]  ;;  %v800_v25 = vld [vmem:[%s8815_s0 + $0x1a8] sm:$0xff] }
 0x103   : > { %2848 = vmatpush1.msra.mxu0 %v2693_v26  ;;  %3105 = vmatpush1.msra.mxu1 %v2757_v27  ;;  %v2736_v26 = vld [vmem:[%s5409_s18 + $0x168] sm:$0xff] }
 0x104   : > { %1116 = vmatmul.mubr.f32.gmra.mxu0 %v777_v28  ;;  %1373 = vmatmul.mubr.f32.gmra.mxu1 %v777_v28  ;;  %v2800_v27 = vld [vmem:[%s5409_s18 + $0x368] sm:$0xff]  ;;  %v2735_v28 = vld [vmem:[%s5409_s18 + $0x160] sm:$0xff] }
 0x105   : > { %1121 = vmatprep.mubr.f32.mxu0 %v780_v29  ;;  %1378 = vmatprep.mubr.f32.mxu1 %v780_v29  ;;  %v2799_v29 = vld [vmem:[%s5409_s18 + $0x360] sm:$0xff] }
 0x106   : > { %2849 = vmatprep.subr.mxu0 %v2692_v30  ;;  %3106 = vmatprep.subr.mxu1 %v2756_v31  ;;  %v799_v30 = vld [vmem:[%s8815_s0 + $0x1a0] sm:$0xff]  ;;  %v802_v31 = vld [vmem:[%s8815_s0 + $0x1b8] sm:$0xff] }
 0x107   : > { %2850 = vmatpush1.msra.mxu0 %v2691_v32  ;;  %3107 = vmatpush1.msra.mxu1 %v2755_v33  ;;  %v2734_v32 = vld [vmem:[%s5409_s18 + $0x158] sm:$0xff] }
 0x108   : > { %1122 = vmatmul.mubr.f32.gmra.mxu0 %v779_v34  ;;  %1379 = vmatmul.mubr.f32.gmra.mxu1 %v779_v34  ;;  %v2798_v33 = vld [vmem:[%s5409_s18 + $0x358] sm:$0xff]  ;;  %v2733_v34 = vld [vmem:[%s5409_s18 + $0x150] sm:$0xff] }
 0x109   : > { %1127 = vmatprep.mubr.f32.mxu0 %v782_v35  ;;  %1384 = vmatprep.mubr.f32.mxu1 %v782_v35  ;;  %v2797_v35 = vld [vmem:[%s5409_s18 + $0x350] sm:$0xff] }
 0x10a   : > { %2851 = vmatprep.subr.mxu0 %v2754_v36  ;;  %3108 = vmatprep.subr.mxu1 %v2818_v37  ;;  %v801_v36 = vld [vmem:[%s8815_s0 + $0x1b0] sm:$0xff]  ;;  %v804_v37 = vld [vmem:[%s8815_s0 + $0x1c8] sm:$0xff] }
 0x10b   : > { %2852 = vmatpush2.msra.mxu0 %v2753_v38  ;;  %3109 = vmatpush2.msra.mxu1 %v2817_v39  ;;  %v2732_v38 = vld [vmem:[%s5409_s18 + $0x148] sm:$0xff] }
 0x10c   : > { %1128 = vmatmul.mubr.f32.gmra.mxu0 %v781_v40  ;;  %1385 = vmatmul.mubr.f32.gmra.mxu1 %v781_v40  ;;  %v2796_v39 = vld [vmem:[%s5409_s18 + $0x348] sm:$0xff]  ;;  %v2731_v40 = vld [vmem:[%s5409_s18 + $0x140] sm:$0xff] }
 0x10d   : > { %1133 = vmatprep.mubr.f32.mxu0 %v784_v41  ;;  %1390 = vmatprep.mubr.f32.mxu1 %v784_v41  ;;  %v2795_v41 = vld [vmem:[%s5409_s18 + $0x340] sm:$0xff] }
 0x10e   : > { %2853 = vmatprep.subr.mxu0 %v2752_v42  ;;  %3110 = vmatprep.subr.mxu1 %v2816_v43  ;;  %v803_v42 = vld [vmem:[%s8815_s0 + $0x1c0] sm:$0xff]  ;;  %v806_v43 = vld [vmem:[%s8815_s0 + $0x1d8] sm:$0xff] }
 0x10f   : > { %2854 = vmatpush2.msra.mxu0 %v2751_v44  ;;  %3111 = vmatpush2.msra.mxu1 %v2815_v45  ;;  %v2730_v44 = vld [vmem:[%s5409_s18 + $0x138] sm:$0xff] }
 0x110   : > { %1134 = vmatmul.mubr.f32.gmra.mxu0 %v783_v46  ;;  %1391 = vmatmul.mubr.f32.gmra.mxu1 %v783_v46  ;;  %v2794_v45 = vld [vmem:[%s5409_s18 + $0x338] sm:$0xff]  ;;  %v2729_v46 = vld [vmem:[%s5409_s18 + $0x130] sm:$0xff] }
 0x111   : > { %1139 = vmatprep.mubr.f32.mxu0 %v786_v47  ;;  %1396 = vmatprep.mubr.f32.mxu1 %v786_v47  ;;  %v2793_v47 = vld [vmem:[%s5409_s18 + $0x330] sm:$0xff] }
 0x112   : > { %2855 = vmatprep.subr.mxu0 %v2750_v48  ;;  %3112 = vmatprep.subr.mxu1 %v2814_v49  ;;  %v805_v48 = vld [vmem:[%s8815_s0 + $0x1d0] sm:$0xff]  ;;  %v808_v49 = vld [vmem:[%s8815_s0 + $0x1e8] sm:$0xff] }
 0x113   : > { %2856 = vmatpush2.msra.mxu0 %v2749_v50  ;;  %3113 = vmatpush2.msra.mxu1 %v2813_v51  ;;  %v2728_v50 = vld [vmem:[%s5409_s18 + $0x128] sm:$0xff] }
 0x114   : > { %1140 = vmatmul.mubr.f32.gmra.mxu0 %v785_v52  ;;  %1397 = vmatmul.mubr.f32.gmra.mxu1 %v785_v52  ;;  %v2792_v51 = vld [vmem:[%s5409_s18 + $0x328] sm:$0xff]  ;;  %v2727_v52 = vld [vmem:[%s5409_s18 + $0x120] sm:$0xff] }
 0x115   : > { %1145 = vmatprep.mubr.f32.mxu0 %v788_v53  ;;  %1402 = vmatprep.mubr.f32.mxu1 %v788_v53  ;;  %v2791_v53 = vld [vmem:[%s5409_s18 + $0x320] sm:$0xff] }
 0x116   : > { %2857 = vmatprep.subr.mxu0 %v2748_v54  ;;  %3114 = vmatprep.subr.mxu1 %v2812_v55  ;;  %v807_v54 = vld [vmem:[%s8815_s0 + $0x1e0] sm:$0xff]  ;;  %v810_v55 = vld [vmem:[%s8815_s0 + $0x1f8] sm:$0xff] }
 0x117   : > { %2858 = vmatpush2.msra.mxu0 %v2747_v56  ;;  %3115 = vmatpush2.msra.mxu1 %v2811_v57  ;;  %v2726_v56 = vld [vmem:[%s5409_s18 + $0x118] sm:$0xff] }
 0x118   : > { %1146 = vmatmul.mubr.f32.gmra.mxu0 %v787_v58  ;;  %1403 = vmatmul.mubr.f32.gmra.mxu1 %v787_v58  ;;  %v2790_v57 = vld [vmem:[%s5409_s18 + $0x318] sm:$0xff]  ;;  %v2725_v58 = vld [vmem:[%s5409_s18 + $0x110] sm:$0xff] }
 0x119   : > { %1151 = vmatprep.mubr.f32.mxu0 %v790_v59  ;;  %1408 = vmatprep.mubr.f32.mxu1 %v790_v59  ;;  %v2789_v59 = vld [vmem:[%s5409_s18 + $0x310] sm:$0xff] }
 0x11a   : > { %2859 = vmatprep.subr.mxu0 %v2746_v60  ;;  %3116 = vmatprep.subr.mxu1 %v2810_v61  ;;  %v809_v60 = vld [vmem:[%s8815_s0 + $0x1f0] sm:$0xff]  ;;  %v2724_v61 = vld [vmem:[%s5409_s18 + $0x108] sm:$0xff] }
 0x11b   : > { %2860 = vmatpush2.msra.mxu0 %v2745_v62  ;;  %3117 = vmatpush2.msra.mxu1 %v2809_v63  ;;  %v2788_v62 = vld [vmem:[%s5409_s18 + $0x308] sm:$0xff]  ;;  %v2723_v63 = vld [vmem:[%s5409_s18 + $0x100] sm:$0xff] }
 0x11c   : > { %1152 = vmatmul.mubr.f32.gmra.mxu0 %v789_v0  ;;  %1409 = vmatmul.mubr.f32.gmra.mxu1 %v789_v0  ;;  %v2787_v0 = vld [vmem:[%s5409_s18 + $0x300] sm:$0xff] }
 0x11d   : > { %1157 = vmatprep.mubr.f32.mxu0 %v792_v1  ;;  %1414 = vmatprep.mubr.f32.mxu1 %v792_v1  ;;  %v941_v1 = vlaneseq }
 0x11e   : > { %2861 = vmatprep.subr.mxu0 %v2744_v2  ;;  %3118 = vmatprep.subr.mxu1 %v2808_v3 }
 0x11f   : > { %2862 = vmatpush2.msra.mxu0 %v2743_v4  ;;  %3119 = vmatpush2.msra.mxu1 %v2807_v5  ;;  %v942_v2 = vshrl.u32 %v941_v1, 7  ;;  %v939_v5 = vld [vmem:[%s662_s13] sm:$0xf] }
 0x120   : > { %1158 = vmatmul.mubr.f32.gmra.mxu0 %v791_v6  ;;  %1415 = vmatmul.mubr.f32.gmra.mxu1 %v791_v6 }
 0x121   : > { %1163 = vmatprep.mubr.f32.mxu0 %v794_v7  ;;  %1420 = vmatprep.mubr.f32.mxu1 %v794_v7  ;;  %v5926_v3 = vsub.s32 0, %v942_v2  ;;  %v951_v4 = vsub.s32 2, %v942_v2  ;;  %v5933_v6 = vsub.s32 1, %v942_v2  ;;  %v955_v7 = vsub.s32 3, %v942_v2 }
 0x122   : > { %2863 = vmatprep.subr.mxu0 %v2742_v8  ;;  %3120 = vmatprep.subr.mxu1 %v2806_v9 }
 0x123   : > { %2864 = vmatpush2.msra.mxu0 %v2741_v10  ;;  %3121 = vmatpush2.msra.mxu1 %v2805_v11  ;;  %8962 = vst [vmem:[#allocation7_spill] sm:$0xff] %v5926_v3  ;;  %8963 = vst [vmem:[#allocation8_spill] sm:$0xff] %v5933_v6  ;;  %v5936_v8 = vrot.slane %v939_v5, %v5926_v3  ;;  %v5938_v9 = vrot.slane %v939_v5, %v951_v4 }
 0x124   : > { %1164 = vmatmul.mubr.f32.gmra.mxu0 %v793_v12  ;;  %1421 = vmatmul.mubr.f32.gmra.mxu1 %v793_v12  ;;  %v5941_v12 = vrot.slane %v939_v5, %v5933_v6 }
 0x125   : > { %1169 = vmatprep.mubr.f32.mxu0 %v796_v13  ;;  %1426 = vmatprep.mubr.f32.mxu1 %v796_v13  ;;  %v5943_v13 = vrot.slane %v939_v5, %v955_v7 }
 0x126   : > { %2865 = vmatprep.subr.mxu0 %v2740_v14  ;;  %3122 = vmatprep.subr.mxu1 %v2804_v15 }
 0x127   : > { %2866 = vmatpush2.msra.mxu0 %v2739_v16  ;;  %3123 = vmatpush2.msra.mxu1 %v2803_v17 }
 0x128   : > { %1170 = vmatmul.mubr.f32.gmra.mxu0 %v795_v18  ;;  %1427 = vmatmul.mubr.f32.gmra.mxu1 %v795_v18 }
 0x129   : > { %1175 = vmatprep.mubr.f32.mxu0 %v798_v19  ;;  %1432 = vmatprep.mubr.f32.mxu1 %v798_v19 }
 0x12a   : > { %2867 = vmatprep.subr.mxu0 %v2738_v20  ;;  %3124 = vmatprep.subr.mxu1 %v2802_v21 }
 0x12b   : > { %2868 = vmatpush2.msra.mxu0 %v2737_v22  ;;  %3125 = vmatpush2.msra.mxu1 %v2801_v23 }
 0x12c   : > { %1176 = vmatmul.mubr.f32.gmra.mxu0 %v797_v24  ;;  %1433 = vmatmul.mubr.f32.gmra.mxu1 %v797_v24 }
 0x12d   : > { %1181 = vmatprep.mubr.f32.mxu0 %v800_v25  ;;  %1438 = vmatprep.mubr.f32.mxu1 %v800_v25 }
 0x12e   : > { %2869 = vmatprep.subr.mxu0 %v2736_v26  ;;  %3126 = vmatprep.subr.mxu1 %v2800_v27 }
 0x12f   : > { %2870 = vmatpush2.msra.mxu0 %v2735_v28  ;;  %3127 = vmatpush2.msra.mxu1 %v2799_v29 }
 0x130   : > { %1182 = vmatmul.mubr.f32.gmra.mxu0 %v799_v30  ;;  %1439 = vmatmul.mubr.f32.gmra.mxu1 %v799_v30 }
 0x131   : > { %1187 = vmatprep.mubr.f32.mxu0 %v802_v31  ;;  %1444 = vmatprep.mubr.f32.mxu1 %v802_v31 }
 0x132   : > { %2871 = vmatprep.subr.mxu0 %v2734_v32  ;;  %3128 = vmatprep.subr.mxu1 %v2798_v33 }
 0x133   : > { %2872 = vmatpush2.msra.mxu0 %v2733_v34  ;;  %3129 = vmatpush2.msra.mxu1 %v2797_v35 }
 0x134   : > { %1188 = vmatmul.mubr.f32.gmra.mxu0 %v801_v36  ;;  %1445 = vmatmul.mubr.f32.gmra.mxu1 %v801_v36 }
 0x135   : > { %1193 = vmatprep.mubr.f32.mxu0 %v804_v37  ;;  %1450 = vmatprep.mubr.f32.mxu1 %v804_v37 }
 0x136   : > { %2873 = vmatprep.subr.mxu0 %v2732_v38  ;;  %3130 = vmatprep.subr.mxu1 %v2796_v39 }
 0x137   : > { %2874 = vmatpush2.msra.mxu0 %v2731_v40  ;;  %3131 = vmatpush2.msra.mxu1 %v2795_v41 }
 0x138   : > { %1194 = vmatmul.mubr.f32.gmra.mxu0 %v803_v42  ;;  %1451 = vmatmul.mubr.f32.gmra.mxu1 %v803_v42 }
 0x139   : > { %1199 = vmatprep.mubr.f32.mxu0 %v806_v43  ;;  %1456 = vmatprep.mubr.f32.mxu1 %v806_v43 }
 0x13a   : > { %2875 = vmatprep.subr.mxu0 %v2730_v44  ;;  %3132 = vmatprep.subr.mxu1 %v2794_v45 }
 0x13b   : > { %2876 = vmatpush2.msra.mxu0 %v2729_v46  ;;  %3133 = vmatpush2.msra.mxu1 %v2793_v47 }
 0x13c   : > { %1200 = vmatmul.mubr.f32.gmra.mxu0 %v805_v48  ;;  %1457 = vmatmul.mubr.f32.gmra.mxu1 %v805_v48 }
 0x13d   : > { %1205 = vmatprep.mubr.f32.mxu0 %v808_v49  ;;  %1462 = vmatprep.mubr.f32.mxu1 %v808_v49 }
 0x13e   : > { %2877 = vmatprep.subr.mxu0 %v2728_v50  ;;  %3134 = vmatprep.subr.mxu1 %v2792_v51 }
 0x13f   : > { %2878 = vmatpush2.msra.mxu0 %v2727_v52  ;;  %3135 = vmatpush2.msra.mxu1 %v2791_v53 }
 0x140   : > { %1206 = vmatmul.mubr.f32.gmra.mxu0 %v807_v54  ;;  %1463 = vmatmul.mubr.f32.gmra.mxu1 %v807_v54 }
 0x141   : > { %1211 = vmatprep.mubr.f32.mxu0 %v810_v55  ;;  %1468 = vmatprep.mubr.f32.mxu1 %v810_v55 }
 0x142   : > { %2879 = vmatprep.subr.mxu0 %v2726_v56  ;;  %3136 = vmatprep.subr.mxu1 %v2790_v57 }
 0x143   : > { %2880 = vmatpush2.msra.mxu0 %v2725_v58  ;;  %3137 = vmatpush2.msra.mxu1 %v2789_v59 }
 0x144   : > { %1212 = vmatmul.mubr.f32.gmra.mxu0 %v809_v60  ;;  %1469 = vmatmul.mubr.f32.gmra.mxu1 %v809_v60 }
 0x145   : > { %2881 = vmatprep.subr.mxu0 %v2724_v61  ;;  %3138 = vmatprep.subr.mxu1 %v2788_v62 }
 0x146   : > { %2882 = vmatpush2.msra.mxu0 %v2723_v63  ;;  %3139 = vmatpush2.msra.mxu1 %v2787_v0 }
 0x188   : > { %v1027_v10 = vpop.f32.mrf.mxu0  ;;  %v1284_v11 = vpop.f32.mrf.mxu1 }
 0x189   : > { %v1028_v14 = vadd.f32 %v1027_v10, %v5936_v8  ;;  %v1285_v15 = vadd.f32 %v1284_v11, %v5938_v9 }
 0x18a   : > { %v1029_v16 = vpop.f32.mrf.mxu0  ;;  %v1286_v17 = vpop.f32.mrf.mxu1 }
 0x18b   : > { %v1603_v18 = vmul.f32 0.044715, %v1028_v14  ;;  %v1605_v19 = vmul.f32 0.044715, %v1285_v15  ;;  %v5948_v20 = vadd.f32 %v1029_v16, %v5941_v12  ;;  %v5951_v21 = vadd.f32 %v1286_v17, %v5943_v13 }
 0x18c   : > { %v1033_v22 = vpop.f32.mrf.mxu0  ;;  %v1290_v23 = vpop.f32.mrf.mxu1  ;;  %v5959_v28 = vmul.f32 0.5, %v1028_v14  ;;  %v5961_v32 = vmul.f32 0.5, %v1285_v15 }
 0x18d   : > { %v1731_v24 = vmul.f32 %v1603_v18, %v1028_v14  ;;  %v1733_v25 = vmul.f32 %v1605_v19, %v1285_v15  ;;  %v5954_v26 = vadd.f32 %v1033_v22, %v5936_v8  ;;  %v5957_v27 = vadd.f32 %v1290_v23, %v5938_v9 }
 0x18e   : > { %v1035_v29 = vpop.f32.mrf.mxu0  ;;  %v1292_v30 = vpop.f32.mrf.mxu1  ;;  %v1604_v34 = vmul.f32 0.044715, %v5948_v20  ;;  %v1606_v35 = vmul.f32 0.044715, %v5951_v21  ;;  %v5972_v40 = vmul.f32 0.5, %v5948_v20  ;;  %v5994_v60 = vmul.f32 0.5, %v5951_v21 }
 0x18f   : > { %v1859_v31 = vmul.f32 %v1731_v24, %v1028_v14  ;;  %v1861_v33 = vmul.f32 %v1733_v25, %v1285_v15  ;;  %v5966_v36 = vadd.f32 %v1035_v29, %v5941_v12  ;;  %v5969_v37 = vadd.f32 %v1292_v30, %v5943_v13 }
 0x190   : > { %v1039_v38 = vpop.f32.mrf.mxu0  ;;  %v1296_v39 = vpop.f32.mrf.mxu1  ;;  %v1607_v43 = vmul.f32 0.044715, %v5954_v26  ;;  %v1609_v44 = vmul.f32 0.044715, %v5957_v27  ;;  %v1732_v55 = vmul.f32 %v1604_v34, %v5948_v20  ;;  %v1734_v56 = vmul.f32 %v1606_v35, %v5951_v21 }
 0x191   : > { %v1987_v41 = vadd.f32 %v1859_v31, %v1028_v14  ;;  %v1989_v42 = vadd.f32 %v1861_v33, %v1285_v15  ;;  %v1608_v45 = vmul.f32 0.044715, %v5966_v36  ;;  %v1610_v46 = vmul.f32 0.044715, %v5969_v37 }
 0x192   : > { %v5979_v47 = vadd.f32 %v1039_v38, %v5936_v8  ;;  %v5982_v48 = vadd.f32 %v1296_v39, %v5938_v9  ;;  %v1041_v49 = vpop.f32.mrf.mxu0  ;;  %v1298_v50 = vpop.f32.mrf.mxu1  ;;  %v5997_v61 = vmul.f32 %v1607_v43, %v5954_v26  ;;  %v6000_v62 = vmul.f32 %v1609_v44, %v5957_v27 }
 0x193   : > { %v2115_v51 = vmul.f32 0.7978846, %v1987_v41  ;;  %v2117_v52 = vmul.f32 0.7978846, %v1989_v42  ;;  %v5985_v53 = vadd.f32 %v1041_v49, %v5941_v12  ;;  %v5988_v54 = vadd.f32 %v1298_v50, %v5943_v13 }
 0x194   : > { %v1611_v57 = vmul.f32 0.044715, %v5979_v47  ;;  %v1045_v58 = vpop.f32.mrf.mxu0  ;;  %v1302_v59 = vpop.f32.mrf.mxu1  ;;  %v1736_v0 = vmul.f32 %v1608_v45, %v5966_v36  ;;  %v1613_v1 = vmul.f32 0.044715, %v5982_v48  ;;  %v6011_v7 = vmul.f32 %v1610_v46, %v5969_v37 }
 0x195   : > { %4654 = vtanh.f32 %v2115_v51  ;;  %v6003_v63 = vadd.f32 %v1045_v58, %v5936_v8  ;;  %v6008_v2 = vadd.f32 %v1302_v59, %v5938_v9  ;;  %v1612_v10 = vmul.f32 0.044715, %v5985_v53 }
 0x196   : > { %4656 = vtanh.f32 %v2117_v52  ;;  %v1047_v4 = vpop.f32.mrf.mxu0  ;;  %v1304_v5 = vpop.f32.mrf.mxu1  ;;  %v1614_v11 = vmul.f32 0.044715, %v5988_v54  ;;  %v6019_v15 = vmul.f32 %v1611_v57, %v5979_v47  ;;  %v1860_v19 = vmul.f32 %v1732_v55, %v5948_v20 }
 0x197   : > { %v6016_v14 = vadd.f32 %v1047_v4, %v5941_v12  ;;  %v6022_v16 = vadd.f32 %v1304_v5, %v5943_v13  ;;  %v1862_v22 = vmul.f32 %v1734_v56, %v5951_v21  ;;  %v1615_v23 = vmul.f32 0.044715, %v6003_v63 }
 0x198   : > { %v1051_v17 = vpop.f32.mrf.mxu0  ;;  %v1308_v18 = vpop.f32.mrf.mxu1  ;;  %v1617_v24 = vmul.f32 0.044715, %v6008_v2  ;;  %v6035_v30 = vmul.f32 %v1613_v1, %v5982_v48  ;;  %v1988_v35 = vadd.f32 %v1860_v19, %v5948_v20  ;;  %v6041_v39 = vmul.f32 %v1612_v10, %v5985_v53 }
 0x199   : > { %v6029_v25 = vadd.f32 %v1051_v17, %v5936_v8  ;;  %v6032_v29 = vadd.f32 %v1308_v18, %v5938_v9  ;;  %v1616_v31 = vmul.f32 0.044715, %v6016_v14  ;;  %v1990_v38 = vadd.f32 %v1862_v22, %v5951_v21 }
 0x19a   : > { %v1053_v33 = vpop.f32.mrf.mxu0  ;;  %v1310_v34 = vpop.f32.mrf.mxu1  ;;  %v6044_v41 = vmul.f32 %v1614_v11, %v5988_v54  ;;  %v1618_v42 = vmul.f32 0.044715, %v6022_v16  ;;  %v2116_v49 = vmul.f32 0.7978846, %v1988_v35  ;;  %v6055_v50 = vmul.f32 %v1615_v23, %v6003_v63 }
 0x19b   : > { %8964 = vst [vmem:[#allocation9_spill] sm:$0xff] %v6032_v29  ;;  %v6048_v43 = vadd.f32 %v1053_v33, %v5941_v12  ;;  %v1619_v44 = vmul.f32 0.044715, %v6029_v25  ;;  %v6052_v45 = vadd.f32 %v1310_v34, %v5943_v13  ;;  %v2118_v21 = vmul.f32 0.7978846, %v1990_v38 }
 0x19c   : > { %v1057_v46 = vpop.f32.mrf.mxu0  ;;  %v1314_v20 = vpop.f32.mrf.mxu1  ;;  %v6058_v51 = vmul.f32 %v1617_v24, %v6008_v2  ;;  %v1621_v52 = vmul.f32 0.044715, %v6032_v29  ;;  %v6065_v56 = vmul.f32 %v1616_v31, %v6016_v14  ;;  %4658 = vtanh.f32 %v2116_v49 }
 0x19d   : > { %v6062_v55 = vadd.f32 %v1057_v46, %v5936_v8  ;;  %v1620_v57 = vmul.f32 0.044715, %v6048_v43  ;;  %v6069_v58 = vadd.f32 %v1314_v20, %v5938_v9  ;;  %v1622_v4 = vmul.f32 0.044715, %v6052_v45 }
 0x19e   : > { %v1059_v59 = vpop.f32.mrf.mxu0  ;;  %v1316_v1 = vpop.f32.mrf.mxu1  ;;  %v6080_v17 = vmul.f32 %v1618_v42, %v6022_v16  ;;  %v6083_v18 = vmul.f32 %v1619_v44, %v6029_v25  ;;  %4660 = vtanh.f32 %v2118_v21  ;;  %v1864_v23 = vmul.f32 %v1736_v0, %v5966_v36 }
 0x19f   : > { %8965 = vst [vmem:[#allocation10_spill] sm:$0xff] %v6062_v55  ;;  %8966 = vst [vmem:[#allocation11_spill] sm:$0xff] %v6069_v58  ;;  %v1623_v5 = vmul.f32 0.044715, %v6062_v55  ;;  %v6074_v10 = vadd.f32 %v1059_v59, %v5941_v12  ;;  %v6077_v11 = vadd.f32 %v1316_v1, %v5943_v13  ;;  %v6087_v24 = vmul.f32 %v1621_v52, %v6032_v29 }
 0x1a0   : > { %v1063_v19 = vpop.f32.mrf.mxu0  ;;  %v1320_v22 = vpop.f32.mrf.mxu1  ;;  %v1625_v31 = vmul.f32 0.044715, %v6069_v58  ;;  %v6094_v34 = vmul.f32 0.5, %v5966_v36  ;;  %v6097_v38 = vmul.f32 %v1620_v57, %v6048_v43  ;;  %v6105_v21 = vmul.f32 %v1622_v4, %v6052_v45 }
 0x1a1   : > { %8967 = vst [vmem:[#allocation12_spill] sm:$0xff] %v6074_v10  ;;  %8968 = vst [vmem:[#allocation13_spill] sm:$0xff] %v6077_v11  ;;  %v6091_v33 = vadd.f32 %v1063_v19, %v5936_v8  ;;  %v1624_v42 = vmul.f32 0.044715, %v6074_v10  ;;  %v1626_v44 = vmul.f32 0.044715, %v6077_v11  ;;  %v6102_v0 = vadd.f32 %v1320_v22, %v5938_v9 }
 0x1a2   : > { %8969 = vst [vmem:[#allocation14_spill] sm:$0xff] %v6087_v24  ;;  %v4655_v35 = vpop.eup %4654  ;;  %v1065_v46 = vpop.f32.mrf.mxu0  ;;  %v6108_v52 = vmul.f32 %v1623_v5, %v6062_v55  ;;  %v1992_v24 = vadd.f32 %v1864_v23, %v5966_v36  ;;  %v6120_v4 = vmul.f32 %v1625_v31, %v6069_v58  ;;  %v6136_v23 = vmul.f32 0.5, %v5969_v37 }
 0x1a3   : > { %8970 = vst [vmem:[#allocation15_spill] sm:$0xff] %v6091_v33  ;;  %8971 = vst [vmem:[#allocation16_spill] sm:$0xff] %v6102_v0  ;;  %v1322_v20 = vpop.f32.mrf.mxu1  ;;  %v4657_v49 = vpop.eup %4656  ;;  %v1627_v59 = vmul.f32 0.044715, %v6091_v33  ;;  %v6112_v57 = vadd.f32 %v1065_v46, %v5941_v12  ;;  %v1629_v1 = vmul.f32 0.044715, %v6102_v0  ;;  %v6127_v55 = vmul.f32 %v1624_v42, %v6074_v10 }
 0x1a4   : > { %8972 = vst [vmem:[#allocation17_spill] sm:$0xff] %v6108_v52  ;;  %v6116_v19 = vadd.f32 %v1322_v20, %v5943_v13  ;;  %v1069_v22 = vpop.f32.mrf.mxu0  ;;  %v2371_v3 = vadd.f32 1.0, %v4655_v35  ;;  %8975 = vst [vmem:[#allocation20_spill] sm:$0xff] %v6120_v4  ;;  %v2373_v46 = vadd.f32 1.0, %v4657_v49  ;;  %v6130_v20 = vmul.f32 %v1626_v44, %v6077_v11 }
 0x1a5   : > { %8973 = vst [vmem:[#allocation18_spill] sm:$0xff] %v6112_v57  ;;  %v1326_v6 = vpop.f32.mrf.mxu1  ;;  %v1628_v5 = vmul.f32 0.044715, %v6112_v57  ;;  %v6124_v52 = vadd.f32 %v1069_v22, %v5936_v8  ;;  %8977 = vst [vmem:[#allocation22_spill] sm:$0xff] %v6127_v55  ;;  %v6139_v31 = vmul.f32 %v1627_v59, %v6091_v33  ;;  %v6142_v22 = vmul.f32 %v1629_v1, %v6102_v0 }
 0x1a6   : > { %8974 = vst [vmem:[#allocation19_spill] sm:$0xff] %v6116_v19  ;;  %8978 = vst [vmem:[#allocation23_spill] sm:$0xff] %v6130_v20  ;;  %v6133_v29 = vadd.f32 %v1326_v6, %v5938_v9  ;;  %v1071_v35 = vpop.f32.mrf.mxu0  ;;  %v1630_v42 = vmul.f32 0.044715, %v6116_v19  ;;  %v2499_v58 = vmul.f32 %v2371_v3, %v5959_v28  ;;  %v2120_v20 = vmul.f32 0.7978846, %v1992_v24 }
 0x1a7   : > { %8976 = vst [vmem:[#allocation21_spill] sm:$0xff] %v6124_v52  ;;  %v1328_v36 = vpop.f32.mrf.mxu1  ;;  %8979 = vst [vmem:[#allocation24_spill] sm:$0xff] %v6139_v31  ;;  %v6146_v49 = vadd.f32 %v1071_v35, %v5941_v12  ;;  %v1866_v59 = vmul.f32 %v6011_v7, %v5969_v37  ;;  %v6155_v31 = vmul.f32 %v1628_v5, %v6112_v57  ;;  %v1631_v1 = vmul.f32 0.044715, %v6124_v52 }
 0x1a8   : > { %8980 = vst [vmem:[#allocation25_spill] sm:$0xff] %v6142_v22  ;;  %v6149_v44 = vadd.f32 %v1328_v36, %v5943_v13  ;;  %v1075_v6 = vpop.f32.mrf.mxu0  ;;  %v2501_v35 = vmul.f32 %v2373_v46, %v5961_v32  ;;  %v1633_v36 = vmul.f32 0.044715, %v6133_v29  ;;  %4662 = vtanh.f32 %v2120_v20 }
 0x1a9   : > { %v1332_v4 = vpop.f32.mrf.mxu1  ;;  %8981 = vst [vmem:[#allocation26_spill] sm:$0xff] %v6155_v31  ;;  %v6159_v22 = vadd.f32 %v1075_v6, %v5936_v8  ;;  %v1994_v7 = vadd.f32 %v1866_v59, %v5969_v37  ;;  %v4659_v24 = vpop.eup %4658  ;;  %v1632_v5 = vmul.f32 0.044715, %v6146_v49  ;;  %v6176_v46 = vmul.f32 %v1630_v42, %v6116_v19 }
 0x1aa   : > { %v6164_v0 = vadd.f32 %v1332_v4, %v5938_v9  ;;  %v1077_v3 = vpop.f32.mrf.mxu0  ;;  %v1634_v33 = vmul.f32 0.044715, %v6149_v44  ;;  %v2372_v31 = vadd.f32 1.0, %v4659_v24  ;;  %v6180_v11 = vmul.f32 %v1631_v1, %v6124_v52 }
 0x1ab   : > { %v1334_v28 = vpop.f32.mrf.mxu1  ;;  %v6170_v6 = vadd.f32 %v1077_v3, %v5941_v12  ;;  %8982 = vst [vmem:[#allocation27_spill] sm:$0xff] %v6176_v46  ;;  %v1635_v4 = vmul.f32 0.044715, %v6159_v22  ;;  %v2122_v37 = vmul.f32 0.7978846, %v1994_v7  ;;  %v4661_v59 = vpop.eup %4660  ;;  %v6193_v1 = vmul.f32 %v1633_v36, %v6133_v29 }
 0x1ac   : > { %v6173_v32 = vadd.f32 %v1334_v28, %v5943_v13  ;;  %v1081_v20 = vpop.f32.mrf.mxu0  ;;  %8983 = vst [vmem:[#allocation28_spill] sm:$0xff] %v6180_v11  ;;  %v1637_v55 = vmul.f32 0.044715, %v6164_v0  ;;  %v2500_v42 = vmul.f32 %v2372_v31, %v5972_v40  ;;  %v2374_v46 = vadd.f32 1.0, %v4661_v59 }
 0x1ad   : > { %v1338_v57 = vpop.f32.mrf.mxu1  ;;  %v1636_v3 = vmul.f32 0.044715, %v6170_v6  ;;  %v6185_v28 = vadd.f32 %v1081_v20, %v5936_v8  ;;  %v6196_v11 = vmul.f32 %v1632_v5, %v6146_v49  ;;  %4664 = vtanh.f32 %v2122_v37 }
 0x1ae   : > { %v1638_v19 = vmul.f32 0.044715, %v6173_v32  ;;  %v6190_v24 = vadd.f32 %v1338_v57, %v5938_v9  ;;  %v1083_v7 = vpop.f32.mrf.mxu0  ;;  %v6200_v20 = vmul.f32 %v1634_v33, %v6149_v44  ;;  %v6203_v40 = vmul.f32 %v1635_v4, %v6159_v22  ;;  %2883 = vmatprep.mubr.f32.mxu0 %v2500_v42 }
 0x1af   : > { %8984 = vst [vmem:[#allocation29_spill] sm:$0xff] %v6185_v28  ;;  %v1340_v10 = vpop.f32.mrf.mxu1  ;;  %v1639_v52 = vmul.f32 0.044715, %v6185_v28  ;;  %v2502_v57 = vmul.f32 %v2374_v46, %v5994_v60  ;;  %v6207_v31 = vadd.f32 %v1083_v7, %v5941_v12  ;;  %v6210_v59 = vmul.f32 %v1637_v55, %v6164_v0  ;;  %2884 = vmatmul.mubr.f32.vlgmr.msra.gmra.mxu0 %v2499_v58 }
 0x1b0   : > { %8985 = vst [vmem:[#allocation30_spill] sm:$0xff] %v6190_v24  ;;  %v1087_v36 = vpop.f32.mrf.mxu0  ;;  %v1641_v5 = vmul.f32 0.044715, %v6190_v24  ;;  %v6214_v37 = vadd.f32 %v1340_v10, %v5943_v13  ;;  %v1863_v33 = vmul.f32 %v5997_v61, %v5954_v26  ;;  %v6219_v60 = vmul.f32 %v1636_v3, %v6170_v6 }
 0x1b1   : > { %8986 = vst [vmem:[#allocation31_spill] sm:$0xff] %v6210_v59  ;;  %v1344_v4 = vpop.f32.mrf.mxu1  ;;  %3140 = vmatprep.mubr.f32.mxu1 %v2502_v57  ;;  %v6222_v46 = vmul.f32 %v1638_v19, %v6173_v32  ;;  %v6225_v55 = vmul.f32 %v1639_v52, %v6185_v28  ;;  %v1865_v58 = vmul.f32 %v6000_v62, %v5957_v27  ;;  %v1640_v10 = vmul.f32 0.044715, %v6207_v31 }
 0x1b2   : > { %3141 = vmatmul.mubr.f32.vlgmr.msra.gmra.mxu1 %v2501_v35  ;;  %v6231_v42 = vmul.f32 0.5, %v5954_v26  ;;  %v1991_v61 = vadd.f32 %v1863_v33, %v5954_v26  ;;  %v6235_v3 = vadd.f32 %v1087_v36, %v5936_v8  ;;  %v1089_v7 = vpop.f32.mrf.mxu0  ;;  %v6238_v19 = vmul.f32 0.5, %v5957_v27 }
 0x1b3   : > { %8987 = vst [vmem:[#allocation32_spill] sm:$0xff] %v6225_v55  ;;  %v1993_v52 = vadd.f32 %v1865_v58, %v5957_v27  ;;  %v6242_v57 = vadd.f32 %v1344_v4, %v5938_v9  ;;  %v1868_v62 = vmul.f32 %v6041_v39, %v5985_v53  ;;  %v6247_v35 = vmul.f32 %v1641_v5, %v6190_v24  ;;  %v1346_v55 = vpop.f32.mrf.mxu1 }
 0x1b4   : > { %v1642_v26 = vmul.f32 0.044715, %v6214_v37  ;;  %v2119_v33 = vmul.f32 0.7978846, %v1991_v61  ;;  %v1870_v36 = vmul.f32 %v6044_v41, %v5988_v54  ;;  %v6253_v59 = vmul.f32 0.5, %v5985_v53 }
 0x1b5   : > { %8988 = vst [vmem:[#allocation33_spill] sm:$0xff] %v6242_v57  ;;  %8989 = vst [vmem:[#allocation34_spill] sm:$0xff] %v6247_v35  ;;  %v2121_v28 = vmul.f32 0.7978846, %v1993_v52  ;;  %v1996_v27 = vadd.f32 %v1868_v62, %v5985_v53  ;;  %v6257_v4 = vadd.f32 %v1089_v7, %v5941_v12  ;;  %v4663_v39 = vpop.eup %4662  ;;  %v6260_v5 = vmul.f32 %v1640_v10, %v6207_v31  ;;  %v1093_v62 = vpop.f32.mrf.mxu0 }
 0x1b6   : > { %4666 = vtanh.f32 %v2119_v33  ;;  %v1643_v58 = vmul.f32 0.044715, %v6235_v3  ;;  %v1998_v61 = vadd.f32 %v1870_v36, %v5988_v54  ;;  %v2376_v41 = vadd.f32 1.0, %v4663_v39  ;;  %v1350_v33 = vpop.f32.mrf.mxu1 }
 0x1b7   : > { %8990 = vst [vmem:[#allocation35_spill] sm:$0xff] %v6260_v5  ;;  %4668 = vtanh.f32 %v2121_v28  ;;  %v1645_v52 = vmul.f32 0.044715, %v6242_v57  ;;  %v2124_v35 = vmul.f32 0.7978846, %v1996_v27  ;;  %v6266_v24 = vmul.f32 %v1642_v26, %v6214_v37 }
 0x1b8   : > { %v2126_v53 = vmul.f32 0.7978846, %v1998_v61  ;;  %v6269_v7 = vadd.f32 %v1346_v55, %v5943_v13  ;;  %v1867_v10 = vmul.f32 %v6019_v15, %v5979_v47  ;;  %v2504_v5 = vmul.f32 %v2376_v41, %v6094_v34 }
 0x1b9   : > { %4670 = vtanh.f32 %v2124_v35  ;;  %v6275_v28 = vmul.f32 0.5, %v5988_v54  ;;  %v1644_v36 = vmul.f32 0.044715, %v6257_v4  ;;  %v6279_v26 = vmul.f32 %v1643_v58, %v6235_v3 }
 0x1ba   : > { %4672 = vtanh.f32 %v2126_v53  ;;  %v1995_v55 = vadd.f32 %v1867_v10, %v5979_v47  ;;  %v1869_v27 = vmul.f32 %v6035_v30, %v5982_v48  ;;  %v4665_v15 = vpop.eup %4664  ;;  %2889 = vmatprep.mubr.f32.mxu0 %v2504_v5  ;;  %v6285_v39 = vmul.f32 %v1645_v52, %v6242_v57  ;;  %v1095_v53 = vpop.f32.mrf.mxu0 }
 0x1bb   : > { %v6288_v34 = vadd.f32 %v1093_v62, %v5936_v8  ;;  %v6291_v54 = vadd.f32 %v1350_v33, %v5938_v9  ;;  %v1872_v35 = vmul.f32 %v6065_v56, %v6016_v14  ;;  %v2378_v58 = vadd.f32 1.0, %v4665_v15  ;;  %v1352_v15 = vpop.f32.mrf.mxu1 }
 0x1bc   : > { %8991 = vst [vmem:[#allocation36_spill] sm:$0xff] %v6285_v39  ;;  %v1646_v61 = vmul.f32 0.044715, %v6269_v7  ;;  %v2123_v41 = vmul.f32 0.7978846, %v1995_v55  ;;  %v1997_v30 = vadd.f32 %v1869_v27, %v5982_v48  ;;  %v6298_v5 = vmul.f32 %v1644_v36, %v6257_v4 }
 0x1bd   : > { %8992 = vst [vmem:[#allocation37_spill] sm:$0xff] %v6288_v34  ;;  %8993 = vst [vmem:[#allocation38_spill] sm:$0xff] %v6291_v54  ;;  %v6301_v52 = vmul.f32 0.5, %v5979_v47  ;;  %v1647_v10 = vmul.f32 0.044715, %v6288_v34  ;;  %v2000_v62 = vadd.f32 %v1872_v35, %v6016_v14  ;;  %v2506_v33 = vmul.f32 %v2378_v58, %v6136_v23  ;;  %v1099_v58 = vpop.f32.mrf.mxu0 }
 0x1be   : > { %4674 = vtanh.f32 %v2123_v41  ;;  %v2125_v56 = vmul.f32 0.7978846, %v1997_v30  ;;  %v1874_v55 = vmul.f32 %v6080_v17, %v6022_v16  ;;  %v6309_v27 = vmul.f32 0.5, %v5982_v48 }
 0x1bf   : > { %v1649_v36 = vmul.f32 0.044715, %v6291_v54  ;;  %v2128_v39 = vmul.f32 0.7978846, %v2000_v62  ;;  %v6313_v47 = vadd.f32 %v1095_v53, %v5941_v12  ;;  %3146 = vmatprep.mubr.f32.mxu1 %v2506_v33  ;;  %v6316_v35 = vmul.f32 %v1646_v61, %v6269_v7  ;;  %v1356_v33 = vpop.f32.mrf.mxu1 }
 0x1c0   : > { %4676 = vtanh.f32 %v2125_v56  ;;  %v6319_v23 = vmul.f32 0.5, %v6016_v14  ;;  %v2002_v17 = vadd.f32 %v1874_v55, %v6022_v16  ;;  %v6323_v48 = vmul.f32 %v1647_v10, %v6288_v34 }
 0x1c1   : > { %4678 = vtanh.f32 %v2128_v39  ;;  %v6326_v41 = vmul.f32 0.5, %v6022_v16  ;;  %v1871_v30 = vmul.f32 %v6055_v50, %v6003_v63  ;;  %v1648_v61 = vmul.f32 0.044715, %v6313_v47 }
 0x1c2   : > { %8994 = vst [vmem:[#allocation39_spill] sm:$0xff] %v6323_v48  ;;  %v2130_v53 = vmul.f32 0.7978846, %v2002_v17  ;;  %v6332_v62 = vadd.f32 %v1352_v15, %v5943_v13  ;;  %v1873_v14 = vmul.f32 %v6058_v51, %v6008_v2  ;;  %v6337_v10 = vmul.f32 %v1649_v36, %v6291_v54  ;;  %v1101_v54 = vpop.f32.mrf.mxu0 }
 0x1c3   : > { %v4667_v56 = vpop.eup %4666  ;;  %v6340_v16 = vmul.f32 0.5, %v6003_v63  ;;  %v1999_v39 = vadd.f32 %v1871_v30, %v6003_v63  ;;  %v6344_v50 = vadd.f32 %v1099_v58, %v5936_v8  ;;  %v6347_v15 = vmul.f32 0.5, %v6008_v2 }
 0x1c4   : > { %8995 = vst [vmem:[#allocation40_spill] sm:$0xff] %v6337_v10  ;;  %v4669_v55 = vpop.eup %4668  ;;  %v2375_v17 = vadd.f32 1.0, %v4667_v56  ;;  %4680 = vtanh.f32 %v2130_v53  ;;  %v2001_v51 = vadd.f32 %v1873_v14, %v6008_v2  ;;  %v6351_v36 = vadd.f32 %v1356_v33, %v5938_v9 }
 0x1c5   : > { %8996 = vst [vmem:[#allocation41_spill] sm:$0xff] %v6344_v50  ;;  %v2377_v48 = vadd.f32 1.0, %v4669_v55  ;;  %v2127_v34 = vmul.f32 0.7978846, %v1999_v39  ;;  %v1876_v10 = vmul.f32 %v6097_v38, %v6048_v43  ;;  %v6357_v30 = vmul.f32 %v1648_v61, %v6313_v47  ;;  %v1358_v61 = vpop.f32.mrf.mxu1 }
 0x1c6   : > { %8997 = vst [vmem:[#allocation42_spill] sm:$0xff] %v6351_v36  ;;  %v4671_v63 = vpop.eup %4670  ;;  %v2503_v58 = vmul.f32 %v2375_v17, %v6231_v42  ;;  %v1650_v53 = vmul.f32 0.044715, %v6332_v62  ;;  %v2129_v56 = vmul.f32 0.7978846, %v2001_v51  ;;  %v6363_v38 = vmul.f32 0.5, %v6048_v43 }
 0x1c7   : > { %v4673_v57 = vpop.eup %4672  ;;  %v2505_v2 = vmul.f32 %v2377_v48, %v6238_v19  ;;  %v2380_v14 = vadd.f32 1.0, %v4671_v63  ;;  %4682 = vtanh.f32 %v2127_v34  ;;  %v1651_v33 = vmul.f32 0.044715, %v6344_v50 }
 0x1c8   : > { %2890 = vmatmul.mubr.f32.gmra.mxu0 %v2503_v58  ;;  %v2382_v39 = vadd.f32 1.0, %v4673_v57  ;;  %4684 = vtanh.f32 %v2129_v56  ;;  %v2004_v42 = vadd.f32 %v1876_v10, %v6048_v43  ;;  %v1653_v17 = vmul.f32 0.044715, %v6351_v36  ;;  %v1105_v10 = vpop.f32.mrf.mxu0  ;;  %v9001_v56 = vld [vmem:[#allocation14_spill] sm:$0xff] }
 0x1c9   : > { %3147 = vmatmul.mubr.f32.gmra.mxu1 %v2505_v2  ;;  %v2508_v55 = vmul.f32 %v2380_v14, %v6253_v59  ;;  %v1878_v19 = vmul.f32 %v6105_v21, %v6052_v45  ;;  %v6371_v34 = vadd.f32 %v1101_v54, %v5941_v12  ;;  %v6375_v48 = vmul.f32 %v1650_v53, %v6332_v62 }
 0x1ca   : > { %v2510_v57 = vmul.f32 %v2382_v39, %v6275_v28  ;;  %v2132_v51 = vmul.f32 0.7978846, %v2004_v42  ;;  %v1875_v43 = vmul.f32 %v6083_v18, %v6029_v25  ;;  %v6380_v59 = vmul.f32 %v1651_v33, %v6344_v50  ;;  %v9000_v18 = vld [vmem:[#allocation9_spill] sm:$0xff] }
 0x1cb   : > { %v4675_v63 = vpop.eup %4674  ;;  %2895 = vmatprep.mubr.f32.mxu0 %v2508_v55  ;;  %v6383_v21 = vmul.f32 0.5, %v6052_v45  ;;  %v2006_v54 = vadd.f32 %v1878_v19, %v6052_v45  ;;  %v6387_v28 = vadd.f32 %v1358_v61, %v5943_v13  ;;  %v1877_v2 = vmul.f32 %v9001_v56, %v9000_v18  ;;  %v1362_v61 = vpop.f32.mrf.mxu1 }
 0x1cc   : > { %8998 = vst [vmem:[#allocation43_spill] sm:$0xff] %v6380_v59  ;;  %3152 = vmatprep.mubr.f32.mxu1 %v2510_v57  ;;  %v2379_v58 = vadd.f32 1.0, %v4675_v63  ;;  %4686 = vtanh.f32 %v2132_v51  ;;  %v2003_v53 = vadd.f32 %v1875_v43, %v6029_v25  ;;  %v6393_v33 = vmul.f32 %v1653_v17, %v6351_v36 }
 0x1cd   : > { %8999 = vst [vmem:[#allocation44_spill] sm:$0xff] %v6387_v28  ;;  %v4677_v14 = vpop.eup %4676  ;;  %v2134_v39 = vmul.f32 0.7978846, %v2006_v54  ;;  %v1652_v42 = vmul.f32 0.044715, %v6371_v34  ;;  %v6397_v45 = vadd.f32 %v1105_v10, %v5936_v8  ;;  %v2005_v43 = vadd.f32 %v1877_v2, %v9000_v18 }
 0x1ce   : > { %9002 = vst [vmem:[#allocation9_spill] sm:$0xff] %v6393_v33  ;;  %v4679_v55 = vpop.eup %4678  ;;  %v2507_v19 = vmul.f32 %v2379_v58, %v6301_v52  ;;  %v2381_v57 = vadd.f32 1.0, %v4677_v14  ;;  %v2131_v51 = vmul.f32 0.7978846, %v2003_v53  ;;  %v1654_v56 = vmul.f32 0.044715, %v6387_v28  ;;  %v1107_v52 = vpop.f32.mrf.mxu0 }
 0x1cf   : > { %9003 = vst [vmem:[#allocation14_spill] sm:$0xff] %v6397_v45  ;;  %v2384_v63 = vadd.f32 1.0, %v4679_v55  ;;  %4688 = vtanh.f32 %v2134_v39  ;;  %v6403_v17 = vmul.f32 0.5, %v6029_v25  ;;  %v6407_v10 = vmul.f32 0.5, %v9000_v18  ;;  %v9005_v39 = vld [vmem:[#allocation12_spill] sm:$0xff]  ;;  %v9006_v25 = vld [vmem:[#allocation22_spill] sm:$0xff] }
 0x1d0   : > { %2896 = vmatmul.mubr.f32.gmra.mxu0 %v2507_v19  ;;  %v2509_v54 = vmul.f32 %v2381_v57, %v6309_v27  ;;  %4690 = vtanh.f32 %v2131_v51  ;;  %v2133_v33 = vmul.f32 0.7978846, %v2005_v43  ;;  %v1655_v2 = vmul.f32 0.044715, %v6397_v45  ;;  %v1364_v19 = vpop.f32.mrf.mxu1  ;;  %v9007_v18 = vld [vmem:[#allocation13_spill] sm:$0xff]  ;;  %v9008_v51 = vld [vmem:[#allocation23_spill] sm:$0xff] }
 0x1d1   : > { %v4681_v58 = vpop.eup %4680  ;;  %v2512_v53 = vmul.f32 %v2384_v63, %v6319_v23  ;;  %v6412_v14 = vadd.f32 %v1362_v61, %v5938_v9  ;;  %v1880_v55 = vmul.f32 %v9006_v25, %v9005_v39  ;;  %v6417_v57 = vmul.f32 %v1652_v42, %v6371_v34 }
 0x1d2   : > { %3153 = vmatmul.mubr.f32.gmra.mxu1 %v2509_v54  ;;  %v2386_v27 = vadd.f32 1.0, %v4681_v58  ;;  %4692 = vtanh.f32 %v2133_v33  ;;  %v1882_v43 = vmul.f32 %v9008_v51, %v9007_v18  ;;  %v6422_v23 = vmul.f32 %v1654_v56, %v6387_v28  ;;  %v9013_v51 = vld [vmem:[#allocation17_spill] sm:$0xff] }
 0x1d3   : > { %9004 = vst [vmem:[#allocation45_spill] sm:$0xff] %v6412_v14  ;;  %2901 = vmatprep.mubr.f32.mxu0 %v2512_v53  ;;  %v6425_v61 = vmul.f32 0.5, %v9005_v39  ;;  %v2008_v63 = vadd.f32 %v1880_v55, %v9005_v39  ;;  %v6429_v25 = vadd.f32 %v1107_v52, %v5941_v12  ;;  %v6434_v58 = vadd.f32 %v1364_v19, %v5943_v13  ;;  %v9012_v53 = vld [vmem:[#allocation10_spill] sm:$0xff]  ;;  %v1111_v55 = vpop.f32.mrf.mxu0 }
 0x1d4   : > { %9009 = vst [vmem:[#allocation12_spill] sm:$0xff] %v6422_v23  ;;  %v4683_v54 = vpop.eup %4682  ;;  %v2514_v42 = vmul.f32 %v2386_v27, %v6326_v41  ;;  %v2010_v33 = vadd.f32 %v1882_v43, %v9007_v18  ;;  %v1879_v56 = vmul.f32 %v9013_v51, %v9012_v53  ;;  %v6439_v50 = vmul.f32 %v1655_v2, %v6397_v45  ;;  %v1368_v43 = vpop.f32.mrf.mxu1  ;;  %v9015_v2 = vld [vmem:[#allocation11_spill] sm:$0xff] }
 0x1d5   : > { %9010 = vst [vmem:[#allocation22_spill] sm:$0xff] %v6429_v25  ;;  %9011 = vst [vmem:[#allocation13_spill] sm:$0xff] %v6434_v58  ;;  %v4685_v36 = vpop.eup %4684  ;;  %v2383_v59 = vadd.f32 1.0, %v4683_v54  ;;  %v1657_v39 = vmul.f32 0.044715, %v6412_v14  ;;  %v6443_v41 = vmul.f32 0.5, %v9007_v18 }
 0x1d6   : > { %9014 = vst [vmem:[#allocation23_spill] sm:$0xff] %v6439_v50  ;;  %v2136_v52 = vmul.f32 0.7978846, %v2008_v63  ;;  %3158 = vmatprep.mubr.f32.mxu1 %v2514_v42  ;;  %v2385_v23 = vadd.f32 1.0, %v4685_v36  ;;  %v2138_v27 = vmul.f32 0.7978846, %v2010_v33  ;;  %v2007_v19 = vadd.f32 %v1879_v56, %v9012_v53 }
 0x1d7   : > { %v2511_v51 = vmul.f32 %v2383_v59, %v6340_v16  ;;  %v1656_v54 = vmul.f32 0.044715, %v6429_v25  ;;  %v9016_v50 = vld [vmem:[#allocation20_spill] sm:$0xff]  ;;  %v1658_v36 = vmul.f32 0.044715, %v6434_v58  ;;  %v6453_v33 = vmul.f32 %v1657_v39, %v6412_v14  ;;  %v1370_v39 = vpop.f32.mrf.mxu1 }
 0x1d8   : > { %4694 = vtanh.f32 %v2136_v52  ;;  %v1881_v45 = vmul.f32 %v9016_v50, %v9015_v2  ;;  %v2513_v63 = vmul.f32 %v2385_v23, %v6347_v15  ;;  %v2135_v42 = vmul.f32 0.7978846, %v2007_v19  ;;  %v1113_v50 = vpop.f32.mrf.mxu0  ;;  %v9018_v52 = vld [vmem:[#allocation18_spill] sm:$0xff] }
 0x1d9   : > { %4696 = vtanh.f32 %v2138_v27  ;;  %v4687_v18 = vpop.eup %4686  ;;  %2902 = vmatmul.mubr.f32.gmra.mxu0 %v2511_v51  ;;  %9017 = vst [vmem:[#allocation10_spill] sm:$0xff] %v6453_v33  ;;  %v6456_v56 = vmul.f32 0.5, %v9012_v53  ;;  %v6460_v59 = vadd.f32 %v1111_v55, %v5936_v8  ;;  %v6463_v23 = vmul.f32 0.5, %v9015_v2  ;;  %v9019_v27 = vld [vmem:[#allocation26_spill] sm:$0xff]  ;;  %v9022_v55 = vld [vmem:[#allocation19_spill] sm:$0xff]  ;;  %v1374_v28 = vpop.f32.mrf.mxu1 }
 0x1da   : > { %v2009_v16 = vadd.f32 %v1881_v45, %v9015_v2  ;;  %3159 = vmatmul.mubr.f32.gmra.mxu1 %v2513_v63  ;;  %v2388_v15 = vadd.f32 1.0, %v4687_v18  ;;  %4698 = vtanh.f32 %v2135_v42  ;;  %v1884_v19 = vmul.f32 %v9019_v27, %v9018_v52  ;;  %v9023_v33 = vld [vmem:[#allocation27_spill] sm:$0xff] }
 0x1db   : > { %v6468_v51 = vmul.f32 %v1656_v54, %v6429_v25  ;;  %v6471_v45 = vadd.f32 %v1368_v43, %v5938_v9  ;;  %v1886_v14 = vmul.f32 %v9023_v33, %v9022_v55  ;;  %v6477_v2 = vmul.f32 %v1658_v36, %v6434_v58  ;;  %v9026_v58 = vld [vmem:[#allocation24_spill] sm:$0xff] }
 0x1dc   : > { %v2137_v53 = vmul.f32 0.7978846, %v2009_v16  ;;  %v4689_v63 = vpop.eup %4688  ;;  %v2516_v42 = vmul.f32 %v2388_v15, %v6363_v38  ;;  %v2012_v18 = vadd.f32 %v1884_v19, %v9018_v52  ;;  %v6481_v27 = vadd.f32 %v1113_v50, %v5941_v12 }
 0x1dd   : > { %9020 = vst [vmem:[#allocation17_spill] sm:$0xff] %v6468_v51  ;;  %9021 = vst [vmem:[#allocation11_spill] sm:$0xff] %v6471_v45  ;;  %v4691_v54 = vpop.eup %4690  ;;  %v2390_v51 = vadd.f32 1.0, %v4689_v63  ;;  %v1659_v43 = vmul.f32 0.044715, %v6460_v59  ;;  %v6485_v16 = vadd.f32 %v1370_v39, %v5943_v13  ;;  %v6488_v38 = vmul.f32 0.5, %v9018_v52  ;;  %v1117_v39 = vpop.f32.mrf.mxu0 }
 0x1de   : > { %9024 = vst [vmem:[#allocation20_spill] sm:$0xff] %v6477_v2  ;;  %4700 = vtanh.f32 %v2137_v53  ;;  %2907 = vmatprep.mubr.f32.mxu0 %v2516_v42  ;;  %v2387_v33 = vadd.f32 1.0, %v4691_v54  ;;  %v2140_v36 = vmul.f32 0.7978846, %v2012_v18  ;;  %v2014_v15 = vadd.f32 %v1886_v14, %v9022_v55  ;;  %v9025_v63 = vld [vmem:[#allocation15_spill] sm:$0xff] }
 0x1df   : > { %v4693_v19 = vpop.eup %4692  ;;  %v2518_v50 = vmul.f32 %v2390_v51, %v6383_v21  ;;  %v1661_v2 = vmul.f32 0.044715, %v6471_v45  ;;  %v1660_v53 = vmul.f32 0.044715, %v6481_v27  ;;  %v1883_v25 = vmul.f32 %v9026_v58, %v9025_v63 }
 0x1e0   : > { %v2515_v42 = vmul.f32 %v2387_v33, %v6403_v17  ;;  %v2389_v54 = vadd.f32 1.0, %v4693_v19  ;;  %4702 = vtanh.f32 %v2140_v36  ;;  %v2142_v52 = vmul.f32 0.7978846, %v2014_v15  ;;  %v9028_v17 = vld [vmem:[#allocation16_spill] sm:$0xff]  ;;  %v9029_v33 = vld [vmem:[#allocation25_spill] sm:$0xff] }
 0x1e1   : > { %3164 = vmatprep.mubr.f32.mxu1 %v2518_v50  ;;  %v6498_v14 = vmul.f32 %v1659_v43, %v6460_v59  ;;  %v6501_v21 = vmul.f32 0.5, %v9022_v55  ;;  %v1662_v51 = vmul.f32 0.044715, %v6485_v16  ;;  %v2011_v18 = vadd.f32 %v1883_v25, %v9025_v63 }
 0x1e2   : > { %2908 = vmatmul.mubr.f32.gmra.mxu0 %v2515_v42  ;;  %v2517_v58 = vmul.f32 %v2389_v54, %v6407_v10  ;;  %4704 = vtanh.f32 %v2142_v52  ;;  %v1885_v36 = vmul.f32 %v9029_v33, %v9028_v17  ;;  %v6509_v15 = vadd.f32 %v1117_v39, %v5936_v8  ;;  %v1119_v54 = vpop.f32.mrf.mxu0 }
 0x1e3   : > { %9027 = vst [vmem:[#allocation18_spill] sm:$0xff] %v6498_v14  ;;  %v6512_v43 = vmul.f32 %v1661_v2, %v6471_v45  ;;  %v2139_v19 = vmul.f32 0.7978846, %v2011_v18  ;;  %v6515_v55 = vadd.f32 %v1374_v28, %v5938_v9  ;;  %v1888_v25 = vmul.f32 %v6196_v11, %v6146_v49 }
 0x1e4   : > { %3165 = vmatmul.mubr.f32.gmra.mxu1 %v2517_v58  ;;  %v6520_v10 = vmul.f32 %v1660_v53, %v6481_v27  ;;  %v6523_v42 = vmul.f32 0.5, %v9025_v63  ;;  %v2013_v39 = vadd.f32 %v1885_v36, %v9028_v17  ;;  %v1890_v2 = vmul.f32 %v6200_v20, %v6149_v44 }
 0x1e5   : > { %9030 = vst [vmem:[#allocation26_spill] sm:$0xff] %v6512_v43  ;;  %v4695_v50 = vpop.eup %4694  ;;  %v6529_v18 = vmul.f32 %v1662_v51, %v6485_v16  ;;  %4706 = vtanh.f32 %v2139_v19  ;;  %v2016_v11 = vadd.f32 %v1888_v25, %v6146_v49  ;;  %v1663_v33 = vmul.f32 0.044715, %v6509_v15  ;;  %v1376_v51 = vpop.f32.mrf.mxu1 }
 0x1e6   : > { %v4697_v52 = vpop.eup %4696  ;;  %v2392_v28 = vadd.f32 1.0, %v4695_v50  ;;  %v2141_v53 = vmul.f32 0.7978846, %v2013_v39  ;;  %v2018_v63 = vadd.f32 %v1890_v2, %v6149_v44  ;;  %v1665_v20 = vmul.f32 0.044715, %v6515_v55 }
 0x1e7   : > { %v2394_v58 = vadd.f32 1.0, %v4697_v52  ;;  %v4699_v43 = vpop.eup %4698  ;;  %v2144_v45 = vmul.f32 0.7978846, %v2016_v11  ;;  %v6537_v50 = vadd.f32 %v1119_v54, %v5941_v12  ;;  %v6541_v39 = vmul.f32 0.5, %v9028_v17  ;;  %v1123_v52 = vpop.f32.mrf.mxu0  ;;  %v9032_v11 = vld [vmem:[#allocation28_spill] sm:$0xff] }
 0x1e8   : > { %v2520_v36 = vmul.f32 %v2392_v28, %v6425_v61  ;;  %v2391_v14 = vadd.f32 1.0, %v4699_v43  ;;  %4708 = vtanh.f32 %v2141_v53  ;;  %v2146_v25 = vmul.f32 0.7978846, %v2018_v63  ;;  %v9031_v43 = vld [vmem:[#allocation21_spill] sm:$0xff] }
 0x1e9   : > { %v2522_v19 = vmul.f32 %v2394_v58, %v6443_v41  ;;  %v6544_v2 = vmul.f32 0.5, %v6146_v49  ;;  %4710 = vtanh.f32 %v2144_v45  ;;  %v6547_v61 = vmul.f32 0.5, %v6149_v44  ;;  %v1380_v45 = vpop.f32.mrf.mxu1 }
 0x1ea   : > { %2913 = vmatprep.mubr.f32.mxu0 %v2520_v36  ;;  %v2519_v28 = vmul.f32 %v2391_v14, %v6456_v56  ;;  %4712 = vtanh.f32 %v2146_v25  ;;  %v1664_v41 = vmul.f32 0.044715, %v6537_v50  ;;  %v1887_v58 = vmul.f32 %v9032_v11, %v9031_v43 }
 0x1eb   : > { %v4701_v54 = vpop.eup %4700  ;;  %3170 = vmatprep.mubr.f32.mxu1 %v2522_v19  ;;  %v6554_v53 = vmul.f32 %v1663_v33, %v6509_v15  ;;  %v6557_v49 = vadd.f32 %v1376_v51, %v5943_v13  ;;  %v1889_v44 = vmul.f32 %v6193_v1, %v6133_v29  ;;  %v6562_v56 = vmul.f32 %v1665_v20, %v6515_v55 }
 0x1ec   : > { %v2393_v17 = vadd.f32 1.0, %v4701_v54  ;;  %2914 = vmatmul.mubr.f32.gmra.mxu0 %v2519_v28  ;;  %v6565_v14 = vmul.f32 0.5, %v9031_v43  ;;  %v2015_v63 = vadd.f32 %v1887_v58, %v9031_v43  ;;  %v6569_v36 = vadd.f32 %v1123_v52, %v5936_v8  ;;  %v1125_v52 = vpop.f32.mrf.mxu0 }
 0x1ed   : > { %9033 = vst [vmem:[#allocation19_spill] sm:$0xff] %v6562_v56  ;;  %v4703_v33 = vpop.eup %4702  ;;  %v6573_v19 = vmul.f32 0.5, %v6133_v29  ;;  %v2017_v1 = vadd.f32 %v1889_v44, %v6133_v29  ;;  %v1892_v20 = vmul.f32 %v6219_v60, %v6170_v6  ;;  %v6579_v54 = vmul.f32 %v1664_v41, %v6537_v50  ;;  %v1382_v60 = vpop.f32.mrf.mxu1 }
 0x1ee   : > { %9034 = vst [vmem:[#allocation27_spill] sm:$0xff] %v6569_v36  ;;  %v2521_v51 = vmul.f32 %v2393_v17, %v6463_v23  ;;  %v2396_v25 = vadd.f32 1.0, %v4703_v33  ;;  %v2143_v28 = vmul.f32 0.7978846, %v2015_v63  ;;  %v6582_v43 = vadd.f32 %v1380_v45, %v5938_v9 }
 0x1ef   : > { %v4705_v11 = vpop.eup %4704  ;;  %v1666_v23 = vmul.f32 0.044715, %v6557_v49  ;;  %v2145_v58 = vmul.f32 0.7978846, %v2017_v1  ;;  %v2020_v17 = vadd.f32 %v1892_v20, %v6170_v6  ;;  %v1894_v29 = vmul.f32 %v6222_v46, %v6173_v32 }
 0x1f0   : > { %9035 = vst [vmem:[#allocation15_spill] sm:$0xff] %v6582_v43  ;;  %3171 = vmatmul.mubr.f32.gmra.mxu1 %v2521_v51  ;;  %v2524_v44 = vmul.f32 %v2396_v25, %v6488_v38  ;;  %v2398_v41 = vadd.f32 1.0, %v4705_v11  ;;  %4714 = vtanh.f32 %v2143_v28  ;;  %v1667_v63 = vmul.f32 0.044715, %v6569_v36  ;;  %v1129_v25 = vpop.f32.mrf.mxu0 }
 0x1f1   : > { %4716 = vtanh.f32 %v2145_v58  ;;  %v6591_v45 = vmul.f32 0.5, %v6170_v6  ;;  %v2148_v33 = vmul.f32 0.7978846, %v2020_v17  ;;  %v2022_v51 = vadd.f32 %v1894_v29, %v6173_v32  ;;  %v9037_v17 = vld [vmem:[#allocation31_spill] sm:$0xff] }
 0x1f2   : > { %v4707_v1 = vpop.eup %4706  ;;  %2919 = vmatprep.mubr.f32.mxu0 %v2524_v44  ;;  %v2526_v20 = vmul.f32 %v2398_v41, %v6501_v21  ;;  %v1669_v46 = vmul.f32 0.044715, %v6582_v43  ;;  %v6597_v56 = vadd.f32 %v1125_v52, %v5941_v12  ;;  %v6600_v38 = vadd.f32 %v1382_v60, %v5943_v13  ;;  %v1386_v60 = vpop.f32.mrf.mxu1 }
 0x1f3   : > { %v2395_v28 = vadd.f32 1.0, %v4707_v1  ;;  %4718 = vtanh.f32 %v2148_v33  ;;  %v2150_v6 = vmul.f32 0.7978846, %v2022_v51  ;;  %v1891_v11 = vmul.f32 %v6203_v40, %v6159_v22 }
 0x1f4   : > { %3176 = vmatprep.mubr.f32.mxu1 %v2526_v20  ;;  %v6605_v58 = vmul.f32 %v1666_v23, %v6557_v49  ;;  %v6608_v21 = vmul.f32 %v1667_v63, %v6569_v36  ;;  %v6611_v52 = vmul.f32 0.5, %v6173_v32  ;;  %v1893_v29 = vmul.f32 %v9037_v17, %v6164_v0 }
 0x1f5   : > { %v4709_v44 = vpop.eup %4708  ;;  %v2523_v41 = vmul.f32 %v2395_v28, %v6523_v42  ;;  %4720 = vtanh.f32 %v2150_v6  ;;  %v2019_v40 = vadd.f32 %v1891_v11, %v6159_v22  ;;  %v6618_v33 = vadd.f32 %v1129_v25, %v5936_v8  ;;  %v1131_v25 = vpop.f32.mrf.mxu0 }
 0x1f6   : > { %9036 = vst [vmem:[#allocation24_spill] sm:$0xff] %v6608_v21  ;;  %v4711_v23 = vpop.eup %4710  ;;  %v2397_v51 = vadd.f32 1.0, %v4709_v44  ;;  %v6621_v63 = vmul.f32 %v1669_v46, %v6582_v43  ;;  %v1668_v32 = vmul.f32 0.044715, %v6597_v56  ;;  %v2021_v1 = vadd.f32 %v1893_v29, %v6164_v0 }
 0x1f7   : > { %9038 = vst [vmem:[#allocation16_spill] sm:$0xff] %v6618_v33  ;;  %v4713_v20 = vpop.eup %4712  ;;  %2920 = vmatmul.mubr.f32.gmra.mxu0 %v2523_v41  ;;  %v2400_v17 = vadd.f32 1.0, %v4711_v23  ;;  %v1670_v42 = vmul.f32 0.044715, %v6600_v38  ;;  %v2147_v28 = vmul.f32 0.7978846, %v2019_v40  ;;  %v6627_v6 = vadd.f32 %v1386_v60, %v5938_v9 }
 0x1f8   : > { %9039 = vst [vmem:[#allocation25_spill] sm:$0xff] %v6621_v63  ;;  %v2525_v11 = vmul.f32 %v2397_v51, %v6541_v39  ;;  %v2402_v44 = vadd.f32 1.0, %v4713_v20  ;;  %v2149_v21 = vmul.f32 0.7978846, %v2021_v1  ;;  %v1671_v46 = vmul.f32 0.044715, %v6618_v33  ;;  %v1388_v51 = vpop.f32.mrf.mxu1 }
 0x1f9   : > { %v2528_v63 = vmul.f32 %v2400_v17, %v6544_v2  ;;  %v6633_v29 = vmul.f32 0.5, %v6159_v22  ;;  %4722 = vtanh.f32 %v2147_v28  ;;  %v6636_v41 = vmul.f32 0.5, %v6164_v0  ;;  %v9040_v39 = vld [vmem:[#allocation35_spill] sm:$0xff]  ;;  %v9043_v20 = vld [vmem:[#allocation29_spill] sm:$0xff]  ;;  %v9044_v17 = vld [vmem:[#allocation32_spill] sm:$0xff] }
 0x1fa   : > { %3177 = vmatmul.mubr.f32.gmra.mxu1 %v2525_v11  ;;  %v2530_v60 = vmul.f32 %v2402_v44, %v6547_v61  ;;  %v6640_v40 = vmul.f32 %v1668_v32, %v6597_v56  ;;  %4724 = vtanh.f32 %v2149_v21  ;;  %v1896_v23 = vmul.f32 %v9040_v39, %v6207_v31  ;;  %v1135_v61 = vpop.f32.mrf.mxu0  ;;  %v9045_v44 = vld [vmem:[#allocation30_spill] sm:$0xff] }
 0x1fb   : > { %2925 = vmatprep.mubr.f32.mxu0 %v2528_v63  ;;  %v6645_v2 = vmul.f32 %v1670_v42, %v6600_v38  ;;  %v1673_v22 = vmul.f32 0.044715, %v6627_v6  ;;  %v1898_v0 = vmul.f32 %v6266_v24, %v6214_v37  ;;  %v6651_v1 = vadd.f32 %v1131_v25, %v5941_v12 }
 0x1fc   : > { %3182 = vmatprep.mubr.f32.mxu1 %v2530_v60  ;;  %v6654_v21 = vmul.f32 %v1671_v46, %v6618_v33  ;;  %v6657_v32 = vmul.f32 0.5, %v6207_v31  ;;  %v2024_v63 = vadd.f32 %v1896_v23, %v6207_v31  ;;  %v1895_v42 = vmul.f32 %v9044_v17, %v9043_v20  ;;  %v9046_v46 = vld [vmem:[#allocation34_spill] sm:$0xff] }
 0x1fd   : > { %9041 = vst [vmem:[#allocation21_spill] sm:$0xff] %v6645_v2  ;;  %v4715_v28 = vpop.eup %4714  ;;  %v6663_v11 = vmul.f32 0.5, %v6214_v37  ;;  %v2026_v24 = vadd.f32 %v1898_v0, %v6214_v37  ;;  %v6667_v25 = vadd.f32 %v1388_v51, %v5943_v13  ;;  %v1897_v60 = vmul.f32 %v9046_v46, %v9045_v44  ;;  %v1392_v51 = vpop.f32.mrf.mxu1 }
 0x1fe   : > { %9042 = vst [vmem:[#allocation28_spill] sm:$0xff] %v6654_v21  ;;  %v4717_v39 = vpop.eup %4716  ;;  %v2399_v21 = vadd.f32 1.0, %v4715_v28  ;;  %v2152_v33 = vmul.f32 0.7978846, %v2024_v63  ;;  %v2023_v31 = vadd.f32 %v1895_v42, %v9043_v20  ;;  %v6673_v23 = vadd.f32 %v1135_v61, %v5936_v8 }
 0x1ff   : > { %v2401_v17 = vadd.f32 1.0, %v4717_v39  ;;  %v6676_v43 = vmul.f32 %v1673_v22, %v6627_v6  ;;  %v2154_v36 = vmul.f32 0.7978846, %v2026_v24  ;;  %v1672_v37 = vmul.f32 0.044715, %v6651_v1 }
 0x200   : > { %v4719_v0 = vpop.eup %4718  ;;  %v2527_v2 = vmul.f32 %v2399_v21, %v6565_v14  ;;  %4726 = vtanh.f32 %v2152_v33  ;;  %v2151_v46 = vmul.f32 0.7978846, %v2023_v31  ;;  %v2025_v63 = vadd.f32 %v1897_v60, %v9045_v44  ;;  %v1137_v14 = vpop.f32.mrf.mxu0 }
 0x201   : > { %9047 = vst [vmem:[#allocation31_spill] sm:$0xff] %v6676_v43  ;;  %v2529_v42 = vmul.f32 %v2401_v17, %v6573_v19  ;;  %v2404_v28 = vadd.f32 1.0, %v4719_v0  ;;  %4728 = vtanh.f32 %v2154_v36  ;;  %v1674_v61 = vmul.f32 0.044715, %v6667_v25  ;;  %v1394_v60 = vpop.f32.mrf.mxu1 }
 0x202   : > { %v4721_v39 = vpop.eup %4720  ;;  %2926 = vmatmul.mubr.f32.gmra.mxu0 %v2527_v2  ;;  %v6684_v22 = vmul.f32 0.5, %v9043_v20  ;;  %4730 = vtanh.f32 %v2151_v46  ;;  %v2153_v24 = vmul.f32 0.7978846, %v2025_v63  ;;  %v1675_v43 = vmul.f32 0.044715, %v6673_v23 }
 0x203   : > { %3183 = vmatmul.mubr.f32.gmra.mxu1 %v2529_v42  ;;  %v2532_v33 = vmul.f32 %v2404_v28, %v6591_v45  ;;  %v2406_v21 = vadd.f32 1.0, %v4721_v39  ;;  %v6689_v19 = vadd.f32 %v1392_v51, %v5938_v9  ;;  %v1900_v36 = vmul.f32 %v6298_v5, %v6257_v4 }
 0x204   : > { %v6694_v2 = vmul.f32 %v1672_v37, %v6651_v1  ;;  %v6697_v20 = vmul.f32 0.5, %v9045_v44  ;;  %4732 = vtanh.f32 %v2153_v24  ;;  %v1902_v31 = vmul.f32 %v6316_v35, %v6269_v7 }
 0x205   : > { %9048 = vst [vmem:[#allocation35_spill] sm:$0xff] %v6689_v19  ;;  %2931 = vmatprep.mubr.f32.mxu0 %v2532_v33  ;;  %v2534_v45 = vmul.f32 %v2406_v21, %v6611_v52  ;;  %v6703_v17 = vmul.f32 %v1674_v61, %v6667_v25  ;;  %v2028_v51 = vadd.f32 %v1900_v36, %v6257_v4  ;;  %v6710_v0 = vmul.f32 0.5, %v6257_v4  ;;  %v1141_v52 = vpop.f32.mrf.mxu0  ;;  %v1398_v21 = vpop.f32.mrf.mxu1 }
 0x206   : > { %v6707_v5 = vadd.f32 %v1137_v14, %v5941_v12  ;;  %v4723_v37 = vpop.eup %4722  ;;  %v2030_v44 = vadd.f32 %v1902_v31, %v6269_v7  ;;  %v6714_v46 = vadd.f32 %v1394_v60, %v5943_v13  ;;  %v1899_v35 = vmul.f32 %v6279_v26, %v6235_v3  ;;  %v9049_v60 = vld [vmem:[#allocation33_spill] sm:$0xff]  ;;  %v9050_v31 = vld [vmem:[#allocation36_spill] sm:$0xff] }
 0x207   : > { %v4725_v63 = vpop.eup %4724  ;;  %3188 = vmatprep.mubr.f32.mxu1 %v2534_v45  ;;  %v2403_v42 = vadd.f32 1.0, %v4723_v37  ;;  %v6719_v28 = vmul.f32 %v1675_v43, %v6673_v23  ;;  %v1677_v61 = vmul.f32 0.044715, %v6689_v19  ;;  %v2156_v39 = vmul.f32 0.7978846, %v2028_v51 }
 0x208   : > { %v2405_v4 = vadd.f32 1.0, %v4725_v63  ;;  %v6723_v24 = vmul.f32 0.5, %v6269_v7  ;;  %v2158_v14 = vmul.f32 0.7978846, %v2030_v44  ;;  %v2027_v33 = vadd.f32 %v1899_v35, %v6235_v3  ;;  %v1143_v7 = vpop.f32.mrf.mxu0 }
 0x209   : > { %v2531_v26 = vmul.f32 %v2403_v42, %v6633_v29  ;;  %4734 = vtanh.f32 %v2156_v39  ;;  %v1676_v36 = vmul.f32 0.044715, %v6707_v5  ;;  %v1901_v43 = vmul.f32 %v9050_v31, %v9049_v60  ;;  %v1400_v39 = vpop.f32.mrf.mxu1 }
 0x20a   : > { %v2533_v45 = vmul.f32 %v2405_v4, %v6636_v41  ;;  %4736 = vtanh.f32 %v2158_v14  ;;  %v1678_v51 = vmul.f32 0.044715, %v6714_v46  ;;  %v2155_v37 = vmul.f32 0.7978846, %v2027_v33 }
 0x20b   : > { %2932 = vmatmul.mubr.f32.gmra.mxu0 %v2531_v26  ;;  %v6733_v44 = vmul.f32 %v1677_v61, %v6689_v19  ;;  %v6736_v35 = vmul.f32 0.5, %v6235_v3  ;;  %v2029_v29 = vadd.f32 %v1901_v43, %v9049_v60  ;;  %v6740_v63 = vadd.f32 %v1141_v52, %v5936_v8 }
 0x20c   : > { %3189 = vmatmul.mubr.f32.gmra.mxu1 %v2533_v45  ;;  %4738 = vtanh.f32 %v2155_v37  ;;  %v6743_v41 = vmul.f32 0.5, %v9049_v60  ;;  %v1904_v42 = vmul.f32 %v6357_v30, %v6313_v47  ;;  %v1906_v61 = vmul.f32 %v6375_v48, %v6332_v62 }
 0x20d   : > { %9051 = vst [vmem:[#allocation29_spill] sm:$0xff] %v6733_v44  ;;  %9052 = vst [vmem:[#allocation32_spill] sm:$0xff] %v6740_v63  ;;  %v4727_v4 = vpop.eup %4726  ;;  %v6750_v3 = vmul.f32 %v1676_v36, %v6707_v5  ;;  %v2157_v14 = vmul.f32 0.7978846, %v2029_v29  ;;  %v6753_v52 = vadd.f32 %v1398_v21, %v5938_v9  ;;  %v6756_v33 = vadd.f32 %v1143_v7, %v5941_v12  ;;  %v1147_v44 = vpop.f32.mrf.mxu0 }
 0x20e   : > { %v4729_v26 = vpop.eup %4728  ;;  %v2408_v60 = vadd.f32 1.0, %v4727_v4  ;;  %v6759_v31 = vmul.f32 %v1678_v51, %v6714_v46  ;;  %v2032_v30 = vadd.f32 %v1904_v42, %v6313_v47  ;;  %v2034_v48 = vadd.f32 %v1906_v61, %v6332_v62 }
 0x20f   : > { %9053 = vst [vmem:[#allocation30_spill] sm:$0xff] %v6753_v52  ;;  %9054 = vst [vmem:[#allocation34_spill] sm:$0xff] %v6756_v33  ;;  %v4731_v43 = vpop.eup %4730  ;;  %v2410_v45 = vadd.f32 1.0, %v4729_v26  ;;  %4740 = vtanh.f32 %v2157_v14  ;;  %v1679_v36 = vmul.f32 0.044715, %v6740_v63  ;;  %v6765_v21 = vadd.f32 %v1400_v39, %v5943_v13 }
 0x210   : > { %v2536_v37 = vmul.f32 %v2408_v60, %v6657_v32  ;;  %v2407_v7 = vadd.f32 1.0, %v4731_v43  ;;  %v2160_v29 = vmul.f32 0.7978846, %v2032_v30  ;;  %v2162_v4 = vmul.f32 0.7978846, %v2034_v48  ;;  %v9056_v32 = vld [vmem:[#allocation37_spill] sm:$0xff]  ;;  %v1404_v48 = vpop.f32.mrf.mxu1 }
 0x211   : > { %9055 = vst [vmem:[#allocation33_spill] sm:$0xff] %v6765_v21  ;;  %v4733_v51 = vpop.eup %4732  ;;  %v2538_v19 = vmul.f32 %v2410_v45, %v6663_v11  ;;  %v1681_v42 = vmul.f32 0.044715, %v6753_v52  ;;  %v6771_v61 = vmul.f32 0.5, %v6313_v47  ;;  %v1680_v14 = vmul.f32 0.044715, %v6756_v33 }
 0x212   : > { %2937 = vmatprep.mubr.f32.mxu0 %v2536_v37  ;;  %v2535_v39 = vmul.f32 %v2407_v7, %v6684_v22  ;;  %v2409_v26 = vadd.f32 1.0, %v4733_v51  ;;  %4742 = vtanh.f32 %v2160_v29  ;;  %v9057_v60 = vld [vmem:[#allocation39_spill] sm:$0xff]  ;;  %v6778_v43 = vmul.f32 %v1679_v36, %v6740_v63  ;;  %v9059_v37 = vld [vmem:[#allocation38_spill] sm:$0xff]  ;;  %v9060_v7 = vld [vmem:[#allocation40_spill] sm:$0xff] }
 0x213   : > { %v1903_v30 = vmul.f32 %v9057_v60, %v9056_v32  ;;  %3194 = vmatprep.mubr.f32.mxu1 %v2538_v19  ;;  %v6781_v11 = vmul.f32 0.5, %v6332_v62  ;;  %4744 = vtanh.f32 %v2162_v4  ;;  %v1682_v47 = vmul.f32 0.044715, %v6765_v21  ;;  %v1149_v19 = vpop.f32.mrf.mxu0 }
 0x214   : > { %9058 = vst [vmem:[#allocation36_spill] sm:$0xff] %v6778_v43  ;;  %2938 = vmatmul.mubr.f32.gmra.mxu0 %v2535_v39  ;;  %v2537_v45 = vmul.f32 %v2409_v26, %v6697_v20  ;;  %v1905_v29 = vmul.f32 %v9060_v7, %v9059_v37  ;;  %v6789_v51 = vadd.f32 %v1147_v44, %v5936_v8  ;;  %v6795_v62 = vmul.f32 0.5, %v9056_v32 }
 0x215   : > { %v2031_v22 = vadd.f32 %v1903_v30, %v9056_v32  ;;  %v6792_v36 = vmul.f32 %v1681_v42, %v6753_v52  ;;  %v6798_v4 = vadd.f32 %v1404_v48, %v5938_v9  ;;  %v1908_v20 = vmul.f32 %v6417_v57, %v6371_v34  ;;  %v9065_v30 = vld [vmem:[#allocation44_spill] sm:$0xff] }
 0x216   : > { %9061 = vst [vmem:[#allocation37_spill] sm:$0xff] %v6789_v51  ;;  %v4735_v39 = vpop.eup %4734  ;;  %3195 = vmatmul.mubr.f32.gmra.mxu1 %v2537_v45  ;;  %v6803_v26 = vmul.f32 %v1680_v14, %v6756_v33  ;;  %v2033_v60 = vadd.f32 %v1905_v29, %v9059_v37  ;;  %v9066_v42 = vld [vmem:[#allocation12_spill] sm:$0xff]  ;;  %v6809_v52 = vmul.f32 %v1682_v47, %v6765_v21  ;;  %v1406_v47 = vpop.f32.mrf.mxu1 }
 0x217   : > { %9062 = vst [vmem:[#allocation39_spill] sm:$0xff] %v6792_v36  ;;  %9063 = vst [vmem:[#allocation38_spill] sm:$0xff] %v6798_v4  ;;  %v2159_v44 = vmul.f32 0.7978846, %v2031_v22  ;;  %v1910_v7 = vmul.f32 %v9066_v42, %v9065_v30  ;;  %v4737_v36 = vpop.eup %4736  ;;  %v2412_v32 = vadd.f32 1.0, %v4735_v39  ;;  %v2036_v48 = vadd.f32 %v1908_v20, %v6371_v34 }
 0x218   : > { %9064 = vst [vmem:[#allocation40_spill] sm:$0xff] %v6803_v26  ;;  %9067 = vst [vmem:[#allocation44_spill] sm:$0xff] %v6809_v52  ;;  %v6813_v57 = vadd.f32 %v1149_v19, %v5941_v12  ;;  %v2414_v45 = vadd.f32 1.0, %v4737_v36  ;;  %v2161_v14 = vmul.f32 0.7978846, %v2033_v60  ;;  %v6822_v36 = vmul.f32 0.5, %v9059_v37  ;;  %v1153_v60 = vpop.f32.mrf.mxu0 }
 0x219   : > { %4746 = vtanh.f32 %v2159_v44  ;;  %v1683_v22 = vmul.f32 0.044715, %v6789_v51  ;;  %v4739_v43 = vpop.eup %4738  ;;  %v2540_v29 = vmul.f32 %v2412_v32, %v6710_v0  ;;  %v1685_v42 = vmul.f32 0.044715, %v6798_v4 }
 0x21a   : > { %9068 = vst [vmem:[#allocation12_spill] sm:$0xff] %v6813_v57  ;;  %v2164_v63 = vmul.f32 0.7978846, %v2036_v48  ;;  %v2038_v39 = vadd.f32 %v1910_v7, %v9065_v30  ;;  %v2542_v52 = vmul.f32 %v2414_v45, %v6723_v24  ;;  %v2411_v20 = vadd.f32 1.0, %v4739_v43  ;;  %v9070_v48 = vld [vmem:[#allocation41_spill] sm:$0xff]  ;;  %v9071_v45 = vld [vmem:[#allocation43_spill] sm:$0xff] }
 0x21b   : > { %4748 = vtanh.f32 %v2161_v14  ;;  %v1684_v19 = vmul.f32 0.044715, %v6813_v57  ;;  %2943 = vmatprep.mubr.f32.mxu0 %v2540_v29  ;;  %v6825_v44 = vmul.f32 0.5, %v6371_v34  ;;  %v6829_v24 = vmul.f32 0.5, %v9065_v30  ;;  %v9074_v29 = vld [vmem:[#allocation9_spill] sm:$0xff] }
 0x21c   : > { %4750 = vtanh.f32 %v2164_v63  ;;  %v2166_v0 = vmul.f32 0.7978846, %v2038_v39  ;;  %v4741_v32 = vpop.eup %4740  ;;  %3200 = vmatprep.mubr.f32.mxu1 %v2542_v52  ;;  %v2539_v7 = vmul.f32 %v2411_v20, %v6736_v35  ;;  %v6832_v43 = vadd.f32 %v1406_v47, %v5943_v13  ;;  %v9073_v63 = vld [vmem:[#allocation42_spill] sm:$0xff]  ;;  %v1410_v52 = vpop.f32.mrf.mxu1 }
 0x21d   : > { %v1907_v37 = vmul.f32 %v9071_v45, %v9070_v48  ;;  %v2413_v14 = vadd.f32 1.0, %v4741_v32  ;;  %v6837_v34 = vmul.f32 %v1683_v22, %v6789_v51  ;;  %v1909_v39 = vmul.f32 %v9074_v29, %v9073_v63  ;;  %v9079_v29 = vld [vmem:[#allocation17_spill] sm:$0xff] }
 0x21e   : > { %9069 = vst [vmem:[#allocation46_spill] sm:$0xff] %v6832_v43  ;;  %4752 = vtanh.f32 %v2166_v0  ;;  %2944 = vmatmul.mubr.f32.gmra.mxu0 %v2539_v7  ;;  %v6842_v35 = vmul.f32 %v1685_v42, %v6798_v4  ;;  %v6845_v30 = vmul.f32 %v1684_v19, %v6813_v57  ;;  %v6848_v47 = vmul.f32 0.5, %v9070_v48  ;;  %v9078_v7 = vld [vmem:[#allocation22_spill] sm:$0xff] }
 0x21f   : > { %9072 = vst [vmem:[#allocation41_spill] sm:$0xff] %v6837_v34  ;;  %v2035_v20 = vadd.f32 %v1907_v37, %v9070_v48  ;;  %v4743_v32 = vpop.eup %4742  ;;  %v2541_v22 = vmul.f32 %v2413_v14, %v6743_v41  ;;  %v2037_v0 = vadd.f32 %v1909_v39, %v9073_v63  ;;  %v6854_v45 = vadd.f32 %v1153_v60, %v5936_v8  ;;  %v1412_v14 = vpop.f32.mrf.mxu1 }
 0x220   : > { %9075 = vst [vmem:[#allocation43_spill] sm:$0xff] %v6842_v35  ;;  %9076 = vst [vmem:[#allocation42_spill] sm:$0xff] %v6845_v30  ;;  %v1912_v42 = vmul.f32 %v9079_v29, %v9078_v7  ;;  %v1155_v35 = vpop.f32.mrf.mxu0  ;;  %v4745_v4 = vpop.eup %4744  ;;  %v2416_v19 = vadd.f32 1.0, %v4743_v32  ;;  %v1686_v34 = vmul.f32 0.044715, %v6832_v43  ;;  %v6860_v30 = vmul.f32 0.5, %v9073_v63 }
 0x221   : > { %9077 = vst [vmem:[#allocation9_spill] sm:$0xff] %v6854_v45  ;;  %v2163_v51 = vmul.f32 0.7978846, %v2035_v20  ;;  %3201 = vmatmul.mubr.f32.gmra.mxu1 %v2541_v22  ;;  %v2418_v48 = vadd.f32 1.0, %v4745_v4  ;;  %v2165_v41 = vmul.f32 0.7978846, %v2037_v0  ;;  %v6863_v37 = vadd.f32 %v1410_v52, %v5938_v9 }
 0x222   : > { %v2040_v60 = vadd.f32 %v1912_v42, %v9078_v7  ;;  %v2544_v39 = vmul.f32 %v2416_v19, %v6771_v61  ;;  %v6868_v32 = vmul.f32 0.5, %v9078_v7  ;;  %v9080_v29 = vld [vmem:[#allocation13_spill] sm:$0xff]  ;;  %v9081_v20 = vld [vmem:[#allocation20_spill] sm:$0xff]  ;;  %v1687_v4 = vmul.f32 0.044715, %v6854_v45  ;;  %v1159_v52 = vpop.f32.mrf.mxu0  ;;  %v9083_v19 = vld [vmem:[#allocation14_spill] sm:$0xff] }
 0x223   : > { %4754 = vtanh.f32 %v2163_v51  ;;  %v1914_v57 = vmul.f32 %v9081_v20, %v9080_v29  ;;  %v2546_v63 = vmul.f32 %v2418_v48, %v6781_v11  ;;  %v6875_v0 = vmul.f32 %v1686_v34, %v6832_v43  ;;  %v9084_v48 = vld [vmem:[#allocation23_spill] sm:$0xff]  ;;  %v1416_v20 = vpop.f32.mrf.mxu1 }
 0x224   : > { %4756 = vtanh.f32 %v2165_v41  ;;  %v2168_v22 = vmul.f32 0.7978846, %v2040_v60  ;;  %2949 = vmatprep.mubr.f32.mxu0 %v2544_v39  ;;  %v6878_v61 = vmul.f32 0.5, %v9080_v29  ;;  %v6882_v7 = vadd.f32 %v1155_v35, %v5941_v12  ;;  %v9085_v60 = vld [vmem:[#allocation45_spill] sm:$0xff]  ;;  %v9086_v39 = vld [vmem:[#allocation10_spill] sm:$0xff] }
 0x225   : > { %9082 = vst [vmem:[#allocation22_spill] sm:$0xff] %v6875_v0  ;;  %v2042_v51 = vadd.f32 %v1914_v57, %v9080_v29  ;;  %3206 = vmatprep.mubr.f32.mxu1 %v2546_v63  ;;  %v1689_v11 = vmul.f32 0.044715, %v6863_v37  ;;  %v1911_v41 = vmul.f32 %v9084_v48, %v9083_v19  ;;  %v1913_v34 = vmul.f32 %v9086_v39, %v9085_v60 }
 0x226   : > { %v4747_v42 = vpop.eup %4746  ;;  %4758 = vtanh.f32 %v2168_v22  ;;  %v6890_v21 = vadd.f32 %v1412_v14, %v5943_v13  ;;  %v6893_v57 = vadd.f32 %v1159_v52, %v5936_v8  ;;  %v6896_v29 = vmul.f32 %v1687_v4, %v6854_v45  ;;  %v1161_v45 = vpop.f32.mrf.mxu0 }
 0x227   : > { %v2415_v0 = vadd.f32 1.0, %v4747_v42  ;;  %v2170_v43 = vmul.f32 0.7978846, %v2042_v51  ;;  %v1688_v63 = vmul.f32 0.044715, %v6882_v7  ;;  %v2039_v22 = vadd.f32 %v1911_v41, %v9083_v19 }
 0x228   : > { %v4749_v35 = vpop.eup %4748  ;;  %9087 = vst [vmem:[#allocation17_spill] sm:$0xff] %v6896_v29  ;;  %v2041_v48 = vadd.f32 %v1913_v34, %v9085_v60  ;;  %v6903_v14 = vadd.f32 %v1416_v20, %v5938_v9  ;;  %v6906_v26 = vmul.f32 %v1689_v11, %v6863_v37  ;;  %v1690_v34 = vmul.f32 0.044715, %v6890_v21 }
 0x229   : > { %v4751_v39 = vpop.eup %4750  ;;  %v2543_v42 = vmul.f32 %v2415_v0, %v6795_v62  ;;  %v2417_v51 = vadd.f32 1.0, %v4749_v35  ;;  %4760 = vtanh.f32 %v2170_v43  ;;  %v2167_v4 = vmul.f32 0.7978846, %v2039_v22  ;;  %v1418_v35 = vpop.f32.mrf.mxu1 }
 0x22a   : > { %v2420_v52 = vadd.f32 1.0, %v4751_v39  ;;  %v2169_v29 = vmul.f32 0.7978846, %v2041_v48  ;;  %v6911_v62 = vmul.f32 0.5, %v9083_v19  ;;  %v1691_v43 = vmul.f32 0.044715, %v6893_v57  ;;  %v1165_v39 = vpop.f32.mrf.mxu0 }
 0x22b   : > { %v4753_v33 = vpop.eup %4752  ;;  %2950 = vmatmul.mubr.f32.gmra.mxu0 %v2543_v42  ;;  %v2545_v41 = vmul.f32 %v2417_v51, %v6822_v36  ;;  %4762 = vtanh.f32 %v2167_v4  ;;  %v1916_v11 = vmul.f32 %v6520_v10, %v6481_v27  ;;  %v6918_v22 = vmul.f32 %v1688_v63, %v6882_v7  ;;  %v9090_v4 = vld [vmem:[#allocation11_spill] sm:$0xff] }
 0x22c   : > { %v2548_v0 = vmul.f32 %v2420_v52, %v6825_v44  ;;  %v2422_v20 = vadd.f32 1.0, %v4753_v33  ;;  %v6921_v36 = vmul.f32 0.5, %v9085_v60  ;;  %4764 = vtanh.f32 %v2169_v29 }
 0x22d   : > { %3207 = vmatmul.mubr.f32.gmra.mxu1 %v2545_v41  ;;  %v1693_v19 = vmul.f32 0.044715, %v6903_v14  ;;  %v2044_v33 = vadd.f32 %v1916_v11, %v6481_v27  ;;  %v1918_v44 = vmul.f32 %v6529_v18, %v6485_v16  ;;  %v6929_v10 = vadd.f32 %v1161_v45, %v5941_v12  ;;  %v9091_v41 = vld [vmem:[#allocation26_spill] sm:$0xff] }
 0x22e   : > { %2955 = vmatprep.mubr.f32.mxu0 %v2548_v0  ;;  %v2550_v48 = vmul.f32 %v2422_v20, %v6829_v24  ;;  %v6932_v63 = vmul.f32 %v1690_v34, %v6890_v21  ;;  %v6935_v60 = vmul.f32 0.5, %v6481_v27  ;;  %v6938_v29 = vadd.f32 %v1418_v35, %v5943_v13  ;;  %v9088_v24 = vld [vmem:[#allocation18_spill] sm:$0xff] }
 0x22f   : > { %v1915_v42 = vmul.f32 %v9088_v24, %v6460_v59  ;;  %v6943_v18 = vmul.f32 %v1691_v43, %v6893_v57  ;;  %v2172_v45 = vmul.f32 0.7978846, %v2044_v33  ;;  %v2046_v52 = vadd.f32 %v1918_v44, %v6485_v16  ;;  %v1422_v24 = vpop.f32.mrf.mxu1 }
 0x230   : > { %v4755_v51 = vpop.eup %4754  ;;  %3212 = vmatprep.mubr.f32.mxu1 %v2550_v48  ;;  %v1917_v34 = vmul.f32 %v9091_v41, %v9090_v4  ;;  %v6949_v20 = vmul.f32 %v1693_v19, %v6903_v14  ;;  %v6953_v35 = vadd.f32 %v1165_v39, %v5936_v8  ;;  %v1692_v33 = vmul.f32 0.044715, %v6929_v10 }
 0x231   : > { %9089 = vst [vmem:[#allocation13_spill] sm:$0xff] %v6943_v18  ;;  %v4757_v0 = vpop.eup %4756  ;;  %v2419_v27 = vadd.f32 1.0, %v4755_v51  ;;  %v2043_v11 = vadd.f32 %v1915_v42, %v6460_v59  ;;  %4766 = vtanh.f32 %v2172_v45  ;;  %v2174_v43 = vmul.f32 0.7978846, %v2046_v52 }
 0x232   : > { %9092 = vst [vmem:[#allocation20_spill] sm:$0xff] %v6949_v20  ;;  %9093 = vst [vmem:[#allocation14_spill] sm:$0xff] %v6953_v35  ;;  %v2421_v48 = vadd.f32 1.0, %v4757_v0  ;;  %v1694_v41 = vmul.f32 0.044715, %v6938_v29  ;;  %v2045_v19 = vadd.f32 %v1917_v34, %v9090_v4  ;;  %v6962_v45 = vmul.f32 0.5, %v6485_v16 }
 0x233   : > { %v4759_v44 = vpop.eup %4758  ;;  %v2547_v18 = vmul.f32 %v2419_v27, %v6848_v47  ;;  %v2171_v51 = vmul.f32 0.7978846, %v2043_v11  ;;  %4768 = vtanh.f32 %v2174_v43  ;;  %v1695_v39 = vmul.f32 0.044715, %v6953_v35  ;;  %v1167_v47 = vpop.f32.mrf.mxu0 }
 0x234   : > { %v2549_v20 = vmul.f32 %v2421_v48, %v6860_v30  ;;  %v2424_v42 = vadd.f32 1.0, %v4759_v44  ;;  %v2173_v52 = vmul.f32 0.7978846, %v2045_v19  ;;  %v6965_v0 = vadd.f32 %v1422_v24, %v5938_v9 }
 0x235   : > { %2956 = vmatmul.mubr.f32.gmra.mxu0 %v2547_v18  ;;  %4770 = vtanh.f32 %v2171_v51  ;;  %v6969_v30 = vmul.f32 0.5, %v6460_v59  ;;  %v6972_v11 = vmul.f32 0.5, %v9090_v4  ;;  %v1920_v16 = vmul.f32 %v6579_v54, %v6537_v50  ;;  %v1424_v18 = vpop.f32.mrf.mxu1 }
 0x236   : > { %9094 = vst [vmem:[#allocation23_spill] sm:$0xff] %v6965_v0  ;;  %v4761_v27 = vpop.eup %4760  ;;  %3213 = vmatmul.mubr.f32.gmra.mxu1 %v2549_v20  ;;  %v2552_v34 = vmul.f32 %v2424_v42, %v6868_v32  ;;  %v6977_v43 = vmul.f32 %v1692_v33, %v6929_v10  ;;  %4772 = vtanh.f32 %v2173_v52  ;;  %v1922_v20 = vmul.f32 %v6605_v58, %v6557_v49 }
 0x237   : > { %v2426_v48 = vadd.f32 1.0, %v4761_v27  ;;  %v6982_v32 = vmul.f32 %v1694_v41, %v6938_v29  ;;  %v6985_v59 = vmul.f32 %v1695_v39, %v6953_v35  ;;  %v6988_v4 = vmul.f32 0.5, %v6537_v50  ;;  %v1171_v41 = vpop.f32.mrf.mxu0 }
 0x238   : > { %2961 = vmatprep.mubr.f32.mxu0 %v2552_v34  ;;  %v2048_v54 = vadd.f32 %v1920_v16, %v6537_v50  ;;  %v4763_v24 = vpop.eup %4762  ;;  %v1697_v44 = vmul.f32 0.044715, %v6965_v0  ;;  %v2050_v51 = vadd.f32 %v1922_v20, %v6557_v49  ;;  %v1919_v58 = vmul.f32 %v6554_v53, %v6509_v15  ;;  %v1428_v50 = vpop.f32.mrf.mxu1 }
 0x239   : > { %9095 = vst [vmem:[#allocation45_spill] sm:$0xff] %v6985_v59  ;;  %v2554_v33 = vmul.f32 %v2426_v48, %v6878_v61  ;;  %v4765_v19 = vpop.eup %4764  ;;  %v2423_v42 = vadd.f32 1.0, %v4763_v24  ;;  %v6997_v52 = vmul.f32 0.5, %v6557_v49  ;;  %v7000_v27 = vadd.f32 %v1167_v47, %v5941_v12  ;;  %v9096_v49 = vld [vmem:[#allocation19_spill] sm:$0xff] }
 0x23a   : > { %v2176_v39 = vmul.f32 0.7978846, %v2048_v54  ;;  %v2425_v61 = vadd.f32 1.0, %v4765_v19  ;;  %v2178_v34 = vmul.f32 0.7978846, %v2050_v51  ;;  %v7003_v16 = vadd.f32 %v1424_v18, %v5943_v13  ;;  %v1173_v18 = vpop.f32.mrf.mxu0  ;;  %v1430_v19 = vpop.f32.mrf.mxu1 }
 0x23b   : > { %3218 = vmatprep.mubr.f32.mxu1 %v2554_v33  ;;  %v2047_v48 = vadd.f32 %v1919_v58, %v6509_v15  ;;  %v2551_v53 = vmul.f32 %v2423_v42, %v6911_v62  ;;  %v7008_v20 = vmul.f32 0.5, %v6509_v15  ;;  %v1921_v54 = vmul.f32 %v9096_v49, %v6515_v55 }
 0x23c   : > { %4774 = vtanh.f32 %v2176_v39  ;;  %v2553_v47 = vmul.f32 %v2425_v61, %v6921_v36  ;;  %v7014_v24 = vmul.f32 %v1697_v44, %v6965_v0  ;;  %v1696_v51 = vmul.f32 0.044715, %v7000_v27  ;;  %v9100_v39 = vld [vmem:[#allocation21_spill] sm:$0xff] }
 0x23d   : > { %4776 = vtanh.f32 %v2178_v34  ;;  %v2175_v33 = vmul.f32 0.7978846, %v2047_v48  ;;  %2962 = vmatmul.mubr.f32.gmra.mxu0 %v2551_v53  ;;  %v2049_v62 = vadd.f32 %v1921_v54, %v6515_v55  ;;  %v7019_v58 = vadd.f32 %v1171_v41, %v5936_v8 }
 0x23e   : > { %9097 = vst [vmem:[#allocation10_spill] sm:$0xff] %v7014_v24  ;;  %v7022_v15 = vadd.f32 %v1428_v50, %v5938_v9  ;;  %v4767_v42 = vpop.eup %4766  ;;  %3219 = vmatmul.mubr.f32.gmra.mxu1 %v2553_v47  ;;  %v1698_v36 = vmul.f32 0.044715, %v7003_v16  ;;  %v1924_v44 = vmul.f32 %v6640_v40, %v6597_v56  ;;  %v1926_v61 = vmul.f32 %v9100_v39, %v6600_v38 }
 0x23f   : > { %9098 = vst [vmem:[#allocation18_spill] sm:$0xff] %v7019_v58  ;;  %4778 = vtanh.f32 %v2175_v33  ;;  %v2428_v34 = vadd.f32 1.0, %v4767_v42  ;;  %v2177_v48 = vmul.f32 0.7978846, %v2049_v62  ;;  %v1699_v41 = vmul.f32 0.044715, %v7019_v58 }
 0x240   : > { %9099 = vst [vmem:[#allocation11_spill] sm:$0xff] %v7022_v15  ;;  %v7031_v53 = vadd.f32 %v1173_v18, %v5941_v12  ;;  %v4769_v50 = vpop.eup %4768  ;;  %v1701_v49 = vmul.f32 0.044715, %v7022_v15  ;;  %v2052_v54 = vadd.f32 %v1924_v44, %v6597_v56  ;;  %v2054_v47 = vadd.f32 %v1926_v61, %v6600_v38 }
 0x241   : > { %v7037_v33 = vadd.f32 %v1430_v19, %v5943_v13  ;;  %v2556_v39 = vmul.f32 %v2428_v34, %v6935_v60  ;;  %v2430_v42 = vadd.f32 1.0, %v4769_v50  ;;  %4780 = vtanh.f32 %v2177_v48  ;;  %v1177_v50 = vpop.f32.mrf.mxu0 }
 0x242   : > { %v4771_v40 = vpop.eup %4770  ;;  %v1827_v62 = vmul.f32 %v1699_v41, %v7019_v58  ;;  %v1829_v18 = vmul.f32 %v1701_v49, %v7022_v15  ;;  %v2180_v0 = vmul.f32 0.7978846, %v2052_v54  ;;  %v2182_v59 = vmul.f32 0.7978846, %v2054_v47  ;;  %v1434_v49 = vpop.f32.mrf.mxu1  ;;  %v9102_v47 = vld [vmem:[#allocation24_spill] sm:$0xff] }
 0x243   : > { %v2427_v24 = vadd.f32 1.0, %v4771_v40  ;;  %v4773_v35 = vpop.eup %4772  ;;  %2967 = vmatprep.mubr.f32.mxu0 %v2556_v39  ;;  %v2558_v44 = vmul.f32 %v2430_v42, %v6962_v45  ;;  %v7044_v61 = vmul.f32 0.5, %v6515_v55  ;;  %v1700_v60 = vmul.f32 0.044715, %v7031_v53  ;;  %v9105_v39 = vld [vmem:[#allocation25_spill] sm:$0xff] }
 0x244   : > { %v1955_v19 = vmul.f32 %v1827_v62, %v7019_v58  ;;  %v2429_v48 = vadd.f32 1.0, %v4773_v35  ;;  %4782 = vtanh.f32 %v2180_v0  ;;  %v1702_v41 = vmul.f32 0.044715, %v7037_v33 }
 0x245   : > { %v2555_v34 = vmul.f32 %v2427_v24, %v6969_v30  ;;  %3224 = vmatprep.mubr.f32.mxu1 %v2558_v44  ;;  %v7051_v54 = vmul.f32 %v1696_v51, %v7000_v27  ;;  %v7054_v45 = vmul.f32 %v1698_v36, %v7003_v16  ;;  %v7057_v55 = vmul.f32 0.5, %v6597_v56  ;;  %v9101_v24 = vld [vmem:[#allocation27_spill] sm:$0xff] }
 0x246   : > { %4784 = vtanh.f32 %v2182_v59  ;;  %v2557_v30 = vmul.f32 %v2429_v48, %v6972_v11  ;;  %v1957_v35 = vmul.f32 %v1829_v18, %v7022_v15  ;;  %v7062_v0 = vmul.f32 0.5, %v6600_v38  ;;  %v9104_v36 = vld [vmem:[#allocation15_spill] sm:$0xff] }
 0x247   : > { %2968 = vmatmul.mubr.f32.gmra.mxu0 %v2555_v34  ;;  %v1923_v40 = vmul.f32 %v9102_v47, %v9101_v24  ;;  %v7067_v51 = vadd.f32 %v1955_v19, %v7019_v58  ;;  %v1925_v42 = vmul.f32 %v9105_v39, %v9104_v36  ;;  %v7072_v56 = vadd.f32 %v1177_v50, %v5936_v8 }
 0x248   : > { %v7075_v59 = vadd.f32 %v1434_v49, %v5938_v9  ;;  %3225 = vmatmul.mubr.f32.gmra.mxu1 %v2557_v30  ;;  %v7078_v38 = vmul.f32 %v1700_v60, %v7031_v53  ;;  %v7081_v62 = vmul.f32 %v1702_v41, %v7037_v33  ;;  %v1928_v44 = vmul.f32 %v6694_v2, %v6651_v1 }
 0x249   : > { %9103 = vst [vmem:[#allocation26_spill] sm:$0xff] %v7067_v51  ;;  %9106 = vst [vmem:[#allocation19_spill] sm:$0xff] %v7072_v56  ;;  %v4775_v11 = vpop.eup %4774  ;;  %v2051_v18 = vadd.f32 %v1923_v40, %v9101_v24  ;;  %v2053_v48 = vadd.f32 %v1925_v42, %v9104_v36  ;;  %v1703_v50 = vmul.f32 0.044715, %v7072_v56  ;;  %v1930_v41 = vmul.f32 %v6703_v17, %v6667_v25  ;;  %v1179_v42 = vpop.f32.mrf.mxu0 }
 0x24a   : > { %9107 = vst [vmem:[#allocation21_spill] sm:$0xff] %v7075_v59  ;;  %9108 = vst [vmem:[#allocation27_spill] sm:$0xff] %v7081_v62  ;;  %v4777_v19 = vpop.eup %4776  ;;  %v2432_v34 = vadd.f32 1.0, %v4775_v11  ;;  %v1705_v49 = vmul.f32 0.044715, %v7075_v59  ;;  %v2056_v60 = vadd.f32 %v1928_v44, %v6651_v1  ;;  %v7097_v44 = vadd.f32 %v1957_v35, %v7022_v15 }
 0x24b   : > { %v2434_v30 = vadd.f32 1.0, %v4777_v19  ;;  %v2179_v47 = vmul.f32 0.7978846, %v2051_v18  ;;  %v2181_v58 = vmul.f32 0.7978846, %v2053_v48  ;;  %v1831_v2 = vmul.f32 %v1703_v50, %v7072_v56  ;;  %v1436_v18 = vpop.f32.mrf.mxu1 }
 0x24c   : > { %v4779_v39 = vpop.eup %4778  ;;  %v2560_v40 = vmul.f32 %v2432_v34, %v6988_v4  ;;  %v1833_v11 = vmul.f32 %v1705_v49, %v7075_v59  ;;  %v2184_v19 = vmul.f32 0.7978846, %v2056_v60  ;;  %v2058_v4 = vadd.f32 %v1930_v41, %v6667_v25  ;;  %v9110_v60 = vld [vmem:[#allocation28_spill] sm:$0xff] }
 0x24d   : > { %v2562_v51 = vmul.f32 %v2434_v30, %v6997_v52  ;;  %v2431_v62 = vadd.f32 1.0, %v4779_v39  ;;  %4786 = vtanh.f32 %v2179_v47  ;;  %v1959_v17 = vmul.f32 %v1831_v2, %v7072_v56  ;;  %v1183_v39 = vpop.f32.mrf.mxu0 }
 0x24e   : > { %2973 = vmatprep.mubr.f32.mxu0 %v2560_v40  ;;  %4788 = vtanh.f32 %v2181_v58  ;;  %v4781_v34 = vpop.eup %4780  ;;  %v1961_v50 = vmul.f32 %v1833_v11, %v7075_v59  ;;  %v7104_v52 = vadd.f32 %v1179_v42, %v5941_v12  ;;  %v7107_v30 = vmul.f32 0.5, %v9101_v24  ;;  %v1440_v24 = vpop.f32.mrf.mxu1 }
 0x24f   : > { %3230 = vmatprep.mubr.f32.mxu1 %v2562_v51  ;;  %v2559_v48 = vmul.f32 %v2431_v62, %v7008_v20  ;;  %4790 = vtanh.f32 %v2184_v19  ;;  %v2433_v49 = vadd.f32 1.0, %v4781_v34  ;;  %v7110_v58 = vmul.f32 0.5, %v9104_v36  ;;  %v9109_v62 = vld [vmem:[#allocation16_spill] sm:$0xff] }
 0x250   : > { %v2186_v35 = vmul.f32 0.7978846, %v2058_v4  ;;  %v7113_v47 = vmul.f32 0.5, %v6651_v1  ;;  %v7116_v20 = vmul.f32 0.5, %v6667_v25  ;;  %v7119_v51 = vadd.f32 %v1436_v18, %v5943_v13  ;;  %v9111_v1 = vld [vmem:[#allocation31_spill] sm:$0xff] }
 0x251   : > { %2974 = vmatmul.mubr.f32.gmra.mxu0 %v2559_v48  ;;  %v1927_v41 = vmul.f32 %v9110_v60, %v9109_v62  ;;  %v4783_v40 = vpop.eup %4782  ;;  %v2561_v36 = vmul.f32 %v2433_v49, %v7044_v61  ;;  %v7125_v2 = vadd.f32 %v1959_v17, %v7072_v56  ;;  %v1929_v11 = vmul.f32 %v9111_v1, %v6627_v6 }
 0x252   : > { %4792 = vtanh.f32 %v2186_v35  ;;  %v2436_v42 = vadd.f32 1.0, %v4783_v40  ;;  %v7130_v19 = vadd.f32 %v1961_v50, %v7075_v59  ;;  %v1704_v18 = vmul.f32 0.044715, %v7104_v52 }
 0x253   : > { %v4785_v25 = vpop.eup %4784  ;;  %v2055_v4 = vadd.f32 %v1927_v41, %v9109_v62  ;;  %3231 = vmatmul.mubr.f32.gmra.mxu1 %v2561_v36  ;;  %v2057_v61 = vadd.f32 %v1929_v11, %v6627_v6  ;;  %v7136_v17 = vadd.f32 %v1183_v39, %v5936_v8  ;;  %v7139_v48 = vadd.f32 %v1440_v24, %v5938_v9  ;;  %v1185_v39 = vpop.f32.mrf.mxu0 }
 0x254   : > { %9112 = vst [vmem:[#allocation24_spill] sm:$0xff] %v7130_v19  ;;  %v2438_v34 = vadd.f32 1.0, %v4785_v25  ;;  %v2564_v49 = vmul.f32 %v2436_v42, %v7057_v55  ;;  %v1706_v35 = vmul.f32 0.044715, %v7119_v51  ;;  %v1932_v60 = vmul.f32 %v6750_v3, %v6707_v5  ;;  %v1442_v25 = vpop.f32.mrf.mxu1 }
 0x255   : > { %9113 = vst [vmem:[#allocation15_spill] sm:$0xff] %v7136_v17  ;;  %9114 = vst [vmem:[#allocation25_spill] sm:$0xff] %v7139_v48  ;;  %v2183_v50 = vmul.f32 0.7978846, %v2055_v4  ;;  %v2185_v40 = vmul.f32 0.7978846, %v2057_v61  ;;  %v1934_v11 = vmul.f32 %v6759_v31, %v6714_v46  ;;  %v7160_v4 = vmul.f32 %v1704_v18, %v7104_v52 }
 0x256   : > { %v2566_v41 = vmul.f32 %v2438_v34, %v7062_v0  ;;  %v1707_v36 = vmul.f32 0.044715, %v7136_v17  ;;  %v1709_v1 = vmul.f32 0.044715, %v7139_v48  ;;  %2979 = vmatprep.mubr.f32.mxu0 %v2564_v49  ;;  %v7149_v24 = vmul.f32 0.5, %v9109_v62 }
 0x257   : > { %4794 = vtanh.f32 %v2183_v50  ;;  %v2060_v55 = vadd.f32 %v1932_v60, %v6707_v5  ;;  %v7155_v3 = vmul.f32 0.5, %v6627_v6  ;;  %v2062_v34 = vadd.f32 %v1934_v11, %v6714_v46  ;;  %v1189_v11 = vpop.f32.mrf.mxu0 }
 0x258   : > { %3236 = vmatprep.mubr.f32.mxu1 %v2566_v41  ;;  %4796 = vtanh.f32 %v2185_v40  ;;  %v1835_v0 = vmul.f32 %v1707_v36, %v7136_v17  ;;  %v1837_v42 = vmul.f32 %v1709_v1, %v7139_v48  ;;  %v7164_v61 = vadd.f32 %v1185_v39, %v5941_v12 }
 0x259   : > { %v2188_v62 = vmul.f32 0.7978846, %v2060_v55  ;;  %v7167_v49 = vmul.f32 %v1706_v35, %v7119_v51  ;;  %v7170_v6 = vmul.f32 0.5, %v6707_v5  ;;  %v7173_v50 = vadd.f32 %v1442_v25, %v5943_v13  ;;  %v1446_v25 = vpop.f32.mrf.mxu1 }
 0x25a   : > { %9115 = vst [vmem:[#allocation16_spill] sm:$0xff] %v7164_v61  ;;  %v4787_v31 = vpop.eup %4786  ;;  %v1931_v18 = vmul.f32 %v6719_v28, %v6673_v23  ;;  %v1963_v40 = vmul.f32 %v1835_v0, %v7136_v17  ;;  %v2190_v36 = vmul.f32 0.7978846, %v2062_v34  ;;  %v1965_v35 = vmul.f32 %v1837_v42, %v7139_v48 }
 0x25b   : > { %9116 = vst [vmem:[#allocation28_spill] sm:$0xff] %v7173_v50  ;;  %v4789_v60 = vpop.eup %4788  ;;  %v2435_v41 = vadd.f32 1.0, %v4787_v31  ;;  %4798 = vtanh.f32 %v2188_v62  ;;  %v7180_v55 = vmul.f32 0.5, %v6714_v46  ;;  %v7183_v5 = vmul.f32 0.5, %v6673_v23  ;;  %v9117_v31 = vld [vmem:[#allocation35_spill] sm:$0xff]  ;;  %v9118_v46 = vld [vmem:[#allocation29_spill] sm:$0xff] }
 0x25c   : > { %v4791_v1 = vpop.eup %4790  ;;  %v2437_v39 = vadd.f32 1.0, %v4789_v60  ;;  %4800 = vtanh.f32 %v2190_v36  ;;  %v1708_v0 = vmul.f32 0.044715, %v7164_v61  ;;  %v1710_v34 = vmul.f32 0.044715, %v7173_v50 }
 0x25d   : > { %v2563_v28 = vmul.f32 %v2435_v41, %v7107_v30  ;;  %v2440_v59 = vadd.f32 1.0, %v4791_v1  ;;  %v2059_v42 = vadd.f32 %v1931_v18, %v6673_v23  ;;  %v1933_v60 = vmul.f32 %v9118_v46, %v9117_v31  ;;  %v9122_v18 = vld [vmem:[#allocation34_spill] sm:$0xff]  ;;  %v9123_v1 = vld [vmem:[#allocation40_spill] sm:$0xff]  ;;  %v1191_v46 = vpop.f32.mrf.mxu0 }
 0x25e   : > { %v2565_v62 = vmul.f32 %v2437_v39, %v7110_v58  ;;  %v7194_v19 = vadd.f32 %v1963_v40, %v7136_v17  ;;  %v7197_v30 = vadd.f32 %v1189_v11, %v5936_v8  ;;  %v7200_v41 = vadd.f32 %v1446_v25, %v5938_v9  ;;  %v9125_v11 = vld [vmem:[#allocation33_spill] sm:$0xff] }
 0x25f   : > { %v4793_v56 = vpop.eup %4792  ;;  %2980 = vmatmul.mubr.f32.gmra.mxu0 %v2563_v28  ;;  %v2568_v15 = vmul.f32 %v2440_v59, %v7113_v47  ;;  %v2187_v36 = vmul.f32 0.7978846, %v2059_v42  ;;  %v2061_v23 = vadd.f32 %v1933_v60, %v9117_v31  ;;  %v1936_v39 = vmul.f32 %v9123_v1, %v9122_v18  ;;  %v9126_v28 = vld [vmem:[#allocation44_spill] sm:$0xff]  ;;  %v1448_v60 = vpop.f32.mrf.mxu1 }
 0x260   : > { %9119 = vst [vmem:[#allocation31_spill] sm:$0xff] %v7194_v19  ;;  %9120 = vst [vmem:[#allocation35_spill] sm:$0xff] %v7197_v30  ;;  %3237 = vmatmul.mubr.f32.gmra.mxu1 %v2565_v62  ;;  %v2442_v58 = vadd.f32 1.0, %v4793_v56  ;;  %v7206_v59 = vadd.f32 %v1965_v35, %v7139_v48  ;;  %v1711_v47 = vmul.f32 0.044715, %v7197_v30  ;;  %v1938_v25 = vmul.f32 %v9126_v28, %v9125_v11 }
 0x261   : > { %9121 = vst [vmem:[#allocation29_spill] sm:$0xff] %v7200_v41  ;;  %2985 = vmatprep.mubr.f32.mxu0 %v2568_v15  ;;  %v1713_v40 = vmul.f32 0.044715, %v7200_v41  ;;  %4802 = vtanh.f32 %v2187_v36  ;;  %v2189_v62 = vmul.f32 0.7978846, %v2061_v23  ;;  %v2064_v42 = vadd.f32 %v1936_v39, %v9122_v18 }
 0x262   : > { %9124 = vst [vmem:[#allocation34_spill] sm:$0xff] %v7206_v59  ;;  %v2570_v56 = vmul.f32 %v2442_v58, %v7116_v20  ;;  %v7215_v15 = vmul.f32 %v1708_v0, %v7164_v61  ;;  %v7218_v35 = vmul.f32 %v1710_v34, %v7173_v50  ;;  %v1839_v1 = vmul.f32 %v1711_v47, %v7197_v30 }
 0x263   : > { %v2066_v48 = vadd.f32 %v1938_v25, %v9125_v11  ;;  %4804 = vtanh.f32 %v2189_v62  ;;  %v1841_v20 = vmul.f32 %v1713_v40, %v7200_v41  ;;  %v2192_v58 = vmul.f32 0.7978846, %v2064_v42  ;;  %v1195_v40 = vpop.f32.mrf.mxu0 }
 0x264   : > { %9127 = vst [vmem:[#allocation40_spill] sm:$0xff] %v7215_v15  ;;  %9128 = vst [vmem:[#allocation33_spill] sm:$0xff] %v7218_v35  ;;  %v4795_v17 = vpop.eup %4794  ;;  %3242 = vmatprep.mubr.f32.mxu1 %v2570_v56  ;;  %v7224_v36 = vadd.f32 %v1191_v46, %v5941_v12  ;;  %v7227_v0 = vmul.f32 0.5, %v9117_v31  ;;  %v7230_v28 = vadd.f32 %v1448_v60, %v5943_v13  ;;  %v7234_v56 = vmul.f32 0.5, %v9122_v18 }
 0x265   : > { %v4797_v23 = vpop.eup %4796  ;;  %v2439_v39 = vadd.f32 1.0, %v4795_v17  ;;  %v2194_v34 = vmul.f32 0.7978846, %v2066_v48  ;;  %v1967_v25 = vmul.f32 %v1839_v1, %v7197_v30  ;;  %4806 = vtanh.f32 %v2192_v58  ;;  %v9130_v17 = vld [vmem:[#allocation32_spill] sm:$0xff]  ;;  %v1452_v48 = vpop.f32.mrf.mxu1 }
 0x266   : > { %9129 = vst [vmem:[#allocation44_spill] sm:$0xff] %v7230_v28  ;;  %v2441_v47 = vadd.f32 1.0, %v4797_v23  ;;  %v7238_v62 = vmul.f32 0.5, %v9125_v11  ;;  %v7241_v31 = vmul.f32 0.5, %v9130_v17  ;;  %v1969_v1 = vmul.f32 %v1841_v20, %v7200_v41  ;;  %v9131_v58 = vld [vmem:[#allocation36_spill] sm:$0xff]  ;;  %v1197_v61 = vpop.f32.mrf.mxu0 }
 0x267   : > { %v2567_v46 = vmul.f32 %v2439_v39, %v7149_v24  ;;  %4808 = vtanh.f32 %v2194_v34  ;;  %v1712_v18 = vmul.f32 0.044715, %v7224_v36  ;;  %v1935_v23 = vmul.f32 %v9131_v58, %v9130_v17  ;;  %v9132_v39 = vld [vmem:[#allocation30_spill] sm:$0xff]  ;;  %v9133_v34 = vld [vmem:[#allocation39_spill] sm:$0xff] }
 0x268   : > { %v4799_v42 = vpop.eup %4798  ;;  %v2569_v60 = vmul.f32 %v2441_v47, %v7155_v3  ;;  %v1714_v11 = vmul.f32 0.044715, %v7230_v28  ;;  %v1937_v59 = vmul.f32 %v9133_v34, %v9132_v39  ;;  %v7252_v19 = vadd.f32 %v1195_v40, %v5936_v8 }
 0x269   : > { %2986 = vmatmul.mubr.f32.gmra.mxu0 %v2567_v46  ;;  %v2444_v24 = vadd.f32 1.0, %v4799_v42  ;;  %v4801_v35 = vpop.eup %4800  ;;  %v7255_v3 = vadd.f32 %v1967_v25, %v7197_v30  ;;  %v2063_v20 = vadd.f32 %v1935_v23, %v9130_v17  ;;  %v7259_v47 = vadd.f32 %v1452_v48, %v5938_v9  ;;  %v9137_v46 = vld [vmem:[#allocation12_spill] sm:$0xff]  ;;  %v9138_v42 = vld [vmem:[#allocation42_spill] sm:$0xff]  ;;  %v1454_v23 = vpop.f32.mrf.mxu1 }
 0x26a   : > { %9134 = vst [vmem:[#allocation32_spill] sm:$0xff] %v7252_v19  ;;  %3243 = vmatmul.mubr.f32.gmra.mxu1 %v2569_v60  ;;  %v1940_v58 = vmul.f32 %v9138_v42, %v9137_v46  ;;  %v2446_v15 = vadd.f32 1.0, %v4801_v35  ;;  %v2065_v34 = vadd.f32 %v1937_v59, %v9132_v39  ;;  %v1715_v40 = vmul.f32 0.044715, %v7252_v19  ;;  %v9140_v35 = vld [vmem:[#allocation46_spill] sm:$0xff] }
 0x26b   : > { %9135 = vst [vmem:[#allocation36_spill] sm:$0xff] %v7255_v3  ;;  %9136 = vst [vmem:[#allocation30_spill] sm:$0xff] %v7259_v47  ;;  %v2572_v50 = vmul.f32 %v2444_v24, %v7170_v6  ;;  %v7267_v60 = vadd.f32 %v1969_v1, %v7200_v41  ;;  %v2191_v25 = vmul.f32 0.7978846, %v2063_v20  ;;  %v1717_v17 = vmul.f32 0.044715, %v7259_v47 }
 0x26c   : > { %v2068_v48 = vadd.f32 %v1940_v58, %v9137_v46  ;;  %v2574_v42 = vmul.f32 %v2446_v15, %v7180_v55  ;;  %v2193_v30 = vmul.f32 0.7978846, %v2065_v34  ;;  %v1843_v6 = vmul.f32 %v1715_v40, %v7252_v19  ;;  %v9141_v59 = vld [vmem:[#allocation22_spill] sm:$0xff] }
 0x26d   : > { %9139 = vst [vmem:[#allocation39_spill] sm:$0xff] %v7267_v60  ;;  %2991 = vmatprep.mubr.f32.mxu0 %v2572_v50  ;;  %v1942_v24 = vmul.f32 %v9141_v59, %v9140_v35  ;;  %4810 = vtanh.f32 %v2191_v25  ;;  %v1845_v3 = vmul.f32 %v1717_v17, %v7259_v47  ;;  %v7277_v20 = vadd.f32 %v1197_v61, %v5941_v12 }
 0x26e   : > { %v2196_v1 = vmul.f32 0.7978846, %v2068_v48  ;;  %v4803_v41 = vpop.eup %4802  ;;  %3248 = vmatprep.mubr.f32.mxu1 %v2574_v42  ;;  %4812 = vtanh.f32 %v2193_v30  ;;  %v1971_v50 = vmul.f32 %v1843_v6, %v7252_v19  ;;  %v7282_v15 = vadd.f32 %v1454_v23, %v5943_v13  ;;  %v1201_v23 = vpop.f32.mrf.mxu0 }
 0x26f   : > { %v2070_v55 = vadd.f32 %v1942_v24, %v9140_v35  ;;  %v2443_v58 = vadd.f32 1.0, %v4803_v41  ;;  %v7285_v34 = vmul.f32 %v1712_v18, %v7224_v36  ;;  %v7288_v40 = vmul.f32 %v1714_v11, %v7230_v28  ;;  %v1458_v6 = vpop.f32.mrf.mxu1  ;;  %v9143_v24 = vld [vmem:[#allocation37_spill] sm:$0xff] }
 0x270   : > { %4814 = vtanh.f32 %v2196_v1  ;;  %v4805_v61 = vpop.eup %4804  ;;  %v7291_v25 = vmul.f32 0.5, %v9132_v39  ;;  %v7294_v30 = vmul.f32 0.5, %v9137_v46  ;;  %v7297_v17 = vmul.f32 0.5, %v9140_v35  ;;  %v9144_v35 = vld [vmem:[#allocation41_spill] sm:$0xff] }
 0x271   : > { %9142 = vst [vmem:[#allocation12_spill] sm:$0xff] %v7288_v40  ;;  %v2198_v48 = vmul.f32 0.7978846, %v2070_v55  ;;  %v2571_v41 = vmul.f32 %v2443_v58, %v7183_v5  ;;  %v2445_v18 = vadd.f32 1.0, %v4805_v61  ;;  %v1973_v42 = vmul.f32 %v1845_v3, %v7259_v47  ;;  %v9145_v61 = vld [vmem:[#allocation38_spill] sm:$0xff]  ;;  %v9146_v3 = vld [vmem:[#allocation43_spill] sm:$0xff] }
 0x272   : > { %v1716_v11 = vmul.f32 0.044715, %v7277_v20  ;;  %v4807_v59 = vpop.eup %4806  ;;  %v7303_v39 = vadd.f32 %v1971_v50, %v7252_v19  ;;  %v1718_v46 = vmul.f32 0.044715, %v7282_v15  ;;  %v1939_v1 = vmul.f32 %v9144_v35, %v9143_v24  ;;  %v1460_v35 = vpop.f32.mrf.mxu1 }
 0x273   : > { %4816 = vtanh.f32 %v2198_v48  ;;  %2992 = vmatmul.mubr.f32.gmra.mxu0 %v2571_v41  ;;  %v2573_v5 = vmul.f32 %v2445_v18, %v7227_v0  ;;  %v2448_v58 = vadd.f32 1.0, %v4807_v59  ;;  %v1941_v60 = vmul.f32 %v9146_v3, %v9145_v61  ;;  %v1203_v59 = vpop.f32.mrf.mxu0 }
 0x274   : > { %v4809_v55 = vpop.eup %4808  ;;  %v7312_v40 = vadd.f32 %v1201_v23, %v5936_v8  ;;  %v7315_v50 = vmul.f32 0.5, %v9143_v24  ;;  %v2067_v48 = vadd.f32 %v1939_v1, %v9143_v24  ;;  %v7319_v19 = vadd.f32 %v1458_v6, %v5938_v9 }
 0x275   : > { %v2450_v28 = vadd.f32 1.0, %v4809_v55  ;;  %3249 = vmatmul.mubr.f32.gmra.mxu1 %v2573_v5  ;;  %v2576_v41 = vmul.f32 %v2448_v58, %v7234_v56  ;;  %v2069_v0 = vadd.f32 %v1941_v60, %v9145_v61  ;;  %v1944_v23 = vmul.f32 %v6918_v22, %v6882_v7 }
 0x276   : > { %9147 = vst [vmem:[#allocation42_spill] sm:$0xff] %v7319_v19  ;;  %v1719_v18 = vmul.f32 0.044715, %v7312_v40  ;;  %v7328_v3 = vadd.f32 %v1973_v42, %v7259_v47  ;;  %v2195_v24 = vmul.f32 0.7978846, %v2067_v48  ;;  %v1946_v5 = vmul.f32 %v6932_v63, %v6890_v21  ;;  %v9149_v47 = vld [vmem:[#allocation9_spill] sm:$0xff] }
 0x277   : > { %v2578_v55 = vmul.f32 %v2450_v28, %v7238_v62  ;;  %v1721_v6 = vmul.f32 0.044715, %v7319_v19  ;;  %2997 = vmatprep.mubr.f32.mxu0 %v2576_v41  ;;  %v2197_v1 = vmul.f32 0.7978846, %v2069_v0  ;;  %v2072_v60 = vadd.f32 %v1944_v23, %v6882_v7 }
 0x278   : > { %9148 = vst [vmem:[#allocation46_spill] sm:$0xff] %v7328_v3  ;;  %v1847_v56 = vmul.f32 %v1719_v18, %v7312_v40  ;;  %4818 = vtanh.f32 %v2195_v24  ;;  %v7337_v28 = vadd.f32 %v1203_v59, %v5941_v12  ;;  %v7340_v62 = vadd.f32 %v1460_v35, %v5943_v13  ;;  %v1207_v24 = vpop.f32.mrf.mxu0 }
 0x279   : > { %3254 = vmatprep.mubr.f32.mxu1 %v2578_v55  ;;  %v1849_v22 = vmul.f32 %v1721_v6, %v7319_v19  ;;  %v7343_v42 = vmul.f32 %v1716_v11, %v7277_v20  ;;  %4820 = vtanh.f32 %v2197_v1  ;;  %v2200_v58 = vmul.f32 0.7978846, %v2072_v60 }
 0x27a   : > { %v2074_v48 = vadd.f32 %v1946_v5, %v6890_v21  ;;  %v4811_v41 = vpop.eup %4810  ;;  %v7347_v63 = vmul.f32 %v1718_v46, %v7282_v15  ;;  %v7350_v0 = vmul.f32 0.5, %v9145_v61  ;;  %v7353_v18 = vmul.f32 0.5, %v6882_v7  ;;  %v1464_v7 = vpop.f32.mrf.mxu1 }
 0x27b   : > { %v7356_v23 = vmul.f32 0.5, %v6890_v21  ;;  %v4813_v59 = vpop.eup %4812  ;;  %v2447_v11 = vadd.f32 1.0, %v4811_v41  ;;  %v1975_v35 = vmul.f32 %v1847_v56, %v7312_v40  ;;  %4822 = vtanh.f32 %v2200_v58  ;;  %v9150_v41 = vld [vmem:[#allocation17_spill] sm:$0xff] }
 0x27c   : > { %v2202_v55 = vmul.f32 0.7978846, %v2074_v48  ;;  %v2449_v1 = vadd.f32 1.0, %v4813_v59  ;;  %v1977_v46 = vmul.f32 %v1849_v22, %v7319_v19  ;;  %v1720_v61 = vmul.f32 0.044715, %v7337_v28 }
 0x27d   : > { %v4815_v6 = vpop.eup %4814  ;;  %v1722_v60 = vmul.f32 0.044715, %v7340_v62  ;;  %v2575_v5 = vmul.f32 %v2447_v11, %v7241_v31  ;;  %v1943_v3 = vmul.f32 %v9150_v41, %v9149_v47  ;;  %v7367_v58 = vmul.f32 0.5, %v9149_v47 }
 0x27e   : > { %v2452_v21 = vadd.f32 1.0, %v4815_v6  ;;  %4824 = vtanh.f32 %v2202_v55  ;;  %v2577_v56 = vmul.f32 %v2449_v1, %v7291_v25  ;;  %v1945_v22 = vmul.f32 %v6906_v26, %v6863_v37 }
 0x27f   : > { %v7372_v48 = vadd.f32 %v1207_v24, %v5936_v8  ;;  %2998 = vmatmul.mubr.f32.gmra.mxu0 %v2575_v5  ;;  %v7376_v11 = vadd.f32 %v1975_v35, %v7312_v40  ;;  %v2071_v55 = vadd.f32 %v1943_v3, %v9149_v47  ;;  %v7380_v25 = vadd.f32 %v1464_v7, %v5938_v9  ;;  %v1209_v5 = vpop.f32.mrf.mxu0 }
 0x280   : > { %v4817_v59 = vpop.eup %4816  ;;  %v2580_v31 = vmul.f32 %v2452_v21, %v7294_v30  ;;  %3255 = vmatmul.mubr.f32.gmra.mxu1 %v2577_v56  ;;  %v2073_v1 = vadd.f32 %v1945_v22, %v6863_v37  ;;  %v1948_v24 = vmul.f32 %v6977_v43, %v6929_v10  ;;  %v7387_v30 = vadd.f32 %v1977_v46, %v7319_v19  ;;  %v1466_v22 = vpop.f32.mrf.mxu1 }
 0x281   : > { %9151 = vst [vmem:[#allocation22_spill] sm:$0xff] %v7372_v48  ;;  %9152 = vst [vmem:[#allocation37_spill] sm:$0xff] %v7380_v25  ;;  %v2454_v6 = vadd.f32 1.0, %v4817_v59  ;;  %v1723_v26 = vmul.f32 0.044715, %v7372_v48  ;;  %v1950_v3 = vmul.f32 %v6982_v32, %v6938_v29  ;;  %v7398_v59 = vadd.f32 %v1209_v5, %v5941_v12  ;;  %v1213_v5 = vpop.f32.mrf.mxu0 }
 0x282   : > { %3003 = vmatprep.mubr.f32.mxu0 %v2580_v31  ;;  %v2199_v35 = vmul.f32 0.7978846, %v2071_v55  ;;  %v1725_v47 = vmul.f32 0.044715, %v7380_v25  ;;  %v2201_v21 = vmul.f32 0.7978846, %v2073_v1  ;;  %v2076_v56 = vadd.f32 %v1948_v24, %v6929_v10 }
 0x283   : > { %v2582_v7 = vmul.f32 %v2454_v6, %v7297_v17  ;;  %v1851_v41 = vmul.f32 %v1723_v26, %v7372_v48  ;;  %v2078_v46 = vadd.f32 %v1950_v3, %v6938_v29  ;;  %v7401_v31 = vmul.f32 %v1720_v61, %v7337_v28  ;;  %v1215_v19 = vpop.f32.mrf.mxu0 }
 0x284   : > { %4826 = vtanh.f32 %v2199_v35  ;;  %v1853_v43 = vmul.f32 %v1725_v47, %v7380_v25  ;;  %v2204_v17 = vmul.f32 0.7978846, %v2076_v56  ;;  %v7405_v6 = vmul.f32 %v1722_v60, %v7340_v62 }
 0x285   : > { %3260 = vmatprep.mubr.f32.mxu1 %v2582_v7  ;;  %4828 = vtanh.f32 %v2201_v21  ;;  %v1979_v32 = vmul.f32 %v1851_v41, %v7372_v48  ;;  %v4819_v55 = vpop.eup %4818  ;;  %v7408_v1 = vmul.f32 0.5, %v6863_v37  ;;  %v7411_v26 = vmul.f32 0.5, %v6929_v10  ;;  %v1470_v7 = vpop.f32.mrf.mxu1 }
 0x286   : > { %v2206_v24 = vmul.f32 0.7978846, %v2078_v46  ;;  %v4821_v35 = vpop.eup %4820  ;;  %v2451_v47 = vadd.f32 1.0, %v4819_v55  ;;  %4830 = vtanh.f32 %v2204_v17  ;;  %v7414_v61 = vmul.f32 0.5, %v6938_v29  ;;  %v9153_v29 = vld [vmem:[#allocation13_spill] sm:$0xff] }
 0x287   : > { %v7417_v3 = vadd.f32 %v1466_v22, %v5943_v13  ;;  %v2453_v60 = vadd.f32 1.0, %v4821_v35  ;;  %v1981_v21 = vmul.f32 %v1853_v43, %v7380_v25  ;;  %v1724_v37 = vmul.f32 0.044715, %v7398_v59  ;;  %v9154_v43 = vld [vmem:[#allocation20_spill] sm:$0xff] }
 0x288   : > { %4832 = vtanh.f32 %v2206_v24  ;;  %v4823_v10 = vpop.eup %4822  ;;  %v2579_v41 = vmul.f32 %v2451_v47, %v7315_v50  ;;  %v7423_v56 = vadd.f32 %v1979_v32, %v7372_v48  ;;  %v7426_v46 = vmul.f32 0.5, %v6893_v57 }
 0x289   : > { %v1947_v22 = vmul.f32 %v9153_v29, %v6893_v57  ;;  %v2581_v17 = vmul.f32 %v2453_v60, %v7350_v0  ;;  %v2456_v55 = vadd.f32 1.0, %v4823_v10  ;;  %v1949_v24 = vmul.f32 %v9154_v43, %v6903_v14  ;;  %v1472_v60 = vpop.f32.mrf.mxu1 }
 0x28a   : > { %v7434_v35 = vadd.f32 %v1213_v5, %v5936_v8  ;;  %3004 = vmatmul.mubr.f32.gmra.mxu0 %v2579_v41  ;;  %v1726_v32 = vmul.f32 0.044715, %v7417_v3  ;;  %v7439_v48 = vadd.f32 %v1470_v7, %v5938_v9  ;;  %v1952_v0 = vmul.f32 %v7051_v54, %v7000_v27  ;;  %v7446_v41 = vpop.f32.mrf.mxu0 }
 0x28b   : > { %v4825_v50 = vpop.eup %4824  ;;  %v2075_v47 = vadd.f32 %v1947_v22, %v6893_v57  ;;  %3261 = vmatmul.mubr.f32.gmra.mxu1 %v2581_v17  ;;  %v2584_v10 = vmul.f32 %v2456_v55, %v7353_v18  ;;  %v2077_v8 = vadd.f32 %v1949_v24, %v6903_v14  ;;  %v7449_v43 = vadd.f32 %v1981_v21, %v7380_v25  ;;  %v7453_v54 = vpop.f32.mrf.mxu1  ;;  %v9162_v25 = vld [vmem:[#allocation23_spill] sm:$0xff] }
 0x28c   : > { %9155 = vst [vmem:[#allocation41_spill] sm:$0xff] %v7434_v35  ;;  %9156 = vst [vmem:[#allocation38_spill] sm:$0xff] %v7439_v48  ;;  %v2458_v29 = vadd.f32 1.0, %v4825_v50  ;;  %v1727_v5 = vmul.f32 0.044715, %v7434_v35  ;;  %v2080_v7 = vadd.f32 %v1952_v0, %v7000_v27  ;;  %v1954_v55 = vmul.f32 %v7054_v45, %v7003_v16 }
 0x28d   : > { %v2203_v57 = vmul.f32 0.7978846, %v2075_v47  ;;  %v1729_v9 = vmul.f32 0.044715, %v7439_v48  ;;  %3009 = vmatprep.mubr.f32.mxu0 %v2584_v10  ;;  %v2205_v22 = vmul.f32 0.7978846, %v2077_v8  ;;  %v7461_v50 = vadd.f32 %v1215_v19, %v5941_v12  ;;  %v7470_v10 = vpop.f32.mrf.mxu0  ;;  %v7481_v19 = vpop.f32.mrf.mxu1 }
 0x28e   : > { %v2586_v18 = vmul.f32 %v2458_v29, %v7356_v23  ;;  %v1855_v17 = vmul.f32 %v1727_v5, %v7434_v35  ;;  %v2208_v24 = vmul.f32 0.7978846, %v2080_v7  ;;  %v7464_v47 = vmul.f32 %v1724_v37, %v7398_v59  ;;  %9157 = vst [vmem:[#allocation43_spill] sm:$0xff] %v7470_v10  ;;  %9158 = vst [vmem:[#allocation9_spill] sm:$0xff] %v7481_v19  ;;  %v9159_v7 = vld [vmem:[#allocation14_spill] sm:$0xff] }
 0x28f   : > { %4834 = vtanh.f32 %v2203_v57  ;;  %v1857_v21 = vmul.f32 %v1729_v9, %v7439_v48  ;;  %v2082_v23 = vadd.f32 %v1954_v55, %v7003_v16  ;;  %v7468_v0 = vadd.f32 %v1472_v60, %v5943_v13  ;;  %v9163_v19 = vld [vmem:[#allocation10_spill] sm:$0xff]  ;;  %v7502_v10 = vpop.f32.mrf.mxu1 }
 0x290   : > { %3266 = vmatprep.mubr.f32.mxu1 %v2586_v18  ;;  %4836 = vtanh.f32 %v2205_v22  ;;  %v7473_v29 = vmul.f32 %v1726_v32, %v7417_v3  ;;  %v7476_v8 = vmul.f32 0.5, %v6903_v14  ;;  %v7479_v12 = vmul.f32 0.5, %v7000_v27  ;;  %v9160_v18 = vld [vmem:[#allocation45_spill] sm:$0xff] }
 0x291   : > { %v4827_v45 = vpop.eup %4826  ;;  %4838 = vtanh.f32 %v2208_v24  ;;  %v1983_v13 = vmul.f32 %v1855_v17, %v7434_v35  ;;  %v1985_v60 = vmul.f32 %v1857_v21, %v7439_v48  ;;  %v2210_v57 = vmul.f32 0.7978846, %v2082_v23  ;;  %v7496_v21 = vpop.f32.mrf.mxu0 }
 0x292   : > { %v4829_v37 = vpop.eup %4828  ;;  %v2455_v5 = vadd.f32 1.0, %v4827_v45  ;;  %v7486_v32 = vmul.f32 0.5, %v7003_v16  ;;  %v1728_v14 = vmul.f32 0.044715, %v7461_v50  ;;  %v1951_v27 = vmul.f32 %v9160_v18, %v9159_v7  ;;  %9161 = vst [vmem:[#allocation17_spill] sm:$0xff] %v7496_v21 }
 0x293   : > { %v2457_v9 = vadd.f32 1.0, %v4829_v37  ;;  %v4831_v22 = vpop.eup %4830  ;;  %4840 = vtanh.f32 %v2210_v57  ;;  %v1730_v24 = vmul.f32 0.044715, %v7468_v0  ;;  %v7494_v17 = vmul.f32 0.5, %v9159_v7 }
 0x294   : > { %v2583_v55 = vmul.f32 %v2455_v5, %v7367_v58  ;;  %v2460_v45 = vadd.f32 1.0, %v4831_v22  ;;  %v2079_v37 = vadd.f32 %v1951_v27, %v9159_v7  ;;  %v1953_v18 = vmul.f32 %v9163_v19, %v9162_v25  ;;  %v9164_v19 = vld [vmem:[#allocation27_spill] sm:$0xff] }
 0x295   : > { %v4833_v23 = vpop.eup %4832  ;;  %v2585_v16 = vmul.f32 %v2457_v9, %v7408_v1  ;;  %v7505_v5 = vadd.f32 %v1983_v13, %v7434_v35  ;;  %v7508_v57 = vadd.f32 %v1985_v60, %v7439_v48  ;;  %v1956_v21 = vmul.f32 %v7078_v38, %v7031_v53  ;;  %v7522_v48 = vpop.f32.mrf.mxu0 }
 0x296   : > { %3010 = vmatmul.mubr.f32.gmra.mxu0 %v2583_v55  ;;  %v2462_v58 = vadd.f32 1.0, %v4833_v23  ;;  %v2588_v1 = vmul.f32 %v2460_v45, %v7411_v26  ;;  %v2207_v9 = vmul.f32 0.7978846, %v2079_v37  ;;  %v2081_v7 = vadd.f32 %v1953_v18, %v9162_v25  ;;  %v9165_v55 = vld [vmem:[#allocation26_spill] sm:$0xff]  ;;  %v7528_v45 = vpop.f32.mrf.mxu1 }
 0x297   : > { %3267 = vmatmul.mubr.f32.gmra.mxu1 %v2585_v16  ;;  %v1958_v27 = vmul.f32 %v9164_v19, %v7037_v33  ;;  %v7518_v13 = vmul.f32 %v1728_v14, %v7461_v50  ;;  %v2084_v60 = vadd.f32 %v1956_v21, %v7031_v53  ;;  %v2211_v23 = vmul.f32 0.7978846, %v9165_v55 }
 0x298   : > { %v2590_v22 = vmul.f32 %v2462_v58, %v7414_v61  ;;  %3015 = vmatprep.mubr.f32.mxu0 %v2588_v1  ;;  %v7525_v38 = vmul.f32 %v1730_v24, %v7468_v0  ;;  %4842 = vtanh.f32 %v2207_v9  ;;  %v2209_v26 = vmul.f32 0.7978846, %v2081_v7  ;;  %v7545_v7 = vpop.f32.mrf.mxu0 }
 0x299   : > { %v2086_v16 = vadd.f32 %v1958_v27, %v7037_v33  ;;  %v7531_v61 = vmul.f32 0.5, %v9162_v25  ;;  %v2212_v14 = vmul.f32 0.7978846, %v2084_v60  ;;  %4844 = vtanh.f32 %v2211_v23  ;;  %9166 = vst [vmem:[#allocation13_spill] sm:$0xff] %v7545_v7 }
 0x29a   : > { %3272 = vmatprep.mubr.f32.mxu1 %v2590_v22  ;;  %v2213_v21 = vmul.f32 0.7978846, %v7097_v44  ;;  %4846 = vtanh.f32 %v2209_v26  ;;  %v7535_v37 = vmul.f32 0.5, %v7031_v53  ;;  %v1960_v18 = vmul.f32 %v7160_v4, %v7104_v52  ;;  %v9167_v53 = vld [vmem:[#allocation18_spill] sm:$0xff]  ;;  %v7551_v22 = vpop.f32.mrf.mxu1 }
 0x29b   : > { %v2214_v24 = vmul.f32 0.7978846, %v2086_v16  ;;  %4848 = vtanh.f32 %v2212_v14  ;;  %v7540_v1 = vmul.f32 0.5, %v7037_v33  ;;  %v1962_v25 = vmul.f32 %v7167_v49, %v7119_v51  ;;  %9168 = vst [vmem:[#allocation20_spill] sm:$0xff] %v7551_v22  ;;  %v9169_v49 = vld [vmem:[#allocation24_spill] sm:$0xff] }
 0x29c   : > { %v4835_v58 = vpop.eup %4834  ;;  %v2215_v9 = vmul.f32 0.7978846, %v7125_v2  ;;  %v7548_v27 = vmul.f32 0.5, %v9167_v53  ;;  %v2088_v4 = vadd.f32 %v1960_v18, %v7104_v52  ;;  %v2217_v23 = vmul.f32 0.7978846, %v9169_v49  ;;  %v7560_v53 = vpop.f32.mrf.mxu0 }
 0x29d   : > { %v4837_v44 = vpop.eup %4836  ;;  %v2459_v19 = vadd.f32 1.0, %v4835_v58  ;;  %4850 = vtanh.f32 %v2214_v24  ;;  %v2090_v55 = vadd.f32 %v1962_v25, %v7119_v51  ;;  %v9170_v24 = vld [vmem:[#allocation11_spill] sm:$0xff]  ;;  %9171 = vst [vmem:[#allocation14_spill] sm:$0xff] %v7560_v53  ;;  %v7564_v25 = vmul.f32 0.5, %v7104_v52 }
 0x29e   : > { %v4839_v60 = vpop.eup %4838  ;;  %v2461_v33 = vadd.f32 1.0, %v4837_v44  ;;  %4852 = vtanh.f32 %v2213_v21  ;;  %v2216_v16 = vmul.f32 0.7978846, %v2088_v4  ;;  %v7558_v58 = vmul.f32 0.5, %v9170_v24  ;;  %v7568_v4 = vpop.f32.mrf.mxu1 }
 0x29f   : > { %v2587_v2 = vmul.f32 %v2459_v19, %v7426_v46  ;;  %v2464_v26 = vadd.f32 1.0, %v4839_v60  ;;  %4854 = vtanh.f32 %v2215_v9  ;;  %v2218_v18 = vmul.f32 0.7978846, %v2090_v55  ;;  %v9172_v46 = vld [vmem:[#allocation16_spill] sm:$0xff]  ;;  %9174 = vst [vmem:[#allocation45_spill] sm:$0xff] %v7568_v4  ;;  %v9176_v55 = vld [vmem:[#allocation33_spill] sm:$0xff] }
 0x2a0   : > { %v2589_v14 = vmul.f32 %v2461_v33, %v7476_v8  ;;  %4856 = vtanh.f32 %v2217_v23  ;;  %v4841_v44 = vpop.eup %4840  ;;  %v9173_v19 = vld [vmem:[#allocation40_spill] sm:$0xff]  ;;  %v7571_v60 = vmul.f32 0.5, %v7119_v51  ;;  %v7595_v35 = vpop.f32.mrf.mxu1 }
 0x2a1   : > { %3016 = vmatmul.mubr.f32.gmra.mxu0 %v2587_v2  ;;  %v2592_v21 = vmul.f32 %v2464_v26, %v7479_v12  ;;  %4858 = vtanh.f32 %v2216_v16  ;;  %v1964_v9 = vmul.f32 %v9173_v19, %v9172_v46  ;;  %v2466_v8 = vadd.f32 1.0, %v4841_v44  ;;  %v9175_v33 = vld [vmem:[#allocation28_spill] sm:$0xff]  ;;  %v9177_v12 = vld [vmem:[#allocation19_spill] sm:$0xff]  ;;  %v9179_v16 = vld [vmem:[#allocation34_spill] sm:$0xff]  ;;  %9184 = vst [vmem:[#allocation10_spill] sm:$0xff] %v7595_v35 }
 0x2a2   : > { %3273 = vmatmul.mubr.f32.gmra.mxu1 %v2589_v14  ;;  %4860 = vtanh.f32 %v2218_v18  ;;  %v1966_v49 = vmul.f32 %v9176_v55, %v9175_v33  ;;  %v7576_v23 = vmul.f32 0.5, %v9177_v12  ;;  %v9178_v2 = vld [vmem:[#allocation31_spill] sm:$0xff]  ;;  %v2221_v24 = vmul.f32 0.7978846, %v9179_v16  ;;  %v9180_v44 = vld [vmem:[#allocation21_spill] sm:$0xff]  ;;  %v9182_v12 = vld [vmem:[#allocation44_spill] sm:$0xff] }
 0x2a3   : > { %3021 = vmatprep.mubr.f32.mxu0 %v2592_v21  ;;  %v2092_v52 = vadd.f32 %v1964_v9, %v9172_v46  ;;  %v2219_v26 = vmul.f32 0.7978846, %v9178_v2  ;;  %v2594_v14 = vmul.f32 %v2466_v8, %v7486_v32  ;;  %v7583_v19 = vmul.f32 0.5, %v9180_v44  ;;  %v7588_v21 = vpop.f32.mrf.mxu0  ;;  %v9183_v2 = vld [vmem:[#allocation12_spill] sm:$0xff]  ;;  %v9186_v35 = vld [vmem:[#allocation15_spill] sm:$0xff] }
 0x2a4   : > { %v2094_v51 = vadd.f32 %v1966_v49, %v9175_v33  ;;  %v1968_v18 = vmul.f32 %v7285_v34, %v7224_v36  ;;  %9181 = vst [vmem:[#allocation23_spill] sm:$0xff] %v7588_v21  ;;  %v7591_v55 = vmul.f32 0.5, %v9172_v46  ;;  %v1970_v16 = vmul.f32 %v9183_v2, %v9182_v12 }
 0x2a5   : > { %v2220_v9 = vmul.f32 0.7978846, %v2092_v52  ;;  %4862 = vtanh.f32 %v2219_v26  ;;  %v4843_v32 = vpop.eup %4842  ;;  %3278 = vmatprep.mubr.f32.mxu1 %v2594_v14  ;;  %v7598_v8 = vmul.f32 0.5, %v9175_v33  ;;  %v9185_v52 = vld [vmem:[#allocation36_spill] sm:$0xff]  ;;  %v7604_v53 = vmul.f32 0.5, %v9186_v35  ;;  %v7606_v33 = vpop.f32.mrf.mxu0 }
 0x2a6   : > { %v2222_v49 = vmul.f32 0.7978846, %v2094_v51  ;;  %4864 = vtanh.f32 %v2221_v24  ;;  %v2096_v34 = vadd.f32 %v1968_v18, %v7224_v36  ;;  %v4845_v44 = vpop.eup %4844  ;;  %v2463_v21 = vadd.f32 1.0, %v4843_v32  ;;  %9187 = vst [vmem:[#allocation27_spill] sm:$0xff] %v7606_v33 }
 0x2a7   : > { %4866 = vtanh.f32 %v2220_v9  ;;  %v2098_v46 = vadd.f32 %v1970_v16, %v9182_v12  ;;  %v2223_v26 = vmul.f32 0.7978846, %v9185_v52  ;;  %v4847_v4 = vpop.eup %4846  ;;  %v2467_v2 = vadd.f32 1.0, %v4845_v44  ;;  %v7609_v9 = vpop.f32.mrf.mxu1  ;;  %v9188_v52 = vld [vmem:[#allocation25_spill] sm:$0xff] }
 0x2a8   : > { %4868 = vtanh.f32 %v2222_v49  ;;  %v2224_v14 = vmul.f32 0.7978846, %v2096_v34  ;;  %v4849_v51 = vpop.eup %4848  ;;  %v2591_v24 = vmul.f32 %v2463_v21, %v7494_v17  ;;  %v2465_v18 = vadd.f32 1.0, %v4847_v4  ;;  %v9189_v49 = vld [vmem:[#allocation39_spill] sm:$0xff] }
 0x2a9   : > { %v2226_v22 = vmul.f32 0.7978846, %v2098_v46  ;;  %4870 = vtanh.f32 %v2223_v26  ;;  %v2468_v32 = vadd.f32 1.0, %v4849_v51  ;;  %v7612_v7 = vmul.f32 0.5, %v9188_v52 }
 0x2aa   : > { %v4851_v16 = vpop.eup %4850  ;;  %4872 = vtanh.f32 %v2224_v14  ;;  %v2225_v35 = vmul.f32 0.7978846, %v9189_v49  ;;  %3022 = vmatmul.mubr.f32.gmra.mxu0 %v2591_v24  ;;  %v2593_v34 = vmul.f32 %v2465_v18, %v7531_v61  ;;  %v7617_v17 = vmul.f32 0.5, %v7224_v36  ;;  %v7622_v14 = vpop.f32.mrf.mxu0 }
 0x2ab   : > { %v4853_v44 = vpop.eup %4852  ;;  %v2470_v33 = vadd.f32 1.0, %v4851_v16  ;;  %4874 = vtanh.f32 %v2226_v22  ;;  %v2596_v21 = vmul.f32 %v2468_v32, %v7535_v37  ;;  %v1972_v26 = vmul.f32 %v7343_v42, %v7277_v20  ;;  %v7631_v37 = vpop.f32.mrf.mxu1  ;;  %v9190_v32 = vld [vmem:[#allocation35_spill] sm:$0xff] }
 0x2ac   : > { %v4855_v4 = vpop.eup %4854  ;;  %v2469_v46 = vadd.f32 1.0, %v4853_v44  ;;  %4876 = vtanh.f32 %v2225_v35  ;;  %3279 = vmatmul.mubr.f32.gmra.mxu1 %v2593_v34  ;;  %v2595_v61 = vmul.f32 %v2467_v2, %v7548_v27  ;;  %v7627_v36 = vmul.f32 0.5, %v9182_v12  ;;  %v9191_v35 = vld [vmem:[#allocation29_spill] sm:$0xff] }
 0x2ad   : > { %v4857_v51 = vpop.eup %4856  ;;  %v2598_v24 = vmul.f32 %v2470_v33, %v7540_v1  ;;  %v1974_v22 = vmul.f32 %v7347_v63, %v7282_v15  ;;  %3027 = vmatprep.mubr.f32.mxu0 %v2596_v21  ;;  %v2471_v16 = vadd.f32 1.0, %v4855_v4  ;;  %v7635_v52 = vmul.f32 0.5, %v9190_v32  ;;  %v7646_v4 = vpop.f32.mrf.mxu0 }
 0x2ae   : > { %v4859_v18 = vpop.eup %4858  ;;  %v2597_v42 = vmul.f32 %v2469_v46, %v7558_v58  ;;  %v2100_v1 = vadd.f32 %v1972_v26, %v7277_v20  ;;  %3028 = vmatmul.mubr.f32.gmra.mxu0 %v2595_v61  ;;  %v2473_v12 = vadd.f32 1.0, %v4857_v51  ;;  %v2227_v63 = vmul.f32 0.7978846, %v7303_v39  ;;  %v9192_v26 = vld [vmem:[#allocation46_spill] sm:$0xff] }
 0x2af   : > { %v4861_v33 = vpop.eup %4860  ;;  %3284 = vmatprep.mubr.f32.mxu1 %v2598_v24  ;;  %v2472_v27 = vadd.f32 1.0, %v4859_v18  ;;  %v2102_v2 = vadd.f32 %v1974_v22, %v7282_v15  ;;  %v7641_v44 = vmul.f32 0.5, %v9191_v35  ;;  %v7644_v58 = vmul.f32 0.5, %v7277_v20  ;;  %v7650_v24 = vpop.f32.mrf.mxu1 }
 0x2b0   : > { %v2474_v49 = vadd.f32 1.0, %v4861_v33  ;;  %v2228_v34 = vmul.f32 0.7978846, %v2100_v1  ;;  %3285 = vmatmul.mubr.f32.gmra.mxu1 %v2597_v42  ;;  %4878 = vtanh.f32 %v2227_v63  ;;  %v2229_v51 = vmul.f32 0.7978846, %v9192_v26  ;;  %v7666_v33 = vpop.f32.mrf.mxu0 }
 0x2b1   : > { %v2600_v21 = vmul.f32 %v2472_v27, %v7564_v25  ;;  %v2230_v46 = vmul.f32 0.7978846, %v2102_v2  ;;  %v2599_v22 = vmul.f32 %v2471_v16, %v7576_v23  ;;  %v1976_v20 = vmul.f32 %v7401_v31, %v7337_v28  ;;  %v9193_v23 = vld [vmem:[#allocation32_spill] sm:$0xff]  ;;  %v7670_v63 = vpop.f32.mrf.mxu1 }
 0x2b2   : > { %v4863_v39 = vpop.eup %4862  ;;  %v2602_v61 = vmul.f32 %v2474_v49, %v7571_v60  ;;  %4880 = vtanh.f32 %v2228_v34  ;;  %v2601_v42 = vmul.f32 %v2473_v12, %v7583_v19  ;;  %v1978_v32 = vmul.f32 %v7405_v6, %v7340_v62  ;;  %v9194_v34 = vld [vmem:[#allocation30_spill] sm:$0xff] }
 0x2b3   : > { %v4865_v18 = vpop.eup %4864  ;;  %3033 = vmatprep.mubr.f32.mxu0 %v2600_v21  ;;  %v2475_v25 = vadd.f32 1.0, %v4863_v39  ;;  %4882 = vtanh.f32 %v2230_v46  ;;  %v7660_v60 = vmul.f32 0.5, %v7282_v15  ;;  %v7663_v16 = vmul.f32 0.5, %v9193_v23 }
 0x2b4   : > { %v4867_v1 = vpop.eup %4866  ;;  %3290 = vmatprep.mubr.f32.mxu1 %v2602_v61  ;;  %3034 = vmatmul.mubr.f32.gmra.mxu0 %v2599_v22  ;;  %4884 = vtanh.f32 %v2229_v51  ;;  %v2104_v31 = vadd.f32 %v1976_v20, %v7337_v28  ;;  %v2477_v12 = vadd.f32 1.0, %v4865_v18  ;;  %v2106_v6 = vadd.f32 %v1978_v32, %v7340_v62 }
 0x2b5   : > { %v4869_v19 = vpop.eup %4868  ;;  %3291 = vmatmul.mubr.f32.gmra.mxu1 %v2601_v42  ;;  %v2476_v27 = vadd.f32 1.0, %v4867_v1  ;;  %v2231_v2 = vmul.f32 0.7978846, %v7376_v11  ;;  %v2603_v35 = vmul.f32 %v2475_v25, %v7604_v53  ;;  %v7674_v21 = vmul.f32 0.5, %v9194_v34  ;;  %v7679_v42 = vpop.f32.mrf.mxu0 }
 0x2b6   : > { %v4871_v15 = vpop.eup %4870  ;;  %v2478_v49 = vadd.f32 1.0, %v4869_v19  ;;  %v2232_v46 = vmul.f32 0.7978846, %v2104_v31  ;;  %v2234_v61 = vmul.f32 0.7978846, %v2106_v6  ;;  %v2605_v25 = vmul.f32 %v2477_v12, %v7612_v7 }
 0x2b7   : > { %v4873_v26 = vpop.eup %4872  ;;  %v2604_v51 = vmul.f32 %v2476_v27, %v7591_v55  ;;  %v2479_v39 = vadd.f32 1.0, %v4871_v15  ;;  %4886 = vtanh.f32 %v2231_v2  ;;  %v2233_v18 = vmul.f32 0.7978846, %v7387_v30  ;;  %v7685_v55 = vpop.f32.mrf.mxu1  ;;  %v9195_v27 = vld [vmem:[#allocation42_spill] sm:$0xff] }
 0x2b8   : > { %v4875_v22 = vpop.eup %4874  ;;  %v2606_v20 = vmul.f32 %v2478_v49, %v7598_v8  ;;  %v2480_v11 = vadd.f32 1.0, %v4873_v26  ;;  %4888 = vtanh.f32 %v2232_v46  ;;  %v7683_v1 = vmul.f32 0.5, %v7337_v28 }
 0x2b9   : > { %v4877_v53 = vpop.eup %4876  ;;  %3039 = vmatprep.mubr.f32.mxu0 %v2604_v51  ;;  %v2482_v32 = vadd.f32 1.0, %v4875_v22  ;;  %4890 = vtanh.f32 %v2234_v61  ;;  %v1980_v30 = vmul.f32 %v7464_v47, %v7398_v59  ;;  %v7692_v7 = vmul.f32 0.5, %v7340_v62 }
 0x2ba   : > { %3296 = vmatprep.mubr.f32.mxu1 %v2606_v20  ;;  %3040 = vmatmul.mubr.f32.gmra.mxu0 %v2603_v35  ;;  %v2608_v8 = vmul.f32 %v2480_v11, %v7617_v17  ;;  %v2481_v23 = vadd.f32 1.0, %v4877_v53  ;;  %4892 = vtanh.f32 %v2233_v18  ;;  %v7695_v28 = vmul.f32 0.5, %v7312_v40 }
 0x2bb   : > { %3297 = vmatmul.mubr.f32.gmra.mxu1 %v2605_v25  ;;  %v2610_v31 = vmul.f32 %v2482_v32, %v7627_v36  ;;  %v1982_v19 = vmul.f32 %v7473_v29, %v7417_v3  ;;  %v2607_v17 = vmul.f32 %v2479_v39, %v7635_v52  ;;  %v7701_v12 = vmul.f32 0.5, %v9195_v27  ;;  %v7705_v36 = vpop.f32.mrf.mxu0  ;;  %v7712_v52 = vpop.f32.mrf.mxu1 }
 0x2bc   : > { %3045 = vmatprep.mubr.f32.mxu0 %v2608_v8  ;;  %v2108_v47 = vadd.f32 %v1980_v30, %v7398_v59  ;;  %v2235_v6 = vmul.f32 0.7978846, %v7423_v56  ;;  %v2609_v62 = vmul.f32 %v2481_v23, %v7641_v44  ;;  %v2237_v2 = vmul.f32 0.7978846, %v7449_v43 }
 0x2bd   : > { %3302 = vmatprep.mubr.f32.mxu1 %v2610_v31  ;;  %v2110_v40 = vadd.f32 %v1982_v19, %v7417_v3  ;;  %v1984_v29 = vmul.f32 %v7518_v13, %v7461_v50  ;;  %v4879_v15 = vpop.eup %4878  ;;  %v7715_v49 = vmul.f32 0.5, %v7398_v59  ;;  %v1986_v35 = vmul.f32 %v7525_v38, %v7468_v0  ;;  %v7724_v39 = vpop.f32.mrf.mxu0  ;;  %v9196_v38 = vld [vmem:[#allocation22_spill] sm:$0xff]  ;;  %v2627_v31 = vld [vmem:[#allocation2 + $0xb0] sm:$0xff] }
 0x2be   : > { %3046 = vmatmul.mubr.f32.gmra.mxu0 %v2607_v17  ;;  %v2236_v56 = vmul.f32 0.7978846, %v2108_v47  ;;  %4894 = vtanh.f32 %v2235_v6  ;;  %v2483_v34 = vadd.f32 1.0, %v4879_v15  ;;  %v7721_v51 = vmul.f32 0.5, %v7417_v3  ;;  %v7729_v18 = vpop.f32.mrf.mxu1  ;;  %v2628_v19 = vld [vmem:[#allocation2 + $0x1b0] sm:$0xff]  ;;  %v9197_v47 = vld [vmem:[#allocation43_spill] sm:$0xff] }
 0x2bf   : > { %v4881_v44 = vpop.eup %4880  ;;  %3303 = vmatmul.mubr.f32.gmra.mxu1 %v2609_v62  ;;  %v2238_v46 = vmul.f32 0.7978846, %v2110_v40  ;;  %4896 = vtanh.f32 %v2237_v2  ;;  %v2112_v43 = vadd.f32 %v1984_v29, %v7461_v50  ;;  %v2114_v59 = vadd.f32 %v1986_v35, %v7468_v0  ;;  %v9198_v6 = vld [vmem:[#allocation9_spill] sm:$0xff]  ;;  %v2629_v62 = vld [vmem:[#allocation2 + $0xd8] sm:$0xff] }
 0x2c0   : > { %v4883_v13 = vpop.eup %4882  ;;  %v2484_v26 = vadd.f32 1.0, %v4881_v44  ;;  %4898 = vtanh.f32 %v2236_v56  ;;  %v7727_v20 = vmul.f32 0.5, %v9196_v38  ;;  %v2239_v3 = vmul.f32 0.7978846, %v7505_v5  ;;  %v9199_v2 = vld [vmem:[#allocation17_spill] sm:$0xff]  ;;  %v9202_v38 = vld [vmem:[#allocation14_spill] sm:$0xff] }
 0x2c1   : > { %v4885_v61 = vpop.eup %4884  ;;  %v2486_v22 = vadd.f32 1.0, %v4883_v13  ;;  %4900 = vtanh.f32 %v2238_v46  ;;  %v2240_v11 = vmul.f32 0.7978846, %v2112_v43  ;;  %v2242_v32 = vmul.f32 0.7978846, %v2114_v59  ;;  %v2632_v59 = vld [vmem:[#allocation2 + $0x168] sm:$0xff] }
 0x2c2   : > { %v2612_v53 = vmul.f32 %v2484_v26, %v7644_v58  ;;  %v2485_v25 = vadd.f32 1.0, %v4885_v61  ;;  %v2611_v23 = vmul.f32 %v2483_v34, %v7663_v16  ;;  %v2241_v30 = vmul.f32 0.7978846, %v7508_v57  ;;  %v7741_v40 = vpop.f32.mrf.mxu0  ;;  %v2631_v26 = vld [vmem:[#allocation2 + $0x50] sm:$0xff] }
 0x2c3   : > { %v2614_v8 = vmul.f32 %v2486_v22, %v7660_v60  ;;  %4902 = vtanh.f32 %v2240_v11  ;;  %v3143_v58 = vadd.f32 %v7453_v54, %v7446_v41  ;;  %v3145_v5 = vadd.f32 %v9198_v6, %v9197_v47  ;;  %v2630_v60 = vld [vmem:[#allocation2 + $0x18] sm:$0xff]  ;;  %v7747_v15 = vpop.f32.mrf.mxu1  ;;  %v9203_v11 = vld [vmem:[#allocation45_spill] sm:$0xff] }
 0x2c4   : > { %v4887_v17 = vpop.eup %4886  ;;  %3051 = vmatprep.mubr.f32.mxu0 %v2612_v53  ;;  %v2613_v27 = vmul.f32 %v2485_v25, %v7674_v21  ;;  %4904 = vtanh.f32 %v2242_v32  ;;  %v3149_v29 = vadd.f32 %v7502_v10, %v9199_v2  ;;  %v3151_v21 = vadd.f32 %v7528_v45, %v7522_v48  ;;  %v9200_v48 = vld [vmem:[#allocation13_spill] sm:$0xff]  ;;  %v9201_v45 = vld [vmem:[#allocation20_spill] sm:$0xff] }
 0x2c5   : > { %v4889_v16 = vpop.eup %4888  ;;  %3308 = vmatprep.mubr.f32.mxu1 %v2614_v8  ;;  %3052 = vmatmul.mubr.f32.gmra.mxu0 %v2611_v23  ;;  %v2487_v57 = vadd.f32 1.0, %v4887_v17  ;;  %4906 = vtanh.f32 %v2239_v3  ;;  %v3333_v56 = vadd.f32 %v3143_v58, %v2627_v31  ;;  %v3334_v35 = vadd.f32 %v3145_v5, %v2628_v19  ;;  %v2633_v25 = vld [vmem:[#allocation2 + $0x130] sm:$0xff]  ;;  %v2634_v32 = vld [vmem:[#allocation2 + $0x48] sm:$0xff]  ;;  %v2635_v3 = vld [vmem:[#allocation2 + $0x180] sm:$0xff]  ;;  %v7755_v8 = vpop.f32.mrf.mxu0 }
 0x2c6   : > { %v4891_v41 = vpop.eup %4890  ;;  %3309 = vmatmul.mubr.f32.gmra.mxu1 %v2613_v27  ;;  %v2488_v54 = vadd.f32 1.0, %v4889_v16  ;;  %4908 = vtanh.f32 %v2241_v30  ;;  %v3335_v43 = vadd.f32 %v3149_v29, %v2629_v62  ;;  %v3336_v13 = vadd.f32 %v3151_v21, %v2630_v60  ;;  %v9204_v23 = vld [vmem:[#allocation23_spill] sm:$0xff]  ;;  %v2636_v27 = vld [vmem:[#allocation2 + $0x110] sm:$0xff]  ;;  %v3186_v58 = vpop.f32.mrf.mxu1  ;;  %v2637_v29 = vld [vmem:[#allocation2 + $0x118] sm:$0xff] }
 0x2c7   : > { %v4893_v44 = vpop.eup %4892  ;;  %v2490_v34 = vadd.f32 1.0, %v4891_v41  ;;  %v2615_v46 = vmul.f32 %v2487_v57, %v7695_v28  ;;  %3397 = vst [vmem:[#allocation2 + $0xb0] sm:$0xff] %v3333_v56  ;;  %3398 = vst [vmem:[#allocation2 + $0x1b0] sm:$0xff] %v3334_v35  ;;  %v3155_v22 = vadd.f32 %v9201_v45, %v9200_v48  ;;  %v3157_v53 = vadd.f32 %v9203_v11, %v9202_v38  ;;  %v9206_v31 = vld [vmem:[#allocation27_spill] sm:$0xff]  ;;  %v9207_v60 = vld [vmem:[#allocation37_spill] sm:$0xff] }
 0x2c8   : > { %v2616_v10 = vmul.f32 %v2488_v54, %v7683_v1  ;;  %v2489_v61 = vadd.f32 1.0, %v4893_v44  ;;  %3399 = vst [vmem:[#allocation2 + $0xd8] sm:$0xff] %v3335_v43  ;;  %3400 = vst [vmem:[#allocation2 + $0x18] sm:$0xff] %v3336_v13  ;;  %v9205_v1 = vld [vmem:[#allocation10_spill] sm:$0xff]  ;;  %v3163_v19 = vadd.f32 %v7609_v9, %v9206_v31  ;;  %v3167_v17 = vadd.f32 %v7631_v37, %v7622_v14  ;;  %v2639_v41 = vld [vmem:[#allocation2 + $0x120] sm:$0xff] }
 0x2c9   : > { %v2618_v28 = vmul.f32 %v2490_v34, %v7692_v7  ;;  %v3161_v30 = vadd.f32 %v9205_v1, %v9204_v23  ;;  %v3337_v6 = vadd.f32 %v3155_v22, %v2631_v26  ;;  %v3338_v5 = vadd.f32 %v3157_v53, %v2632_v59  ;;  %v2638_v14 = vld [vmem:[#allocation2 + $0x98] sm:$0xff]  ;;  %v2640_v54 = vld [vmem:[#allocation2 + $0x150] sm:$0xff]  ;;  %v2643_v45 = vld [vmem:[#allocation2 + $0xe0] sm:$0xff] }
 0x2ca   : > { %3057 = vmatprep.mubr.f32.mxu0 %v2616_v10  ;;  %v2617_v47 = vmul.f32 %v2489_v61, %v7701_v12  ;;  %v3169_v7 = vadd.f32 %v7650_v24, %v7646_v4  ;;  %v1597_v16 = vmul.f32 0.5, %v9207_v60  ;;  %v3340_v9 = vadd.f32 %v3163_v19, %v2634_v32  ;;  %v2644_v11 = vld [vmem:[#allocation2 + $0x188] sm:$0xff]  ;;  %v9208_v19 = vld [vmem:[#allocation41_spill] sm:$0xff]  ;;  %v2645_v60 = vld [vmem:[#allocation2 + $0x138] sm:$0xff] }
 0x2cb   : > { %v4895_v62 = vpop.eup %4894  ;;  %3314 = vmatprep.mubr.f32.mxu1 %v2618_v28  ;;  %3058 = vmatmul.mubr.f32.gmra.mxu0 %v2615_v46  ;;  %v3339_v57 = vadd.f32 %v3161_v30, %v2633_v25  ;;  %v3341_v2 = vadd.f32 %v3167_v17, %v2635_v3  ;;  %v1600_v21 = vmul.f32 0.5, %v7461_v50  ;;  %3401 = vst [vmem:[#allocation2 + $0x50] sm:$0xff] %v3337_v6  ;;  %3402 = vst [vmem:[#allocation2 + $0x168] sm:$0xff] %v3338_v5  ;;  %v2933_v56 = vpop.f32.mrf.mxu0  ;;  %v2641_v46 = vld [vmem:[#allocation2 + $0x108] sm:$0xff] }
 0x2cc   : > { %v4897_v37 = vpop.eup %4896  ;;  %3315 = vmatmul.mubr.f32.gmra.mxu1 %v2617_v47  ;;  %v3342_v12 = vadd.f32 %v3169_v7, %v2636_v27  ;;  %v3173_v4 = vadd.f32 %v7670_v63, %v7666_v33  ;;  %v3175_v24 = vadd.f32 %v7685_v55, %v7679_v42  ;;  %v2491_v44 = vadd.f32 1.0, %v4895_v62  ;;  %3404 = vst [vmem:[#allocation2 + $0x48] sm:$0xff] %v3340_v9  ;;  %v3190_v63 = vpop.f32.mrf.mxu1 }
 0x2cd   : > { %v4899_v35 = vpop.eup %4898  ;;  %3403 = vst [vmem:[#allocation2 + $0x130] sm:$0xff] %v3339_v57  ;;  %3405 = vst [vmem:[#allocation2 + $0x180] sm:$0xff] %v3341_v2  ;;  %v3179_v50 = vadd.f32 %v7712_v52, %v7705_v36  ;;  %v3181_v34 = vadd.f32 %v7729_v18, %v7724_v39  ;;  %v3185_v33 = vadd.f32 %v7747_v15, %v7741_v40  ;;  %v2493_v43 = vadd.f32 1.0, %v4897_v37  ;;  %v2935_v59 = vpop.f32.mrf.mxu0  ;;  %v2642_v52 = vld [vmem:[#allocation2 + $0x60] sm:$0xff] }
 0x2ce   : > { %v4901_v42 = vpop.eup %4900  ;;  %v2492_v55 = vadd.f32 1.0, %v4899_v35  ;;  %3406 = vst [vmem:[#allocation2 + $0x110] sm:$0xff] %v3342_v12  ;;  %v3343_v13 = vadd.f32 %v3173_v4, %v2637_v29  ;;  %v3344_v26 = vadd.f32 %v3175_v24, %v2638_v14  ;;  %v1602_v61 = vmul.f32 0.5, %v7468_v0  ;;  %v3192_v39 = vpop.f32.mrf.mxu1  ;;  %v2646_v2 = vld [vmem:[#allocation2 + $0x140] sm:$0xff] }
 0x2cf   : > { %v2494_v10 = vadd.f32 1.0, %v4901_v42  ;;  %v3345_v48 = vadd.f32 %v3179_v50, %v2639_v41  ;;  %v3346_v36 = vadd.f32 %v3181_v34, %v2640_v54  ;;  %v3347_v40 = vadd.f32 %v3185_v33, %v2641_v46  ;;  %v2647_v4 = vld [vmem:[#allocation2 + $0x80] sm:$0xff]  ;;  %v2649_v33 = vld [vmem:[#allocation2 + $0x1b8] sm:$0xff] }
 0x2d0   : > { %v4903_v18 = vpop.eup %4902  ;;  %v2620_v22 = vmul.f32 %v2492_v55, %v7715_v49  ;;  %3407 = vst [vmem:[#allocation2 + $0x118] sm:$0xff] %v3343_v13  ;;  %3408 = vst [vmem:[#allocation2 + $0x98] sm:$0xff] %v3344_v26  ;;  %v3187_v15 = vadd.f32 %v3186_v58, %v7755_v8  ;;  %v3191_v38 = vadd.f32 %v3190_v63, %v2933_v56  ;;  %v1599_v17 = vmul.f32 0.5, %v9208_v19  ;;  %v9209_v58 = vld [vmem:[#allocation38_spill] sm:$0xff]  ;;  %v2648_v56 = vld [vmem:[#allocation2 + $0x1a8] sm:$0xff] }
 0x2d1   : > { %v4905_v53 = vpop.eup %4904  ;;  %v2622_v25 = vmul.f32 %v2494_v10, %v7721_v51  ;;  %v2619_v0 = vmul.f32 %v2491_v44, %v7727_v20  ;;  %v2496_v32 = vadd.f32 1.0, %v4903_v18  ;;  %3409 = vst [vmem:[#allocation2 + $0x120] sm:$0xff] %v3345_v48  ;;  %3410 = vst [vmem:[#allocation2 + $0x150] sm:$0xff] %v3346_v36  ;;  %v3193_v3 = vadd.f32 %v3192_v39, %v2935_v59  ;;  %v2651_v48 = vld [vmem:[#allocation2 + $0x1e8] sm:$0xff]  ;;  %v2652_v39 = vld [vmem:[#allocation2 + $0xf8] sm:$0xff] }
 0x2d2   : > { %v4907_v28 = vpop.eup %4906  ;;  %3063 = vmatprep.mubr.f32.mxu0 %v2620_v22  ;;  %v2621_v23 = vmul.f32 %v2493_v43, %v1597_v16  ;;  %v2498_v49 = vadd.f32 1.0, %v4905_v53  ;;  %3411 = vst [vmem:[#allocation2 + $0x108] sm:$0xff] %v3347_v40  ;;  %v3348_v1 = vadd.f32 %v3187_v15, %v2642_v52  ;;  %v3349_v30 = vadd.f32 %v3191_v38, %v2643_v45  ;;  %v2650_v43 = vld [vmem:[#allocation2 + $0x28] sm:$0xff] }
 0x2d3   : > { %v4909_v31 = vpop.eup %4908  ;;  %3320 = vmatprep.mubr.f32.mxu1 %v2622_v25  ;;  %3064 = vmatmul.mubr.f32.gmra.mxu0 %v2619_v0  ;;  %v2624_v8 = vmul.f32 %v2496_v32, %v1600_v21  ;;  %v2495_v51 = vadd.f32 1.0, %v4907_v28  ;;  %v3350_v27 = vadd.f32 %v3193_v3, %v2644_v11  ;;  %v1601_v47 = vmul.f32 0.5, %v9209_v58  ;;  %v2653_v11 = vld [vmem:[#allocation2 + $0x160] sm:$0xff]  ;;  %v2654_v32 = vld [vmem:[#allocation2 + $0x30] sm:$0xff] }
 0x2d4   : > { %3321 = vmatmul.mubr.f32.gmra.mxu1 %v2621_v23  ;;  %v2626_v20 = vmul.f32 %v2498_v49, %v1602_v61  ;;  %v2497_v6 = vadd.f32 1.0, %v4909_v31  ;;  %3412 = vst [vmem:[#allocation2 + $0x60] sm:$0xff] %v3348_v1  ;;  %3413 = vst [vmem:[#allocation2 + $0xe0] sm:$0xff] %v3349_v30  ;;  %v2939_v7 = vpop.f32.mrf.mxu0  ;;  %v2655_v30 = vld [vmem:[#allocation2 + $0x1e0] sm:$0xff] }
 0x2d5   : > { %3069 = vmatprep.mubr.f32.mxu0 %v2624_v8  ;;  %v2623_v5 = vmul.f32 %v2495_v51, %v1599_v17  ;;  %3414 = vst [vmem:[#allocation2 + $0x188] sm:$0xff] %v3350_v27  ;;  %v2656_v17 = vld [vmem:[#allocation2] sm:$0xff] }
 0x2d6   : > { %3326 = vmatprep.mubr.f32.mxu1 %v2626_v20  ;;  %v2625_v62 = vmul.f32 %v2497_v6, %v1601_v47  ;;  %v3196_v16 = vpop.f32.mrf.mxu1  ;;  %v2941_v57 = vpop.f32.mrf.mxu0  ;;  %v2657_v6 = vld [vmem:[#allocation2 + $0xf0] sm:$0xff] }
 0x2d7   : > { %3070 = vmatmul.mubr.f32.gmra.mxu0 %v2623_v5  ;;  %v3197_v9 = vadd.f32 %v3196_v16, %v2939_v7 }
 0x2d8   : > { %3327 = vmatmul.mubr.f32.gmra.mxu1 %v2625_v62  ;;  %v3198_v29 = vpop.f32.mrf.mxu1 }
 0x2d9   : > { %v3351_v14 = vadd.f32 %v3197_v9, %v2645_v60  ;;  %v3199_v37 = vadd.f32 %v3198_v29, %v2941_v57  ;;  %v2658_v60 = vld [vmem:[#allocation2 + $0x8] sm:$0xff] }
 0x2db   : > { %3415 = vst [vmem:[#allocation2 + $0x138] sm:$0xff] %v3351_v14  ;;  %v3352_v21 = vadd.f32 %v3199_v37, %v2646_v2  ;;  %v2659_v14 = vld [vmem:[#allocation2 + $0x148] sm:$0xff] }
 0x2dd   : > { %3416 = vst [vmem:[#allocation2 + $0x140] sm:$0xff] %v3352_v21 }
 0x2de   : > { %v2945_v12 = vpop.f32.mrf.mxu0 }
 0x2e0   : > { %v2947_v41 = vpop.f32.mrf.mxu0 }
 0x2e1   : > { %v3202_v24 = vpop.f32.mrf.mxu1 }
 0x2e2   : > { %v3203_v54 = vadd.f32 %v3202_v24, %v2945_v12 }
 0x2e3   : > { %v3204_v35 = vpop.f32.mrf.mxu1 }
 0x2e4   : > { %v3353_v44 = vadd.f32 %v3203_v54, %v2647_v4  ;;  %v3205_v50 = vadd.f32 %v3204_v35, %v2947_v41  ;;  %v2660_v4 = vld [vmem:[#allocation2 + $0x1d0] sm:$0xff] }
 0x2e6   : > { %3417 = vst [vmem:[#allocation2 + $0x80] sm:$0xff] %v3353_v44  ;;  %v3354_v34 = vadd.f32 %v3205_v50, %v2648_v56  ;;  %v2661_v44 = vld [vmem:[#allocation2 + $0x100] sm:$0xff] }
 0x2e8   : > { %3418 = vst [vmem:[#allocation2 + $0x1a8] sm:$0xff] %v3354_v34 }
 0x2eb   : > { %v2951_v46 = vpop.f32.mrf.mxu0 }
 0x2ed   : > { %v3208_v63 = vpop.f32.mrf.mxu1  ;;  %v2953_v42 = vpop.f32.mrf.mxu0 }
 0x2ee   : > { %v3209_v55 = vadd.f32 %v3208_v63, %v2951_v46 }
 0x2ef   : > { %v3210_v13 = vpop.f32.mrf.mxu1 }
 0x2f0   : > { %v3355_v26 = vadd.f32 %v3209_v55, %v2649_v33  ;;  %v3211_v59 = vadd.f32 %v3210_v13, %v2953_v42  ;;  %v2662_v33 = vld [vmem:[#allocation2 + $0xc8] sm:$0xff] }
 0x2f2   : > { %3419 = vst [vmem:[#allocation2 + $0x1b8] sm:$0xff] %v3355_v26  ;;  %v3356_v10 = vadd.f32 %v3211_v59, %v2650_v43  ;;  %v2663_v26 = vld [vmem:[#allocation2 + $0x40] sm:$0xff] }
 0x2f4   : > { %3420 = vst [vmem:[#allocation2 + $0x28] sm:$0xff] %v3356_v10 }
 0x2f5   : > { %v2957_v61 = vpop.f32.mrf.mxu0 }
 0x2f6   : > { %v3214_v36 = vpop.f32.mrf.mxu1 }
 0x2f7   : > { %v3215_v52 = vadd.f32 %v3214_v36, %v2957_v61  ;;  %v2959_v45 = vpop.f32.mrf.mxu0 }
 0x2f8   : > { %v3216_v18 = vpop.f32.mrf.mxu1 }
 0x2f9   : > { %v3357_v22 = vadd.f32 %v3215_v52, %v2651_v48  ;;  %v3217_v40 = vadd.f32 %v3216_v18, %v2959_v45  ;;  %v2664_v48 = vld [vmem:[#allocation2 + $0x1f8] sm:$0xff] }
 0x2fb   : > { %3421 = vst [vmem:[#allocation2 + $0x1e8] sm:$0xff] %v3357_v22  ;;  %v3358_v15 = vadd.f32 %v3217_v40, %v2652_v39  ;;  %v2665_v22 = vld [vmem:[#allocation2 + $0x20] sm:$0xff] }
 0x2fd   : > { %3422 = vst [vmem:[#allocation2 + $0xf8] sm:$0xff] %v3358_v15  ;;  %v2963_v38 = vpop.f32.mrf.mxu0 }
 0x2fe   : > { %v3220_v53 = vpop.f32.mrf.mxu1 }
 0x2ff   : > { %v3221_v25 = vadd.f32 %v3220_v53, %v2963_v38  ;;  %v2965_v0 = vpop.f32.mrf.mxu0 }
 0x300   : > { %v3222_v3 = vpop.f32.mrf.mxu1 }
 0x301   : > { %v3359_v28 = vadd.f32 %v3221_v25, %v2653_v11  ;;  %v3223_v23 = vadd.f32 %v3222_v3, %v2965_v0  ;;  %v2666_v11 = vld [vmem:[#allocation2 + $0x128] sm:$0xff] }
 0x303   : > { %3423 = vst [vmem:[#allocation2 + $0x160] sm:$0xff] %v3359_v28  ;;  %v3360_v49 = vadd.f32 %v3223_v23, %v2654_v32  ;;  %v2667_v28 = vld [vmem:[#allocation2 + $0x1a0] sm:$0xff] }
 0x305   : > { %3424 = vst [vmem:[#allocation2 + $0x30] sm:$0xff] %v3360_v49 }
 0x307   : > { %v2969_v1 = vpop.f32.mrf.mxu0 }
 0x308   : > { %v3226_v31 = vpop.f32.mrf.mxu1 }
 0x309   : > { %v2971_v8 = vpop.f32.mrf.mxu0  ;;  %v3227_v19 = vadd.f32 %v3226_v31, %v2969_v1 }
 0x30a   : > { %v3228_v51 = vpop.f32.mrf.mxu1 }
 0x30b   : > { %v3361_v27 = vadd.f32 %v3227_v19, %v2655_v30  ;;  %v3229_v20 = vadd.f32 %v3228_v51, %v2971_v8  ;;  %v2668_v30 = vld [vmem:[#allocation2 + $0x1f0] sm:$0xff] }
 0x30d   : > { %3425 = vst [vmem:[#allocation2 + $0x1e0] sm:$0xff] %v3361_v27  ;;  %v3362_v58 = vadd.f32 %v3229_v20, %v2656_v17  ;;  %v2669_v27 = vld [vmem:[#allocation2 + $0xe8] sm:$0xff] }
 0x30f   : > { %3426 = vst [vmem:[#allocation2] sm:$0xff] %v3362_v58 }
 0x311   : > { %v2975_v47 = vpop.f32.mrf.mxu0 }
 0x313   : > { %v3232_v5 = vpop.f32.mrf.mxu1  ;;  %v2977_v7 = vpop.f32.mrf.mxu0 }
 0x314   : > { %v3233_v62 = vadd.f32 %v3232_v5, %v2975_v47 }
 0x315   : > { %v3234_v16 = vpop.f32.mrf.mxu1 }
 0x316   : > { %v3363_v57 = vadd.f32 %v3233_v62, %v2657_v6  ;;  %v3235_v9 = vadd.f32 %v3234_v16, %v2977_v7  ;;  %v2670_v6 = vld [vmem:[#allocation2 + $0x78] sm:$0xff] }
 0x318   : > { %3427 = vst [vmem:[#allocation2 + $0xf0] sm:$0xff] %v3363_v57  ;;  %v3364_v2 = vadd.f32 %v3235_v9, %v2658_v60  ;;  %v2671_v57 = vld [vmem:[#allocation2 + $0x70] sm:$0xff] }
 0x31a   : > { %3428 = vst [vmem:[#allocation2 + $0x8] sm:$0xff] %v3364_v2 }
 0x31f   : > { %v2981_v29 = vpop.f32.mrf.mxu0 }
 0x320   : > { %v3238_v37 = vpop.f32.mrf.mxu1 }
 0x321   : > { %v3239_v21 = vadd.f32 %v3238_v37, %v2981_v29  ;;  %v2983_v12 = vpop.f32.mrf.mxu0 }
 0x322   : > { %v3240_v24 = vpop.f32.mrf.mxu1 }
 0x323   : > { %v3365_v41 = vadd.f32 %v3239_v21, %v2659_v14  ;;  %v3241_v54 = vadd.f32 %v3240_v24, %v2983_v12  ;;  %v2672_v14 = vld [vmem:[#allocation2 + $0x90] sm:$0xff] }
 0x325   : > { %3429 = vst [vmem:[#allocation2 + $0x148] sm:$0xff] %v3365_v41  ;;  %v3366_v56 = vadd.f32 %v3241_v54, %v2660_v4  ;;  %v2673_v41 = vld [vmem:[#allocation2 + $0x1d8] sm:$0xff] }
 0x327   : > { %3430 = vst [vmem:[#allocation2 + $0x1d0] sm:$0xff] %v3366_v56 }
 0x329   : > { %v2987_v35 = vpop.f32.mrf.mxu0 }
 0x32a   : > { %v3244_v50 = vpop.f32.mrf.mxu1 }
 0x32b   : > { %v3245_v34 = vadd.f32 %v3244_v50, %v2987_v35  ;;  %v2989_v46 = vpop.f32.mrf.mxu0 }
 0x32c   : > { %v3246_v63 = vpop.f32.mrf.mxu1 }
 0x32d   : > { %v3367_v42 = vadd.f32 %v3245_v34, %v2661_v44  ;;  %v3247_v55 = vadd.f32 %v3246_v63, %v2989_v46  ;;  %v2674_v44 = vld [vmem:[#allocation2 + $0xd0] sm:$0xff]  ;;  %v2675_v63 = vld [vmem:[#allocation2 + $0xb8] sm:$0xff] }
 0x32f   : > { %3431 = vst [vmem:[#allocation2 + $0x100] sm:$0xff] %v3367_v42  ;;  %v3368_v43 = vadd.f32 %v3247_v55, %v2662_v33 }
 0x331   : > { %3432 = vst [vmem:[#allocation2 + $0xc8] sm:$0xff] %v3368_v43 }
 0x333   : > { %v2993_v13 = vpop.f32.mrf.mxu0 }
 0x335   : > { %v3250_v59 = vpop.f32.mrf.mxu1  ;;  %v2995_v10 = vpop.f32.mrf.mxu0 }
 0x336   : > { %v3251_v61 = vadd.f32 %v3250_v59, %v2993_v13 }
 0x337   : > { %v3252_v36 = vpop.f32.mrf.mxu1 }
 0x338   : > { %v3369_v52 = vadd.f32 %v3251_v61, %v2663_v26  ;;  %v3253_v45 = vadd.f32 %v3252_v36, %v2995_v10  ;;  %v2676_v26 = vld [vmem:[#allocation2 + $0x88] sm:$0xff] }
 0x339   : > { %v2677_v36 = vld [vmem:[#allocation2 + $0xa8] sm:$0xff] }
 0x33a   : > { %3433 = vst [vmem:[#allocation2 + $0x40] sm:$0xff] %v3369_v52  ;;  %v3370_v39 = vadd.f32 %v3253_v45, %v2664_v48 }
 0x33c   : > { %3434 = vst [vmem:[#allocation2 + $0x1f8] sm:$0xff] %v3370_v39 }
 0x33f   : > { %v2999_v18 = vpop.f32.mrf.mxu0 }
 0x340   : > { %v3256_v40 = vpop.f32.mrf.mxu1 }
 0x341   : > { %v3257_v15 = vadd.f32 %v3256_v40, %v2999_v18  ;;  %v3001_v38 = vpop.f32.mrf.mxu0 }
 0x342   : > { %v3258_v53 = vpop.f32.mrf.mxu1 }
 0x343   : > { %v3371_v25 = vadd.f32 %v3257_v15, %v2665_v22  ;;  %v3259_v0 = vadd.f32 %v3258_v53, %v3001_v38  ;;  %v2678_v22 = vld [vmem:[#allocation2 + $0x1c8] sm:$0xff] }
 0x345   : > { %3435 = vst [vmem:[#allocation2 + $0x20] sm:$0xff] %v3371_v25  ;;  %v3372_v32 = vadd.f32 %v3259_v0, %v2666_v11  ;;  %v2679_v25 = vld [vmem:[#allocation2 + $0x170] sm:$0xff] }
 0x347   : > { %3436 = vst [vmem:[#allocation2 + $0x128] sm:$0xff] %v3372_v32 }
 0x34a   : > { %v3005_v3 = vpop.f32.mrf.mxu0 }
 0x34b   : > { %v3262_v23 = vpop.f32.mrf.mxu1 }
 0x34c   : > { %v3263_v49 = vadd.f32 %v3262_v23, %v3005_v3  ;;  %v3007_v1 = vpop.f32.mrf.mxu0 }
 0x34d   : > { %v3264_v31 = vpop.f32.mrf.mxu1 }
 0x34e   : > { %v3373_v8 = vadd.f32 %v3263_v49, %v2667_v28  ;;  %v3265_v19 = vadd.f32 %v3264_v31, %v3007_v1  ;;  %v2680_v28 = vld [vmem:[#allocation2 + $0x178] sm:$0xff]  ;;  %v2681_v31 = vld [vmem:[#allocation2 + $0x68] sm:$0xff] }
 0x350   : > { %3437 = vst [vmem:[#allocation2 + $0x1a0] sm:$0xff] %v3373_v8  ;;  %v3374_v17 = vadd.f32 %v3265_v19, %v2668_v30 }
 0x352   : > { %3438 = vst [vmem:[#allocation2 + $0x1f0] sm:$0xff] %v3374_v17 }
 0x356   : > { %v3011_v51 = vpop.f32.mrf.mxu0 }
 0x357   : > { %v3268_v20 = vpop.f32.mrf.mxu1 }
 0x358   : > { %v3269_v58 = vadd.f32 %v3268_v20, %v3011_v51  ;;  %v3013_v47 = vpop.f32.mrf.mxu0 }
 0x359   : > { %v3270_v5 = vpop.f32.mrf.mxu1 }
 0x35a   : > { %v3375_v7 = vadd.f32 %v3269_v58, %v2669_v27  ;;  %v3271_v62 = vadd.f32 %v3270_v5, %v3013_v47  ;;  %v2682_v27 = vld [vmem:[#allocation2 + $0x190] sm:$0xff] }
 0x35c   : > { %3439 = vst [vmem:[#allocation2 + $0xe8] sm:$0xff] %v3375_v7  ;;  %v3376_v60 = vadd.f32 %v3271_v62, %v2670_v6  ;;  %v2683_v7 = vld [vmem:[#allocation2 + $0x198] sm:$0xff] }
 0x35e   : > { %3440 = vst [vmem:[#allocation2 + $0x78] sm:$0xff] %v3376_v60 }
 0x361   : > { %v3017_v16 = vpop.f32.mrf.mxu0 }
 0x362   : > { %v3274_v9 = vpop.f32.mrf.mxu1 }
 0x363   : > { %v3275_v2 = vadd.f32 %v3274_v9, %v3017_v16  ;;  %v3019_v29 = vpop.f32.mrf.mxu0 }
 0x364   : > { %v3276_v37 = vpop.f32.mrf.mxu1 }
 0x365   : > { %v3377_v21 = vadd.f32 %v3275_v2, %v2671_v57  ;;  %v3277_v12 = vadd.f32 %v3276_v37, %v3019_v29  ;;  %v2684_v57 = vld [vmem:[#allocation2 + $0x38] sm:$0xff] }
 0x367   : > { %3441 = vst [vmem:[#allocation2 + $0x70] sm:$0xff] %v3377_v21  ;;  %v3378_v4 = vadd.f32 %v3277_v12, %v2672_v14  ;;  %v2685_v21 = vld [vmem:[#allocation2 + $0xc0] sm:$0xff] }
 0x369   : > { %3442 = vst [vmem:[#allocation2 + $0x90] sm:$0xff] %v3378_v4 }
 0x36a   : > { %v3023_v24 = vpop.f32.mrf.mxu0 }
 0x36c   : > { %v3280_v54 = vpop.f32.mrf.mxu1  ;;  %v3025_v56 = vpop.f32.mrf.mxu0 }
 0x36d   : > { %v3281_v35 = vadd.f32 %v3280_v54, %v3023_v24 }
 0x36e   : > { %v3282_v50 = vpop.f32.mrf.mxu1  ;;  %v3029_v34 = vpop.f32.mrf.mxu0 }
 0x36f   : > { %v3379_v46 = vadd.f32 %v3281_v35, %v2673_v41  ;;  %v3283_v33 = vadd.f32 %v3282_v50, %v3025_v56  ;;  %v2686_v41 = vld [vmem:[#allocation2 + $0x1c0] sm:$0xff] }
 0x370   : > { %v3286_v42 = vpop.f32.mrf.mxu1  ;;  %v3031_v55 = vpop.f32.mrf.mxu0 }
 0x371   : > { %3443 = vst [vmem:[#allocation2 + $0x1d8] sm:$0xff] %v3379_v46  ;;  %v3380_v43 = vadd.f32 %v3283_v33, %v2674_v44  ;;  %v3287_v13 = vadd.f32 %v3286_v42, %v3029_v34  ;;  %v2687_v34 = vld [vmem:[#allocation2 + $0x158] sm:$0xff]  ;;  %v2688_v42 = vld [vmem:[#allocation2 + $0x10] sm:$0xff] }
 0x372   : > { %v3288_v59 = vpop.f32.mrf.mxu1 }
 0x373   : > { %3444 = vst [vmem:[#allocation2 + $0xd0] sm:$0xff] %v3380_v43  ;;  %v3381_v10 = vadd.f32 %v3287_v13, %v2675_v63  ;;  %v3289_v61 = vadd.f32 %v3288_v59, %v3031_v55  ;;  %v2689_v59 = vld [vmem:[#allocation2 + $0x58] sm:$0xff] }
 0x374   : > { %v3035_v48 = vpop.f32.mrf.mxu0 }
 0x375   : > { %v3292_v52 = vpop.f32.mrf.mxu1  ;;  %3445 = vst [vmem:[#allocation2 + $0xb8] sm:$0xff] %v3381_v10  ;;  %v3382_v45 = vadd.f32 %v3289_v61, %v2676_v26 }
 0x376   : > { %v3293_v39 = vadd.f32 %v3292_v52, %v3035_v48  ;;  %v3037_v18 = vpop.f32.mrf.mxu0  ;;  %v2690_v52 = vld [vmem:[#allocation2 + $0xa0] sm:$0xff] }
 0x377   : > { %v3294_v40 = vpop.f32.mrf.mxu1  ;;  %3446 = vst [vmem:[#allocation2 + $0x88] sm:$0xff] %v3382_v45 }
 0x378   : > { %v3383_v15 = vadd.f32 %v3293_v39, %v2677_v36  ;;  %v3295_v38 = vadd.f32 %v3294_v40, %v3037_v18 }
 0x37a   : > { %3447 = vst [vmem:[#allocation2 + $0xa8] sm:$0xff] %v3383_v15  ;;  %v3384_v11 = vadd.f32 %v3295_v38, %v2678_v22  ;;  %v3041_v53 = vpop.f32.mrf.mxu0 }
 0x37b   : > { %v3298_v0 = vpop.f32.mrf.mxu1 }
 0x37c   : > { %3448 = vst [vmem:[#allocation2 + $0x1c8] sm:$0xff] %v3384_v11  ;;  %v3299_v32 = vadd.f32 %v3298_v0, %v3041_v53  ;;  %v3043_v3 = vpop.f32.mrf.mxu0 }
 0x37d   : > { %v3300_v23 = vpop.f32.mrf.mxu1 }
 0x37e   : > { %v3385_v49 = vadd.f32 %v3299_v32, %v2679_v25  ;;  %v3301_v1 = vadd.f32 %v3300_v23, %v3043_v3  ;;  %v3047_v30 = vpop.f32.mrf.mxu0 }
 0x37f   : > { %v3304_v8 = vpop.f32.mrf.mxu1 }
 0x380   : > { %3449 = vst [vmem:[#allocation2 + $0x170] sm:$0xff] %v3385_v49  ;;  %v3386_v19 = vadd.f32 %v3301_v1, %v2680_v28  ;;  %v3305_v17 = vadd.f32 %v3304_v8, %v3047_v30  ;;  %v3049_v51 = vpop.f32.mrf.mxu0 }
 0x381   : > { %v3306_v20 = vpop.f32.mrf.mxu1 }
 0x382   : > { %3450 = vst [vmem:[#allocation2 + $0x178] sm:$0xff] %v3386_v19  ;;  %v3387_v58 = vadd.f32 %v3305_v17, %v2681_v31  ;;  %v3307_v47 = vadd.f32 %v3306_v20, %v3049_v51 }
 0x384   : > { %3451 = vst [vmem:[#allocation2 + $0x68] sm:$0xff] %v3387_v58  ;;  %v3388_v6 = vadd.f32 %v3307_v47, %v2682_v27 }
 0x385   : > { %v3053_v5 = vpop.f32.mrf.mxu0 }
 0x386   : > { %3452 = vst [vmem:[#allocation2 + $0x190] sm:$0xff] %v3388_v6  ;;  %v3310_v62 = vpop.f32.mrf.mxu1 }
 0x387   : > { %v3311_v60 = vadd.f32 %v3310_v62, %v3053_v5  ;;  %v3055_v16 = vpop.f32.mrf.mxu0 }
 0x388   : > { %v3312_v9 = vpop.f32.mrf.mxu1 }
 0x389   : > { %v3389_v2 = vadd.f32 %v3311_v60, %v2683_v7  ;;  %v3313_v29 = vadd.f32 %v3312_v9, %v3055_v16 }
 0x38b   : > { %3453 = vst [vmem:[#allocation2 + $0x198] sm:$0xff] %v3389_v2  ;;  %v3390_v14 = vadd.f32 %v3313_v29, %v2684_v57  ;;  %v3059_v37 = vpop.f32.mrf.mxu0 }
 0x38c   : > { %v3316_v12 = vpop.f32.mrf.mxu1 }
 0x38d   : > { %3454 = vst [vmem:[#allocation2 + $0x38] sm:$0xff] %v3390_v14  ;;  %v3317_v4 = vadd.f32 %v3316_v12, %v3059_v37  ;;  %v3061_v24 = vpop.f32.mrf.mxu0 }
 0x38e   : > { %v3318_v54 = vpop.f32.mrf.mxu1 }
 0x38f   : > { %v3391_v56 = vadd.f32 %v3317_v4, %v2685_v21  ;;  %v3319_v35 = vadd.f32 %v3318_v54, %v3061_v24 }
 0x391   : > { %3455 = vst [vmem:[#allocation2 + $0xc0] sm:$0xff] %v3391_v56  ;;  %v3392_v44 = vadd.f32 %v3319_v35, %v2686_v41 }
 0x393   : > { %3456 = vst [vmem:[#allocation2 + $0x1c0] sm:$0xff] %v3392_v44  ;;  %v3065_v50 = vpop.f32.mrf.mxu0 }
 0x394   : > { %v3322_v46 = vpop.f32.mrf.mxu1 }
 0x395   : > { %v3323_v33 = vadd.f32 %v3322_v46, %v3065_v50  ;;  %v3067_v63 = vpop.f32.mrf.mxu0 }
 0x396   : > { %v3324_v55 = vpop.f32.mrf.mxu1 }
 0x397   : > { %v3393_v43 = vadd.f32 %v3323_v33, %v2687_v34  ;;  %v3325_v13 = vadd.f32 %v3324_v55, %v3067_v63  ;;  %v3071_v26 = vpop.f32.mrf.mxu0 }
 0x398   : > { %v3328_v10 = vpop.f32.mrf.mxu1 }
 0x399   : > { %3457 = vst [vmem:[#allocation2 + $0x158] sm:$0xff] %v3393_v43  ;;  %v3394_v61 = vadd.f32 %v3325_v13, %v2688_v42  ;;  %v3329_v48 = vadd.f32 %v3328_v10, %v3071_v26  ;;  %v3073_v36 = vpop.f32.mrf.mxu0 }
 0x39a   : > { %v3330_v45 = vpop.f32.mrf.mxu1 }
 0x39b   : > { %3458 = vst [vmem:[#allocation2 + $0x10] sm:$0xff] %v3394_v61  ;;  %v3395_v39 = vadd.f32 %v3329_v48, %v2689_v59  ;;  %v3331_v18 = vadd.f32 %v3330_v45, %v3073_v36  ;;  %3464 = sbr.rel (%p4597_p12) target bundleno = 1321 (0x529), region = 83 }
 0x39d   : > { %3459 = vst [vmem:[#allocation2 + $0x58] sm:$0xff] %v3395_v39  ;;  %v3396_v22 = vadd.f32 %v3331_v18, %v2690_v52 }
 0x39f   : > { %3460 = vst [vmem:[#allocation2 + $0xa0] sm:$0xff] %v3396_v22 }
 0x3a0   : > { %v3465_v40 = vld [vmem:[#allocation2 + $0xb0] sm:$0xff]  ;;  %v3529_v38 = vld [vmem:[%s8819_s4] sm:$0x3]  ;;  %v9211_v25 = vld [vmem:[#allocation8_spill] sm:$0xff] }
 0x3a1   : > { %v3466_v15 = vld [vmem:[#allocation2 + $0x1b0] sm:$0xff]  ;;  %v9210_v11 = vld [vmem:[#allocation7_spill] sm:$0xff]  ;;  %v7794_v0 = vrot.slane %v3529_v38, %v9211_v25  ;;  %v3606_v3 = vld [vmem:[%s8820_s5 + $0x8] sm:$0xff] }
 0x3a2   : > { %v7791_v53 = vrot.slane %v3529_v38, %v9210_v11  ;;  %v3605_v32 = vld [vmem:[%s8820_s5] sm:$0xff]  ;;  %v3469_v28 = vld [vmem:[#allocation2 + $0x50] sm:$0xff]  ;;  %v3470_v23 = vld [vmem:[#allocation2 + $0x168] sm:$0xff] }
 0x3a3   : > { %v3609_v49 = vld [vmem:[%s8820_s5 + $0x20] sm:$0xff]  ;;  %v3610_v1 = vld [vmem:[%s8820_s5 + $0x28] sm:$0xff]  ;;  %v3542_v31 = vadd.f32 %v7794_v0, %v3466_v15  ;;  %v3546_v19 = vadd.f32 %v7794_v0, %v3470_v23  ;;  %v3467_v17 = vld [vmem:[#allocation2 + $0xd8] sm:$0xff] }
 0x3a4   : > { %v3541_v30 = vadd.f32 %v7791_v53, %v3465_v40  ;;  %v3545_v8 = vadd.f32 %v7791_v53, %v3469_v28  ;;  %v3468_v51 = vld [vmem:[#allocation2 + $0x18] sm:$0xff]  ;;  %v3607_v27 = vld [vmem:[%s8820_s5 + $0x10] sm:$0xff]  ;;  %v3543_v20 = vadd.f32 %v7791_v53, %v3467_v17  ;;  %v3472_v5 = vld [vmem:[#allocation2 + $0x48] sm:$0xff] }
 0x3a5   : > { %v3544_v58 = vadd.f32 %v7794_v0, %v3468_v51  ;;  %v3608_v47 = vld [vmem:[%s8820_s5 + $0x18] sm:$0xff]  ;;  %v3471_v6 = vld [vmem:[#allocation2 + $0x130] sm:$0xff]  ;;  %v7822_v62 = vadd.f32 %v3606_v3, %v3542_v31  ;;  %v7826_v16 = vadd.f32 %v3610_v1, %v3546_v19  ;;  %v3473_v2 = vld [vmem:[#allocation2 + $0x180] sm:$0xff]  ;;  %v3548_v21 = vadd.f32 %v7794_v0, %v3472_v5 }
 0x3a6   : > { %v7820_v7 = vadd.f32 %v3605_v32, %v3541_v30  ;;  %v7824_v60 = vadd.f32 %v3609_v49, %v3545_v8  ;;  %v3611_v57 = vld [vmem:[%s8820_s5 + $0x30] sm:$0xff]  ;;  %v3612_v9 = vld [vmem:[%s8820_s5 + $0x38] sm:$0xff]  ;;  %v7834_v29 = vadd.f32 %v3607_v27, %v3543_v20  ;;  %v3547_v37 = vadd.f32 %v7791_v53, %v3471_v6  ;;  %v3613_v4 = vld [vmem:[%s8820_s5 + $0x40] sm:$0xff] }
 0x3a7   : > { %v7836_v14 = vadd.f32 %v3608_v47, %v3544_v58  ;;  %v3474_v12 = vld [vmem:[#allocation2 + $0x110] sm:$0xff]  ;;  %v3614_v24 = vld [vmem:[%s8820_s5 + $0x48] sm:$0xff]  ;;  %v3549_v56 = vadd.f32 %v7791_v53, %v3473_v2  ;;  %v3475_v44 = vld [vmem:[#allocation2 + $0x118] sm:$0xff]  ;;  %v7859_v63 = vadd.f32 %v3612_v9, %v3548_v21 }
 0x3a8   : > { %v3733_v41 = vadd.f32 %v7822_v62, %v7820_v7  ;;  %v3739_v54 = vadd.f32 %v7826_v16, %v7824_v60  ;;  %v3550_v35 = vadd.f32 %v7794_v0, %v3474_v12  ;;  %v3476_v50 = vld [vmem:[#allocation2 + $0x98] sm:$0xff]  ;;  %v3615_v34 = vld [vmem:[%s8820_s5 + $0x50] sm:$0xff]  ;;  %v7857_v33 = vadd.f32 %v3611_v57, %v3547_v37  ;;  %v3477_v43 = vld [vmem:[#allocation2 + $0x120] sm:$0xff] }
 0x3a9   : > { %v3736_v46 = vadd.f32 %v7836_v14, %v7834_v29  ;;  %v3551_v42 = vadd.f32 %v7791_v53, %v3475_v44  ;;  %v3616_v55 = vld [vmem:[%s8820_s5 + $0x58] sm:$0xff]  ;;  %v3478_v13 = vld [vmem:[#allocation2 + $0x150] sm:$0xff]  ;;  %v7865_v26 = vadd.f32 %v3613_v4, %v3549_v56  ;;  %v3552_v10 = vadd.f32 %v7794_v0, %v3476_v50  ;;  %v3617_v61 = vld [vmem:[%s8820_s5 + $0x60] sm:$0xff] }
 0x3aa   : > { %3734 = vadd.xlane.f32.xlu0 %v3733_v41  ;;  %3740 = vadd.xlane.f32.xlu1 %v3739_v54  ;;  %v7867_v59 = vadd.f32 %v3614_v24, %v3550_v35  ;;  %v3618_v48 = vld [vmem:[%s8820_s5 + $0x68] sm:$0xff]  ;;  %v3742_v52 = vadd.f32 %v7859_v63, %v7857_v33  ;;  %v3553_v39 = vadd.f32 %v7791_v53, %v3477_v43  ;;  %v3480_v22 = vld [vmem:[#allocation2 + $0x60] sm:$0xff]  ;;  %v3619_v40 = vld [vmem:[%s8820_s5 + $0x70] sm:$0xff] }
 0x3ab   : > { %v3479_v36 = vld [vmem:[#allocation2 + $0x108] sm:$0xff]  ;;  %v7878_v45 = vadd.f32 %v3615_v34, %v3551_v42  ;;  %v3554_v18 = vadd.f32 %v7794_v0, %v3478_v13  ;;  %v3620_v15 = vld [vmem:[%s8820_s5 + $0x78] sm:$0xff]  ;;  %v7890_v32 = vadd.f32 %v3616_v55, %v3552_v10  ;;  %v3556_v28 = vadd.f32 %v7794_v0, %v3480_v22  ;;  %v3481_v23 = vld [vmem:[#allocation2 + $0xe0] sm:$0xff] }
 0x3ac   : > { %v3745_v38 = vadd.f32 %v7867_v59, %v7865_v26  ;;  %v3555_v3 = vadd.f32 %v7791_v53, %v3479_v36  ;;  %v3482_v49 = vld [vmem:[#allocation2 + $0x188] sm:$0xff]  ;;  %v7894_v1 = vadd.f32 %v3617_v61, %v3553_v39  ;;  %v3557_v31 = vadd.f32 %v7791_v53, %v3481_v23  ;;  %v3621_v19 = vld [vmem:[%s8820_s5 + $0x80] sm:$0xff]  ;;  %v3483_v17 = vld [vmem:[#allocation2 + $0x138] sm:$0xff] }
 0x3ad   : > { %v7896_v30 = vadd.f32 %v3618_v48, %v3554_v18  ;;  %v3558_v8 = vadd.f32 %v7794_v0, %v3482_v49  ;;  %v3484_v51 = vld [vmem:[#allocation2 + $0x140] sm:$0xff]  ;;  %v3748_v27 = vadd.f32 %v7890_v32, %v7878_v45  ;;  %v7907_v58 = vadd.f32 %v3620_v15, %v3556_v28  ;;  %v3622_v47 = vld [vmem:[%s8820_s5 + $0x88] sm:$0xff]  ;;  %v3623_v6 = vld [vmem:[%s8820_s5 + $0x90] sm:$0xff] }
 0x3ae   : > { %3737 = vadd.xlane.f32.xlu0 %v3736_v46  ;;  %3743 = vadd.xlane.f32.xlu1 %v3742_v52  ;;  %v7905_v20 = vadd.f32 %v3619_v40, %v3555_v3  ;;  %v3485_v5 = vld [vmem:[#allocation2 + $0x80] sm:$0xff]  ;;  %v3559_v57 = vadd.f32 %v7791_v53, %v3483_v17  ;;  %v3624_v9 = vld [vmem:[%s8820_s5 + $0x98] sm:$0xff]  ;;  %v3486_v2 = vld [vmem:[#allocation2 + $0x1a8] sm:$0xff]  ;;  %v3560_v12 = vadd.f32 %v7794_v0, %v3484_v51 }
 0x3af   : > { %v3625_v37 = vld [vmem:[%s8820_s5 + $0xa0] sm:$0xff]  ;;  %v3751_v21 = vadd.f32 %v7896_v30, %v7894_v1  ;;  %v3561_v4 = vadd.f32 %v7791_v53, %v3485_v5  ;;  %v3562_v24 = vadd.f32 %v7794_v0, %v3486_v2  ;;  %v3626_v41 = vld [vmem:[%s8820_s5 + $0xa8] sm:$0xff]  ;;  %v3487_v54 = vld [vmem:[#allocation2 + $0x1b8] sm:$0xff]  ;;  %v7930_v35 = vadd.f32 %v3621_v19, %v3557_v31 }
 0x3b0   : > { %v3488_v56 = vld [vmem:[#allocation2 + $0x28] sm:$0xff]  ;;  %v7932_v44 = vadd.f32 %v3622_v47, %v3558_v8  ;;  %v3563_v50 = vadd.f32 %v7791_v53, %v3487_v54  ;;  %v3627_v46 = vld [vmem:[%s8820_s5 + $0xb0] sm:$0xff]  ;;  %v3628_v42 = vld [vmem:[%s8820_s5 + $0xb8] sm:$0xff]  ;;  %v3754_v43 = vadd.f32 %v7907_v58, %v7905_v20  ;;  %v7944_v13 = vadd.f32 %v3623_v6, %v3559_v57 }
 0x3b1   : > { %v3564_v34 = vadd.f32 %v7794_v0, %v3488_v56  ;;  %v3489_v55 = vld [vmem:[#allocation2 + $0x1e8] sm:$0xff]  ;;  %v7946_v10 = vadd.f32 %v3624_v9, %v3560_v12  ;;  %v3490_v61 = vld [vmem:[#allocation2 + $0xf8] sm:$0xff]  ;;  %v3491_v48 = vld [vmem:[#allocation2 + $0x160] sm:$0xff]  ;;  %v7948_v36 = vadd.f32 %v3625_v37, %v3561_v4  ;;  %v7950_v39 = vadd.f32 %v3626_v41, %v3562_v24 }
 0x3b2   : > { %3746 = vadd.xlane.f32.xlu0 %v3745_v38  ;;  %3749 = vadd.xlane.f32.xlu1 %v3748_v27  ;;  %v3492_v52 = vld [vmem:[#allocation2 + $0x30] sm:$0xff]  ;;  %v7952_v18 = vadd.f32 %v3627_v46, %v3563_v50  ;;  %v3565_v40 = vadd.f32 %v7791_v53, %v3489_v55  ;;  %v3566_v15 = vadd.f32 %v7794_v0, %v3490_v61  ;;  %v3629_v38 = vld [vmem:[%s8820_s5 + $0xc0] sm:$0xff]  ;;  %v3630_v3 = vld [vmem:[%s8820_s5 + $0xc8] sm:$0xff] }
 0x3b3   : > { %v7954_v22 = vadd.f32 %v3628_v42, %v3564_v34  ;;  %v3567_v28 = vadd.f32 %v7791_v53, %v3491_v48  ;;  %v3568_v23 = vadd.f32 %v7794_v0, %v3492_v52  ;;  %v3757_v49 = vadd.f32 %v7932_v44, %v7930_v35  ;;  %v3631_v8 = vld [vmem:[%s8820_s5 + $0xd0] sm:$0xff]  ;;  %v3632_v19 = vld [vmem:[%s8820_s5 + $0xd8] sm:$0xff]  ;;  %v3493_v17 = vld [vmem:[#allocation2 + $0x1e0] sm:$0xff] }
 0x3b4   : > { %v3760_v31 = vadd.f32 %v7946_v10, %v7944_v13  ;;  %v3494_v51 = vld [vmem:[#allocation2] sm:$0xff]  ;;  %v3495_v27 = vld [vmem:[#allocation2 + $0xf0] sm:$0xff]  ;;  %v3496_v47 = vld [vmem:[#allocation2 + $0x8] sm:$0xff]  ;;  %v3763_v6 = vadd.f32 %v7950_v39, %v7948_v36  ;;  %v7980_v57 = vadd.f32 %v3629_v38, %v3565_v40  ;;  %v7982_v2 = vadd.f32 %v3630_v3, %v3566_v15 }
 0x3b5   : > { %v3766_v5 = vadd.f32 %v7954_v22, %v7952_v18  ;;  %v3497_v9 = vld [vmem:[#allocation2 + $0x148] sm:$0xff]  ;;  %v7984_v37 = vadd.f32 %v3631_v8, %v3567_v28  ;;  %v3569_v12 = vadd.f32 %v7791_v53, %v3493_v17  ;;  %v3498_v4 = vld [vmem:[#allocation2 + $0x1d0] sm:$0xff]  ;;  %v3499_v24 = vld [vmem:[#allocation2 + $0x100] sm:$0xff]  ;;  %v3570_v54 = vadd.f32 %v7794_v0, %v3494_v51 }
 0x3b6   : > { %3752 = vadd.xlane.f32.xlu0 %v3751_v21  ;;  %3755 = vadd.xlane.f32.xlu1 %v3754_v43  ;;  %v7986_v21 = vadd.f32 %v3632_v19, %v3568_v23  ;;  %v3500_v41 = vld [vmem:[#allocation2 + $0xc8] sm:$0xff]  ;;  %v3633_v56 = vld [vmem:[%s8820_s5 + $0xe0] sm:$0xff]  ;;  %v3571_v50 = vadd.f32 %v7791_v53, %v3495_v27  ;;  %v3572_v34 = vadd.f32 %v7794_v0, %v3496_v47  ;;  %v3635_v42 = vld [vmem:[%s8820_s5 + $0xf0] sm:$0xff] }
 0x3b7   : > { %v3634_v46 = vld [vmem:[%s8820_s5 + $0xe8] sm:$0xff]  ;;  %v3636_v55 = vld [vmem:[%s8820_s5 + $0xf8] sm:$0xff]  ;;  %v3573_v43 = vadd.f32 %v7791_v53, %v3497_v9  ;;  %v3574_v61 = vadd.f32 %v7794_v0, %v3498_v4  ;;  %v3637_v48 = vld [vmem:[%s8820_s5 + $0x100] sm:$0xff]  ;;  %v3575_v40 = vadd.f32 %v7791_v53, %v3499_v24  ;;  %v3576_v15 = vadd.f32 %v7794_v0, %v3500_v41 }
 0x3b8   : > { %v3638_v52 = vld [vmem:[%s8820_s5 + $0x108] sm:$0xff]  ;;  %v3769_v38 = vadd.f32 %v7982_v2, %v7980_v57  ;;  %v3772_v3 = vadd.f32 %v7986_v21, %v7984_v37  ;;  %v8018_v28 = vadd.f32 %v3633_v56, %v3569_v12  ;;  %v3639_v23 = vld [vmem:[%s8820_s5 + $0x110] sm:$0xff]  ;;  %v8026_v8 = vadd.f32 %v3634_v46, %v3570_v54  ;;  %v3502_v51 = vld [vmem:[#allocation2 + $0x1f8] sm:$0xff] }
 0x3b9   : > { %v8028_v19 = vadd.f32 %v3635_v42, %v3571_v50  ;;  %v8030_v17 = vadd.f32 %v3636_v55, %v3572_v34  ;;  %v3503_v27 = vld [vmem:[#allocation2 + $0x20] sm:$0xff]  ;;  %v8032_v47 = vadd.f32 %v3637_v48, %v3573_v43  ;;  %v3504_v9 = vld [vmem:[#allocation2 + $0x128] sm:$0xff]  ;;  %v8034_v12 = vadd.f32 %v3638_v52, %v3574_v61  ;;  %v3643_v42 = vld [vmem:[%s8820_s5 + $0x130] sm:$0xff] }
 0x3ba   : > { %3758 = vadd.xlane.f32.xlu0 %v3757_v49  ;;  %3761 = vadd.xlane.f32.xlu1 %v3760_v31  ;;  %v3640_v49 = vld [vmem:[%s8820_s5 + $0x118] sm:$0xff]  ;;  %v3501_v31 = vld [vmem:[#allocation2 + $0x40] sm:$0xff]  ;;  %v8036_v4 = vadd.f32 %v3639_v23, %v3575_v40  ;;  %v3642_v54 = vld [vmem:[%s8820_s5 + $0x128] sm:$0xff]  ;;  %v3579_v56 = vadd.f32 %v7791_v53, %v3503_v27  ;;  %v3775_v50 = vadd.f32 %v8026_v8, %v8018_v28 }
 0x3bb   : > { %9212 = vst [vmem:[#allocation47_spill] sm:$0xff] %v8032_v47  ;;  %9213 = vst [vmem:[#allocation48_spill] sm:$0xff] %v8034_v12  ;;  %v8038_v24 = vadd.f32 %v3640_v49, %v3576_v15  ;;  %v3641_v41 = vld [vmem:[%s8820_s5 + $0x120] sm:$0xff]  ;;  %v3778_v34 = vadd.f32 %v8030_v17, %v8028_v19  ;;  %v3580_v46 = vadd.f32 %v7794_v0, %v3504_v9  ;;  %v3506_v43 = vld [vmem:[#allocation2 + $0x1f0] sm:$0xff] }
 0x3bc   : > { %9214 = vst [vmem:[#allocation49_spill] sm:$0xff] %v8036_v4  ;;  %v3505_v55 = vld [vmem:[#allocation2 + $0x1a0] sm:$0xff]  ;;  %v3644_v61 = vld [vmem:[%s8820_s5 + $0x138] sm:$0xff]  ;;  %v3507_v48 = vld [vmem:[#allocation2 + $0xe8] sm:$0xff]  ;;  %v3781_v40 = vadd.f32 %v8034_v12, %v8032_v47  ;;  %v8068_v23 = vadd.f32 %v3643_v42, %v3579_v56 }
 0x3bd   : > { %9215 = vst [vmem:[#allocation50_spill] sm:$0xff] %v8038_v24  ;;  %v3508_v52 = vld [vmem:[#allocation2 + $0x78] sm:$0xff]  ;;  %v3784_v15 = vadd.f32 %v8038_v24, %v8036_v4  ;;  %v3581_v49 = vadd.f32 %v7791_v53, %v3505_v55  ;;  %v3510_v27 = vld [vmem:[#allocation2 + $0x90] sm:$0xff]  ;;  %v8072_v25 = vadd.f32 %v3644_v61, %v3580_v46  ;;  %v3649_v55 = vld [vmem:[%s8820_s5 + $0x160] sm:$0xff] }
 0x3be   : > { %3764 = vadd.xlane.f32.xlu0 %v3763_v6  ;;  %3767 = vadd.xlane.f32.xlu1 %v3766_v5  ;;  %v3577_v6 = vadd.f32 %v7791_v53, %v3501_v31  ;;  %v3578_v5 = vadd.f32 %v7794_v0, %v3502_v51  ;;  %v3582_v31 = vadd.f32 %v7794_v0, %v3506_v43  ;;  %v3509_v51 = vld [vmem:[#allocation2 + $0x70] sm:$0xff]  ;;  %v3511_v9 = vld [vmem:[#allocation2 + $0x1d8] sm:$0xff]  ;;  %v3650_v11 = vld [vmem:[%s8820_s5 + $0x168] sm:$0xff] }
 0x3bf   : > { %v3512_v56 = vld [vmem:[#allocation2 + $0xd0] sm:$0xff]  ;;  %v3585_v46 = vadd.f32 %v7791_v53, %v3509_v51  ;;  %v3586_v42 = vadd.f32 %v7794_v0, %v3510_v27  ;;  %v3587_v43 = vadd.f32 %v7791_v53, %v3511_v9  ;;  %v3652_v9 = vld [vmem:[%s8820_s5 + $0x178] sm:$0xff] }
 0x3c0   : > { %v3588_v51 = vadd.f32 %v7794_v0, %v3512_v56  ;;  %v3651_v27 = vld [vmem:[%s8820_s5 + $0x170] sm:$0xff]  ;;  %v3515_v56 = vld [vmem:[#allocation2 + $0xa8] sm:$0xff] }
 0x3c1   : > { %v8116_v24 = vadd.f32 %v3649_v55, %v3585_v46  ;;  %v8118_v4 = vadd.f32 %v3650_v11, %v3586_v42  ;;  %v8120_v12 = vadd.f32 %v3651_v27, %v3587_v43  ;;  %v3653_v46 = vld [vmem:[%s8820_s5 + $0x180] sm:$0xff]  ;;  %v3655_v55 = vld [vmem:[%s8820_s5 + $0x190] sm:$0xff]  ;;  %v3656_v43 = vld [vmem:[%s8820_s5 + $0x198] sm:$0xff] }
 0x3c2   : > { %3770 = vadd.xlane.f32.xlu0 %v3769_v38  ;;  %3773 = vadd.xlane.f32.xlu1 %v3772_v3  ;;  %v8064_v38 = vadd.f32 %v3641_v41, %v3577_v6  ;;  %v8066_v3 = vadd.f32 %v3642_v54, %v3578_v5  ;;  %v3645_v6 = vld [vmem:[%s8820_s5 + $0x140] sm:$0xff]  ;;  %v3646_v5 = vld [vmem:[%s8820_s5 + $0x148] sm:$0xff]  ;;  %v3583_v41 = vadd.f32 %v7791_v53, %v3507_v48 }
 0x3c3   : > { %v3584_v54 = vadd.f32 %v7794_v0, %v3508_v52  ;;  %v8096_v48 = vadd.f32 %v3645_v6, %v3581_v49  ;;  %v8098_v52 = vadd.f32 %v3646_v5, %v3582_v31  ;;  %v3790_v49 = vadd.f32 %v8072_v25, %v8068_v23  ;;  %v3513_v5 = vld [vmem:[#allocation2 + $0xb8] sm:$0xff]  ;;  %9221 = vst [vmem:[#allocation56_spill] sm:$0xff] %v8116_v24 }
 0x3c4   : > { %9216 = vst [vmem:[#allocation51_spill] sm:$0xff] %v8064_v38  ;;  %9217 = vst [vmem:[#allocation52_spill] sm:$0xff] %v8066_v3  ;;  %v3787_v61 = vadd.f32 %v8066_v3, %v8064_v38  ;;  %v3514_v3 = vld [vmem:[#allocation2 + $0x88] sm:$0xff]  ;;  %v8122_v47 = vadd.f32 %v3652_v9, %v3588_v51  ;;  %v3520_v51 = vld [vmem:[#allocation2 + $0x190] sm:$0xff]  ;;  %v3799_v27 = vadd.f32 %v8118_v4, %v8116_v24 }
 0x3c5   : > { %9218 = vst [vmem:[#allocation53_spill] sm:$0xff] %v8098_v52  ;;  %v3516_v38 = vld [vmem:[#allocation2 + $0x1c8] sm:$0xff]  ;;  %9222 = vst [vmem:[#allocation57_spill] sm:$0xff] %v8118_v4  ;;  %v3522_v24 = vld [vmem:[#allocation2 + $0x38] sm:$0xff] }
 0x3c6   : > { %3776 = vadd.xlane.f32.xlu0 %v3775_v50  ;;  %3779 = vadd.xlane.f32.xlu1 %v3778_v34  ;;  %v3647_v50 = vld [vmem:[%s8820_s5 + $0x150] sm:$0xff]  ;;  %v3648_v34 = vld [vmem:[%s8820_s5 + $0x158] sm:$0xff]  ;;  %9223 = vst [vmem:[#allocation58_spill] sm:$0xff] %v8120_v12  ;;  %9224 = vst [vmem:[#allocation59_spill] sm:$0xff] %v8122_v47  ;;  %v3592_v42 = vadd.f32 %v7794_v0, %v3516_v38 }
 0x3c7   : > { %v8112_v31 = vadd.f32 %v3647_v50, %v3583_v41  ;;  %v8114_v6 = vadd.f32 %v3648_v34, %v3584_v54  ;;  %v3591_v41 = vadd.f32 %v7791_v53, %v3515_v56  ;;  %v3517_v54 = vld [vmem:[#allocation2 + $0x170] sm:$0xff]  ;;  %v3518_v50 = vld [vmem:[#allocation2 + $0x178] sm:$0xff]  ;;  %v3793_v34 = vadd.f32 %v8098_v52, %v8096_v48  ;;  %v3657_v38 = vld [vmem:[%s8820_s5 + $0x1a0] sm:$0xff] }
 0x3c8   : > { %v3593_v9 = vadd.f32 %v7791_v53, %v3517_v54  ;;  %v3658_v4 = vld [vmem:[%s8820_s5 + $0x1a8] sm:$0xff]  ;;  %v3521_v54 = vld [vmem:[#allocation2 + $0x198] sm:$0xff] }
 0x3c9   : > { %9219 = vst [vmem:[#allocation54_spill] sm:$0xff] %v8112_v31  ;;  %9220 = vst [vmem:[#allocation55_spill] sm:$0xff] %v8114_v6  ;;  %v3796_v11 = vadd.f32 %v8114_v6, %v8112_v31  ;;  %v8157_v31 = vadd.f32 %v3655_v55, %v3591_v41  ;;  %v3660_v41 = vld [vmem:[%s8820_s5 + $0x1b8] sm:$0xff] }
 0x3ca   : > { %3782 = vadd.xlane.f32.xlu0 %v3781_v40  ;;  %3785 = vadd.xlane.f32.xlu1 %v3784_v15  ;;  %v3589_v40 = vadd.f32 %v7791_v53, %v3513_v5  ;;  %v3590_v15 = vadd.f32 %v7794_v0, %v3514_v3  ;;  %v3654_v3 = vld [vmem:[%s8820_s5 + $0x188] sm:$0xff]  ;;  %v3802_v5 = vadd.f32 %v8122_v47, %v8120_v12 }
 0x3cb   : > { %v3596_v47 = vadd.f32 %v7794_v0, %v3520_v51 }
 0x3cc   : > { %v8153_v56 = vadd.f32 %v3653_v46, %v3589_v40  ;;  %v8155_v6 = vadd.f32 %v3654_v3, %v3590_v15  ;;  %v3523_v40 = vld [vmem:[#allocation2 + $0xc0] sm:$0xff]  ;;  %v3659_v15 = vld [vmem:[%s8820_s5 + $0x1b0] sm:$0xff]  ;;  %v8172_v3 = vadd.f32 %v3657_v38, %v3593_v9 }
 0x3cd   : > { %v3524_v46 = vld [vmem:[#allocation2 + $0x1c0] sm:$0xff]  ;;  %v3599_v51 = vadd.f32 %v7791_v53, %v3523_v40  ;;  %v3663_v9 = vld [vmem:[%s8820_s5 + $0x1d0] sm:$0xff]  ;;  %v8195_v38 = vadd.f32 %v3660_v41, %v3596_v47  ;;  %v3525_v40 = vld [vmem:[#allocation2 + $0x158] sm:$0xff] }
 0x3ce   : > { %3788 = vadd.xlane.f32.xlu0 %v3787_v61  ;;  %3791 = vadd.xlane.f32.xlu1 %v3790_v49  ;;  %v3519_v61 = vld [vmem:[#allocation2 + $0x68] sm:$0xff]  ;;  %v3594_v49 = vadd.f32 %v7794_v0, %v3518_v50  ;;  %9225 = vst [vmem:[#allocation60_spill] sm:$0xff] %v8153_v56  ;;  %9226 = vst [vmem:[#allocation61_spill] sm:$0xff] %v8155_v6  ;;  %v8162_v50 = vadd.f32 %v3656_v43, %v3592_v42  ;;  %v3661_v43 = vld [vmem:[%s8820_s5 + $0x1c0] sm:$0xff] }
 0x3cf   : > { %v3595_v52 = vadd.f32 %v7791_v53, %v3519_v61  ;;  %v3598_v42 = vadd.f32 %v7794_v0, %v3522_v24  ;;  %v3805_v55 = vadd.f32 %v8155_v6, %v8153_v56  ;;  %v3662_v61 = vld [vmem:[%s8820_s5 + $0x1c8] sm:$0xff]  ;;  %v3526_v6 = vld [vmem:[#allocation2 + $0x10] sm:$0xff]  ;;  %v3528_v56 = vld [vmem:[#allocation2 + $0xa0] sm:$0xff]  ;;  %v3601_v47 = vadd.f32 %v7791_v53, %v3525_v40 }
 0x3d0   : > { %9227 = vst [vmem:[#allocation62_spill] sm:$0xff] %v8162_v50  ;;  %v3808_v24 = vadd.f32 %v8162_v50, %v8157_v31  ;;  %v8206_v50 = vadd.f32 %v3663_v9, %v3599_v51 }
 0x3d2   : > { %3794 = vadd.xlane.f32.xlu0 %v3793_v34  ;;  %3797 = vadd.xlane.f32.xlu1 %v3796_v11  ;;  %v8174_v34 = vadd.f32 %v3658_v4, %v3594_v49  ;;  %v3597_v11 = vadd.f32 %v7791_v53, %v3521_v54  ;;  %v3600_v4 = vadd.f32 %v7794_v0, %v3524_v46  ;;  %v3664_v54 = vld [vmem:[%s8820_s5 + $0x1d8] sm:$0xff] }
 0x3d3   : > { %v8193_v49 = vadd.f32 %v3659_v15, %v3595_v52  ;;  %v3527_v46 = vld [vmem:[#allocation2 + $0x58] sm:$0xff]  ;;  %v3602_v15 = vadd.f32 %v7794_v0, %v3526_v6  ;;  %v3667_v6 = vld [vmem:[%s8820_s5 + $0x1f0] sm:$0xff] }
 0x3d4   : > { %v3811_v12 = vadd.f32 %v8174_v34, %v8172_v3  ;;  %v8208_v52 = vadd.f32 %v3664_v54, %v3600_v4 }
 0x3d5   : > { %v3814_v41 = vadd.f32 %v8195_v38, %v8193_v49 }
 0x3d6   : > { %3800 = vadd.xlane.f32.xlu0 %v3799_v27  ;;  %3803 = vadd.xlane.f32.xlu1 %v3802_v5  ;;  %v8202_v27 = vadd.f32 %v3661_v43, %v3597_v11  ;;  %v8204_v5 = vadd.f32 %v3662_v61, %v3598_v42  ;;  %v3665_v11 = vld [vmem:[%s8820_s5 + $0x1e0] sm:$0xff]  ;;  %v3603_v42 = vadd.f32 %v7791_v53, %v3527_v46  ;;  %v3666_v61 = vld [vmem:[%s8820_s5 + $0x1e8] sm:$0xff] }
 0x3d7   : > { %v3604_v43 = vadd.f32 %v7794_v0, %v3528_v56  ;;  %v3820_v53 = vadd.f32 %v8208_v52, %v8206_v50  ;;  %v8232_v4 = vadd.f32 %v3665_v11, %v3601_v47  ;;  %v8234_v0 = vadd.f32 %v3666_v61, %v3602_v15 }
 0x3d8   : > { %v3817_v51 = vadd.f32 %v8204_v5, %v8202_v27  ;;  %v8236_v56 = vadd.f32 %v3667_v6, %v3603_v42 }
 0x3da   : > { %3806 = vadd.xlane.f32.xlu0 %v3805_v55  ;;  %3809 = vadd.xlane.f32.xlu1 %v3808_v24  ;;  %v3668_v55 = vld [vmem:[%s8820_s5 + $0x1f8] sm:$0xff]  ;;  %v3823_v24 = vadd.f32 %v8234_v0, %v8232_v4 }
 0x3db   : > { %v8238_v9 = vadd.f32 %v3668_v55, %v3604_v43 }
 0x3dd   : > { %v3826_v54 = vadd.f32 %v8238_v9, %v8236_v56 }
 0x3de   : > { %3812 = vadd.xlane.f32.xlu0 %v3811_v12  ;;  %3815 = vadd.xlane.f32.xlu1 %v3814_v41 }
 0x3e2   : > { %3818 = vadd.xlane.f32.xlu0 %v3817_v51  ;;  %3821 = vadd.xlane.f32.xlu1 %v3820_v53 }
 0x3e6   : > { %3824 = vadd.xlane.f32.xlu0 %v3823_v24  ;;  %3827 = vadd.xlane.f32.xlu1 %v3826_v54 }
 0x433   : > { %v3735_v40 = vpop.xlane.xlu0 %3734  ;;  %v3741_v46 = vpop.xlane.xlu1 %3740 }
 0x434   : > { %v3830_v12 = vmul.f32 0.00390625, %v3735_v40  ;;  %v3832_v47 = vmul.f32 0.00390625, %v3741_v46 }
 0x436   : > { %v8245_v15 = vsub.f32 %v7820_v7, %v3830_v12  ;;  %v8248_v41 = vsub.f32 %v7822_v62, %v3830_v12  ;;  %v8251_v11 = vsub.f32 %v7824_v60, %v3832_v47  ;;  %v8254_v42 = vsub.f32 %v7826_v16, %v3832_v47 }
 0x437   : > { %v3738_v43 = vpop.xlane.xlu0 %3737  ;;  %v3744_v61 = vpop.xlane.xlu1 %3743 }
 0x438   : > { %v3831_v6 = vmul.f32 0.00390625, %v3738_v43  ;;  %v3833_v55 = vmul.f32 0.00390625, %v3744_v61  ;;  %v3926_v51 = vmul.f32 %v8245_v15, %v8245_v15  ;;  %v3927_v7 = vmul.f32 %v8248_v41, %v8248_v41 }
 0x439   : > { %v3930_v62 = vmul.f32 %v8251_v11, %v8251_v11  ;;  %v3931_v60 = vmul.f32 %v8254_v42, %v8254_v42 }
 0x43a   : > { %v8265_v53 = vsub.f32 %v7834_v29, %v3831_v6  ;;  %v8268_v16 = vsub.f32 %v7836_v14, %v3831_v6  ;;  %v8271_v24 = vsub.f32 %v7857_v33, %v3833_v55  ;;  %v8274_v54 = vsub.f32 %v7859_v63, %v3833_v55 }
 0x43b   : > { %v3747_v40 = vpop.xlane.xlu0 %3746  ;;  %v3990_v46 = vadd.f32 %v3927_v7, %v3926_v51  ;;  %v3750_v12 = vpop.xlane.xlu1 %3749  ;;  %v3996_v14 = vadd.f32 %v3931_v60, %v3930_v62 }
 0x43c   : > { %9228 = vst [vmem:[#allocation63_spill] sm:$0xff] %v8274_v54  ;;  %v3834_v47 = vmul.f32 0.00390625, %v3747_v40  ;;  %v3835_v43 = vmul.f32 0.00390625, %v3750_v12  ;;  %v3928_v61 = vmul.f32 %v8265_v53, %v8265_v53  ;;  %v3929_v29 = vmul.f32 %v8268_v16, %v8268_v16 }
 0x43d   : > { %3991 = vadd.xlane.f32.xlu0 %v3990_v46  ;;  %v3932_v33 = vmul.f32 %v8271_v24, %v8271_v24  ;;  %v3933_v63 = vmul.f32 %v8274_v54, %v8274_v54 }
 0x43e   : > { %v8285_v6 = vsub.f32 %v7865_v26, %v3834_v47  ;;  %v8288_v55 = vsub.f32 %v7867_v59, %v3834_v47  ;;  %v8291_v51 = vsub.f32 %v7878_v45, %v3835_v43  ;;  %v8294_v7 = vsub.f32 %v7890_v32, %v3835_v43 }
 0x43f   : > { %v3753_v40 = vpop.xlane.xlu0 %3752  ;;  %v3993_v62 = vadd.f32 %v3929_v29, %v3928_v61  ;;  %v3756_v60 = vpop.xlane.xlu1 %3755  ;;  %v3999_v59 = vadd.f32 %v3933_v63, %v3932_v33 }
 0x440   : > { %v3836_v46 = vmul.f32 0.00390625, %v3753_v40  ;;  %v3837_v12 = vmul.f32 0.00390625, %v3756_v60  ;;  %v3934_v54 = vmul.f32 %v8285_v6, %v8285_v6  ;;  %v3935_v26 = vmul.f32 %v8288_v55, %v8288_v55 }
 0x441   : > { %3997 = vadd.xlane.f32.xlu0 %v3996_v14  ;;  %3994 = vadd.xlane.f32.xlu1 %v3993_v62  ;;  %v3936_v45 = vmul.f32 %v8291_v51, %v8291_v51  ;;  %v3937_v32 = vmul.f32 %v8294_v7, %v8294_v7 }
 0x442   : > { %v8305_v47 = vsub.f32 %v7894_v1, %v3836_v46  ;;  %v8308_v43 = vsub.f32 %v7896_v30, %v3836_v46  ;;  %v8311_v61 = vsub.f32 %v7905_v20, %v3837_v12  ;;  %v8314_v29 = vsub.f32 %v7907_v58, %v3837_v12 }
 0x443   : > { %v3759_v14 = vpop.xlane.xlu0 %3758  ;;  %v4002_v33 = vadd.f32 %v3935_v26, %v3934_v54  ;;  %v3762_v63 = vpop.xlane.xlu1 %3761  ;;  %v4005_v30 = vadd.f32 %v3937_v32, %v3936_v45 }
 0x444   : > { %v3838_v40 = vmul.f32 0.00390625, %v3759_v14  ;;  %v3839_v62 = vmul.f32 0.00390625, %v3762_v63  ;;  %v3938_v60 = vmul.f32 %v8305_v47, %v8305_v47  ;;  %v3939_v1 = vmul.f32 %v8308_v43, %v8308_v43 }
 0x445   : > { %4000 = vadd.xlane.f32.xlu1 %v3999_v59  ;;  %4003 = vadd.xlane.f32.xlu0 %v4002_v33  ;;  %v3940_v20 = vmul.f32 %v8311_v61, %v8311_v61  ;;  %v3941_v58 = vmul.f32 %v8314_v29, %v8314_v29 }
 0x446   : > { %v8325_v54 = vsub.f32 %v7930_v35, %v3838_v40  ;;  %v8328_v46 = vsub.f32 %v7932_v44, %v3838_v40  ;;  %v8331_v12 = vsub.f32 %v7944_v13, %v3839_v62  ;;  %v8334_v26 = vsub.f32 %v7946_v10, %v3839_v62 }
 0x447   : > { %v3765_v59 = vpop.xlane.xlu0 %3764  ;;  %v4008_v45 = vadd.f32 %v3939_v1, %v3938_v60  ;;  %v3768_v32 = vpop.xlane.xlu1 %3767  ;;  %v4011_v44 = vadd.f32 %v3941_v58, %v3940_v20 }
 0x448   : > { %v3840_v14 = vmul.f32 0.00390625, %v3765_v59  ;;  %v3841_v33 = vmul.f32 0.00390625, %v3768_v32  ;;  %v3942_v63 = vmul.f32 %v8325_v54, %v8325_v54  ;;  %v3943_v35 = vmul.f32 %v8328_v46, %v8328_v46 }
 0x449   : > { %4006 = vadd.xlane.f32.xlu1 %v4005_v30  ;;  %4009 = vadd.xlane.f32.xlu0 %v4008_v45  ;;  %v3944_v13 = vmul.f32 %v8331_v12, %v8331_v12  ;;  %v3945_v10 = vmul.f32 %v8334_v26, %v8334_v26 }
 0x44a   : > { %v8345_v40 = vsub.f32 %v7948_v36, %v3840_v14  ;;  %v8348_v62 = vsub.f32 %v7950_v39, %v3840_v14  ;;  %v8351_v60 = vsub.f32 %v7952_v18, %v3841_v33  ;;  %v8354_v1 = vsub.f32 %v7954_v22, %v3841_v33 }
 0x44b   : > { %v3771_v30 = vpop.xlane.xlu0 %3770  ;;  %v4014_v20 = vadd.f32 %v3943_v35, %v3942_v63  ;;  %v3774_v58 = vpop.xlane.xlu1 %3773  ;;  %v4017_v39 = vadd.f32 %v3945_v10, %v3944_v13 }
 0x44c   : > { %v3842_v59 = vmul.f32 0.00390625, %v3771_v30  ;;  %v3843_v45 = vmul.f32 0.00390625, %v3774_v58  ;;  %v3946_v32 = vmul.f32 %v8345_v40, %v8345_v40  ;;  %v3947_v36 = vmul.f32 %v8348_v62, %v8348_v62 }
 0x44d   : > { %4012 = vadd.xlane.f32.xlu1 %v4011_v44  ;;  %4015 = vadd.xlane.f32.xlu0 %v4014_v20  ;;  %v3948_v18 = vmul.f32 %v8351_v60, %v8351_v60  ;;  %v3949_v22 = vmul.f32 %v8354_v1, %v8354_v1 }
 0x44e   : > { %v8365_v14 = vsub.f32 %v7980_v57, %v3842_v59  ;;  %v8368_v33 = vsub.f32 %v7982_v2, %v3842_v59  ;;  %v8371_v63 = vsub.f32 %v7984_v37, %v3843_v45  ;;  %v8374_v35 = vsub.f32 %v7986_v21, %v3843_v45 }
 0x44f   : > { %v3777_v44 = vpop.xlane.xlu0 %3776  ;;  %v4020_v13 = vadd.f32 %v3947_v36, %v3946_v32  ;;  %v3780_v10 = vpop.xlane.xlu1 %3779  ;;  %v4023_v2 = vadd.f32 %v3949_v22, %v3948_v18 }
 0x450   : > { %v3844_v30 = vmul.f32 0.00390625, %v3777_v44  ;;  %v3845_v20 = vmul.f32 0.00390625, %v3780_v10  ;;  %v3950_v58 = vmul.f32 %v8365_v14, %v8365_v14  ;;  %v3951_v57 = vmul.f32 %v8368_v33, %v8368_v33 }
 0x451   : > { %4018 = vadd.xlane.f32.xlu1 %v4017_v39  ;;  %4021 = vadd.xlane.f32.xlu0 %v4020_v13  ;;  %v3952_v37 = vmul.f32 %v8371_v63, %v8371_v63  ;;  %v3953_v21 = vmul.f32 %v8374_v35, %v8374_v35 }
 0x452   : > { %v8385_v59 = vsub.f32 %v8018_v28, %v3844_v30  ;;  %v8388_v45 = vsub.f32 %v8026_v8, %v3844_v30  ;;  %v8391_v32 = vsub.f32 %v8028_v19, %v3845_v20  ;;  %v8394_v36 = vsub.f32 %v8030_v17, %v3845_v20  ;;  %v9233_v30 = vld [vmem:[#allocation47_spill] sm:$0xff] }
 0x453   : > { %v3783_v39 = vpop.xlane.xlu0 %3782  ;;  %v4026_v18 = vadd.f32 %v3951_v57, %v3950_v58  ;;  %v3786_v22 = vpop.xlane.xlu1 %3785  ;;  %v4029_v8 = vadd.f32 %v3953_v21, %v3952_v37  ;;  %v9234_v58 = vld [vmem:[#allocation48_spill] sm:$0xff] }
 0x454   : > { %9229 = vst [vmem:[#allocation64_spill] sm:$0xff] %v8385_v59  ;;  %9230 = vst [vmem:[#allocation65_spill] sm:$0xff] %v8388_v45  ;;  %v3846_v44 = vmul.f32 0.00390625, %v3783_v39  ;;  %v3847_v13 = vmul.f32 0.00390625, %v3786_v22  ;;  %v3954_v10 = vmul.f32 %v8385_v59, %v8385_v59  ;;  %v3955_v28 = vmul.f32 %v8388_v45, %v8388_v45  ;;  %v9235_v39 = vld [vmem:[#allocation49_spill] sm:$0xff]  ;;  %v9237_v59 = vld [vmem:[#allocation50_spill] sm:$0xff] }
 0x455   : > { %9231 = vst [vmem:[#allocation66_spill] sm:$0xff] %v8391_v32  ;;  %9232 = vst [vmem:[#allocation67_spill] sm:$0xff] %v8394_v36  ;;  %4024 = vadd.xlane.f32.xlu1 %v4023_v2  ;;  %4027 = vadd.xlane.f32.xlu0 %v4026_v18  ;;  %v3956_v19 = vmul.f32 %v8391_v32, %v8391_v32  ;;  %v3957_v17 = vmul.f32 %v8394_v36, %v8394_v36 }
 0x456   : > { %v8405_v20 = vsub.f32 %v9233_v30, %v3846_v44  ;;  %v8408_v57 = vsub.f32 %v9234_v58, %v3846_v44  ;;  %v8411_v22 = vsub.f32 %v9235_v39, %v3847_v13  ;;  %v8414_v45 = vsub.f32 %v9237_v59, %v3847_v13  ;;  %v9239_v13 = vld [vmem:[#allocation51_spill] sm:$0xff] }
 0x457   : > { %v3789_v2 = vpop.xlane.xlu0 %3788  ;;  %v4032_v37 = vadd.f32 %v3955_v28, %v3954_v10  ;;  %v3792_v21 = vpop.xlane.xlu1 %3791  ;;  %v4035_v44 = vadd.f32 %v3957_v17, %v3956_v19  ;;  %v9240_v28 = vld [vmem:[#allocation52_spill] sm:$0xff] }
 0x458   : > { %9236 = vst [vmem:[#allocation47_spill] sm:$0xff] %v8411_v22  ;;  %9238 = vst [vmem:[#allocation48_spill] sm:$0xff] %v8414_v45  ;;  %v3848_v18 = vmul.f32 0.00390625, %v3789_v2  ;;  %v3849_v32 = vmul.f32 0.00390625, %v3792_v21  ;;  %v3958_v36 = vmul.f32 %v8405_v20, %v8405_v20  ;;  %v3959_v30 = vmul.f32 %v8408_v57, %v8408_v57 }
 0x459   : > { %4030 = vadd.xlane.f32.xlu1 %v4029_v8  ;;  %4033 = vadd.xlane.f32.xlu0 %v4032_v37  ;;  %v3960_v58 = vmul.f32 %v8411_v22, %v8411_v22  ;;  %v3961_v59 = vmul.f32 %v8414_v45, %v8414_v45 }
 0x45a   : > { %v8425_v10 = vsub.f32 %v9239_v13, %v3848_v18  ;;  %v8428_v39 = vsub.f32 %v9240_v28, %v3848_v18  ;;  %v8431_v2 = vsub.f32 %v8068_v23, %v3849_v32  ;;  %v8434_v21 = vsub.f32 %v8072_v25, %v3849_v32  ;;  %v9247_v28 = vld [vmem:[#allocation54_spill] sm:$0xff] }
 0x45b   : > { %v3795_v8 = vpop.xlane.xlu0 %3794  ;;  %v4038_v19 = vadd.f32 %v3959_v30, %v3958_v36  ;;  %v3798_v17 = vpop.xlane.xlu1 %3797  ;;  %v4041_v18 = vadd.f32 %v3961_v59, %v3960_v58  ;;  %v9245_v36 = vld [vmem:[#allocation53_spill] sm:$0xff] }
 0x45c   : > { %9241 = vst [vmem:[#allocation49_spill] sm:$0xff] %v8428_v39  ;;  %9242 = vst [vmem:[#allocation50_spill] sm:$0xff] %v8431_v2  ;;  %v3850_v37 = vmul.f32 0.00390625, %v3795_v8  ;;  %v3851_v22 = vmul.f32 0.00390625, %v3798_v17  ;;  %v3962_v45 = vmul.f32 %v8425_v10, %v8425_v10  ;;  %v3963_v13 = vmul.f32 %v8428_v39, %v8428_v39  ;;  %v9249_v17 = vld [vmem:[#allocation55_spill] sm:$0xff] }
 0x45d   : > { %9243 = vst [vmem:[#allocation51_spill] sm:$0xff] %v8434_v21  ;;  %4036 = vadd.xlane.f32.xlu1 %v4035_v44  ;;  %4039 = vadd.xlane.f32.xlu0 %v4038_v19  ;;  %v3964_v23 = vmul.f32 %v8431_v2, %v8431_v2  ;;  %v3965_v25 = vmul.f32 %v8434_v21, %v8434_v21 }
 0x45e   : > { %v8445_v32 = vsub.f32 %v8096_v48, %v3850_v37  ;;  %v8448_v30 = vsub.f32 %v9245_v36, %v3850_v37  ;;  %v8451_v8 = vsub.f32 %v9247_v28, %v3851_v22  ;;  %v8454_v39 = vsub.f32 %v9249_v17, %v3851_v22  ;;  %v9251_v28 = vld [vmem:[#allocation56_spill] sm:$0xff] }
 0x45f   : > { %v3801_v44 = vpop.xlane.xlu0 %3800  ;;  %v4044_v58 = vadd.f32 %v3963_v13, %v3962_v45  ;;  %v3804_v59 = vpop.xlane.xlu1 %3803  ;;  %v4047_v37 = vadd.f32 %v3965_v25, %v3964_v23  ;;  %v9252_v13 = vld [vmem:[#allocation57_spill] sm:$0xff] }
 0x460   : > { %9244 = vst [vmem:[#allocation52_spill] sm:$0xff] %v8445_v32  ;;  %9246 = vst [vmem:[#allocation53_spill] sm:$0xff] %v8448_v30  ;;  %v3852_v19 = vmul.f32 0.00390625, %v3801_v44  ;;  %v3853_v2 = vmul.f32 0.00390625, %v3804_v59  ;;  %v3966_v21 = vmul.f32 %v8445_v32, %v8445_v32  ;;  %v3967_v48 = vmul.f32 %v8448_v30, %v8448_v30  ;;  %v9254_v44 = vld [vmem:[#allocation58_spill] sm:$0xff]  ;;  %v9256_v32 = vld [vmem:[#allocation59_spill] sm:$0xff] }
 0x461   : > { %9248 = vst [vmem:[#allocation54_spill] sm:$0xff] %v8451_v8  ;;  %9250 = vst [vmem:[#allocation55_spill] sm:$0xff] %v8454_v39  ;;  %4042 = vadd.xlane.f32.xlu1 %v4041_v18  ;;  %4045 = vadd.xlane.f32.xlu0 %v4044_v58  ;;  %v3968_v36 = vmul.f32 %v8451_v8, %v8451_v8  ;;  %v3969_v22 = vmul.f32 %v8454_v39, %v8454_v39 }
 0x462   : > { %v8465_v45 = vsub.f32 %v9251_v28, %v3852_v19  ;;  %v8468_v17 = vsub.f32 %v9252_v13, %v3852_v19  ;;  %v8471_v59 = vsub.f32 %v9254_v44, %v3853_v2  ;;  %v8474_v30 = vsub.f32 %v9256_v32, %v3853_v2  ;;  %v9258_v32 = vld [vmem:[#allocation60_spill] sm:$0xff] }
 0x463   : > { %v3807_v18 = vpop.xlane.xlu0 %3806  ;;  %v4050_v23 = vadd.f32 %v3967_v48, %v3966_v21  ;;  %v3810_v25 = vpop.xlane.xlu1 %3809  ;;  %v4053_v19 = vadd.f32 %v3969_v22, %v3968_v36  ;;  %v9259_v48 = vld [vmem:[#allocation61_spill] sm:$0xff] }
 0x464   : > { %9253 = vst [vmem:[#allocation56_spill] sm:$0xff] %v8468_v17  ;;  %9255 = vst [vmem:[#allocation57_spill] sm:$0xff] %v8471_v59  ;;  %v3854_v58 = vmul.f32 0.00390625, %v3807_v18  ;;  %v3855_v8 = vmul.f32 0.00390625, %v3810_v25  ;;  %v3970_v39 = vmul.f32 %v8465_v45, %v8465_v45  ;;  %v3971_v28 = vmul.f32 %v8468_v17, %v8468_v17  ;;  %v9260_v25 = vld [vmem:[#allocation62_spill] sm:$0xff] }
 0x465   : > { %9257 = vst [vmem:[#allocation58_spill] sm:$0xff] %v8474_v30  ;;  %4048 = vadd.xlane.f32.xlu1 %v4047_v37  ;;  %4051 = vadd.xlane.f32.xlu0 %v4050_v23  ;;  %v3972_v13 = vmul.f32 %v8471_v59, %v8471_v59  ;;  %v3973_v2 = vmul.f32 %v8474_v30, %v8474_v30 }
 0x466   : > { %v8485_v21 = vsub.f32 %v9258_v32, %v3854_v58  ;;  %v8488_v44 = vsub.f32 %v9259_v48, %v3854_v58  ;;  %v8491_v18 = vsub.f32 %v8157_v31, %v3855_v8  ;;  %v8494_v17 = vsub.f32 %v9260_v25, %v3855_v8 }
 0x467   : > { %v3813_v37 = vpop.xlane.xlu0 %3812  ;;  %v4056_v36 = vadd.f32 %v3971_v28, %v3970_v39  ;;  %v3816_v22 = vpop.xlane.xlu1 %3815  ;;  %v4059_v58 = vadd.f32 %v3973_v2, %v3972_v13 }
 0x468   : > { %v3856_v23 = vmul.f32 0.00390625, %v3813_v37  ;;  %v3857_v59 = vmul.f32 0.00390625, %v3816_v22  ;;  %v3974_v30 = vmul.f32 %v8485_v21, %v8485_v21  ;;  %v3975_v32 = vmul.f32 %v8488_v44, %v8488_v44 }
 0x469   : > { %4054 = vadd.xlane.f32.xlu1 %v4053_v19  ;;  %4057 = vadd.xlane.f32.xlu0 %v4056_v36  ;;  %v3976_v31 = vmul.f32 %v8491_v18, %v8491_v18  ;;  %v3977_v8 = vmul.f32 %v8494_v17, %v8494_v17 }
 0x46a   : > { %v8505_v39 = vsub.f32 %v8172_v3, %v3856_v23  ;;  %v8508_v28 = vsub.f32 %v8174_v34, %v3856_v23  ;;  %v8511_v48 = vsub.f32 %v8193_v49, %v3857_v59  ;;  %v8514_v25 = vsub.f32 %v8195_v38, %v3857_v59 }
 0x46b   : > { %v3819_v19 = vpop.xlane.xlu0 %3818  ;;  %v4062_v13 = vadd.f32 %v3975_v32, %v3974_v30  ;;  %v3822_v2 = vpop.xlane.xlu1 %3821  ;;  %v4065_v34 = vadd.f32 %v3977_v8, %v3976_v31 }
 0x46c   : > { %v3858_v37 = vmul.f32 0.00390625, %v3819_v19  ;;  %v3859_v36 = vmul.f32 0.00390625, %v3822_v2  ;;  %v3978_v22 = vmul.f32 %v8505_v39, %v8505_v39  ;;  %v3979_v3 = vmul.f32 %v8508_v28, %v8508_v28 }
 0x46d   : > { %4060 = vadd.xlane.f32.xlu1 %v4059_v58  ;;  %4063 = vadd.xlane.f32.xlu0 %v4062_v13  ;;  %v3980_v49 = vmul.f32 %v8511_v48, %v8511_v48  ;;  %v3981_v38 = vmul.f32 %v8514_v25, %v8514_v25 }
 0x46e   : > { %v8525_v30 = vsub.f32 %v8202_v27, %v3858_v37  ;;  %v8528_v59 = vsub.f32 %v8204_v5, %v3858_v37  ;;  %v8531_v23 = vsub.f32 %v8206_v50, %v3859_v36  ;;  %v8534_v32 = vsub.f32 %v8208_v52, %v3859_v36 }
 0x46f   : > { %v3825_v58 = vpop.xlane.xlu0 %3824  ;;  %v4068_v31 = vadd.f32 %v3979_v3, %v3978_v22  ;;  %v3828_v8 = vpop.xlane.xlu1 %3827  ;;  %v4071_v5 = vadd.f32 %v3981_v38, %v3980_v49 }
 0x470   : > { %v3860_v19 = vmul.f32 0.00390625, %v3825_v58  ;;  %v3861_v13 = vmul.f32 0.00390625, %v3828_v8  ;;  %v3982_v2 = vmul.f32 %v8525_v30, %v8525_v30  ;;  %v3983_v27 = vmul.f32 %v8528_v59, %v8528_v59 }
 0x471   : > { %4066 = vadd.xlane.f32.xlu1 %v4065_v34  ;;  %4069 = vadd.xlane.f32.xlu0 %v4068_v31  ;;  %v3984_v50 = vmul.f32 %v8531_v23, %v8531_v23  ;;  %v3985_v52 = vmul.f32 %v8534_v32, %v8534_v32 }
 0x472   : > { %v8545_v37 = vsub.f32 %v8232_v4, %v3860_v19  ;;  %v8548_v36 = vsub.f32 %v8234_v0, %v3860_v19  ;;  %v8551_v22 = vsub.f32 %v8236_v56, %v3861_v13  ;;  %v8554_v3 = vsub.f32 %v8238_v9, %v3861_v13 }
 0x473   : > { %v4074_v34 = vadd.f32 %v3983_v27, %v3982_v2  ;;  %v4077_v4 = vadd.f32 %v3985_v52, %v3984_v50 }
 0x474   : > { %9261 = vst [vmem:[#allocation59_spill] sm:$0xff] %v8545_v37  ;;  %9262 = vst [vmem:[#allocation60_spill] sm:$0xff] %v8548_v36  ;;  %v3986_v49 = vmul.f32 %v8545_v37, %v8545_v37  ;;  %v3987_v38 = vmul.f32 %v8548_v36, %v8548_v36  ;;  %v3988_v0 = vmul.f32 %v8551_v22, %v8551_v22 }
 0x475   : > { %9263 = vst [vmem:[#allocation61_spill] sm:$0xff] %v8551_v22  ;;  %9264 = vst [vmem:[#allocation62_spill] sm:$0xff] %v8554_v3  ;;  %4072 = vadd.xlane.f32.xlu1 %v4071_v5  ;;  %4075 = vadd.xlane.f32.xlu0 %v4074_v34  ;;  %v3989_v56 = vmul.f32 %v8554_v3, %v8554_v3 }
 0x476   : > { %v4080_v58 = vadd.f32 %v3987_v38, %v3986_v49 }
 0x477   : > { %v4083_v9 = vadd.f32 %v3989_v56, %v3988_v0  ;;  %v4246_v56 = vld [vmem:[%s8821_s6] sm:$0x3] }
 0x479   : > { %4078 = vadd.xlane.f32.xlu1 %v4077_v4  ;;  %4081 = vadd.xlane.f32.xlu0 %v4080_v58 }
 0x47d   : > { %4084 = vadd.xlane.f32.xlu1 %v4083_v9 }
 0x4c6   : > { %v3992_v31 = vpop.xlane.xlu0 %3991 }
 0x4c7   : > { %v4086_v8 = vmul.f32 0.00390625, %v3992_v31  ;;  %v4322_v31 = vld [vmem:[%s8822_s7] sm:$0x3] }
 0x4c9   : > { %v4118_v19 = vadd.f32 1e-12, %v4086_v8 }
 0x4ca   : > { %v3995_v13 = vpop.xlane.xlu1 %3994  ;;  %v3998_v2 = vpop.xlane.xlu0 %3997 }
 0x4cb   : > { %4910 = vrsqrt.f32 %v4118_v19  ;;  %v4087_v27 = vmul.f32 0.00390625, %v3995_v13  ;;  %v4088_v5 = vmul.f32 0.00390625, %v3998_v2  ;;  %v9266_v2 = vld [vmem:[#allocation8_spill] sm:$0xff] }
 0x4cd   : > { %v4119_v50 = vadd.f32 1e-12, %v4087_v27  ;;  %v4120_v52 = vadd.f32 1e-12, %v4088_v5  ;;  %v8574_v27 = vrot.slane %v4246_v56, %v9266_v2 }
 0x4ce   : > { %v4001_v34 = vpop.xlane.xlu1 %4000  ;;  %v4004_v22 = vpop.xlane.xlu0 %4003 }
 0x4cf   : > { %4912 = vrsqrt.f32 %v4119_v50  ;;  %v4089_v36 = vmul.f32 0.00390625, %v4001_v34  ;;  %v4090_v3 = vmul.f32 0.00390625, %v4004_v22  ;;  %v9265_v22 = vld [vmem:[#allocation7_spill] sm:$0xff] }
 0x4d0   : > { %4914 = vrsqrt.f32 %v4120_v52  ;;  %v8571_v13 = vrot.slane %v4246_v56, %v9265_v22  ;;  %v8577_v34 = vrot.slane %v4322_v31, %v9265_v22 }
 0x4d1   : > { %v4121_v49 = vadd.f32 1e-12, %v4089_v36  ;;  %v4122_v38 = vadd.f32 1e-12, %v4090_v3 }
 0x4d2   : > { %v4007_v4 = vpop.xlane.xlu1 %4006  ;;  %v4010_v0 = vpop.xlane.xlu0 %4009 }
 0x4d3   : > { %4916 = vrsqrt.f32 %v4121_v49  ;;  %v4091_v58 = vmul.f32 0.00390625, %v4007_v4  ;;  %v4092_v9 = vmul.f32 0.00390625, %v4010_v0  ;;  %v8580_v49 = vrot.slane %v4322_v31, %v9266_v2 }
 0x4d4   : > { %4918 = vrsqrt.f32 %v4122_v38 }
 0x4d5   : > { %v4123_v8 = vadd.f32 1e-12, %v4091_v58  ;;  %v4124_v19 = vadd.f32 1e-12, %v4092_v9 }
 0x4d6   : > { %v4013_v36 = vpop.xlane.xlu1 %4012  ;;  %v4016_v3 = vpop.xlane.xlu0 %4015 }
 0x4d7   : > { %4920 = vrsqrt.f32 %v4123_v8  ;;  %v4093_v5 = vmul.f32 0.00390625, %v4013_v36  ;;  %v4094_v50 = vmul.f32 0.00390625, %v4016_v3 }
 0x4d8   : > { %v4911_v52 = vpop.eup %4910  ;;  %4922 = vrsqrt.f32 %v4124_v19 }
 0x4d9   : > { %v4182_v38 = vmul.f32 %v4911_v52, %v8245_v15  ;;  %v4183_v4 = vmul.f32 %v4911_v52, %v8248_v41  ;;  %v4125_v0 = vadd.f32 1e-12, %v4093_v5  ;;  %v4126_v58 = vadd.f32 1e-12, %v4094_v50 }
 0x4da   : > { %v4019_v9 = vpop.xlane.xlu1 %4018  ;;  %v4022_v56 = vpop.xlane.xlu0 %4021 }
 0x4db   : > { %v4258_v8 = vmul.f32 %v8571_v13, %v4182_v38  ;;  %v4259_v36 = vmul.f32 %v8574_v27, %v4183_v4  ;;  %4924 = vrsqrt.f32 %v4125_v0  ;;  %v4095_v3 = vmul.f32 0.00390625, %v4019_v9 }
 0x4dc   : > { %v4913_v22 = vpop.eup %4912  ;;  %4926 = vrsqrt.f32 %v4126_v58  ;;  %v4096_v37 = vmul.f32 0.00390625, %v4022_v56 }
 0x4dd   : > { %v4915_v31 = vpop.eup %4914  ;;  %v4334_v19 = vadd.f32 %v8577_v34, %v4258_v8  ;;  %v4335_v15 = vadd.f32 %v8580_v49, %v4259_v36  ;;  %v4184_v41 = vmul.f32 %v4913_v22, %v8265_v53  ;;  %v4185_v2 = vmul.f32 %v4913_v22, %v8268_v16 }
 0x4de   : > { %v4186_v5 = vmul.f32 %v4915_v31, %v8251_v11  ;;  %v4187_v50 = vmul.f32 %v4915_v31, %v8254_v42  ;;  %v4127_v52 = vadd.f32 1e-12, %v4095_v3  ;;  %v4025_v38 = vpop.xlane.xlu1 %4024  ;;  %v4028_v4 = vpop.xlane.xlu0 %4027  ;;  %v4128_v9 = vadd.f32 1e-12, %v4096_v37  ;;  %v9267_v31 = vld [vmem:[#allocation63_spill] sm:$0xff] }
 0x4df   : > { %4398 = vst [vmem:[#allocation4] sm:$0xff] %v4334_v19  ;;  %4399 = vst [vmem:[#allocation4 + $0x8] sm:$0xff] %v4335_v15  ;;  %v4260_v0 = vmul.f32 %v8571_v13, %v4184_v41  ;;  %v4261_v58 = vmul.f32 %v8574_v27, %v4185_v2  ;;  %v4097_v56 = vmul.f32 0.00390625, %v4025_v38  ;;  %v4098_v11 = vmul.f32 0.00390625, %v4028_v4 }
 0x4e0   : > { %v4917_v8 = vpop.eup %4916  ;;  %v4262_v53 = vmul.f32 %v8571_v13, %v4186_v5  ;;  %v4263_v16 = vmul.f32 %v8574_v27, %v4187_v50  ;;  %4928 = vrsqrt.f32 %v4127_v52 }
 0x4e1   : > { %v4919_v36 = vpop.eup %4918  ;;  %v4336_v42 = vadd.f32 %v8577_v34, %v4260_v0  ;;  %v4337_v3 = vadd.f32 %v8580_v49, %v4261_v58  ;;  %v4188_v22 = vmul.f32 %v4917_v8, %v8271_v24  ;;  %v4189_v19 = vmul.f32 %v4917_v8, %v9267_v31 }
 0x4e2   : > { %v4338_v15 = vadd.f32 %v8577_v34, %v4262_v53  ;;  %v4339_v37 = vadd.f32 %v8580_v49, %v4263_v16  ;;  %v4190_v41 = vmul.f32 %v4919_v36, %v8285_v6  ;;  %v4191_v2 = vmul.f32 %v4919_v36, %v8288_v55  ;;  %v4031_v5 = vpop.xlane.xlu1 %4030  ;;  %v4034_v50 = vpop.xlane.xlu0 %4033 }
 0x4e3   : > { %4400 = vst [vmem:[#allocation4 + $0x10] sm:$0xff] %v4336_v42  ;;  %4401 = vst [vmem:[#allocation4 + $0x18] sm:$0xff] %v4337_v3  ;;  %v4264_v52 = vmul.f32 %v8571_v13, %v4188_v22  ;;  %v4265_v38 = vmul.f32 %v8574_v27, %v4189_v19  ;;  %4930 = vrsqrt.f32 %v4128_v9  ;;  %v4129_v24 = vadd.f32 1e-12, %v4097_v56 }
 0x4e4   : > { %v4921_v4 = vpop.eup %4920  ;;  %4402 = vst [vmem:[#allocation4 + $0x20] sm:$0xff] %v4338_v15  ;;  %4403 = vst [vmem:[#allocation4 + $0x28] sm:$0xff] %v4339_v37  ;;  %v4266_v0 = vmul.f32 %v8571_v13, %v4190_v41  ;;  %v4267_v58 = vmul.f32 %v8574_v27, %v4191_v2  ;;  %v4130_v6 = vadd.f32 1e-12, %v4098_v11  ;;  %v4099_v8 = vmul.f32 0.00390625, %v4031_v5 }
 0x4e5   : > { %v4923_v55 = vpop.eup %4922  ;;  %v4340_v53 = vadd.f32 %v8577_v34, %v4264_v52  ;;  %v4341_v16 = vadd.f32 %v8580_v49, %v4265_v38  ;;  %v4192_v36 = vmul.f32 %v4921_v4, %v8291_v51  ;;  %v4193_v42 = vmul.f32 %v4921_v4, %v8294_v7 }
 0x4e6   : > { %v4342_v9 = vadd.f32 %v8577_v34, %v4266_v0  ;;  %v4343_v56 = vadd.f32 %v8580_v49, %v4267_v58  ;;  %v4194_v3 = vmul.f32 %v4923_v55, %v8305_v47  ;;  %v4195_v22 = vmul.f32 %v4923_v55, %v8308_v43  ;;  %v4037_v31 = vpop.xlane.xlu1 %4036  ;;  %v4040_v11 = vpop.xlane.xlu0 %4039 }
 0x4e7   : > { %4404 = vst [vmem:[#allocation4 + $0x30] sm:$0xff] %v4340_v53  ;;  %4405 = vst [vmem:[#allocation4 + $0x38] sm:$0xff] %v4341_v16  ;;  %v4268_v19 = vmul.f32 %v8571_v13, %v4192_v36  ;;  %v4269_v15 = vmul.f32 %v8574_v27, %v4193_v42  ;;  %4932 = vrsqrt.f32 %v4129_v24  ;;  %v4131_v51 = vadd.f32 1e-12, %v4099_v8 }
 0x4e8   : > { %v4925_v37 = vpop.eup %4924  ;;  %4406 = vst [vmem:[#allocation4 + $0x40] sm:$0xff] %v4342_v9  ;;  %4407 = vst [vmem:[#allocation4 + $0x48] sm:$0xff] %v4343_v56  ;;  %v4270_v7 = vmul.f32 %v8571_v13, %v4194_v3  ;;  %v4271_v41 = vmul.f32 %v8574_v27, %v4195_v22  ;;  %4934 = vrsqrt.f32 %v4130_v6  ;;  %v4100_v47 = vmul.f32 0.00390625, %v4034_v50 }
 0x4e9   : > { %v4927_v43 = vpop.eup %4926  ;;  %v4344_v2 = vadd.f32 %v8577_v34, %v4268_v19  ;;  %v4345_v5 = vadd.f32 %v8580_v49, %v4269_v15  ;;  %v4196_v52 = vmul.f32 %v4925_v37, %v8311_v61  ;;  %v4197_v38 = vmul.f32 %v4925_v37, %v8314_v29 }
 0x4ea   : > { %v4346_v24 = vadd.f32 %v8577_v34, %v4270_v7  ;;  %v4347_v4 = vadd.f32 %v8580_v49, %v4271_v41  ;;  %v4198_v0 = vmul.f32 %v4927_v43, %v8325_v54  ;;  %v4199_v58 = vmul.f32 %v4927_v43, %v8328_v46  ;;  %v4043_v8 = vpop.xlane.xlu1 %4042  ;;  %v4046_v6 = vpop.xlane.xlu0 %4045 }
 0x4eb   : > { %4408 = vst [vmem:[#allocation4 + $0x50] sm:$0xff] %v4344_v2  ;;  %4409 = vst [vmem:[#allocation4 + $0x58] sm:$0xff] %v4345_v5  ;;  %v4272_v50 = vmul.f32 %v8571_v13, %v4196_v52  ;;  %v4273_v55 = vmul.f32 %v8574_v27, %v4197_v38  ;;  %4936 = vrsqrt.f32 %v4131_v51  ;;  %v4132_v61 = vadd.f32 1e-12, %v4100_v47 }
 0x4ec   : > { %4410 = vst [vmem:[#allocation4 + $0x60] sm:$0xff] %v4346_v24  ;;  %4411 = vst [vmem:[#allocation4 + $0x68] sm:$0xff] %v4347_v4  ;;  %v4274_v29 = vmul.f32 %v8571_v13, %v4198_v0  ;;  %v4275_v53 = vmul.f32 %v8574_v27, %v4199_v58  ;;  %v4101_v16 = vmul.f32 0.00390625, %v4037_v31  ;;  %v4102_v54 = vmul.f32 0.00390625, %v4040_v11 }
 0x4ed   : > { %v4929_v36 = vpop.eup %4928  ;;  %v4348_v46 = vadd.f32 %v8577_v34, %v4272_v50  ;;  %v4349_v42 = vadd.f32 %v8580_v49, %v4273_v55  ;;  %4938 = vrsqrt.f32 %v4132_v61  ;;  %v4103_v9 = vmul.f32 0.00390625, %v4043_v8 }
 0x4ee   : > { %v4350_v56 = vadd.f32 %v8577_v34, %v4274_v29  ;;  %v4351_v3 = vadd.f32 %v8580_v49, %v4275_v53  ;;  %v4200_v22 = vmul.f32 %v4929_v36, %v8331_v12  ;;  %v4201_v19 = vmul.f32 %v4929_v36, %v8334_v26  ;;  %v4049_v15 = vpop.xlane.xlu1 %4048  ;;  %v4052_v51 = vpop.xlane.xlu0 %4051 }
 0x4ef   : > { %4412 = vst [vmem:[#allocation4 + $0x70] sm:$0xff] %v4348_v46  ;;  %4413 = vst [vmem:[#allocation4 + $0x78] sm:$0xff] %v4349_v42  ;;  %v4133_v31 = vadd.f32 1e-12, %v4101_v16  ;;  %v4134_v11 = vadd.f32 1e-12, %v4102_v54 }
 0x4f0   : > { %v4135_v37 = vadd.f32 1e-12, %v4103_v9  ;;  %v4931_v7 = vpop.eup %4930  ;;  %4414 = vst [vmem:[#allocation4 + $0x80] sm:$0xff] %v4350_v56  ;;  %4415 = vst [vmem:[#allocation4 + $0x88] sm:$0xff] %v4351_v3  ;;  %v4276_v41 = vmul.f32 %v8571_v13, %v4200_v22  ;;  %v4277_v47 = vmul.f32 %v8574_v27, %v4201_v19  ;;  %v4104_v43 = vmul.f32 0.00390625, %v4046_v6 }
 0x4f1   : > { %v4105_v2 = vmul.f32 0.00390625, %v4049_v15  ;;  %v4202_v12 = vmul.f32 %v4931_v7, %v8345_v40  ;;  %v4203_v26 = vmul.f32 %v4931_v7, %v8348_v62  ;;  %4940 = vrsqrt.f32 %v4133_v31 }
 0x4f2   : > { %v4106_v5 = vmul.f32 0.00390625, %v4052_v51  ;;  %v4352_v52 = vadd.f32 %v8577_v34, %v4276_v41  ;;  %v4353_v38 = vadd.f32 %v8580_v49, %v4277_v47  ;;  %4942 = vrsqrt.f32 %v4134_v11  ;;  %v4055_v4 = vpop.xlane.xlu1 %4054  ;;  %v4058_v0 = vpop.xlane.xlu0 %4057 }
 0x4f3   : > { %v4136_v24 = vadd.f32 1e-12, %v4104_v43  ;;  %v4278_v58 = vmul.f32 %v8571_v13, %v4202_v12  ;;  %v4279_v8 = vmul.f32 %v8574_v27, %v4203_v26  ;;  %4944 = vrsqrt.f32 %v4135_v37 }
 0x4f4   : > { %v4137_v6 = vadd.f32 1e-12, %v4105_v2  ;;  %v4933_v50 = vpop.eup %4932  ;;  %4416 = vst [vmem:[#allocation4 + $0x90] sm:$0xff] %v4352_v52  ;;  %4417 = vst [vmem:[#allocation4 + $0x98] sm:$0xff] %v4353_v38  ;;  %v4138_v40 = vadd.f32 1e-12, %v4106_v5 }
 0x4f5   : > { %4946 = vrsqrt.f32 %v4136_v24  ;;  %v4107_v62 = vmul.f32 0.00390625, %v4055_v4  ;;  %v4108_v55 = vmul.f32 0.00390625, %v4058_v0  ;;  %v4935_v61 = vpop.eup %4934  ;;  %v4354_v29 = vadd.f32 %v8577_v34, %v4278_v58  ;;  %v9268_v5 = vld [vmem:[#allocation64_spill] sm:$0xff] }
 0x4f6   : > { %v4355_v53 = vadd.f32 %v8580_v49, %v4279_v8  ;;  %v4204_v16 = vmul.f32 %v4933_v50, %v8351_v60  ;;  %v4205_v54 = vmul.f32 %v4933_v50, %v8354_v1  ;;  %v4206_v36 = vmul.f32 %v4935_v61, %v8365_v14  ;;  %v4061_v9 = vpop.xlane.xlu1 %4060  ;;  %v4064_v56 = vpop.xlane.xlu0 %4063 }
 0x4f7   : > { %v4207_v46 = vmul.f32 %v4935_v61, %v8368_v33  ;;  %4948 = vrsqrt.f32 %v4137_v6  ;;  %v4139_v42 = vadd.f32 1e-12, %v4107_v62  ;;  %4418 = vst [vmem:[#allocation4 + $0xa0] sm:$0xff] %v4354_v29  ;;  %v4140_v19 = vadd.f32 1e-12, %v4108_v55 }
 0x4f8   : > { %4419 = vst [vmem:[#allocation4 + $0xa8] sm:$0xff] %v4355_v53  ;;  %v4280_v3 = vmul.f32 %v8571_v13, %v4204_v16  ;;  %v4281_v22 = vmul.f32 %v8574_v27, %v4205_v54  ;;  %4950 = vrsqrt.f32 %v4138_v40  ;;  %v4937_v15 = vpop.eup %4936  ;;  %v4282_v60 = vmul.f32 %v8571_v13, %v4206_v36  ;;  %v9270_v54 = vld [vmem:[#allocation66_spill] sm:$0xff] }
 0x4f9   : > { %v4283_v1 = vmul.f32 %v8574_v27, %v4207_v46  ;;  %4952 = vrsqrt.f32 %v4139_v42  ;;  %v4109_v14 = vmul.f32 0.00390625, %v4061_v9  ;;  %v4208_v31 = vmul.f32 %v4937_v15, %v8371_v63  ;;  %v9269_v63 = vld [vmem:[#allocation65_spill] sm:$0xff]  ;;  %v9271_v46 = vld [vmem:[#allocation67_spill] sm:$0xff] }
 0x4fa   : > { %v4356_v33 = vadd.f32 %v8577_v34, %v4280_v3  ;;  %v4357_v51 = vadd.f32 %v8580_v49, %v4281_v22  ;;  %v4209_v11 = vmul.f32 %v4937_v15, %v8374_v35  ;;  %v4939_v37 = vpop.eup %4938  ;;  %v4358_v7 = vadd.f32 %v8577_v34, %v4282_v60  ;;  %v4067_v43 = vpop.xlane.xlu1 %4066 }
 0x4fb   : > { %v4359_v41 = vadd.f32 %v8580_v49, %v4283_v1  ;;  %4954 = vrsqrt.f32 %v4140_v19  ;;  %v4141_v47 = vadd.f32 1e-12, %v4109_v14  ;;  %v4070_v2 = vpop.xlane.xlu0 %4069  ;;  %v4284_v12 = vmul.f32 %v8571_v13, %v4208_v31  ;;  %v9272_v1 = vld [vmem:[#allocation47_spill] sm:$0xff] }
 0x4fc   : > { %4420 = vst [vmem:[#allocation4 + $0xb0] sm:$0xff] %v4356_v33  ;;  %4421 = vst [vmem:[#allocation4 + $0xb8] sm:$0xff] %v4357_v51  ;;  %v4285_v26 = vmul.f32 %v8574_v27, %v4209_v11  ;;  %v4210_v52 = vmul.f32 %v4939_v37, %v9268_v5  ;;  %v4211_v38 = vmul.f32 %v4939_v37, %v9269_v63  ;;  %v4110_v35 = vmul.f32 0.00390625, %v4064_v56  ;;  %v9273_v33 = vld [vmem:[#allocation48_spill] sm:$0xff]  ;;  %v9274_v11 = vld [vmem:[#allocation49_spill] sm:$0xff] }
 0x4fd   : > { %4422 = vst [vmem:[#allocation4 + $0xc0] sm:$0xff] %v4358_v7  ;;  %4423 = vst [vmem:[#allocation4 + $0xc8] sm:$0xff] %v4359_v41  ;;  %4956 = vrsqrt.f32 %v4141_v47  ;;  %v4111_v24 = vmul.f32 0.00390625, %v4067_v43  ;;  %v4112_v4 = vmul.f32 0.00390625, %v4070_v2  ;;  %v4360_v0 = vadd.f32 %v8577_v34, %v4284_v12 }
 0x4fe   : > { %v4361_v58 = vadd.f32 %v8580_v49, %v4285_v26  ;;  %v4286_v8 = vmul.f32 %v8571_v13, %v4210_v52  ;;  %v4287_v6 = vmul.f32 %v8574_v27, %v4211_v38  ;;  %v4941_v50 = vpop.eup %4940  ;;  %v4142_v40 = vadd.f32 1e-12, %v4110_v35  ;;  %v4073_v61 = vpop.xlane.xlu1 %4072 }
 0x4ff   : > { %v8670_v62 = vadd.f32 1e-12, %v4111_v24  ;;  %v8672_v55 = vadd.f32 1e-12, %v4112_v4  ;;  %v4943_v29 = vpop.eup %4942  ;;  %4424 = vst [vmem:[#allocation4 + $0xd0] sm:$0xff] %v4360_v0  ;;  %v4212_v36 = vmul.f32 %v4941_v50, %v9270_v54  ;;  %v4213_v42 = vmul.f32 %v4941_v50, %v9271_v46  ;;  %v9275_v24 = vld [vmem:[#allocation50_spill] sm:$0xff] }
 0x500   : > { %4425 = vst [vmem:[#allocation4 + $0xd8] sm:$0xff] %v4361_v58  ;;  %v4362_v53 = vadd.f32 %v8577_v34, %v4286_v8  ;;  %v4363_v16 = vadd.f32 %v8580_v49, %v4287_v6  ;;  %v4945_v9 = vpop.eup %4944  ;;  %v4214_v56 = vmul.f32 %v4943_v29, %v8405_v20  ;;  %v4215_v3 = vmul.f32 %v4943_v29, %v8408_v57  ;;  %v9276_v0 = vld [vmem:[#allocation51_spill] sm:$0xff]  ;;  %v9277_v50 = vld [vmem:[#allocation52_spill] sm:$0xff]  ;;  %v9279_v46 = vld [vmem:[#allocation54_spill] sm:$0xff] }
 0x501   : > { %4958 = vrsqrt.f32 %v4142_v40  ;;  %v8680_v22 = vmul.f32 0.00390625, %v4073_v61  ;;  %v4288_v15 = vmul.f32 %v8571_v13, %v4212_v36  ;;  %v4289_v60 = vmul.f32 %v8574_v27, %v4213_v42  ;;  %v9278_v61 = vld [vmem:[#allocation53_spill] sm:$0xff] }
 0x502   : > { %v4947_v19 = vpop.eup %4946  ;;  %4426 = vst [vmem:[#allocation4 + $0xe0] sm:$0xff] %v4362_v53  ;;  %4427 = vst [vmem:[#allocation4 + $0xe8] sm:$0xff] %v4363_v16  ;;  %v4216_v14 = vmul.f32 %v4945_v9, %v9272_v1  ;;  %v4217_v51 = vmul.f32 %v4945_v9, %v9273_v33  ;;  %v4290_v31 = vmul.f32 %v8571_v13, %v4214_v56  ;;  %v4076_v53 = vpop.xlane.xlu0 %4075  ;;  %v9280_v9 = vld [vmem:[#allocation55_spill] sm:$0xff]  ;;  %v9281_v1 = vld [vmem:[#allocation56_spill] sm:$0xff]  ;;  %4960 = vrsqrt.f32 %v8670_v62 }
 0x503   : > { %v4291_v20 = vmul.f32 %v8574_v27, %v4215_v3  ;;  %v4218_v57 = vmul.f32 %v4947_v19, %v8425_v10  ;;  %v4219_v37 = vmul.f32 %v4947_v19, %v9274_v11  ;;  %v4364_v41 = vadd.f32 %v8577_v34, %v4288_v15  ;;  %v4079_v3 = vpop.xlane.xlu1 %4078 }
 0x504   : > { %v4949_v7 = vpop.eup %4948  ;;  %v4365_v47 = vadd.f32 %v8580_v49, %v4289_v60  ;;  %v4292_v43 = vmul.f32 %v8571_v13, %v4216_v14  ;;  %v4293_v2 = vmul.f32 %v8574_v27, %v4217_v51  ;;  %v4366_v26 = vadd.f32 %v8577_v34, %v4290_v31 }
 0x505   : > { %v4951_v12 = vpop.eup %4950  ;;  %v4367_v5 = vadd.f32 %v8580_v49, %v4291_v20  ;;  %v4294_v52 = vmul.f32 %v8571_v13, %v4218_v57  ;;  %v4295_v10 = vmul.f32 %v8574_v27, %v4219_v37  ;;  %4428 = vst [vmem:[#allocation4 + $0xf0] sm:$0xff] %v4364_v41  ;;  %v4220_v4 = vmul.f32 %v4949_v7, %v9275_v24 }
 0x506   : > { %v4953_v63 = vpop.eup %4952  ;;  %4429 = vst [vmem:[#allocation4 + $0xf8] sm:$0xff] %v4365_v47  ;;  %v4368_v38 = vadd.f32 %v8577_v34, %v4292_v43  ;;  %v4369_v35 = vadd.f32 %v8580_v49, %v4293_v2  ;;  %v4221_v58 = vmul.f32 %v4949_v7, %v9276_v0  ;;  %4430 = vst [vmem:[#allocation4 + $0x100] sm:$0xff] %v4366_v26  ;;  %v9282_v43 = vld [vmem:[#allocation57_spill] sm:$0xff]  ;;  %4962 = vrsqrt.f32 %v8672_v55 }
 0x507   : > { %4431 = vst [vmem:[#allocation4 + $0x108] sm:$0xff] %v4367_v5  ;;  %v4370_v8 = vadd.f32 %v8577_v34, %v4294_v52  ;;  %v4371_v6 = vadd.f32 %v8580_v49, %v4295_v10  ;;  %v4222_v40 = vmul.f32 %v4951_v12, %v9277_v50  ;;  %v4223_v29 = vmul.f32 %v4951_v12, %v9278_v61  ;;  %v9283_v12 = vld [vmem:[#allocation58_spill] sm:$0xff]  ;;  %v4085_v0 = vpop.xlane.xlu1 %4084 }
 0x508   : > { %v4955_v16 = vpop.eup %4954  ;;  %4432 = vst [vmem:[#allocation4 + $0x110] sm:$0xff] %v4368_v38  ;;  %4433 = vst [vmem:[#allocation4 + $0x118] sm:$0xff] %v4369_v35  ;;  %v4296_v54 = vmul.f32 %v8571_v13, %v4220_v4  ;;  %v4297_v36 = vmul.f32 %v8574_v27, %v4221_v58  ;;  %v4224_v42 = vmul.f32 %v4953_v63, %v9279_v46  ;;  %v4145_v10 = vadd.f32 1e-12, %v8680_v22 }
 0x509   : > { %v4225_v56 = vmul.f32 %v4953_v63, %v9280_v9  ;;  %4434 = vst [vmem:[#allocation4 + $0x120] sm:$0xff] %v4370_v8  ;;  %4435 = vst [vmem:[#allocation4 + $0x128] sm:$0xff] %v4371_v6  ;;  %v4298_v19 = vmul.f32 %v8571_v13, %v4222_v40  ;;  %v4299_v15 = vmul.f32 %v8574_v27, %v4223_v29  ;;  %v4082_v63 = vpop.xlane.xlu0 %4081  ;;  %v4114_v4 = vmul.f32 0.00390625, %v4076_v53 }
 0x50a   : > { %v4226_v60 = vmul.f32 %v4955_v16, %v8465_v45  ;;  %v4227_v14 = vmul.f32 %v4955_v16, %v9281_v1  ;;  %v4957_v33 = vpop.eup %4956  ;;  %v4372_v51 = vadd.f32 %v8577_v34, %v4296_v54  ;;  %v4373_v31 = vadd.f32 %v8580_v49, %v4297_v36 }
 0x50b   : > { %v4300_v20 = vmul.f32 %v8571_v13, %v4224_v42  ;;  %v4301_v57 = vmul.f32 %v8574_v27, %v4225_v56  ;;  %v4374_v11 = vadd.f32 %v8577_v34, %v4298_v19  ;;  %v4375_v37 = vadd.f32 %v8580_v49, %v4299_v15 }
 0x50c   : > { %v4302_v7 = vmul.f32 %v8571_v13, %v4226_v60  ;;  %v4303_v41 = vmul.f32 %v8574_v27, %v4227_v14  ;;  %4436 = vst [vmem:[#allocation4 + $0x130] sm:$0xff] %v4372_v51  ;;  %4437 = vst [vmem:[#allocation4 + $0x138] sm:$0xff] %v4373_v31  ;;  %v4228_v2 = vmul.f32 %v4957_v33, %v9282_v43  ;;  %4964 = vrsqrt.f32 %v4145_v10 }
 0x50d   : > { %v4376_v45 = vadd.f32 %v8577_v34, %v4300_v20  ;;  %v4377_v47 = vadd.f32 %v8580_v49, %v4301_v57  ;;  %v4229_v26 = vmul.f32 %v4957_v33, %v9283_v12  ;;  %4438 = vst [vmem:[#allocation4 + $0x140] sm:$0xff] %v4374_v11  ;;  %4439 = vst [vmem:[#allocation4 + $0x148] sm:$0xff] %v4375_v37  ;;  %v4115_v22 = vmul.f32 0.00390625, %v4079_v3  ;;  %v9284_v12 = vld [vmem:[#allocation59_spill] sm:$0xff] }
 0x50e   : > { %v4378_v5 = vadd.f32 %v8577_v34, %v4302_v7  ;;  %v4379_v52 = vadd.f32 %v8580_v49, %v4303_v41  ;;  %v4959_v38 = vpop.eup %4958  ;;  %v4304_v35 = vmul.f32 %v8571_v13, %v4228_v2  ;;  %v4146_v50 = vadd.f32 1e-12, %v4114_v4 }
 0x50f   : > { %4440 = vst [vmem:[#allocation4 + $0x150] sm:$0xff] %v4376_v45  ;;  %4441 = vst [vmem:[#allocation4 + $0x158] sm:$0xff] %v4377_v47  ;;  %v4305_v24 = vmul.f32 %v8574_v27, %v4229_v26  ;;  %v4230_v58 = vmul.f32 %v4959_v38, %v8485_v21  ;;  %v4231_v62 = vmul.f32 %v4959_v38, %v8488_v44  ;;  %v4116_v40 = vmul.f32 0.00390625, %v4082_v63  ;;  %v4961_v36 = vpop.eup %4960  ;;  %v9285_v26 = vld [vmem:[#allocation60_spill] sm:$0xff] }
 0x510   : > { %4442 = vst [vmem:[#allocation4 + $0x160] sm:$0xff] %v4378_v5  ;;  %4443 = vst [vmem:[#allocation4 + $0x168] sm:$0xff] %v4379_v52  ;;  %v4380_v8 = vadd.f32 %v8577_v34, %v4304_v35  ;;  %v4147_v29 = vadd.f32 1e-12, %v4115_v22  ;;  %v4117_v53 = vmul.f32 0.00390625, %v4085_v0  ;;  %4966 = vrsqrt.f32 %v4146_v50 }
 0x511   : > { %v4381_v6 = vadd.f32 %v8580_v49, %v4305_v24  ;;  %v4306_v61 = vmul.f32 %v8571_v13, %v4230_v58  ;;  %v4307_v55 = vmul.f32 %v8574_v27, %v4231_v62  ;;  %v4148_v21 = vadd.f32 1e-12, %v4116_v40 }
 0x512   : > { %4444 = vst [vmem:[#allocation4 + $0x170] sm:$0xff] %v4380_v8  ;;  %4968 = vrsqrt.f32 %v4147_v29  ;;  %v4149_v54 = vadd.f32 1e-12, %v4117_v53  ;;  %v4232_v42 = vmul.f32 %v4961_v36, %v8491_v18  ;;  %v4233_v9 = vmul.f32 %v4961_v36, %v8494_v17 }
 0x513   : > { %4445 = vst [vmem:[#allocation4 + $0x178] sm:$0xff] %v4381_v6  ;;  %v4382_v44 = vadd.f32 %v8577_v34, %v4306_v61  ;;  %v4383_v16 = vadd.f32 %v8580_v49, %v4307_v55  ;;  %4970 = vrsqrt.f32 %v4148_v21  ;;  %v4963_v46 = vpop.eup %4962 }
 0x514   : > { %4972 = vrsqrt.f32 %v4149_v54  ;;  %v4234_v3 = vmul.f32 %v4963_v46, %v8505_v39  ;;  %v4235_v19 = vmul.f32 %v4963_v46, %v8508_v28  ;;  %v4308_v15 = vmul.f32 %v8571_v13, %v4232_v42 }
 0x515   : > { %4446 = vst [vmem:[#allocation4 + $0x180] sm:$0xff] %v4382_v44  ;;  %4447 = vst [vmem:[#allocation4 + $0x188] sm:$0xff] %v4383_v16  ;;  %v4309_v60 = vmul.f32 %v8574_v27, %v4233_v9 }
 0x516   : > { %v4310_v33 = vmul.f32 %v8571_v13, %v4234_v3  ;;  %v4311_v51 = vmul.f32 %v8574_v27, %v4235_v19  ;;  %v4384_v17 = vadd.f32 %v8577_v34, %v4308_v15 }
 0x517   : > { %v4385_v31 = vadd.f32 %v8580_v49, %v4309_v60 }
 0x518   : > { %v4386_v57 = vadd.f32 %v8577_v34, %v4310_v33  ;;  %4448 = vst [vmem:[#allocation4 + $0x190] sm:$0xff] %v4384_v17 }
 0x519   : > { %v4965_v56 = vpop.eup %4964  ;;  %4449 = vst [vmem:[#allocation4 + $0x198] sm:$0xff] %v4385_v31 }
 0x51a   : > { %v4236_v1 = vmul.f32 %v4965_v56, %v8511_v48  ;;  %v4237_v14 = vmul.f32 %v4965_v56, %v8514_v25  ;;  %v4387_v48 = vadd.f32 %v8580_v49, %v4311_v51  ;;  %4450 = vst [vmem:[#allocation4 + $0x1a0] sm:$0xff] %v4386_v57 }
 0x51c   : > { %v4312_v39 = vmul.f32 %v8571_v13, %v4236_v1  ;;  %v4313_v28 = vmul.f32 %v8574_v27, %v4237_v14  ;;  %4451 = vst [vmem:[#allocation4 + $0x1a8] sm:$0xff] %v4387_v48 }
 0x51d   : > { %v4967_v18 = vpop.eup %4966 }
 0x51e   : > { %v4238_v25 = vmul.f32 %v4967_v18, %v8525_v30  ;;  %v4239_v11 = vmul.f32 %v4967_v18, %v8528_v59  ;;  %v4388_v7 = vadd.f32 %v8577_v34, %v4312_v39  ;;  %v4389_v41 = vadd.f32 %v8580_v49, %v4313_v28 }
 0x51f   : > { %v4969_v20 = vpop.eup %4968 }
 0x520   : > { %v4971_v37 = vpop.eup %4970  ;;  %v4240_v45 = vmul.f32 %v4969_v20, %v8531_v23  ;;  %v4241_v47 = vmul.f32 %v4969_v20, %v8534_v32  ;;  %v4314_v2 = vmul.f32 %v8571_v13, %v4238_v25  ;;  %v4315_v30 = vmul.f32 %v8574_v27, %v4239_v11  ;;  %4452 = vst [vmem:[#allocation4 + $0x1b0] sm:$0xff] %v4388_v7  ;;  %v9286_v23 = vld [vmem:[#allocation61_spill] sm:$0xff]  ;;  %v9287_v32 = vld [vmem:[#allocation62_spill] sm:$0xff] }
 0x521   : > { %v4973_v43 = vpop.eup %4972  ;;  %v4242_v59 = vmul.f32 %v4971_v37, %v9284_v12  ;;  %v4243_v5 = vmul.f32 %v4971_v37, %v9285_v26  ;;  %4453 = vst [vmem:[#allocation4 + $0x1b8] sm:$0xff] %v4389_v41 }
 0x522   : > { %v4316_v52 = vmul.f32 %v8571_v13, %v4240_v45  ;;  %v4317_v10 = vmul.f32 %v8574_v27, %v4241_v47  ;;  %v4244_v63 = vmul.f32 %v4973_v43, %v9286_v23  ;;  %v4245_v38 = vmul.f32 %v4973_v43, %v9287_v32 }
 0x523   : > { %v4390_v35 = vadd.f32 %v8577_v34, %v4314_v2  ;;  %v4391_v24 = vadd.f32 %v8580_v49, %v4315_v30  ;;  %v4318_v4 = vmul.f32 %v8571_v13, %v4242_v59  ;;  %v4319_v0 = vmul.f32 %v8574_v27, %v4243_v5 }
 0x524   : > { %v4392_v58 = vadd.f32 %v8577_v34, %v4316_v52  ;;  %v4393_v62 = vadd.f32 %v8580_v49, %v4317_v10  ;;  %v4320_v22 = vmul.f32 %v8571_v13, %v4244_v63  ;;  %v4321_v8 = vmul.f32 %v8574_v27, %v4245_v38 }
 0x525   : > { %4454 = vst [vmem:[#allocation4 + $0x1c0] sm:$0xff] %v4390_v35  ;;  %4455 = vst [vmem:[#allocation4 + $0x1c8] sm:$0xff] %v4391_v24  ;;  %v4394_v6 = vadd.f32 %v8577_v34, %v4318_v4  ;;  %v4395_v50 = vadd.f32 %v8580_v49, %v4319_v0 }
 0x526   : > { %4456 = vst [vmem:[#allocation4 + $0x1d0] sm:$0xff] %v4392_v58  ;;  %4457 = vst [vmem:[#allocation4 + $0x1d8] sm:$0xff] %v4393_v62  ;;  %v4396_v40 = vadd.f32 %v8577_v34, %v4320_v22  ;;  %v4397_v61 = vadd.f32 %v8580_v49, %v4321_v8 }
 0x527   : > { %4458 = vst [vmem:[#allocation4 + $0x1e0] sm:$0xff] %v4394_v6  ;;  %4459 = vst [vmem:[#allocation4 + $0x1e8] sm:$0xff] %v4395_v50 }
 0x528   : > { %4460 = vst [vmem:[#allocation4 + $0x1f0] sm:$0xff] %v4396_v40  ;;  %4461 = vst [vmem:[#allocation4 + $0x1f8] sm:$0xff] %v4397_v61 }
 0x529 PF: > { %p8785_p13 = scmp.eq.s32.totalorder %s4582_s10, 1  ;;  %s5043_s20 = smov [#allocation4]  }
 0x52a   : > { %s4472_s21 = sshll.u32 %s5043_s20, 4  ;;  %s4473_s21 = int_to_ptr.vmem [resolvable:$true] %s4472_s21 }
 0x52b   : > { %s4974_s22 = scalar_lea.vmem %s4473_s21, 8192  ;;  %p4981_p3 = scmp.lt.s32.totalorder %s4473_s21, %s4473_s21 }
 0x52c   : > { %p4975_p0 = scmp.ne.s32.totalorder %s4473_s21, %s4974_s22  ;;  %p4982_p4 = scmp.lt.s32.totalorder %s4974_s22, %s4974_s22 }
 0x52e   : > { %p4976_p1 = pnand %p4975_p0, %p8785_p13  ;;  %p4983_p5 = por %p4982_p4, %p4981_p3 }
 0x530   : > { %p4977_p2 = pneg %p4976_p1 }
 0x532   : > { %p4984_p6 = pnand %p4983_p5, %p4977_p2 }
 0x534   : > { %4987 = shalt.err (!%p4984_p6)
}
 0x535   : > { %s5044_s24 = smov 256   ;;  %s5045_s10 = smov 16  }
 0x536   : > { %4605 = dma.vmem_to_hbm [thread:$0]  (%p8785_p13), %s4473_s21, 8192, %s8823_s8, [#allocation5], %s5044_s24, %s5044_s24, %s5045_s10  }
 0x537   : > { %5019 = dma.done.wait (%p8785_p13), [#allocation5], 8192  }
 0x538   : > { %5021 = vsyncadd (%p8785_p13), [#allocation5], 4294959104 }
 0x539 PF: > { %s19_s9 = sadd.s32 1, %s5040_s9   ;;  %s9289_s27 = smov %s5028_s28 }
 0x53a   : > { %p16_p7 = scmp.ge.s32.totalorder %s19_s9, 4   ;;  %s9290_s28 = smov %s5127_s14 }
 0x53b   : > { %s9291_s29 = smov %s5036_s30  ;;  %s9292_s30 = smov %s9294_s11 }
 0x53c   :  { %18 = sbr.rel (!%p16_p7) target bundleno = 3 (0x3), region = 128 }
 0x541   :  { %4488 = vsyncpa [#allocation5], 1 }
 0x542   :  { %4490 = vsyncpa [#allocation5 + $0x1], 1 }

</bundles_post_ra>
